<compile_context>
chip_gen: v6e
topology: v6e:2x2x1
jax: 0.10.0
libtpu: 0.0.40
codegen_flags: <defaults>
</compile_context>

<pallas_src>
import functools

import jax
import jax.numpy as jnp
from jax.experimental import pallas as pl
from jax.experimental.pallas import tpu as pltpu


_TAPS = tuple((dy, dx) for dy in range(3) for dx in range(3))


# ----------------------------- Pallas kernel ------------------------------- #

def _zero_halo(pad_ref, n, h, w, c):
    """Zero only the 1-pixel halo strips of a (n, h+2, w+2, c) f32 buffer."""
    zrow = jnp.zeros((n, 1, w + 2, c), jnp.float32)
    pad_ref[:, 0:1, :, :] = zrow
    pad_ref[:, h + 1:h + 2, :, :] = zrow
    zcol = jnp.zeros((n, h + 2, 1, c), jnp.float32)
    pad_ref[:, :, 0:1, :] = zcol
    pad_ref[:, :, w + 1:w + 2, :] = zcol


def _im2col_conv_relu(pad_ref, slab_ref, w_ref, b_ref, n, h, w, c):
    """3x3 'same' conv + bias + ReLU as ONE K=9*c MXU matmul.

    pad_ref:  (n, h+2, w+2, c) f32 zero-halo buffer (interior holds the input)
    slab_ref: (n*h*w, 9*c)     f32 im2col scratch (lane-dense matmul operand)
    w_ref:    (9*c, cout)      bf16 weights, row = (dy*3+dx)*c + ci
    b_ref:    (1, cout)        f32 bias
    returns   (n*h*w, cout)    f32
    """
    m = n * h * w
    for t, (dy, dx) in enumerate(_TAPS):
        patch = pad_ref[:, dy:dy + h, dx:dx + w, :].reshape(m, c)
        slab_ref[:, t * c:(t + 1) * c] = patch          # lane-group store
    lhs = slab_ref[...].astype(jnp.bfloat16)            # single cast, lane-dense
    out = jnp.dot(lhs, w_ref[...], preferred_element_type=jnp.float32)
    return jnp.maximum(out + b_ref[...], 0.0)


def _fused_forward_kernel(x1_ref, w1_ref, b1_ref, w2_ref, b2_ref, w3_ref, b3_ref,
                          w4_ref, b4_ref, wt_ref, bt_ref, o_ref,
                          pad_full, pad_half, pool_buf, slab_full, slab_half,
                          *, n, h, w):
    hh, wh = h // 2, w // 2
    c = w2_ref.shape[-1]          # 32

    # ---- conv1 (3 -> 32) + ReLU: im2col prepared in the wrapper, one matmul ----
    h1 = jnp.dot(x1_ref[...], w1_ref[...], preferred_element_type=jnp.float32)
    h1 = jnp.maximum(h1 + b1_ref[...], 0.0)                      # (n*h*w, 32)

    # ---- conv2 (32 -> 32) + ReLU ----
    _zero_halo(pad_full, n, h, w, c)
    pad_full[:, 1:h + 1, 1:w + 1, :] = h1.reshape(n, h, w, c)
    h2 = _im2col_conv_relu(pad_full, slab_full, w2_ref, b2_ref, n, h, w, c)

    # ---- MaxPool2d(kernel=2, stride=2) ----
    # Vertical pairs via a layout-preserving reshape (w, c stay the minor dims;
    # h even per batch element, so pairs never cross the batch boundary).
    h2p = h2.reshape(n * hh, 2, w, c)
    hp = jnp.maximum(h2p[:, 0], h2p[:, 1])                       # (n*hh, w, c)
    pool_buf[...] = hp
    pooled = jnp.maximum(pool_buf[:, pl.ds(0, wh, stride=2), :],
                         pool_buf[:, pl.ds(1, wh, stride=2), :])  # (n*hh, wh, c)

    # ---- conv3 (32 -> 32) + ReLU ----
    _zero_halo(pad_half, n, hh, wh, c)
    pad_half[:, 1:hh + 1, 1:wh + 1, :] = pooled.reshape(n, hh, wh, c)
    h3 = _im2col_conv_relu(pad_half, slab_half, w3_ref, b3_ref, n, hh, wh, c)

    # ---- conv4 (32 -> 32) + ReLU (halo of pad_half is still zero) ----
    pad_half[:, 1:hh + 1, 1:wh + 1, :] = h3.reshape(n, hh, wh, c)
    h4 = _im2col_conv_relu(pad_half, slab_half, w4_ref, b4_ref, n, hh, wh, c)

    # ---- ConvTranspose2d(32, 1, kernel=2, stride=2) + sigmoid ----
    y = jnp.dot(h4.astype(jnp.bfloat16), wt_ref[...],
                preferred_element_type=jnp.float32) + bt_ref[...]
    o_ref[...] = jax.nn.sigmoid(y)                               # (n*hh*wh, 4)


# ------------------------------- wrapper ------------------------------------ #

def transformer_network_forward(x_nchw, params):
    n, cin, h, w = x_nchw.shape
    # Layout requirement (not incidental): w % 16 and even h keep every reshape
    # in the kernel layout-preserving (second-minor dims stay multiples of 8).
    assert h % 2 == 0 and w % 16 == 0, "kernel requires even H and W % 16 == 0"
    hh, wh = h // 2, w // 2
    c = 32
    m_full, m_half = n * h * w, n * hh * wh

    # NCHW -> NHWC, pad, and build conv1's tiny im2col slab (m_full, 9*cin) in
    # the wrapper (27 KiB at this size).  Feature index = (dy*3+dx)*cin + ci.
    x = jnp.transpose(x_nchw, (0, 2, 3, 1)).astype(jnp.float32)
    x_pad = jnp.pad(x, ((0, 0), (1, 1), (1, 1), (0, 0)))
    patches = [x_pad[:, dy:dy + h, dx:dx + w, :] for dy, dx in _TAPS]
    x1 = (jnp.concatenate(patches, axis=-1)
            .reshape(m_full, 9 * cin).astype(jnp.bfloat16))

    def taps_k(w_oihw):  # (cout, cin_, 3, 3) -> (9*cin_, cout) bf16, row=(dy*3+dx)*cin_+ci
        cout, cin_ = w_oihw.shape[0], w_oihw.shape[1]
        return (jnp.transpose(w_oihw, (2, 3, 1, 0))
                  .reshape(9 * cin_, cout).astype(jnp.bfloat16))

    def bias(b):
        return b.reshape(1, -1).astype(jnp.float32)

    w1, b1 = taps_k(params["w1"]), bias(params["b1"])
    w2, b2 = taps_k(params["w2"]), bias(params["b2"])
    w3, b3 = taps_k(params["w3"]), bias(params["b3"])
    w4, b4 = taps_k(params["w4"]), bias(params["b4"])
    # ConvTranspose2d weight (Cin=32, Cout=1, 2, 2) -> (32, 4); columns = (a, b) sub-pixel.
    wt = params["wt"].reshape(32, 4).astype(jnp.bfloat16)
    bt = jnp.broadcast_to(params["bt"].reshape(1, 1), (1, 4)).astype(jnp.float32)

    flops = 2 * (m_full * (9 * cin) * c          # conv1
                 + m_full * (9 * c) * c          # conv2
                 + 2 * m_half * (9 * c) * c      # conv3, conv4
                 + m_half * c * 4)               # deconv
    bytes_accessed = (x1.size * 2
                      + sum(a.size * 2 for a in (w1, w2, w3, w4, wt))
                      + sum(a.size * 4 for a in (b1, b2, b3, b4, bt))
                      + m_half * 4 * 4)

    kernel = functools.partial(_fused_forward_kernel, n=n, h=h, w=w)
    y4 = pl.pallas_call(
        kernel,
        out_shape=jax.ShapeDtypeStruct((m_half, 4), jnp.float32),
        scratch_shapes=[
            pltpu.VMEM((n, h + 2, w + 2, c), jnp.float32),    # conv2 zero-halo input
            pltpu.VMEM((n, hh + 2, wh + 2, c), jnp.float32),  # conv3/4 zero-halo input
            pltpu.VMEM((n * hh, w, c), jnp.float32),          # vertically pooled rows
            pltpu.VMEM((m_full, 9 * c), jnp.float32),         # im2col slab, full res
            pltpu.VMEM((m_half, 9 * c), jnp.float32),         # im2col slab, half res
        ],
        cost_estimate=pl.CostEstimate(flops=flops,
                                      transcendentals=m_half * 4,
                                      bytes_accessed=bytes_accessed),
    )(x1, w1, b1, w2, b2, w3, b3, w4, b4, wt, bt)

    # Sub-pixel (depth-to-space) rearrange of the 2x2 deconv output: tiny glue.
    y = (y4.reshape(n, hh, wh, 2, 2)
            .transpose(0, 1, 3, 2, 4)
            .reshape(n, 1, h, w))
    return y


# ----------------------------- parameter init ------------------------------- #

def init_params(key):
    def conv_init(k, cout, cin, ks):
        bound = 1.0 / float(cin * ks * ks) ** 0.5
        kw, kb = jax.random.split(k)
        w = jax.random.uniform(kw, (cout, cin, ks, ks), jnp.float32, -bound, bound)
        b = jax.random.uniform(kb, (cout,), jnp.float32, -bound, bound)
        return w, b

    keys = jax.random.split(key, 5)
    w1, b1 = conv_init(keys[0], 32, 3, 3)
    w2, b2 = conv_init(keys[1], 32, 32, 3)
    w3, b3 = conv_init(keys[2], 32, 32, 3)
    w4, b4 = conv_init(keys[3], 32, 32, 3)
    # ConvTranspose2d(32, 1, 2, 2): weight shape (in_channels, out_channels, kH, kW)
    bound = 1.0 / float(1 * 2 * 2) ** 0.5
    kw, kb = jax.random.split(keys[4])
    wt = jax.random.uniform(kw, (32, 1, 2, 2), jnp.float32, -bound, bound)
    bt = jax.random.uniform(kb, (1,), jnp.float32, -bound, bound)
    return dict(w1=w1, b1=b1, w2=w2, b2=b2, w3=w3, b3=b3, w4=w4, b4=b4,
                wt=wt, bt=bt)


# --------------------------- pure-JAX reference ----------------------------- #

def reference_forward(x_nchw, params):
    def conv(x, w, b):
        y = jax.lax.conv_general_dilated(
            x, w, window_strides=(1, 1), padding="SAME",
            dimension_numbers=("NCHW", "OIHW", "NCHW"),
            precision=jax.lax.Precision.HIGHEST)
        return y + b.reshape(1, -1, 1, 1)

    h = jax.nn.relu(conv(x_nchw, params["w1"], params["b1"]))
    h = jax.nn.relu(conv(h, params["w2"], params["b2"]))
    h = jax.lax.reduce_window(h, -jnp.inf, jax.lax.max,
                              (1, 1, 2, 2), (1, 1, 2, 2), "VALID")
    h = jax.nn.relu(conv(h, params["w3"], params["b3"]))
    h = jax.nn.relu(conv(h, params["w4"], params["b4"]))
    # ConvTranspose2d(32,1,2,2): non-overlapping -> per-pixel matmul + rearrange
    wt = params["wt"][:, 0]                                        # (32, 2, 2)
    y = jnp.einsum("ncij,cab->niajb", h, wt,
                   precision=jax.lax.Precision.HIGHEST)
    N, Hh, _, Wh, _ = y.shape
    y = y.reshape(N, 1, Hh * 2, Wh * 2) + params["bt"].reshape(1, 1, 1, 1)
    return jax.nn.sigmoid(y)


# ---------------------------------- main ------------------------------------ #

if __name__ == "__main__":
    key = jax.random.PRNGKey(0)
    pkey, xkey = jax.random.split(key)
    params = init_params(pkey)
    x = jax.random.normal(xkey, (2, 3, 16, 16), jnp.float32)       # NCHW like PyTorch

    fwd = jax.jit(transformer_network_forward)
    out = jax.block_until_ready(fwd(x, params))
    ref = jax.block_until_ready(reference_forward(x, params))

    assert out.shape == (2, 1, 16, 16), out.shape
    max_err = float(jnp.max(jnp.abs(out - ref)))
    assert max_err < 5e-3, f"max_err={max_err}"
    print("KERNEL_OK")
</pallas_src>

<mosaic_0001>
module attributes {stable_mosaic.version = 11 : i64} {
  func.func @_fused_forward_kernel(%arg0: memref<512x27xbf16, #tpu.memory_space<vmem>>, %arg1: memref<27x32xbf16, #tpu.memory_space<vmem>>, %arg2: memref<1x32xf32, #tpu.memory_space<vmem>>, %arg3: memref<288x32xbf16, #tpu.memory_space<vmem>>, %arg4: memref<1x32xf32, #tpu.memory_space<vmem>>, %arg5: memref<288x32xbf16, #tpu.memory_space<vmem>>, %arg6: memref<1x32xf32, #tpu.memory_space<vmem>>, %arg7: memref<288x32xbf16, #tpu.memory_space<vmem>>, %arg8: memref<1x32xf32, #tpu.memory_space<vmem>>, %arg9: memref<32x4xbf16, #tpu.memory_space<vmem>>, %arg10: memref<1x4xf32, #tpu.memory_space<vmem>>, %arg11: memref<128x4xf32, #tpu.memory_space<vmem>>, %arg12: memref<2x18x18x32xf32, #tpu.memory_space<vmem>>, %arg13: memref<2x10x10x32xf32, #tpu.memory_space<vmem>>, %arg14: memref<16x16x32xf32, #tpu.memory_space<vmem>>, %arg15: memref<512x288xf32, #tpu.memory_space<vmem>>, %arg16: memref<128x288xf32, #tpu.memory_space<vmem>>) attributes {dimension_semantics = [], scalar_prefetch = 0 : i64, scratch_operands = 5 : i64, tpu.core_type = #tpu.core_type<tc>} {
    %c0 = arith.constant 0 : index
    %c0_0 = arith.constant 0 : index
    %0 = vector.load %arg0[%c0, %c0_0] : memref<512x27xbf16, #tpu.memory_space<vmem>>, vector<512x27xbf16>
    %c0_1 = arith.constant 0 : index
    %c0_2 = arith.constant 0 : index
    %1 = vector.load %arg1[%c0_1, %c0_2] : memref<27x32xbf16, #tpu.memory_space<vmem>>, vector<27x32xbf16>
    %cst = arith.constant dense<0.000000e+00> : vector<512x32xf32>
    %2 = tpu.matmul %0, %1, %cst {dimension_numbers = #tpu.dot_dimension_numbers<[1], [0], [0], [1], [0, 0, 1, 1], [], []>} : vector<512x27xbf16>, vector<27x32xbf16>, vector<512x32xf32> -> vector<512x32xf32>
    %c0_3 = arith.constant 0 : index
    %c0_4 = arith.constant 0 : index
    %3 = vector.load %arg2[%c0_3, %c0_4] : memref<1x32xf32, #tpu.memory_space<vmem>>, vector<1x32xf32>
    %4 = vector.broadcast %3 : vector<1x32xf32> to vector<512x32xf32>
    %5 = arith.addf %2, %4 : vector<512x32xf32>
    %cst_5 = arith.constant 0.000000e+00 : f32
    %6 = vector.broadcast %cst_5 : f32 to vector<512x32xf32>
    %7 = arith.maximumf %5, %6 : vector<512x32xf32>
    %cst_6 = arith.constant 0.000000e+00 : f32
    %8 = vector.broadcast %cst_6 : f32 to vector<2x1x18x32xf32>
    %c0_7 = arith.constant 0 : index
    %c0_8 = arith.constant 0 : index
    %c0_9 = arith.constant 0 : index
    %c0_10 = arith.constant 0 : index
    %9 = vector.load %arg12[%c0_7, %c0_8, %c0_9, %c0_10] : memref<2x18x18x32xf32, #tpu.memory_space<vmem>>, vector<2x1x18x32xf32>
    tpu.vector_store %arg12[%c0_7, %c0_8, %c0_9, %c0_10], %8 {strides = array<i32>} : memref<2x18x18x32xf32, #tpu.memory_space<vmem>>, vector<2x1x18x32xf32>,
    %c0_11 = arith.constant 0 : index
    %c17 = arith.constant 17 : index
    %c0_12 = arith.constant 0 : index
    %c0_13 = arith.constant 0 : index
    %10 = vector.load %arg12[%c0_11, %c17, %c0_12, %c0_13] : memref<2x18x18x32xf32, #tpu.memory_space<vmem>>, vector<2x1x18x32xf32>
    tpu.vector_store %arg12[%c0_11, %c17, %c0_12, %c0_13], %8 {strides = array<i32>} : memref<2x18x18x32xf32, #tpu.memory_space<vmem>>, vector<2x1x18x32xf32>,
    %cst_14 = arith.constant 0.000000e+00 : f32
    %11 = vector.broadcast %cst_14 : f32 to vector<2x18x1x32xf32>
    %c0_15 = arith.constant 0 : index
    %c0_16 = arith.constant 0 : index
    %c0_17 = arith.constant 0 : index
    %c0_18 = arith.constant 0 : index
    %12 = vector.load %arg12[%c0_15, %c0_16, %c0_17, %c0_18] : memref<2x18x18x32xf32, #tpu.memory_space<vmem>>, vector<2x18x1x32xf32>
    tpu.vector_store %arg12[%c0_15, %c0_16, %c0_17, %c0_18], %11 {strides = array<i32>} : memref<2x18x18x32xf32, #tpu.memory_space<vmem>>, vector<2x18x1x32xf32>,
    %c0_19 = arith.constant 0 : index
    %c0_20 = arith.constant 0 : index
    %c17_21 = arith.constant 17 : index
    %c0_22 = arith.constant 0 : index
    %13 = vector.load %arg12[%c0_19, %c0_20, %c17_21, %c0_22] : memref<2x18x18x32xf32, #tpu.memory_space<vmem>>, vector<2x18x1x32xf32>
    tpu.vector_store %arg12[%c0_19, %c0_20, %c17_21, %c0_22], %11 {strides = array<i32>} : memref<2x18x18x32xf32, #tpu.memory_space<vmem>>, vector<2x18x1x32xf32>,
    %14 = vector.shape_cast %7 : vector<512x32xf32> to vector<2x16x16x32xf32>
    %c0_23 = arith.constant 0 : index
    %c1 = arith.constant 1 : index
    %c1_24 = arith.constant 1 : index
    %c0_25 = arith.constant 0 : index
    %15 = vector.load %arg12[%c0_23, %c1, %c1_24, %c0_25] : memref<2x18x18x32xf32, #tpu.memory_space<vmem>>, vector<2x16x16x32xf32>
    tpu.vector_store %arg12[%c0_23, %c1, %c1_24, %c0_25], %14 {strides = array<i32>} : memref<2x18x18x32xf32, #tpu.memory_space<vmem>>, vector<2x16x16x32xf32>,
    %c0_26 = arith.constant 0 : index
    %c0_27 = arith.constant 0 : index
    %c0_28 = arith.constant 0 : index
    %c0_29 = arith.constant 0 : index
    %16 = vector.load %arg12[%c0_26, %c0_27, %c0_28, %c0_29] : memref<2x18x18x32xf32, #tpu.memory_space<vmem>>, vector<2x16x16x32xf32>
    %17 = vector.shape_cast %16 : vector<2x16x16x32xf32> to vector<512x32xf32>
    %c0_30 = arith.constant 0 : index
    %c0_31 = arith.constant 0 : index
    %18 = vector.load %arg15[%c0_30, %c0_31] : memref<512x288xf32, #tpu.memory_space<vmem>>, vector<512x32xf32>
    tpu.vector_store %arg15[%c0_30, %c0_31], %17 {strides = array<i32>} : memref<512x288xf32, #tpu.memory_space<vmem>>, vector<512x32xf32>,
    %c0_32 = arith.constant 0 : index
    %c0_33 = arith.constant 0 : index
    %c1_34 = arith.constant 1 : index
    %c0_35 = arith.constant 0 : index
    %19 = vector.load %arg12[%c0_32, %c0_33, %c1_34, %c0_35] : memref<2x18x18x32xf32, #tpu.memory_space<vmem>>, vector<2x16x16x32xf32>
    %20 = vector.shape_cast %19 : vector<2x16x16x32xf32> to vector<512x32xf32>
    %c0_36 = arith.constant 0 : index
    %c32 = arith.constant 32 : index
    %21 = vector.load %arg15[%c0_36, %c32] : memref<512x288xf32, #tpu.memory_space<vmem>>, vector<512x32xf32>
    tpu.vector_store %arg15[%c0_36, %c32], %20 {strides = array<i32>} : memref<512x288xf32, #tpu.memory_space<vmem>>, vector<512x32xf32>,
    %c0_37 = arith.constant 0 : index
    %c0_38 = arith.constant 0 : index
    %c2 = arith.constant 2 : index
    %c0_39 = arith.constant 0 : index
    %22 = vector.load %arg12[%c0_37, %c0_38, %c2, %c0_39] : memref<2x18x18x32xf32, #tpu.memory_space<vmem>>, vector<2x16x16x32xf32>
    %23 = vector.shape_cast %22 : vector<2x16x16x32xf32> to vector<512x32xf32>
    %c0_40 = arith.constant 0 : index
    %c64 = arith.constant 64 : index
    %24 = vector.load %arg15[%c0_40, %c64] : memref<512x288xf32, #tpu.memory_space<vmem>>, vector<512x32xf32>
    tpu.vector_store %arg15[%c0_40, %c64], %23 {strides = array<i32>} : memref<512x288xf32, #tpu.memory_space<vmem>>, vector<512x32xf32>,
    %c0_41 = arith.constant 0 : index
    %c1_42 = arith.constant 1 : index
    %c0_43 = arith.constant 0 : index
    %c0_44 = arith.constant 0 : index
    %25 = vector.load %arg12[%c0_41, %c1_42, %c0_43, %c0_44] : memref<2x18x18x32xf32, #tpu.memory_space<vmem>>, vector<2x16x16x32xf32>
    %26 = vector.shape_cast %25 : vector<2x16x16x32xf32> to vector<512x32xf32>
    %c0_45 = arith.constant 0 : index
    %c96 = arith.constant 96 : index
    %27 = vector.load %arg15[%c0_45, %c96] : memref<512x288xf32, #tpu.memory_space<vmem>>, vector<512x32xf32>
    tpu.vector_store %arg15[%c0_45, %c96], %26 {strides = array<i32>} : memref<512x288xf32, #tpu.memory_space<vmem>>, vector<512x32xf32>,
    %c0_46 = arith.constant 0 : index
    %c1_47 = arith.constant 1 : index
    %c1_48 = arith.constant 1 : index
    %c0_49 = arith.constant 0 : index
    %28 = vector.load %arg12[%c0_46, %c1_47, %c1_48, %c0_49] : memref<2x18x18x32xf32, #tpu.memory_space<vmem>>, vector<2x16x16x32xf32>
    %29 = vector.shape_cast %28 : vector<2x16x16x32xf32> to vector<512x32xf32>
    %c0_50 = arith.constant 0 : index
    %c128 = arith.constant 128 : index
    %30 = vector.load %arg15[%c0_50, %c128] : memref<512x288xf32, #tpu.memory_space<vmem>>, vector<512x32xf32>
    tpu.vector_store %arg15[%c0_50, %c128], %29 {strides = array<i32>} : memref<512x288xf32, #tpu.memory_space<vmem>>, vector<512x32xf32>,
    %c0_51 = arith.constant 0 : index
    %c1_52 = arith.constant 1 : index
    %c2_53 = arith.constant 2 : index
    %c0_54 = arith.constant 0 : index
    %31 = vector.load %arg12[%c0_51, %c1_52, %c2_53, %c0_54] : memref<2x18x18x32xf32, #tpu.memory_space<vmem>>, vector<2x16x16x32xf32>
    %32 = vector.shape_cast %31 : vector<2x16x16x32xf32> to vector<512x32xf32>
    %c0_55 = arith.constant 0 : index
    %c160 = arith.constant 160 : index
    %33 = vector.load %arg15[%c0_55, %c160] : memref<512x288xf32, #tpu.memory_space<vmem>>, vector<512x32xf32>
    tpu.vector_store %arg15[%c0_55, %c160], %32 {strides = array<i32>} : memref<512x288xf32, #tpu.memory_space<vmem>>, vector<512x32xf32>,
    %c0_56 = arith.constant 0 : index
    %c2_57 = arith.constant 2 : index
    %c0_58 = arith.constant 0 : index
    %c0_59 = arith.constant 0 : index
    %34 = vector.load %arg12[%c0_56, %c2_57, %c0_58, %c0_59] : memref<2x18x18x32xf32, #tpu.memory_space<vmem>>, vector<2x16x16x32xf32>
    %35 = vector.shape_cast %34 : vector<2x16x16x32xf32> to vector<512x32xf32>
    %c0_60 = arith.constant 0 : index
    %c192 = arith.constant 192 : index
    %36 = vector.load %arg15[%c0_60, %c192] : memref<512x288xf32, #tpu.memory_space<vmem>>, vector<512x32xf32>
    tpu.vector_store %arg15[%c0_60, %c192], %35 {strides = array<i32>} : memref<512x288xf32, #tpu.memory_space<vmem>>, vector<512x32xf32>,
    %c0_61 = arith.constant 0 : index
    %c2_62 = arith.constant 2 : index
    %c1_63 = arith.constant 1 : index
    %c0_64 = arith.constant 0 : index
    %37 = vector.load %arg12[%c0_61, %c2_62, %c1_63, %c0_64] : memref<2x18x18x32xf32, #tpu.memory_space<vmem>>, vector<2x16x16x32xf32>
    %38 = vector.shape_cast %37 : vector<2x16x16x32xf32> to vector<512x32xf32>
    %c0_65 = arith.constant 0 : index
    %c224 = arith.constant 224 : index
    %39 = vector.load %arg15[%c0_65, %c224] : memref<512x288xf32, #tpu.memory_space<vmem>>, vector<512x32xf32>
    tpu.vector_store %arg15[%c0_65, %c224], %38 {strides = array<i32>} : memref<512x288xf32, #tpu.memory_space<vmem>>, vector<512x32xf32>,
    %c0_66 = arith.constant 0 : index
    %c2_67 = arith.constant 2 : index
    %c2_68 = arith.constant 2 : index
    %c0_69 = arith.constant 0 : index
    %40 = vector.load %arg12[%c0_66, %c2_67, %c2_68, %c0_69] : memref<2x18x18x32xf32, #tpu.memory_space<vmem>>, vector<2x16x16x32xf32>
    %41 = vector.shape_cast %40 : vector<2x16x16x32xf32> to vector<512x32xf32>
    %c0_70 = arith.constant 0 : index
    %c256 = arith.constant 256 : index
    %42 = vector.load %arg15[%c0_70, %c256] : memref<512x288xf32, #tpu.memory_space<vmem>>, vector<512x32xf32>
    tpu.vector_store %arg15[%c0_70, %c256], %41 {strides = array<i32>} : memref<512x288xf32, #tpu.memory_space<vmem>>, vector<512x32xf32>,
    %c0_71 = arith.constant 0 : index
    %c0_72 = arith.constant 0 : index
    %43 = vector.load %arg15[%c0_71, %c0_72] : memref<512x288xf32, #tpu.memory_space<vmem>>, vector<512x288xf32>
    %44 = arith.truncf %43 : vector<512x288xf32> to vector<512x288xbf16>
    %c0_73 = arith.constant 0 : index
    %c0_74 = arith.constant 0 : index
    %45 = vector.load %arg3[%c0_73, %c0_74] : memref<288x32xbf16, #tpu.memory_space<vmem>>, vector<288x32xbf16>
    %cst_75 = arith.constant dense<0.000000e+00> : vector<512x32xf32>
    %46 = tpu.matmul %44, %45, %cst_75 {dimension_numbers = #tpu.dot_dimension_numbers<[1], [0], [0], [1], [0, 0, 1, 1], [], []>} : vector<512x288xbf16>, vector<288x32xbf16>, vector<512x32xf32> -> vector<512x32xf32>
    %c0_76 = arith.constant 0 : index
    %c0_77 = arith.constant 0 : index
    %47 = vector.load %arg4[%c0_76, %c0_77] : memref<1x32xf32, #tpu.memory_space<vmem>>, vector<1x32xf32>
    %48 = vector.broadcast %47 : vector<1x32xf32> to vector<512x32xf32>
    %49 = arith.addf %46, %48 : vector<512x32xf32>
    %cst_78 = arith.constant 0.000000e+00 : f32
    %50 = vector.broadcast %cst_78 : f32 to vector<512x32xf32>
    %51 = arith.maximumf %49, %50 : vector<512x32xf32>
    %52 = vector.shape_cast %51 : vector<512x32xf32> to vector<16x2x16x32xf32>
    %53 = vector.extract_strided_slice %52 {offsets = [0, 0, 0, 0], sizes = [16, 1, 16, 32], strides = [1, 1, 1, 1]} : vector<16x2x16x32xf32> to vector<16x1x16x32xf32>
    %54 = vector.shape_cast %53 : vector<16x1x16x32xf32> to vector<16x16x32xf32>
    %55 = vector.extract_strided_slice %52 {offsets = [0, 1, 0, 0], sizes = [16, 1, 16, 32], strides = [1, 1, 1, 1]} : vector<16x2x16x32xf32> to vector<16x1x16x32xf32>
    %56 = vector.shape_cast %55 : vector<16x1x16x32xf32> to vector<16x16x32xf32>
    %57 = arith.maximumf %54, %56 : vector<16x16x32xf32>
    %c0_79 = arith.constant 0 : index
    %c0_80 = arith.constant 0 : index
    %c0_81 = arith.constant 0 : index
    %58 = vector.load %arg14[%c0_79, %c0_80, %c0_81] : memref<16x16x32xf32, #tpu.memory_space<vmem>>, vector<16x16x32xf32>
    tpu.vector_store %arg14[%c0_79, %c0_80, %c0_81], %57 {strides = array<i32>} : memref<16x16x32xf32, #tpu.memory_space<vmem>>, vector<16x16x32xf32>,
    %c0_82 = arith.constant 0 : index
    %c0_83 = arith.constant 0 : index
    %c0_84 = arith.constant 0 : index
    %59 = tpu.strided_load %arg14[%c0_82, %c0_83, %c0_84] {strides = array<i32: 1, 2, 1>} : memref<16x16x32xf32, #tpu.memory_space<vmem>>, vector<16x8x32xf32>
    %c0_85 = arith.constant 0 : index
    %c1_86 = arith.constant 1 : index
    %c0_87 = arith.constant 0 : index
    %60 = tpu.strided_load %arg14[%c0_85, %c1_86, %c0_87] {strides = array<i32: 1, 2, 1>} : memref<16x16x32xf32, #tpu.memory_space<vmem>>, vector<16x8x32xf32>
    %61 = arith.maximumf %59, %60 : vector<16x8x32xf32>
    %cst_88 = arith.constant 0.000000e+00 : f32
    %62 = vector.broadcast %cst_88 : f32 to vector<2x1x10x32xf32>
    %c0_89 = arith.constant 0 : index
    %c0_90 = arith.constant 0 : index
    %c0_91 = arith.constant 0 : index
    %c0_92 = arith.constant 0 : index
    %63 = vector.load %arg13[%c0_89, %c0_90, %c0_91, %c0_92] : memref<2x10x10x32xf32, #tpu.memory_space<vmem>>, vector<2x1x10x32xf32>
    tpu.vector_store %arg13[%c0_89, %c0_90, %c0_91, %c0_92], %62 {strides = array<i32>} : memref<2x10x10x32xf32, #tpu.memory_space<vmem>>, vector<2x1x10x32xf32>,
    %c0_93 = arith.constant 0 : index
    %c9 = arith.constant 9 : index
    %c0_94 = arith.constant 0 : index
    %c0_95 = arith.constant 0 : index
    %64 = vector.load %arg13[%c0_93, %c9, %c0_94, %c0_95] : memref<2x10x10x32xf32, #tpu.memory_space<vmem>>, vector<2x1x10x32xf32>
    tpu.vector_store %arg13[%c0_93, %c9, %c0_94, %c0_95], %62 {strides = array<i32>} : memref<2x10x10x32xf32, #tpu.memory_space<vmem>>, vector<2x1x10x32xf32>,
    %cst_96 = arith.constant 0.000000e+00 : f32
    %65 = vector.broadcast %cst_96 : f32 to vector<2x10x1x32xf32>
    %c0_97 = arith.constant 0 : index
    %c0_98 = arith.constant 0 : index
    %c0_99 = arith.constant 0 : index
    %c0_100 = arith.constant 0 : index
    %66 = vector.load %arg13[%c0_97, %c0_98, %c0_99, %c0_100] : memref<2x10x10x32xf32, #tpu.memory_space<vmem>>, vector<2x10x1x32xf32>
    tpu.vector_store %arg13[%c0_97, %c0_98, %c0_99, %c0_100], %65 {strides = array<i32>} : memref<2x10x10x32xf32, #tpu.memory_space<vmem>>, vector<2x10x1x32xf32>,
    %c0_101 = arith.constant 0 : index
    %c0_102 = arith.constant 0 : index
    %c9_103 = arith.constant 9 : index
    %c0_104 = arith.constant 0 : index
    %67 = vector.load %arg13[%c0_101, %c0_102, %c9_103, %c0_104] : memref<2x10x10x32xf32, #tpu.memory_space<vmem>>, vector<2x10x1x32xf32>
    tpu.vector_store %arg13[%c0_101, %c0_102, %c9_103, %c0_104], %65 {strides = array<i32>} : memref<2x10x10x32xf32, #tpu.memory_space<vmem>>, vector<2x10x1x32xf32>,
    %68 = vector.shape_cast %61 : vector<16x8x32xf32> to vector<2x8x8x32xf32>
    %c0_105 = arith.constant 0 : index
    %c1_106 = arith.constant 1 : index
    %c1_107 = arith.constant 1 : index
    %c0_108 = arith.constant 0 : index
    %69 = vector.load %arg13[%c0_105, %c1_106, %c1_107, %c0_108] : memref<2x10x10x32xf32, #tpu.memory_space<vmem>>, vector<2x8x8x32xf32>
    tpu.vector_store %arg13[%c0_105, %c1_106, %c1_107, %c0_108], %68 {strides = array<i32>} : memref<2x10x10x32xf32, #tpu.memory_space<vmem>>, vector<2x8x8x32xf32>,
    %c0_109 = arith.constant 0 : index
    %c0_110 = arith.constant 0 : index
    %c0_111 = arith.constant 0 : index
    %c0_112 = arith.constant 0 : index
    %70 = vector.load %arg13[%c0_109, %c0_110, %c0_111, %c0_112] : memref<2x10x10x32xf32, #tpu.memory_space<vmem>>, vector<2x8x8x32xf32>
    %71 = vector.shape_cast %70 : vector<2x8x8x32xf32> to vector<128x32xf32>
    %c0_113 = arith.constant 0 : index
    %c0_114 = arith.constant 0 : index
    %72 = vector.load %arg16[%c0_113, %c0_114] : memref<128x288xf32, #tpu.memory_space<vmem>>, vector<128x32xf32>
    tpu.vector_store %arg16[%c0_113, %c0_114], %71 {strides = array<i32>} : memref<128x288xf32, #tpu.memory_space<vmem>>, vector<128x32xf32>,
    %c0_115 = arith.constant 0 : index
    %c0_116 = arith.constant 0 : index
    %c1_117 = arith.constant 1 : index
    %c0_118 = arith.constant 0 : index
    %73 = vector.load %arg13[%c0_115, %c0_116, %c1_117, %c0_118] : memref<2x10x10x32xf32, #tpu.memory_space<vmem>>, vector<2x8x8x32xf32>
    %74 = vector.shape_cast %73 : vector<2x8x8x32xf32> to vector<128x32xf32>
    %c0_119 = arith.constant 0 : index
    %c32_120 = arith.constant 32 : index
    %75 = vector.load %arg16[%c0_119, %c32_120] : memref<128x288xf32, #tpu.memory_space<vmem>>, vector<128x32xf32>
    tpu.vector_store %arg16[%c0_119, %c32_120], %74 {strides = array<i32>} : memref<128x288xf32, #tpu.memory_space<vmem>>, vector<128x32xf32>,
    %c0_121 = arith.constant 0 : index
    %c0_122 = arith.constant 0 : index
    %c2_123 = arith.constant 2 : index
    %c0_124 = arith.constant 0 : index
    %76 = vector.load %arg13[%c0_121, %c0_122, %c2_123, %c0_124] : memref<2x10x10x32xf32, #tpu.memory_space<vmem>>, vector<2x8x8x32xf32>
    %77 = vector.shape_cast %76 : vector<2x8x8x32xf32> to vector<128x32xf32>
    %c0_125 = arith.constant 0 : index
    %c64_126 = arith.constant 64 : index
    %78 = vector.load %arg16[%c0_125, %c64_126] : memref<128x288xf32, #tpu.memory_space<vmem>>, vector<128x32xf32>
    tpu.vector_store %arg16[%c0_125, %c64_126], %77 {strides = array<i32>} : memref<128x288xf32, #tpu.memory_space<vmem>>, vector<128x32xf32>,
    %c0_127 = arith.constant 0 : index
    %c1_128 = arith.constant 1 : index
    %c0_129 = arith.constant 0 : index
    %c0_130 = arith.constant 0 : index
    %79 = vector.load %arg13[%c0_127, %c1_128, %c0_129, %c0_130] : memref<2x10x10x32xf32, #tpu.memory_space<vmem>>, vector<2x8x8x32xf32>
    %80 = vector.shape_cast %79 : vector<2x8x8x32xf32> to vector<128x32xf32>
    %c0_131 = arith.constant 0 : index
    %c96_132 = arith.constant 96 : index
    %81 = vector.load %arg16[%c0_131, %c96_132] : memref<128x288xf32, #tpu.memory_space<vmem>>, vector<128x32xf32>
    tpu.vector_store %arg16[%c0_131, %c96_132], %80 {strides = array<i32>} : memref<128x288xf32, #tpu.memory_space<vmem>>, vector<128x32xf32>,
    %c0_133 = arith.constant 0 : index
    %c1_134 = arith.constant 1 : index
    %c1_135 = arith.constant 1 : index
    %c0_136 = arith.constant 0 : index
    %82 = vector.load %arg13[%c0_133, %c1_134, %c1_135, %c0_136] : memref<2x10x10x32xf32, #tpu.memory_space<vmem>>, vector<2x8x8x32xf32>
    %83 = vector.shape_cast %82 : vector<2x8x8x32xf32> to vector<128x32xf32>
    %c0_137 = arith.constant 0 : index
    %c128_138 = arith.constant 128 : index
    %84 = vector.load %arg16[%c0_137, %c128_138] : memref<128x288xf32, #tpu.memory_space<vmem>>, vector<128x32xf32>
    tpu.vector_store %arg16[%c0_137, %c128_138], %83 {strides = array<i32>} : memref<128x288xf32, #tpu.memory_space<vmem>>, vector<128x32xf32>,
    %c0_139 = arith.constant 0 : index
    %c1_140 = arith.constant 1 : index
    %c2_141 = arith.constant 2 : index
    %c0_142 = arith.constant 0 : index
    %85 = vector.load %arg13[%c0_139, %c1_140, %c2_141, %c0_142] : memref<2x10x10x32xf32, #tpu.memory_space<vmem>>, vector<2x8x8x32xf32>
    %86 = vector.shape_cast %85 : vector<2x8x8x32xf32> to vector<128x32xf32>
    %c0_143 = arith.constant 0 : index
    %c160_144 = arith.constant 160 : index
    %87 = vector.load %arg16[%c0_143, %c160_144] : memref<128x288xf32, #tpu.memory_space<vmem>>, vector<128x32xf32>
    tpu.vector_store %arg16[%c0_143, %c160_144], %86 {strides = array<i32>} : memref<128x288xf32, #tpu.memory_space<vmem>>, vector<128x32xf32>,
    %c0_145 = arith.constant 0 : index
    %c2_146 = arith.constant 2 : index
    %c0_147 = arith.constant 0 : index
    %c0_148 = arith.constant 0 : index
    %88 = vector.load %arg13[%c0_145, %c2_146, %c0_147, %c0_148] : memref<2x10x10x32xf32, #tpu.memory_space<vmem>>, vector<2x8x8x32xf32>
    %89 = vector.shape_cast %88 : vector<2x8x8x32xf32> to vector<128x32xf32>
    %c0_149 = arith.constant 0 : index
    %c192_150 = arith.constant 192 : index
    %90 = vector.load %arg16[%c0_149, %c192_150] : memref<128x288xf32, #tpu.memory_space<vmem>>, vector<128x32xf32>
    tpu.vector_store %arg16[%c0_149, %c192_150], %89 {strides = array<i32>} : memref<128x288xf32, #tpu.memory_space<vmem>>, vector<128x32xf32>,
    %c0_151 = arith.constant 0 : index
    %c2_152 = arith.constant 2 : index
    %c1_153 = arith.constant 1 : index
    %c0_154 = arith.constant 0 : index
    %91 = vector.load %arg13[%c0_151, %c2_152, %c1_153, %c0_154] : memref<2x10x10x32xf32, #tpu.memory_space<vmem>>, vector<2x8x8x32xf32>
    %92 = vector.shape_cast %91 : vector<2x8x8x32xf32> to vector<128x32xf32>
    %c0_155 = arith.constant 0 : index
    %c224_156 = arith.constant 224 : index
    %93 = vector.load %arg16[%c0_155, %c224_156] : memref<128x288xf32, #tpu.memory_space<vmem>>, vector<128x32xf32>
    tpu.vector_store %arg16[%c0_155, %c224_156], %92 {strides = array<i32>} : memref<128x288xf32, #tpu.memory_space<vmem>>, vector<128x32xf32>,
    %c0_157 = arith.constant 0 : index
    %c2_158 = arith.constant 2 : index
    %c2_159 = arith.constant 2 : index
    %c0_160 = arith.constant 0 : index
    %94 = vector.load %arg13[%c0_157, %c2_158, %c2_159, %c0_160] : memref<2x10x10x32xf32, #tpu.memory_space<vmem>>, vector<2x8x8x32xf32>
    %95 = vector.shape_cast %94 : vector<2x8x8x32xf32> to vector<128x32xf32>
    %c0_161 = arith.constant 0 : index
    %c256_162 = arith.constant 256 : index
    %96 = vector.load %arg16[%c0_161, %c256_162] : memref<128x288xf32, #tpu.memory_space<vmem>>, vector<128x32xf32>
    tpu.vector_store %arg16[%c0_161, %c256_162], %95 {strides = array<i32>} : memref<128x288xf32, #tpu.memory_space<vmem>>, vector<128x32xf32>,
    %c0_163 = arith.constant 0 : index
    %c0_164 = arith.constant 0 : index
    %97 = vector.load %arg16[%c0_163, %c0_164] : memref<128x288xf32, #tpu.memory_space<vmem>>, vector<128x288xf32>
    %98 = arith.truncf %97 : vector<128x288xf32> to vector<128x288xbf16>
    %c0_165 = arith.constant 0 : index
    %c0_166 = arith.constant 0 : index
    %99 = vector.load %arg5[%c0_165, %c0_166] : memref<288x32xbf16, #tpu.memory_space<vmem>>, vector<288x32xbf16>
    %cst_167 = arith.constant dense<0.000000e+00> : vector<128x32xf32>
    %100 = tpu.matmul %98, %99, %cst_167 {dimension_numbers = #tpu.dot_dimension_numbers<[1], [0], [0], [1], [0, 0, 1, 1], [], []>} : vector<128x288xbf16>, vector<288x32xbf16>, vector<128x32xf32> -> vector<128x32xf32>
    %c0_168 = arith.constant 0 : index
    %c0_169 = arith.constant 0 : index
    %101 = vector.load %arg6[%c0_168, %c0_169] : memref<1x32xf32, #tpu.memory_space<vmem>>, vector<1x32xf32>
    %102 = vector.broadcast %101 : vector<1x32xf32> to vector<128x32xf32>
    %103 = arith.addf %100, %102 : vector<128x32xf32>
    %cst_170 = arith.constant 0.000000e+00 : f32
    %104 = vector.broadcast %cst_170 : f32 to vector<128x32xf32>
    %105 = arith.maximumf %103, %104 : vector<128x32xf32>
    %106 = vector.shape_cast %105 : vector<128x32xf32> to vector<2x8x8x32xf32>
    %c0_171 = arith.constant 0 : index
    %c1_172 = arith.constant 1 : index
    %c1_173 = arith.constant 1 : index
    %c0_174 = arith.constant 0 : index
    %107 = vector.load %arg13[%c0_171, %c1_172, %c1_173, %c0_174] : memref<2x10x10x32xf32, #tpu.memory_space<vmem>>, vector<2x8x8x32xf32>
    tpu.vector_store %arg13[%c0_171, %c1_172, %c1_173, %c0_174], %106 {strides = array<i32>} : memref<2x10x10x32xf32, #tpu.memory_space<vmem>>, vector<2x8x8x32xf32>,
    %c0_175 = arith.constant 0 : index
    %c0_176 = arith.constant 0 : index
    %c0_177 = arith.constant 0 : index
    %c0_178 = arith.constant 0 : index
    %108 = vector.load %arg13[%c0_175, %c0_176, %c0_177, %c0_178] : memref<2x10x10x32xf32, #tpu.memory_space<vmem>>, vector<2x8x8x32xf32>
    %109 = vector.shape_cast %108 : vector<2x8x8x32xf32> to vector<128x32xf32>
    %c0_179 = arith.constant 0 : index
    %c0_180 = arith.constant 0 : index
    %110 = vector.load %arg16[%c0_179, %c0_180] : memref<128x288xf32, #tpu.memory_space<vmem>>, vector<128x32xf32>
    tpu.vector_store %arg16[%c0_179, %c0_180], %109 {strides = array<i32>} : memref<128x288xf32, #tpu.memory_space<vmem>>, vector<128x32xf32>,
    %c0_181 = arith.constant 0 : index
    %c0_182 = arith.constant 0 : index
    %c1_183 = arith.constant 1 : index
    %c0_184 = arith.constant 0 : index
    %111 = vector.load %arg13[%c0_181, %c0_182, %c1_183, %c0_184] : memref<2x10x10x32xf32, #tpu.memory_space<vmem>>, vector<2x8x8x32xf32>
    %112 = vector.shape_cast %111 : vector<2x8x8x32xf32> to vector<128x32xf32>
    %c0_185 = arith.constant 0 : index
    %c32_186 = arith.constant 32 : index
    %113 = vector.load %arg16[%c0_185, %c32_186] : memref<128x288xf32, #tpu.memory_space<vmem>>, vector<128x32xf32>
    tpu.vector_store %arg16[%c0_185, %c32_186], %112 {strides = array<i32>} : memref<128x288xf32, #tpu.memory_space<vmem>>, vector<128x32xf32>,
    %c0_187 = arith.constant 0 : index
    %c0_188 = arith.constant 0 : index
    %c2_189 = arith.constant 2 : index
    %c0_190 = arith.constant 0 : index
    %114 = vector.load %arg13[%c0_187, %c0_188, %c2_189, %c0_190] : memref<2x10x10x32xf32, #tpu.memory_space<vmem>>, vector<2x8x8x32xf32>
    %115 = vector.shape_cast %114 : vector<2x8x8x32xf32> to vector<128x32xf32>
    %c0_191 = arith.constant 0 : index
    %c64_192 = arith.constant 64 : index
    %116 = vector.load %arg16[%c0_191, %c64_192] : memref<128x288xf32, #tpu.memory_space<vmem>>, vector<128x32xf32>
    tpu.vector_store %arg16[%c0_191, %c64_192], %115 {strides = array<i32>} : memref<128x288xf32, #tpu.memory_space<vmem>>, vector<128x32xf32>,
    %c0_193 = arith.constant 0 : index
    %c1_194 = arith.constant 1 : index
    %c0_195 = arith.constant 0 : index
    %c0_196 = arith.constant 0 : index
    %117 = vector.load %arg13[%c0_193, %c1_194, %c0_195, %c0_196] : memref<2x10x10x32xf32, #tpu.memory_space<vmem>>, vector<2x8x8x32xf32>
    %118 = vector.shape_cast %117 : vector<2x8x8x32xf32> to vector<128x32xf32>
    %c0_197 = arith.constant 0 : index
    %c96_198 = arith.constant 96 : index
    %119 = vector.load %arg16[%c0_197, %c96_198] : memref<128x288xf32, #tpu.memory_space<vmem>>, vector<128x32xf32>
    tpu.vector_store %arg16[%c0_197, %c96_198], %118 {strides = array<i32>} : memref<128x288xf32, #tpu.memory_space<vmem>>, vector<128x32xf32>,
    %c0_199 = arith.constant 0 : index
    %c1_200 = arith.constant 1 : index
    %c1_201 = arith.constant 1 : index
    %c0_202 = arith.constant 0 : index
    %120 = vector.load %arg13[%c0_199, %c1_200, %c1_201, %c0_202] : memref<2x10x10x32xf32, #tpu.memory_space<vmem>>, vector<2x8x8x32xf32>
    %121 = vector.shape_cast %120 : vector<2x8x8x32xf32> to vector<128x32xf32>
    %c0_203 = arith.constant 0 : index
    %c128_204 = arith.constant 128 : index
    %122 = vector.load %arg16[%c0_203, %c128_204] : memref<128x288xf32, #tpu.memory_space<vmem>>, vector<128x32xf32>
    tpu.vector_store %arg16[%c0_203, %c128_204], %121 {strides = array<i32>} : memref<128x288xf32, #tpu.memory_space<vmem>>, vector<128x32xf32>,
    %c0_205 = arith.constant 0 : index
    %c1_206 = arith.constant 1 : index
    %c2_207 = arith.constant 2 : index
    %c0_208 = arith.constant 0 : index
    %123 = vector.load %arg13[%c0_205, %c1_206, %c2_207, %c0_208] : memref<2x10x10x32xf32, #tpu.memory_space<vmem>>, vector<2x8x8x32xf32>
    %124 = vector.shape_cast %123 : vector<2x8x8x32xf32> to vector<128x32xf32>
    %c0_209 = arith.constant 0 : index
    %c160_210 = arith.constant 160 : index
    %125 = vector.load %arg16[%c0_209, %c160_210] : memref<128x288xf32, #tpu.memory_space<vmem>>, vector<128x32xf32>
    tpu.vector_store %arg16[%c0_209, %c160_210], %124 {strides = array<i32>} : memref<128x288xf32, #tpu.memory_space<vmem>>, vector<128x32xf32>,
    %c0_211 = arith.constant 0 : index
    %c2_212 = arith.constant 2 : index
    %c0_213 = arith.constant 0 : index
    %c0_214 = arith.constant 0 : index
    %126 = vector.load %arg13[%c0_211, %c2_212, %c0_213, %c0_214] : memref<2x10x10x32xf32, #tpu.memory_space<vmem>>, vector<2x8x8x32xf32>
    %127 = vector.shape_cast %126 : vector<2x8x8x32xf32> to vector<128x32xf32>
    %c0_215 = arith.constant 0 : index
    %c192_216 = arith.constant 192 : index
    %128 = vector.load %arg16[%c0_215, %c192_216] : memref<128x288xf32, #tpu.memory_space<vmem>>, vector<128x32xf32>
    tpu.vector_store %arg16[%c0_215, %c192_216], %127 {strides = array<i32>} : memref<128x288xf32, #tpu.memory_space<vmem>>, vector<128x32xf32>,
    %c0_217 = arith.constant 0 : index
    %c2_218 = arith.constant 2 : index
    %c1_219 = arith.constant 1 : index
    %c0_220 = arith.constant 0 : index
    %129 = vector.load %arg13[%c0_217, %c2_218, %c1_219, %c0_220] : memref<2x10x10x32xf32, #tpu.memory_space<vmem>>, vector<2x8x8x32xf32>
    %130 = vector.shape_cast %129 : vector<2x8x8x32xf32> to vector<128x32xf32>
    %c0_221 = arith.constant 0 : index
    %c224_222 = arith.constant 224 : index
    %131 = vector.load %arg16[%c0_221, %c224_222] : memref<128x288xf32, #tpu.memory_space<vmem>>, vector<128x32xf32>
    tpu.vector_store %arg16[%c0_221, %c224_222], %130 {strides = array<i32>} : memref<128x288xf32, #tpu.memory_space<vmem>>, vector<128x32xf32>,
    %c0_223 = arith.constant 0 : index
    %c2_224 = arith.constant 2 : index
    %c2_225 = arith.constant 2 : index
    %c0_226 = arith.constant 0 : index
    %132 = vector.load %arg13[%c0_223, %c2_224, %c2_225, %c0_226] : memref<2x10x10x32xf32, #tpu.memory_space<vmem>>, vector<2x8x8x32xf32>
    %133 = vector.shape_cast %132 : vector<2x8x8x32xf32> to vector<128x32xf32>
    %c0_227 = arith.constant 0 : index
    %c256_228 = arith.constant 256 : index
    %134 = vector.load %arg16[%c0_227, %c256_228] : memref<128x288xf32, #tpu.memory_space<vmem>>, vector<128x32xf32>
    tpu.vector_store %arg16[%c0_227, %c256_228], %133 {strides = array<i32>} : memref<128x288xf32, #tpu.memory_space<vmem>>, vector<128x32xf32>,
    %c0_229 = arith.constant 0 : index
    %c0_230 = arith.constant 0 : index
    %135 = vector.load %arg16[%c0_229, %c0_230] : memref<128x288xf32, #tpu.memory_space<vmem>>, vector<128x288xf32>
    %136 = arith.truncf %135 : vector<128x288xf32> to vector<128x288xbf16>
    %c0_231 = arith.constant 0 : index
    %c0_232 = arith.constant 0 : index
    %137 = vector.load %arg7[%c0_231, %c0_232] : memref<288x32xbf16, #tpu.memory_space<vmem>>, vector<288x32xbf16>
    %cst_233 = arith.constant dense<0.000000e+00> : vector<128x32xf32>
    %138 = tpu.matmul %136, %137, %cst_233 {dimension_numbers = #tpu.dot_dimension_numbers<[1], [0], [0], [1], [0, 0, 1, 1], [], []>} : vector<128x288xbf16>, vector<288x32xbf16>, vector<128x32xf32> -> vector<128x32xf32>
    %c0_234 = arith.constant 0 : index
    %c0_235 = arith.constant 0 : index
    %139 = vector.load %arg8[%c0_234, %c0_235] : memref<1x32xf32, #tpu.memory_space<vmem>>, vector<1x32xf32>
    %140 = vector.broadcast %139 : vector<1x32xf32> to vector<128x32xf32>
    %141 = arith.addf %138, %140 : vector<128x32xf32>
    %cst_236 = arith.constant 0.000000e+00 : f32
    %142 = vector.broadcast %cst_236 : f32 to vector<128x32xf32>
    %143 = arith.maximumf %141, %142 : vector<128x32xf32>
    %144 = arith.truncf %143 : vector<128x32xf32> to vector<128x32xbf16>
    %c0_237 = arith.constant 0 : index
    %c0_238 = arith.constant 0 : index
    %145 = vector.load %arg9[%c0_237, %c0_238] : memref<32x4xbf16, #tpu.memory_space<vmem>>, vector<32x4xbf16>
    %cst_239 = arith.constant dense<0.000000e+00> : vector<128x4xf32>
    %146 = tpu.matmul %144, %145, %cst_239 {dimension_numbers = #tpu.dot_dimension_numbers<[1], [0], [0], [1], [0, 0, 1, 1], [], []>} : vector<128x32xbf16>, vector<32x4xbf16>, vector<128x4xf32> -> vector<128x4xf32>
    %c0_240 = arith.constant 0 : index
    %c0_241 = arith.constant 0 : index
    %147 = vector.load %arg10[%c0_240, %c0_241] : memref<1x4xf32, #tpu.memory_space<vmem>>, vector<1x4xf32>
    %148 = vector.broadcast %147 : vector<1x4xf32> to vector<128x4xf32>
    %149 = arith.addf %146, %148 : vector<128x4xf32>
    %150 = arith.negf %149 : vector<128x4xf32>
    %151 = math.exp %150 : vector<128x4xf32>
    %cst_242 = arith.constant 1.000000e+00 : f32
    %152 = vector.broadcast %cst_242 : f32 to vector<128x4xf32>
    %153 = arith.addf %152, %151 : vector<128x4xf32>
    %154 = arith.divf %152, %153 : vector<128x4xf32>
    %c0_243 = arith.constant 0 : index
    %c0_244 = arith.constant 0 : index
    %155 = vector.load %arg11[%c0_243, %c0_244] : memref<128x4xf32, #tpu.memory_space<vmem>>, vector<128x4xf32>
    tpu.vector_store %arg11[%c0_243, %c0_244], %154 {strides = array<i32>} : memref<128x4xf32, #tpu.memory_space<vmem>>, vector<128x4xf32>,
    return
  }
}

</mosaic_0001>

<bundles_post_ra>
// kernel: transformer_network_forward.1
= control target key start
LH: loop header
LB: loop body
LE: loop exit
PB: predicated region body
PF: predicated region fallthrough
CT: control target
= control target key end

     0   :  { %vm382_vm0 = vcmask 1044480   ;;  %vm383_vm1 = vcmask 1045504   ;;  %v8336_v1 = vmov 65535   ;;  %vm285_vm2 = vcmask 220160   ;;  %s8339_s21 = smov 96   ;;  %s8340_s24 = smov 32   ;;  %s12186_s1 = inlined_call_operand.vmem [shape: bf16[27,32], index: 1, kind: input, shape index: {}]   ;;  %s12187_s0 = inlined_call_operand.vmem [shape: bf16[512,27], index: 0, kind: input, shape index: {}]   ;;  %s12188_s2 = inlined_call_operand.vmem [shape: f32[1,32], index: 2, kind: input, shape index: {}]   ;;  %s12189_s3 = inlined_call_operand.vmem [shape: bf16[288,32], index: 3, kind: input, shape index: {}]   ;;  %s12190_s4 = inlined_call_operand.vmem [shape: f32[1,32], index: 4, kind: input, shape index: {}]   ;;  %s12191_s5 = inlined_call_operand.vmem [shape: bf16[288,32], index: 5, kind: input, shape index: {}]   ;;  %s12192_s7 = inlined_call_operand.vmem [shape: bf16[288,32], index: 7, kind: input, shape index: {}]   ;;  %s12193_s6 = inlined_call_operand.vmem [shape: f32[1,32], index: 6, kind: input, shape index: {}]   ;;  %s12194_s9 = inlined_call_operand.vmem [shape: bf16[32,4], index: 9, kind: input, shape index: {}]   ;;  %s12195_s8 = inlined_call_operand.vmem [shape: f32[1,32], index: 8, kind: input, shape index: {}]   ;;  %s12196_s10 = inlined_call_operand.vmem [shape: f32[1,4], index: 10, kind: input, shape index: {}]   ;;  %s12197_s11 = inlined_call_operand.vmem [shape: f32[128,4], index: 11, kind: output, shape index: {}]  }
   0x1   :  { %v8176_v0 = vld [vmem:[%s12186_s1 + $0x8] sm:$0x3f]   ;;  %v384_v2 = vsel %vm382_vm0, 4294967295, %v8336_v1  ;;  %v8178_v4 = vld [vmem:[%s12187_s0] sm:$0xff]   ;;  %v8180_v8 = vld [vmem:[%s12187_s0 + $0x10] sm:$0xff]   ;;  %vm742_vm3 = vcmask 261120  }
   0x2   :  { %v385_v3 = vsel %vm383_vm1, %v384_v2, 0  ;;  %v8177_v6 = vld [vmem:[%s12186_s1] sm:$0xff]   ;;  %7946 = vmatprep.mubr.msk.bf16.mxu0 %vm285_vm2, %v8178_v4  ;;  %v8179_v7 = vld [vmem:[%s12187_s0 + $0x8] sm:$0xff]   ;;  %v8181_v9 = vld [vmem:[%s12187_s0 + $0x18] sm:$0xff]   ;;  %vm757_vm4 = vcmask 253952   ;;  %v8337_v16 = vmov 0.0  }
   0x3   :  { %v387_v5 = vand.u32 %v8176_v0, %v385_v3  ;;  %v8182_v10 = vld [vmem:[%s12187_s0 + $0x20] sm:$0xff]   ;;  %v8183_v11 = vld [vmem:[%s12187_s0 + $0x28] sm:$0xff]   ;;  %v8184_v12 = vld [vmem:[%s12187_s0 + $0x30] sm:$0xff]   ;;  %760 = vst.msk [vmem:[#allocation2 + $0x30] sm:$0x1] %vm757_vm4, %v8337_v16  ;;  %v8338_v25 = vmov 0  }
   0x4   :  { %v8185_v13 = vld [vmem:[%s12187_s0 + $0x38] sm:$0xff]   ;;  %v8186_v14 = vld [vmem:[%s12187_s0 + $0x40] sm:$0xff]   ;;  %v8187_v15 = vld [vmem:[%s12187_s0 + $0x48] sm:$0xff]   ;;  %743 = vst.msk [vmem:[#allocation2] sm:$0xff] %vm742_vm3, %v8337_v16  ;;  %8138 = vmatprep.subr.bf16.mxu1 %v8338_v25  ;;  %s8341_s30 = smov 64   ;;  %vm1343_vm5 = vcmask 523520  }
   0x5   :  { %7942 = vmatprep.subr.bf16.mxu0 %v387_v5  ;;  %744 = vst.msk [vmem:[#allocation2 + $0x8] sm:$0xff] %vm742_vm3, %v8337_v16  ;;  %747 = vst.msk [vmem:[#allocation2 + $0x1b0] sm:$0xff] %vm742_vm3, %v8337_v16  ;;  %v8188_v17 = vld [vmem:[%s12187_s0 + $0x50] sm:$0xff]   ;;  %v8189_v18 = vld [vmem:[%s12187_s0 + $0x58] sm:$0xff]   ;;  %vm1728_vm6 = vcmask 785920   ;;  %vm2113_vm7 = vcmask 1048320  }
   0x6   :  { %7943 = vmatpush3.bf16.msra.mxu0 %v387_v5  ;;  %748 = vst.msk [vmem:[#allocation2 + $0x1b8] sm:$0xff] %vm742_vm3, %v8337_v16  ;;  %751 = vst.msk [vmem:[#allocation2 + $0x198] sm:$0xff] %vm742_vm3, %v8337_v16  ;;  %v8190_v19 = vld [vmem:[%s12187_s0 + $0x60] sm:$0xff]   ;;  %v8191_v20 = vld [vmem:[%s12187_s0 + $0x68] sm:$0xff]   ;;  %vm745_vm8 = vcmask 254976   ;;  %vm7496_vm9 = vcmask 31744  }
   0x7   :  { %7944 = vmatprep.subr.bf16.mxu0 %v8177_v6  ;;  %752 = vst.msk [vmem:[#allocation2 + $0x1a0] sm:$0xff] %vm742_vm3, %v8337_v16  ;;  %754 = vst.msk [vmem:[#allocation2 + $0x348] sm:$0xff] %vm742_vm3, %v8337_v16  ;;  %v8192_v21 = vld [vmem:[%s12187_s0 + $0x70] sm:$0xff]   ;;  %v8193_v22 = vld [vmem:[%s12187_s0 + $0x78] sm:$0xff]  }
   0x8   :  { %755 = vst.msk [vmem:[#allocation2 + $0x350] sm:$0xff] %vm742_vm3, %v8337_v16  ;;  %4907 = vst.msk [vmem:[#allocation3] sm:$0xff] %vm742_vm3, %v8337_v16  ;;  %v8707_v23 = vld [vmem:[%s12188_s2] ss:$0 sm:$0xff]  ;;  %v8194_v27 = vld [vmem:[%s12189_s3 + $0x38] sm:$0xff]  }
   0x9   :  { %759 = vst.msk [vmem:[#allocation2 + $0x18] sm:$0x1] %vm757_vm4, %v8337_v16  ;;  %761 = vst.msk [vmem:[#allocation2 + $0x48] sm:$0x1] %vm757_vm4, %v8337_v16  ;;  %8154 = vmatpush1.bf16.msra.mxu1 %v8194_v27  ;;  %v8195_v34 = vld [vmem:[%s12189_s3 + $0x30] sm:$0xff]   ;;  %v8196_v41 = vld [vmem:[%s12189_s3 + $0x28] sm:$0xff]  }
   0xa   :  { %7945 = vmatpush3.bf16.msra.mxu0 %v8177_v6  ;;  %762 = vst.msk [vmem:[#allocation2 + $0x60] sm:$0x1] %vm757_vm4, %v8337_v16  ;;  %763 = vst.msk [vmem:[#allocation2 + $0x78] sm:$0x1] %vm757_vm4, %v8337_v16  ;;  %8139 = vmatprep.subr.bf16.mxu1 %v8338_v25  ;;  %v8197_v50 = vld [vmem:[%s12189_s3 + $0x20] sm:$0xff]   ;;  %v8198_v62 = vld [vmem:[%s12189_s3 + $0x18] sm:$0xff]  }
   0xb   :  { %764 = vst.msk [vmem:[#allocation2 + $0x90] sm:$0x1] %vm757_vm4, %v8337_v16  ;;  %765 = vst.msk [vmem:[#allocation2 + $0xa8] sm:$0x1] %vm757_vm4, %v8337_v16  ;;  %4122 = vmatprep.subr.bf16.mxu0 %v8338_v25 }
   0xc   :  { %766 = vst.msk [vmem:[#allocation2 + $0xc0] sm:$0x1] %vm757_vm4, %v8337_v16  ;;  %767 = vst.msk [vmem:[#allocation2 + $0xd8] sm:$0x1] %vm757_vm4, %v8337_v16 }
   0xd   :  { %7947 = vmatmul.mubr.msk.bf16.vlgmr.msra.gmra.mxu0 %vm285_vm2, %v8179_v7  ;;  %768 = vst.msk [vmem:[#allocation2 + $0xf0] sm:$0x1] %vm757_vm4, %v8337_v16  ;;  %769 = vst.msk [vmem:[#allocation2 + $0x108] sm:$0x1] %vm757_vm4, %v8337_v16  ;;  %8155 = vmatpush1.bf16.msra.mxu1 %v8195_v34 }
   0xe   :  { %7950 = vmatprep.mubr.msk.bf16.mxu0 %vm285_vm2, %v8180_v8  ;;  %770 = vst.msk [vmem:[#allocation2 + $0x120] sm:$0x1] %vm757_vm4, %v8337_v16  ;;  %771 = vst.msk [vmem:[#allocation2 + $0x138] sm:$0x1] %vm757_vm4, %v8337_v16  ;;  %4123 = vmatpush1.bf16.msra.mxu0 %v8194_v27  ;;  %v8199_v8 = vld [vmem:[%s12189_s3 + $0x10] sm:$0xff]  }
   0xf   :  { %772 = vst.msk [vmem:[#allocation2 + $0x150] sm:$0x1] %vm757_vm4, %v8337_v16  ;;  %773 = vst.msk [vmem:[#allocation2 + $0x168] sm:$0x1] %vm757_vm4, %v8337_v16  ;;  %4124 = vmatprep.subr.bf16.mxu0 %v8338_v25  ;;  %8140 = vmatprep.subr.bf16.mxu1 %v8338_v25 }
  0x10   :  { %774 = vst.msk [vmem:[#allocation2 + $0x180] sm:$0x1] %vm757_vm4, %v8337_v16  ;;  %777 = vst.msk [vmem:[#allocation2 + $0x1c8] sm:$0x1] %vm757_vm4, %v8337_v16 }
  0x11   :  { %778 = vst.msk [vmem:[#allocation2 + $0x1e0] sm:$0x1] %vm757_vm4, %v8337_v16  ;;  %779 = vst.msk [vmem:[#allocation2 + $0x1f8] sm:$0x1] %vm757_vm4, %v8337_v16  ;;  %8156 = vmatpush1.bf16.msra.mxu1 %v8196_v41 }
  0x12   :  { %780 = vst.msk [vmem:[#allocation2 + $0x210] sm:$0x1] %vm757_vm4, %v8337_v16  ;;  %781 = vst.msk [vmem:[#allocation2 + $0x228] sm:$0x1] %vm757_vm4, %v8337_v16  ;;  %4125 = vmatpush1.bf16.msra.mxu0 %v8195_v34  ;;  %8141 = vmatprep.subr.bf16.mxu1 %v8338_v25 }
  0x13   :  { %782 = vst.msk [vmem:[#allocation2 + $0x240] sm:$0x1] %vm757_vm4, %v8337_v16  ;;  %783 = vst.msk [vmem:[#allocation2 + $0x258] sm:$0x1] %vm757_vm4, %v8337_v16  ;;  %4126 = vmatprep.subr.bf16.mxu0 %v8338_v25 }
  0x14   :  { %784 = vst.msk [vmem:[#allocation2 + $0x270] sm:$0x1] %vm757_vm4, %v8337_v16  ;;  %785 = vst.msk [vmem:[#allocation2 + $0x288] sm:$0x1] %vm757_vm4, %v8337_v16 }
  0x15   :  { %7951 = vmatmul.mubr.msk.bf16.gmra.mxu0 %vm285_vm2, %v8181_v9  ;;  %786 = vst.msk [vmem:[#allocation2 + $0x2a0] sm:$0x1] %vm757_vm4, %v8337_v16  ;;  %787 = vst.msk [vmem:[#allocation2 + $0x2b8] sm:$0x1] %vm757_vm4, %v8337_v16  ;;  %8157 = vmatpush1.bf16.msra.mxu1 %v8197_v50 }
  0x16   :  { %7954 = vmatprep.mubr.msk.bf16.mxu0 %vm285_vm2, %v8182_v10  ;;  %788 = vst.msk [vmem:[#allocation2 + $0x2d0] sm:$0x1] %vm757_vm4, %v8337_v16  ;;  %789 = vst.msk [vmem:[#allocation2 + $0x2e8] sm:$0x1] %vm757_vm4, %v8337_v16  ;;  %4127 = vmatpush1.bf16.msra.mxu0 %v8196_v41 }
  0x17   :  { %790 = vst.msk [vmem:[#allocation2 + $0x300] sm:$0x1] %vm757_vm4, %v8337_v16  ;;  %791 = vst.msk [vmem:[#allocation2 + $0x318] sm:$0x1] %vm757_vm4, %v8337_v16  ;;  %4128 = vmatprep.subr.bf16.mxu0 %v8338_v25  ;;  %8142 = vmatprep.subr.bf16.mxu1 %v8338_v25 }
  0x18   :  { %792 = vst.msk [vmem:[#allocation2 + $0x330] sm:$0x1] %vm757_vm4, %v8337_v16  ;;  %795 = vst.msk [vmem:[#allocation2 + $0x29] sm:$0x1] %vm757_vm4, %v8337_v16 }
  0x19   :  { %796 = vst.msk [vmem:[#allocation2 + $0x41] sm:$0x1] %vm757_vm4, %v8337_v16  ;;  %797 = vst.msk [vmem:[#allocation2 + $0x59] sm:$0x1] %vm757_vm4, %v8337_v16  ;;  %8158 = vmatpush1.bf16.msra.mxu1 %v8198_v62 }
  0x1a   :  { %798 = vst.msk [vmem:[#allocation2 + $0x71] sm:$0x1] %vm757_vm4, %v8337_v16  ;;  %799 = vst.msk [vmem:[#allocation2 + $0x89] sm:$0x1] %vm757_vm4, %v8337_v16  ;;  %4129 = vmatpush1.bf16.msra.mxu0 %v8197_v50  ;;  %8143 = vmatprep.subr.bf16.mxu1 %v8338_v25 }
  0x1b   :  { %800 = vst.msk [vmem:[#allocation2 + $0xa1] sm:$0x1] %vm757_vm4, %v8337_v16  ;;  %801 = vst.msk [vmem:[#allocation2 + $0xb9] sm:$0x1] %vm757_vm4, %v8337_v16  ;;  %4130 = vmatprep.subr.bf16.mxu0 %v8338_v25 }
  0x1c   :  { %802 = vst.msk [vmem:[#allocation2 + $0xd1] sm:$0x1] %vm757_vm4, %v8337_v16  ;;  %803 = vst.msk [vmem:[#allocation2 + $0xe9] sm:$0x1] %vm757_vm4, %v8337_v16 }
  0x1d   :  { %7955 = vmatmul.mubr.msk.bf16.gmra.mxu0 %vm285_vm2, %v8183_v11  ;;  %804 = vst.msk [vmem:[#allocation2 + $0x101] sm:$0x1] %vm757_vm4, %v8337_v16  ;;  %805 = vst.msk [vmem:[#allocation2 + $0x119] sm:$0x1] %vm757_vm4, %v8337_v16  ;;  %8159 = vmatpush1.bf16.msra.mxu1 %v8199_v8 }
  0x1e   :  { %7958 = vmatprep.mubr.msk.bf16.mxu0 %vm285_vm2, %v8184_v12  ;;  %806 = vst.msk [vmem:[#allocation2 + $0x131] sm:$0x1] %vm757_vm4, %v8337_v16  ;;  %807 = vst.msk [vmem:[#allocation2 + $0x149] sm:$0x1] %vm757_vm4, %v8337_v16  ;;  %4131 = vmatpush1.bf16.msra.mxu0 %v8198_v62 }
  0x1f   :  { %808 = vst.msk [vmem:[#allocation2 + $0x161] sm:$0x1] %vm757_vm4, %v8337_v16  ;;  %809 = vst.msk [vmem:[#allocation2 + $0x179] sm:$0x1] %vm757_vm4, %v8337_v16  ;;  %4132 = vmatprep.subr.bf16.mxu0 %v8338_v25  ;;  %8144 = vmatprep.subr.bf16.mxu1 %v8338_v25 }
  0x20   :  { %810 = vst.msk [vmem:[#allocation2 + $0x191] sm:$0x1] %vm757_vm4, %v8337_v16  ;;  %813 = vst.msk [vmem:[#allocation2 + $0x1d9] sm:$0x1] %vm757_vm4, %v8337_v16 }
  0x21   :  { %814 = vst.msk [vmem:[#allocation2 + $0x1f1] sm:$0x1] %vm757_vm4, %v8337_v16  ;;  %815 = vst.msk [vmem:[#allocation2 + $0x209] sm:$0x1] %vm757_vm4, %v8337_v16 }
  0x22   :  { %816 = vst.msk [vmem:[#allocation2 + $0x221] sm:$0x1] %vm757_vm4, %v8337_v16  ;;  %817 = vst.msk [vmem:[#allocation2 + $0x239] sm:$0x1] %vm757_vm4, %v8337_v16  ;;  %4133 = vmatpush1.bf16.msra.mxu0 %v8199_v8 }
  0x23   :  { %818 = vst.msk [vmem:[#allocation2 + $0x251] sm:$0x1] %vm757_vm4, %v8337_v16  ;;  %819 = vst.msk [vmem:[#allocation2 + $0x269] sm:$0x1] %vm757_vm4, %v8337_v16  ;;  %4134 = vmatprep.subr.bf16.mxu0 %v8338_v25 }
  0x24   :  { %820 = vst.msk [vmem:[#allocation2 + $0x281] sm:$0x1] %vm757_vm4, %v8337_v16  ;;  %821 = vst.msk [vmem:[#allocation2 + $0x299] sm:$0x1] %vm757_vm4, %v8337_v16 }
  0x25   :  { %7959 = vmatmul.mubr.msk.bf16.gmra.mxu0 %vm285_vm2, %v8185_v13  ;;  %822 = vst.msk [vmem:[#allocation2 + $0x2b1] sm:$0x1] %vm757_vm4, %v8337_v16  ;;  %823 = vst.msk [vmem:[#allocation2 + $0x2c9] sm:$0x1] %vm757_vm4, %v8337_v16 }
  0x26   :  { %7962 = vmatprep.mubr.msk.bf16.mxu0 %vm285_vm2, %v8186_v14  ;;  %824 = vst.msk [vmem:[#allocation2 + $0x2e1] sm:$0x1] %vm757_vm4, %v8337_v16  ;;  %825 = vst.msk [vmem:[#allocation2 + $0x2f9] sm:$0x1] %vm757_vm4, %v8337_v16 }
  0x27   :  { %826 = vst.msk [vmem:[#allocation2 + $0x311] sm:$0x1] %vm757_vm4, %v8337_v16  ;;  %827 = vst.msk [vmem:[#allocation2 + $0x329] sm:$0x1] %vm757_vm4, %v8337_v16 }
  0x28   :  { %828 = vst.msk [vmem:[#allocation2 + $0x341] sm:$0x1] %vm757_vm4, %v8337_v16  ;;  %4917 = vst.msk [vmem:[#allocation3 + $0x10] sm:$0x1] %vm757_vm4, %v8337_v16 }
  0x29   :  { %4909 = vst.msk [vmem:[#allocation3 + $0xa0] sm:$0xff] %vm742_vm3, %v8337_v16  ;;  %4912 = vst.msk [vmem:[#allocation3 + $0x90] sm:$0xff] %vm742_vm3, %v8337_v16 }
  0x2a   :  { %4914 = vst.msk [vmem:[#allocation3 + $0x130] sm:$0xff] %vm742_vm3, %v8337_v16 }
  0x2b   :  { %4918 = vst.msk [vmem:[#allocation3 + $0x20] sm:$0x1] %vm757_vm4, %v8337_v16  ;;  %4919 = vst.msk [vmem:[#allocation3 + $0x30] sm:$0x1] %vm757_vm4, %v8337_v16 }
  0x2c   :  { %4920 = vst.msk [vmem:[#allocation3 + $0x40] sm:$0x1] %vm757_vm4, %v8337_v16  ;;  %4921 = vst.msk [vmem:[#allocation3 + $0x50] sm:$0x1] %vm757_vm4, %v8337_v16 }
  0x2d   :  { %7963 = vmatmul.mubr.msk.bf16.gmra.mxu0 %vm285_vm2, %v8187_v15  ;;  %4922 = vst.msk [vmem:[#allocation3 + $0x60] sm:$0x1] %vm757_vm4, %v8337_v16  ;;  %4923 = vst.msk [vmem:[#allocation3 + $0x70] sm:$0x1] %vm757_vm4, %v8337_v16 }
  0x2e   :  { %4924 = vst.msk [vmem:[#allocation3 + $0x80] sm:$0x1] %vm757_vm4, %v8337_v16  ;;  %4927 = vst.msk [vmem:[#allocation3 + $0xb0] sm:$0x1] %vm757_vm4, %v8337_v16  ;;  %7966 = vmatprep.mubr.msk.bf16.mxu0 %vm285_vm2, %v8188_v17 }
  0x2f   :  { %4928 = vst.msk [vmem:[#allocation3 + $0xc0] sm:$0x1] %vm757_vm4, %v8337_v16  ;;  %4929 = vst.msk [vmem:[#allocation3 + $0xd0] sm:$0x1] %vm757_vm4, %v8337_v16 }
  0x30   :  { %4930 = vst.msk [vmem:[#allocation3 + $0xe0] sm:$0x1] %vm757_vm4, %v8337_v16  ;;  %4931 = vst.msk [vmem:[#allocation3 + $0xf0] sm:$0x1] %vm757_vm4, %v8337_v16 }
  0x31   :  { %4932 = vst.msk [vmem:[#allocation3 + $0x100] sm:$0x1] %vm757_vm4, %v8337_v16  ;;  %4933 = vst.msk [vmem:[#allocation3 + $0x110] sm:$0x1] %vm757_vm4, %v8337_v16 }
  0x32   :  { %4934 = vst.msk [vmem:[#allocation3 + $0x120] sm:$0x1] %vm757_vm4, %v8337_v16  ;;  %4937 = vst.msk [vmem:[#allocation3 + $0x19] sm:$0x1] %vm757_vm4, %v8337_v16 }
  0x33   :  { %4938 = vst.msk [vmem:[#allocation3 + $0x29] sm:$0x1] %vm757_vm4, %v8337_v16  ;;  %4939 = vst.msk [vmem:[#allocation3 + $0x39] sm:$0x1] %vm757_vm4, %v8337_v16 }
  0x34   :  { %4940 = vst.msk [vmem:[#allocation3 + $0x49] sm:$0x1] %vm757_vm4, %v8337_v16  ;;  %4941 = vst.msk [vmem:[#allocation3 + $0x59] sm:$0x1] %vm757_vm4, %v8337_v16 }
  0x35   :  { %4942 = vst.msk [vmem:[#allocation3 + $0x69] sm:$0x1] %vm757_vm4, %v8337_v16  ;;  %4943 = vst.msk [vmem:[#allocation3 + $0x79] sm:$0x1] %vm757_vm4, %v8337_v16  ;;  %7967 = vmatmul.mubr.msk.bf16.gmra.mxu0 %vm285_vm2, %v8189_v18 }
  0x36   :  { %4944 = vst.msk [vmem:[#allocation3 + $0x89] sm:$0x1] %vm757_vm4, %v8337_v16  ;;  %4947 = vst.msk [vmem:[#allocation3 + $0xb9] sm:$0x1] %vm757_vm4, %v8337_v16  ;;  %7970 = vmatprep.mubr.msk.bf16.mxu0 %vm285_vm2, %v8190_v19 }
  0x37   :  { %4948 = vst.msk [vmem:[#allocation3 + $0xc9] sm:$0x1] %vm757_vm4, %v8337_v16  ;;  %4949 = vst.msk [vmem:[#allocation3 + $0xd9] sm:$0x1] %vm757_vm4, %v8337_v16 }
  0x38   :  { %4950 = vst.msk [vmem:[#allocation3 + $0xe9] sm:$0x1] %vm757_vm4, %v8337_v16  ;;  %4951 = vst.msk [vmem:[#allocation3 + $0xf9] sm:$0x1] %vm757_vm4, %v8337_v16 }
  0x39   :  { %4952 = vst.msk [vmem:[#allocation3 + $0x109] sm:$0x1] %vm757_vm4, %v8337_v16  ;;  %4953 = vst.msk [vmem:[#allocation3 + $0x119] sm:$0x1] %vm757_vm4, %v8337_v16 }
  0x3a   :  { %4954 = vst.msk [vmem:[#allocation3 + $0x129] sm:$0x1] %vm757_vm4, %v8337_v16  ;;  %758 = vst.msk [vmem:[#allocation2] sm:$0x1] %vm757_vm4, %v8337_v16 }
  0x3b   :  { %775 = vst.msk [vmem:[#allocation2 + $0x198] sm:$0x1] %vm757_vm4, %v8337_v16  ;;  %776 = vst.msk [vmem:[#allocation2 + $0x1b0] sm:$0x1] %vm757_vm4, %v8337_v16 }
  0x3c   :  { %793 = vst.msk [vmem:[#allocation2 + $0x348] sm:$0x1] %vm757_vm4, %v8337_v16  ;;  %4916 = vst.msk [vmem:[#allocation3] sm:$0x1] %vm757_vm4, %v8337_v16 }
  0x3d   :  { %4925 = vst.msk [vmem:[#allocation3 + $0x90] sm:$0x1] %vm757_vm4, %v8337_v16  ;;  %4926 = vst.msk [vmem:[#allocation3 + $0xa0] sm:$0x1] %vm757_vm4, %v8337_v16  ;;  %7971 = vmatmul.mubr.msk.bf16.gmra.mxu0 %vm285_vm2, %v8191_v20 }
  0x3e   :  { %4935 = vst.msk [vmem:[#allocation3 + $0x130] sm:$0x1] %vm757_vm4, %v8337_v16  ;;  %7974 = vmatprep.mubr.msk.bf16.mxu0 %vm285_vm2, %v8192_v21 }
  0x3f   :  { %746 = vst.msk [vmem:[#allocation2 + $0x10] sm:$0x3] %vm745_vm8, %v8337_v16  ;;  %749 = vst.msk [vmem:[#allocation2 + $0x1c0] sm:$0x3] %vm745_vm8, %v8337_v16 }
  0x40   :  { %753 = vst.msk [vmem:[#allocation2 + $0x1a8] sm:$0x3] %vm745_vm8, %v8337_v16  ;;  %756 = vst.msk [vmem:[#allocation2 + $0x358] sm:$0x3] %vm745_vm8, %v8337_v16 }
  0x41   :  { %4908 = vst.msk [vmem:[#allocation3 + $0x8] sm:$0x3] %vm745_vm8, %v8337_v16  ;;  %4910 = vst.msk [vmem:[#allocation3 + $0xa8] sm:$0x3] %vm745_vm8, %v8337_v16 }
  0x42   :  { %4913 = vst.msk [vmem:[#allocation3 + $0x98] sm:$0x3] %vm745_vm8, %v8337_v16  ;;  %4915 = vst.msk [vmem:[#allocation3 + $0x138] sm:$0x3] %vm745_vm8, %v8337_v16 }
  0x43   :  { %794 = vst.msk [vmem:[#allocation2 + $0x11] sm:$0x1] %vm757_vm4, %v8337_v16  ;;  %811 = vst.msk [vmem:[#allocation2 + $0x1a9] sm:$0x1] %vm757_vm4, %v8337_v16 }
  0x44   :  { %812 = vst.msk [vmem:[#allocation2 + $0x1c1] sm:$0x1] %vm757_vm4, %v8337_v16  ;;  %829 = vst.msk [vmem:[#allocation2 + $0x359] sm:$0x1] %vm757_vm4, %v8337_v16 }
  0x45   :  { %7975 = vmatmul.mubr.msk.bf16.gmra.mxu0 %vm285_vm2, %v8193_v22  ;;  %4936 = vst.msk [vmem:[#allocation3 + $0x9] sm:$0x1] %vm757_vm4, %v8337_v16  ;;  %4945 = vst.msk [vmem:[#allocation3 + $0x99] sm:$0x1] %vm757_vm4, %v8337_v16 }
  0x46   :  { %4946 = vst.msk [vmem:[#allocation3 + $0xa9] sm:$0x1] %vm757_vm4, %v8337_v16  ;;  %4955 = vst.msk [vmem:[#allocation3 + $0x139] sm:$0x1] %vm757_vm4, %v8337_v16 }
  0xcd   :  { %v7948_v24 = vpop.f32.mrf.mxu0 }
  0xce   :  { %v432_v26 = vadd.f32 %v7948_v24, %v8707_v23 }
  0xcf   :  { %v423_v28 = vpop.f32.mrf.mxu0 }
  0xd0   :  { %v680_v29 = vmax.f32 %v432_v26, 0.0  ;;  %v424_v30 = vadd.f32 %v8707_v23, %v423_v28  ;;  %v8200_v26 = vld [vmem:[%s12189_s3 + $0x8] sm:$0xff]  }
  0xd1   :  { %v7949_v31 = vpop.f32.mrf.mxu0  ;;  %8160 = vmatpush1.bf16.msra.mxu1 %v8200_v26  ;;  %4135 = vmatpush1.bf16.msra.mxu0 %v8200_v26  ;;  %v8204_v26 = vld [vmem:[%s12189_s3 + $0x68] sm:$0xff]  }
  0xd2   :  { %833 = vst.msk [vmem:[#allocation2 + $0x31] sm:$0xff] %vm742_vm3, %v680_v29  ;;  %v678_v32 = vmax.f32 %v424_v30, 0.0  ;;  %v435_v33 = vadd.f32 %v7949_v31, %v8707_v23  ;;  %8145 = vmatprep.subr.bf16.mxu1 %v8338_v25  ;;  %4136 = vmatprep.subr.bf16.mxu0 %v8338_v25 }
  0xd3   :  { %v426_v35 = vpop.f32.mrf.mxu0 }
  0xd4   :  { %831 = vst.msk [vmem:[#allocation2 + $0x19] sm:$0xff] %vm742_vm3, %v678_v32  ;;  %v681_v36 = vmax.f32 %v435_v33, 0.0  ;;  %v427_v37 = vadd.f32 %v8707_v23, %v426_v35 }
  0xd5   :  { %v7952_v38 = vpop.f32.mrf.mxu0 }
  0xd6   :  { %834 = vst.msk [vmem:[#allocation2 + $0x39] sm:$0xff] %vm742_vm3, %v681_v36  ;;  %v679_v39 = vmax.f32 %v427_v37, 0.0  ;;  %v448_v40 = vadd.f32 %v7952_v38, %v8707_v23 }
  0xd7   :  { %v439_v42 = vpop.f32.mrf.mxu0 }
  0xd8   :  { %832 = vst.msk [vmem:[#allocation2 + $0x21] sm:$0xff] %vm742_vm3, %v679_v39  ;;  %v684_v43 = vmax.f32 %v448_v40, 0.0  ;;  %v440_v44 = vadd.f32 %v8707_v23, %v439_v42  ;;  %v8201_v39 = vld [vmem:[%s12189_s3] sm:$0xff]  }
  0xd9   :  { %v1795_v45 = vld [vmem:[#allocation2 + $0x30] sm:$0xff]  ;;  %v7953_v47 = vpop.f32.mrf.mxu0  ;;  %8161 = vmatpush1.bf16.msra.mxu1 %v8201_v39  ;;  %4137 = vmatpush1.bf16.msra.mxu0 %v8201_v39 }
  0xda   :  { %v1027_v46 = vld [vmem:[#allocation2 + $0x31] sm:$0xff]  ;;  %1925 = vrot.lane.b32.xlu0 %v1795_v45, %s8339_s21  ;;  %837 = vst.msk [vmem:[#allocation2 + $0x61] sm:$0xff] %vm742_vm3, %v684_v43  ;;  %v682_v48 = vmax.f32 %v440_v44, 0.0  ;;  %v451_v49 = vadd.f32 %v7953_v47, %v8707_v23  ;;  %963 = vst.msk [vmem:[#allocation5 + $0x60] sm:$0xff] %vm742_vm3, %v1795_v45  ;;  %8146 = vmatprep.subr.bf16.mxu1 %v8338_v25 }
  0xdb   :  { %2244 = vst.msk [vmem:[#allocation5 + $0x38] sm:$0xff] %vm742_vm3, %v1027_v46  ;;  %v1025_v51 = vld [vmem:[#allocation2 + $0x19] sm:$0xff]  ;;  %v442_v52 = vpop.f32.mrf.mxu0  ;;  %4138 = vmatprep.subr.bf16.mxu0 %v8338_v25 }
  0xdc   :  { %v897_v53 = vld [vmem:[#allocation2 + $0x18] sm:$0xff]  ;;  %1155 = vrot.lane.b32.xlu1 %v1025_v51, %s8340_s24  ;;  %835 = vst.msk [vmem:[#allocation2 + $0x49] sm:$0xff] %vm742_vm3, %v682_v48  ;;  %v685_v54 = vmax.f32 %v451_v49, 0.0  ;;  %v443_v55 = vadd.f32 %v8707_v23, %v442_v52 }
  0xdd   :  { %961 = vst.msk [vmem:[#allocation5 + $0x30] sm:$0xff] %vm742_vm3, %v897_v53  ;;  %v8748_v56 = vld [vmem:[#allocation2 + $0x32] sm:$0xff]  ;;  %v7956_v59 = vpop.f32.mrf.mxu0  ;;  %v2309_v9 = vld [vmem:[#allocation2 + $0x3a] sm:$0xff] }
  0xde   :  { %v1796_v57 = vld [vmem:[#allocation2 + $0x38] sm:$0xff]  ;;  %3523 = vst.msk [vmem:[#allocation5 + $0x10] sm:$0xff] %vm742_vm3, %v8748_v56  ;;  %1159 = vrot.lane.b32.xlu0 %v1027_v46, %s8340_s24  ;;  %838 = vst.msk [vmem:[#allocation2 + $0x69] sm:$0xff] %vm742_vm3, %v685_v54  ;;  %v683_v60 = vmax.f32 %v443_v55, 0.0  ;;  %v464_v61 = vadd.f32 %v7956_v59, %v8707_v23 }
  0xdf   :  { %v1028_v58 = vld [vmem:[#allocation2 + $0x39] sm:$0xff]  ;;  %964 = vst.msk [vmem:[#allocation5 + $0x78] sm:$0xff] %vm742_vm3, %v1796_v57  ;;  %v455_v63 = vpop.f32.mrf.mxu0  ;;  %v2179_v17 = vld [vmem:[#allocation2 + $0x21] sm:$0xff] }
  0xe0   :  { %2245 = vst.msk [vmem:[#allocation5 + $0x50] sm:$0xff] %vm742_vm3, %v1028_v58  ;;  %1927 = vrot.lane.b32.xlu1 %v1796_v57, %s8339_s21  ;;  %836 = vst.msk [vmem:[#allocation2 + $0x51] sm:$0xff] %vm742_vm3, %v683_v60  ;;  %v688_v0 = vmax.f32 %v464_v61, 0.0  ;;  %v456_v1 = vadd.f32 %v8707_v23, %v455_v63  ;;  %v898_v2 = vld [vmem:[#allocation2 + $0x20] sm:$0xff] }
  0xe1   :  { %v8765_v3 = vld [vmem:[#allocation2 + $0x60] sm:$0xff]  ;;  %v7957_v5 = vpop.f32.mrf.mxu0  ;;  %962 = vst.msk [vmem:[#allocation5 + $0x48] sm:$0xff] %vm742_vm3, %v898_v2  ;;  %2243 = vst.msk [vmem:[#allocation5 + $0x20] sm:$0xff] %vm742_vm3, %v2179_v17 }
  0xe2   :  { %v8767_v4 = vld [vmem:[#allocation2 + $0x61] sm:$0xff]  ;;  %2438 = vrot.lane.b32.xlu0 %v8748_v56, %s8340_s24  ;;  %841 = vst.msk [vmem:[#allocation2 + $0x91] sm:$0xff] %vm742_vm3, %v688_v0  ;;  %v686_v6 = vmax.f32 %v456_v1, 0.0  ;;  %v467_v7 = vadd.f32 %v7957_v5, %v8707_v23  ;;  %967 = vst.msk [vmem:[#allocation5 + $0xc0] sm:$0xff] %vm742_vm3, %v8765_v3  ;;  %v2178_v13 = vld [vmem:[#allocation2 + $0x19] sm:$0xff] }
  0xe3   :  { %2248 = vst.msk [vmem:[#allocation5 + $0x98] sm:$0xff] %vm742_vm3, %v8767_v4  ;;  %v8783_v10 = vld [vmem:[#allocation2 + $0x48] sm:$0xff]  ;;  %v458_v12 = vpop.f32.mrf.mxu0  ;;  %2242 = vst.msk [vmem:[#allocation5 + $0x8] sm:$0xff] %vm742_vm3, %v2178_v13  ;;  %v3460_v27 = vld [vmem:[#allocation2 + $0x3a] sm:$0xff] }
  0xe4   :  { %v8785_v11 = vld [vmem:[#allocation2 + $0x49] sm:$0xff]  ;;  %1161 = vrot.lane.b32.xlu1 %v1028_v58, %s8340_s24  ;;  %839 = vst.msk [vmem:[#allocation2 + $0x79] sm:$0xff] %vm742_vm3, %v686_v6  ;;  %v689_v14 = vmax.f32 %v467_v7, 0.0  ;;  %v459_v15 = vadd.f32 %v8707_v23, %v458_v12  ;;  %965 = vst.msk [vmem:[#allocation5 + $0x90] sm:$0xff] %vm742_vm3, %v8783_v10  ;;  %v1026_v42 = vld [vmem:[#allocation2 + $0x21] sm:$0xff] }
  0xe5   :  { %2246 = vst.msk [vmem:[#allocation5 + $0x68] sm:$0xff] %vm742_vm3, %v8785_v11  ;;  %v8795_v18 = vld [vmem:[#allocation2 + $0x62] sm:$0xff]  ;;  %v7960_v21 = vpop.f32.mrf.mxu0  ;;  %3524 = vst.msk [vmem:[#allocation5 + $0x28] sm:$0xff] %vm742_vm3, %v3460_v27  ;;  %v3464_v41 = vld [vmem:[#allocation2 + $0x6a] sm:$0xff] }
  0xe6   :  { %v8797_v19 = vld [vmem:[#allocation2 + $0x68] sm:$0xff]  ;;  %3527 = vst.msk [vmem:[#allocation5 + $0x70] sm:$0xff] %vm742_vm3, %v8795_v18  ;;  %2440 = vrot.lane.b32.xlu0 %v2309_v9, %s8340_s24  ;;  %842 = vst.msk [vmem:[#allocation2 + $0x99] sm:$0xff] %vm742_vm3, %v689_v14  ;;  %v687_v22 = vmax.f32 %v459_v15, 0.0  ;;  %v480_v24 = vadd.f32 %v7960_v21, %v8707_v23  ;;  %v1410_v46 = vld [vmem:[#allocation2 + $0x1a] sm:$0xff] }
  0xe7   :  { %v8799_v20 = vld [vmem:[#allocation2 + $0x69] sm:$0xff]  ;;  %968 = vst.msk [vmem:[#allocation5 + $0xd8] sm:$0xff] %vm742_vm3, %v8797_v19  ;;  %v8820_v30 = vld [vmem:[#allocation2 + $0x51] sm:$0xff]  ;;  %v471_v31 = vpop.f32.mrf.mxu0  ;;  %3528 = vst.msk [vmem:[#allocation5 + $0x88] sm:$0xff] %vm742_vm3, %v3464_v41 }
  0xe8   :  { %2249 = vst.msk [vmem:[#allocation5 + $0xb0] sm:$0xff] %vm742_vm3, %v8799_v20  ;;  %v8816_v28 = vld [vmem:[#allocation2 + $0x4a] sm:$0xff]  ;;  %1546 = vrot.lane.b32.xlu1 %v2309_v9, %s8341_s30  ;;  %840 = vst.msk [vmem:[#allocation2 + $0x81] sm:$0xff] %vm742_vm3, %v687_v22  ;;  %v692_v32 = vmax.f32 %v480_v24, 0.0  ;;  %v472_v33 = vadd.f32 %v8707_v23, %v471_v31  ;;  %v3462_v40 = vld [vmem:[#allocation2 + $0x52] sm:$0xff] }
  0xe9   :  { %v8818_v29 = vld [vmem:[#allocation2 + $0x50] sm:$0xff]  ;;  %3525 = vst.msk [vmem:[#allocation5 + $0x40] sm:$0xff] %vm742_vm3, %v8816_v28  ;;  %2247 = vst.msk [vmem:[#allocation5 + $0x80] sm:$0xff] %vm742_vm3, %v8820_v30  ;;  %v7961_v36 = vpop.f32.mrf.mxu0  ;;  %v1411_v53 = vld [vmem:[#allocation2 + $0x22] sm:$0xff] }
  0xea   :  { %966 = vst.msk [vmem:[#allocation5 + $0xa8] sm:$0xff] %vm742_vm3, %v8818_v29  ;;  %v8832_v34 = vld [vmem:[#allocation2 + $0x90] sm:$0xff]  ;;  %1544 = vrot.lane.b32.xlu0 %v8748_v56, %s8341_s30  ;;  %845 = vst.msk [vmem:[#allocation2 + $0xc1] sm:$0xff] %vm742_vm3, %v692_v32  ;;  %v690_v37 = vmax.f32 %v472_v33, 0.0  ;;  %v483_v38 = vadd.f32 %v7961_v36, %v8707_v23  ;;  %v8202_v56 = vld [vmem:[%s12189_s3 + $0x78] sm:$0xff]  }
  0xeb   :  { %v8834_v35 = vld [vmem:[#allocation2 + $0x91] sm:$0xff]  ;;  %971 = vst.msk [vmem:[#allocation5 + $0x120] sm:$0xff] %vm742_vm3, %v8832_v34  ;;  %v8851_v44 = vld [vmem:[#allocation2 + $0x79] sm:$0xff]  ;;  %v474_v45 = vpop.f32.mrf.mxu0  ;;  %3526 = vst.msk [vmem:[#allocation5 + $0x58] sm:$0xff] %vm742_vm3, %v3462_v40  ;;  %8162 = vmatpush2.bf16.msra.mxu1 %v8202_v56  ;;  %4139 = vmatpush2.bf16.msra.mxu0 %v8202_v56 }
  0xec   :  { %2252 = vst.msk [vmem:[#allocation5 + $0xf8] sm:$0xff] %vm742_vm3, %v8834_v35  ;;  %v8849_v43 = vld [vmem:[#allocation2 + $0x78] sm:$0xff]  ;;  %1157 = vrot.lane.b32.xlu1 %v1026_v42, %s8340_s24  ;;  %843 = vst.msk [vmem:[#allocation2 + $0xa9] sm:$0xff] %vm742_vm3, %v690_v37  ;;  %v693_v47 = vmax.f32 %v483_v38, 0.0  ;;  %v475_v48 = vadd.f32 %v8707_v23, %v474_v45  ;;  %8147 = vmatprep.subr.bf16.mxu1 %v8338_v25  ;;  %v8203_v6 = vld [vmem:[%s12189_s3 + $0x70] sm:$0xff]  }
  0xed   :  { %969 = vst.msk [vmem:[#allocation5 + $0xf0] sm:$0xff] %vm742_vm3, %v8849_v43  ;;  %2250 = vst.msk [vmem:[#allocation5 + $0xc8] sm:$0xff] %vm742_vm3, %v8851_v44  ;;  %v8862_v49 = vld [vmem:[#allocation2 + $0x92] sm:$0xff]  ;;  %v7964_v52 = vpop.f32.mrf.mxu0  ;;  %4140 = vmatprep.subr.bf16.mxu0 %v8338_v25  ;;  %v3468_v15 = vld [vmem:[#allocation2 + $0x9a] sm:$0xff] }
  0xee   :  { %v8864_v50 = vld [vmem:[#allocation2 + $0x98] sm:$0xff]  ;;  %1540 = vrot.lane.b32.xlu0 %v1410_v46, %s8341_s30  ;;  %3531 = vst.msk [vmem:[#allocation5 + $0xd0] sm:$0xff] %vm742_vm3, %v8862_v49  ;;  %846 = vst.msk [vmem:[#allocation2 + $0xc9] sm:$0xff] %vm742_vm3, %v693_v47  ;;  %v691_v54 = vmax.f32 %v475_v48, 0.0  ;;  %v496_v55 = vadd.f32 %v7964_v52, %v8707_v23  ;;  %v8205_v37 = vld [vmem:[%s12189_s3 + $0x60] sm:$0xff]  }
  0xef   :  { %v8866_v51 = vld [vmem:[#allocation2 + $0x99] sm:$0xff]  ;;  %972 = vst.msk [vmem:[#allocation5 + $0x138] sm:$0xff] %vm742_vm3, %v8864_v50  ;;  %v8886_v59 = vld [vmem:[#allocation2 + $0x81] sm:$0xff]  ;;  %v487_v60 = vpop.f32.mrf.mxu0  ;;  %8163 = vmatpush2.bf16.msra.mxu1 %v8203_v6  ;;  %4141 = vmatpush2.bf16.msra.mxu0 %v8203_v6  ;;  %3532 = vst.msk [vmem:[#allocation5 + $0xe8] sm:$0xff] %vm742_vm3, %v3468_v15 }
  0xf0   :  { %2253 = vst.msk [vmem:[#allocation5 + $0x110] sm:$0xff] %vm742_vm3, %v8866_v51  ;;  %v8882_v57 = vld [vmem:[#allocation2 + $0x7a] sm:$0xff]  ;;  %1542 = vrot.lane.b32.xlu1 %v1411_v53, %s8341_s30  ;;  %844 = vst.msk [vmem:[#allocation2 + $0xb1] sm:$0xff] %vm742_vm3, %v691_v54  ;;  %v696_v61 = vmax.f32 %v496_v55, 0.0  ;;  %v488_v62 = vadd.f32 %v8707_v23, %v487_v60  ;;  %v3466_v12 = vld [vmem:[#allocation2 + $0x82] sm:$0xff]  ;;  %8148 = vmatprep.subr.bf16.mxu1 %v8338_v25 }
  0xf1   :  { %v8884_v58 = vld [vmem:[#allocation2 + $0x80] sm:$0xff]  ;;  %3529 = vst.msk [vmem:[#allocation5 + $0xa0] sm:$0xff] %vm742_vm3, %v8882_v57  ;;  %2251 = vst.msk [vmem:[#allocation5 + $0xe0] sm:$0xff] %vm742_vm3, %v8886_v59  ;;  %v7965_v0 = vpop.f32.mrf.mxu0  ;;  %4142 = vmatprep.subr.bf16.mxu0 %v8338_v25  ;;  %v2313_v38 = vld [vmem:[#allocation2 + $0x6a] sm:$0xff] }
  0xf2   :  { %970 = vst.msk [vmem:[#allocation5 + $0x108] sm:$0xff] %vm742_vm3, %v8884_v58  ;;  %v8897_v63 = vld [vmem:[#allocation2 + $0xc0] sm:$0xff]  ;;  %2827 = vrot.lane.b32.xlu0 %v8765_v3, %s8341_s30  ;;  %849 = vst.msk [vmem:[#allocation2 + $0xf1] sm:$0xff] %vm742_vm3, %v696_v61  ;;  %v694_v2 = vmax.f32 %v488_v62, 0.0  ;;  %v499_v5 = vadd.f32 %v7965_v0, %v8707_v23  ;;  %v8209_v47 = vld [vmem:[%s12189_s3 + $0x50] sm:$0xff]  }
  0xf3   :  { %v2192_v1 = vld [vmem:[#allocation2 + $0xc1] sm:$0xff]  ;;  %975 = vst.msk [vmem:[#allocation5 + $0x180] sm:$0xff] %vm742_vm3, %v8897_v63  ;;  %v8913_v8 = vld [vmem:[#allocation2 + $0xa9] sm:$0xff]  ;;  %v490_v9 = vpop.f32.mrf.mxu0  ;;  %3530 = vst.msk [vmem:[#allocation5 + $0xb8] sm:$0xff] %vm742_vm3, %v3466_v12  ;;  %8164 = vmatpush2.bf16.msra.mxu1 %v8204_v26  ;;  %4143 = vmatpush2.bf16.msra.mxu0 %v8204_v26 }
  0xf4   :  { %2256 = vst.msk [vmem:[#allocation5 + $0x158] sm:$0xff] %vm742_vm3, %v2192_v1  ;;  %v8911_v7 = vld [vmem:[#allocation2 + $0xa8] sm:$0xff]  ;;  %2829 = vrot.lane.b32.xlu1 %v8797_v19, %s8341_s30  ;;  %847 = vst.msk [vmem:[#allocation2 + $0xd9] sm:$0xff] %vm742_vm3, %v694_v2  ;;  %v697_v13 = vmax.f32 %v499_v5, 0.0  ;;  %v491_v14 = vadd.f32 %v8707_v23, %v490_v9  ;;  %8149 = vmatprep.subr.bf16.mxu1 %v8338_v25  ;;  %v8207_v45 = vld [vmem:[%s12187_s0 + $0x80] sm:$0xff]  }
  0xf5   :  { %973 = vst.msk [vmem:[#allocation5 + $0x150] sm:$0xff] %vm742_vm3, %v8911_v7  ;;  %2254 = vst.msk [vmem:[#allocation5 + $0x128] sm:$0xff] %vm742_vm3, %v8913_v8  ;;  %v8924_v17 = vld [vmem:[#allocation2 + $0xc2] sm:$0xff]  ;;  %v3472_v36 = vld [vmem:[#allocation2 + $0xca] sm:$0xff]  ;;  %4144 = vmatprep.subr.bf16.mxu0 %v8338_v25  ;;  %7978 = vmatprep.mubr.msk.bf16.mxu0 %vm285_vm2, %v8207_v45 }
  0xf6   :  { %v8926_v21 = vld [vmem:[#allocation2 + $0xc8] sm:$0xff]  ;;  %3211 = vrot.lane.b32.xlu0 %v8767_v4, %s8339_s21  ;;  %3535 = vst.msk [vmem:[#allocation5 + $0x130] sm:$0xff] %vm742_vm3, %v8924_v17  ;;  %850 = vst.msk [vmem:[#allocation2 + $0xf9] sm:$0xff] %vm742_vm3, %v697_v13  ;;  %v695_v24 = vmax.f32 %v491_v14, 0.0  ;;  %v8211_v60 = vld [vmem:[%s12189_s3 + $0x40] sm:$0xff]  }
  0xf7   :  { %v8928_v22 = vld [vmem:[#allocation2 + $0xc9] sm:$0xff]  ;;  %976 = vst.msk [vmem:[#allocation5 + $0x198] sm:$0xff] %vm742_vm3, %v8926_v21  ;;  %v8949_v32 = vld [vmem:[#allocation2 + $0xb1] sm:$0xff]  ;;  %3536 = vst.msk [vmem:[#allocation5 + $0x148] sm:$0xff] %vm742_vm3, %v3472_v36  ;;  %8165 = vmatpush2.bf16.msra.mxu1 %v8205_v37  ;;  %4145 = vmatpush2.bf16.msra.mxu0 %v8205_v37 }
  0xf8   :  { %2257 = vst.msk [vmem:[#allocation5 + $0x170] sm:$0xff] %vm742_vm3, %v8928_v22  ;;  %v8945_v27 = vld [vmem:[#allocation2 + $0xaa] sm:$0xff]  ;;  %3213 = vrot.lane.b32.xlu1 %v8799_v20, %s8339_s21  ;;  %848 = vst.msk [vmem:[#allocation2 + $0xe1] sm:$0xff] %vm742_vm3, %v695_v24  ;;  %v3470_v33 = vld [vmem:[#allocation2 + $0xb2] sm:$0xff]  ;;  %8150 = vmatprep.subr.bf16.mxu1 %v8338_v25 }
  0xf9   :  { %v8947_v31 = vld [vmem:[#allocation2 + $0xb0] sm:$0xff]  ;;  %3533 = vst.msk [vmem:[#allocation5 + $0x100] sm:$0xff] %vm742_vm3, %v8945_v27  ;;  %2255 = vst.msk [vmem:[#allocation5 + $0x140] sm:$0xff] %vm742_vm3, %v8949_v32  ;;  %4146 = vmatprep.subr.bf16.mxu0 %v8338_v25  ;;  %v8213_v1 = vld [vmem:[%s12187_s0 + $0x98] sm:$0xff]  }
  0xfa   :  { %974 = vst.msk [vmem:[#allocation5 + $0x168] sm:$0xff] %vm742_vm3, %v8947_v31  ;;  %3534 = vst.msk [vmem:[#allocation5 + $0x118] sm:$0xff] %vm742_vm3, %v3470_v33  ;;  %1933 = vrot.lane.b32.xlu0 %v8765_v3, %s8339_s21  ;;  %v8206_v3 = vld [vmem:[%s12189_s3 + $0x58] sm:$0xff]   ;;  %v8987_v41 = vld [vmem:[#allocation2 + $0xf0] sm:$0xff] }
  0xfb   :  { %8166 = vmatpush2.bf16.msra.mxu1 %v8206_v3  ;;  %v8991_v42 = vld [vmem:[#allocation2 + $0xf1] sm:$0xff]  ;;  %979 = vst.msk [vmem:[#allocation5 + $0x1e0] sm:$0xff] %vm742_vm3, %v8987_v41  ;;  %4147 = vmatpush2.bf16.msra.mxu0 %v8206_v3  ;;  %v9019_v52 = vld [vmem:[#allocation2 + $0xd9] sm:$0xff] }
  0xfc   :  { %2448 = vrot.lane.b32.xlu1 %v2313_v38, %s8340_s24  ;;  %8151 = vmatprep.subr.bf16.mxu1 %v8338_v25  ;;  %2260 = vst.msk [vmem:[#allocation5 + $0x1b8] sm:$0xff] %vm742_vm3, %v8991_v42  ;;  %v9013_v48 = vld [vmem:[#allocation2 + $0xd8] sm:$0xff]  ;;  %2258 = vst.msk [vmem:[#allocation5 + $0x188] sm:$0xff] %vm742_vm3, %v9019_v52 }
  0xfd   :  { %v8970_v39 = vld [vmem:[#allocation2 + $0xf2] sm:$0xff]  ;;  %4148 = vmatprep.subr.bf16.mxu0 %v8338_v25  ;;  %977 = vst.msk [vmem:[#allocation5 + $0x1b0] sm:$0xff] %vm742_vm3, %v9013_v48  ;;  %v3476_v56 = vld [vmem:[#allocation2 + $0xfa] sm:$0xff] }
  0xfe   :  { %1167 = vrot.lane.b32.xlu0 %v8767_v4, %s8340_s24  ;;  %3539 = vst.msk [vmem:[#allocation5 + $0x190] sm:$0xff] %vm742_vm3, %v8970_v39  ;;  %v8989_v4 = vld [vmem:[#allocation2 + $0xf8] sm:$0xff]  ;;  %3540 = vst.msk [vmem:[#allocation5 + $0x1a8] sm:$0xff] %vm742_vm3, %v3476_v56 }
  0xff   :  { %v8981_v40 = vld [vmem:[#allocation2 + $0xda] sm:$0xff]  ;;  %980 = vst.msk [vmem:[#allocation5 + $0x1f8] sm:$0xff] %vm742_vm3, %v8989_v4  ;;  %8167 = vmatpush2.bf16.msra.mxu1 %v8209_v47  ;;  %4149 = vmatpush2.bf16.msra.mxu0 %v8209_v47  ;;  %v3474_v55 = vld [vmem:[#allocation2 + $0xe2] sm:$0xff] }
 0x100   :  { %1935 = vrot.lane.b32.xlu1 %v8797_v19, %s8339_s21  ;;  %3537 = vst.msk [vmem:[#allocation5 + $0x160] sm:$0xff] %vm742_vm3, %v8981_v40  ;;  %v8997_v46 = vld [vmem:[#allocation2 + $0xf9] sm:$0xff]  ;;  %v8208_v19 = vld [vmem:[%s12187_s0 + $0x88] sm:$0xff]   ;;  %8152 = vmatprep.subr.bf16.mxu1 %v8338_v25  ;;  %3538 = vst.msk [vmem:[#allocation5 + $0x178] sm:$0xff] %vm742_vm3, %v3474_v55 }
 0x101   :  { %2261 = vst.msk [vmem:[#allocation5 + $0x1d0] sm:$0xff] %vm742_vm3, %v8997_v46  ;;  %v9021_v53 = vld [vmem:[#allocation2 + $0xe0] sm:$0xff]  ;;  %7979 = vmatmul.mubr.msk.bf16.gmra.mxu0 %vm285_vm2, %v8208_v19  ;;  %4150 = vmatprep.subr.bf16.mxu0 %v8338_v25 }
 0x102   :  { %2823 = vrot.lane.b32.xlu0 %v8783_v10, %s8341_s30  ;;  %v9023_v54 = vld [vmem:[#allocation2 + $0xe1] sm:$0xff]  ;;  %978 = vst.msk [vmem:[#allocation5 + $0x1c8] sm:$0xff] %vm742_vm3, %v9021_v53 }
 0x103   :  { %2259 = vst.msk [vmem:[#allocation5 + $0x1a0] sm:$0xff] %vm742_vm3, %v9023_v54  ;;  %v2317_v12 = vld [vmem:[#allocation2 + $0x9a] sm:$0xff] }
 0x104   :  { %1169 = vrot.lane.b32.xlu1 %v8799_v20, %s8340_s24  ;;  %v8210_v20 = vld [vmem:[%s12189_s3 + $0x48] sm:$0xff]  }
 0x105   :  { %8168 = vmatpush2.bf16.msra.mxu1 %v8210_v20  ;;  %4151 = vmatpush2.bf16.msra.mxu0 %v8210_v20 }
 0x106   :  { %3207 = vrot.lane.b32.xlu0 %v8785_v11, %s8339_s21  ;;  %8153 = vmatprep.subr.bf16.mxu1 %v8338_v25 }
 0x107   :  { %4152 = vmatprep.subr.bf16.mxu0 %v8338_v25  ;;  %v7968_v25 = vpop.f32.mrf.mxu0 }
 0x108   :  { %1554 = vrot.lane.b32.xlu1 %v2313_v38, %s8341_s30 }
 0x109   :  { %8169 = vmatpush2.bf16.msra.mxu1 %v8211_v60  ;;  %4153 = vmatpush2.bf16.msra.mxu0 %v8211_v60  ;;  %v503_v61 = vpop.f32.mrf.mxu0 }
 0x10a   :  { %1929 = vrot.lane.b32.xlu0 %v8783_v10, %s8339_s21  ;;  %v2311_v10 = vld [vmem:[#allocation2 + $0x52] sm:$0xff] }
 0x10b   :  { %v7969_v0 = vpop.f32.mrf.mxu0 }
 0x10c   :  { %2825 = vrot.lane.b32.xlu1 %v8818_v29, %s8341_s30 }
 0x10d   :  { %v506_v2 = vpop.f32.mrf.mxu0 }
 0x10e   :  { %1163 = vrot.lane.b32.xlu0 %v8785_v11, %s8340_s24  ;;  %v512_v11 = vadd.f32 %v7968_v25, %v8707_v23  ;;  %v507_v6 = vadd.f32 %v8707_v23, %v506_v2 }
 0x110   :  { %3209 = vrot.lane.b32.xlu1 %v8820_v30, %s8339_s21  ;;  %v700_v62 = vmax.f32 %v512_v11, 0.0  ;;  %v699_v9 = vmax.f32 %v507_v6, 0.0  ;;  %v8215_v11 = vld [vmem:[%s12187_s0 + $0xa8] sm:$0xff]  }
 0x112   :  { %2446 = vrot.lane.b32.xlu0 %v8795_v18, %s8340_s24  ;;  %853 = vst.msk [vmem:[#allocation2 + $0x121] sm:$0xff] %vm742_vm3, %v700_v62  ;;  %852 = vst.msk [vmem:[#allocation2 + $0x111] sm:$0xff] %vm742_vm3, %v699_v9 }
 0x114   :  { %2444 = vrot.lane.b32.xlu1 %v2311_v10, %s8340_s24 }
 0x116   :  { %1552 = vrot.lane.b32.xlu0 %v8795_v18, %s8341_s30  ;;  %v504_v18 = vadd.f32 %v8707_v23, %v503_v61 }
 0x118   :  { %1931 = vrot.lane.b32.xlu1 %v8818_v29, %s8339_s21  ;;  %v8212_v29 = vld [vmem:[%s12187_s0 + $0x90] sm:$0xff]  }
 0x119   :  { %7982 = vmatprep.mubr.msk.bf16.mxu0 %vm285_vm2, %v8212_v29  ;;  %v9120_v26 = vld [vmem:[#allocation2 + $0x121] sm:$0xff]  ;;  %v9138_v37 = vld [vmem:[#allocation2 + $0x111] sm:$0xff] }
 0x11a   :  { %2442 = vrot.lane.b32.xlu0 %v8816_v28, %s8340_s24  ;;  %7983 = vmatmul.mubr.msk.bf16.gmra.mxu0 %vm285_vm2, %v8213_v1  ;;  %2264 = vst.msk [vmem:[#allocation5 + $0x218] sm:$0xff] %vm742_vm3, %v9120_v26  ;;  %2263 = vst.msk [vmem:[#allocation5 + $0x200] sm:$0xff] %vm742_vm3, %v9138_v37  ;;  %v3478_v38 = vld [vmem:[#allocation2 + $0x112] sm:$0xff]  ;;  %v2321_v1 = vld [vmem:[#allocation2 + $0xca] sm:$0xff] }
 0x11b   :  { %3542 = vst.msk [vmem:[#allocation5 + $0x1d8] sm:$0xff] %vm742_vm3, %v3478_v38 }
 0x11c   :  { %1165 = vrot.lane.b32.xlu1 %v8820_v30, %s8340_s24  ;;  %v698_v30 = vmax.f32 %v504_v18, 0.0 }
 0x11e   :  { %1548 = vrot.lane.b32.xlu0 %v8816_v28, %s8341_s30  ;;  %v515_v28 = vadd.f32 %v7969_v0, %v8707_v23  ;;  %851 = vst.msk [vmem:[#allocation2 + $0x109] sm:$0xff] %vm742_vm3, %v698_v30 }
 0x120   :  { %1550 = vrot.lane.b32.xlu1 %v2311_v10, %s8341_s30  ;;  %v701_v5 = vmax.f32 %v515_v28, 0.0  ;;  %v8214_v10 = vld [vmem:[%s12187_s0 + $0xa0] sm:$0xff]  }
 0x121   :  { %7986 = vmatprep.mubr.msk.bf16.mxu0 %vm285_vm2, %v8214_v10 }
 0x122   :  { %2835 = vrot.lane.b32.xlu0 %v8832_v34, %s8341_s30  ;;  %854 = vst.msk [vmem:[#allocation2 + $0x129] sm:$0xff] %vm742_vm3, %v701_v5  ;;  %7987 = vmatmul.mubr.msk.bf16.gmra.mxu0 %vm285_vm2, %v8215_v11 }
 0x124   :  { %2837 = vrot.lane.b32.xlu1 %v8864_v50, %s8341_s30 }
 0x125   :  { %v9110_v15 = vld [vmem:[#allocation2 + $0x10a] sm:$0xff] }
 0x126   :  { %3219 = vrot.lane.b32.xlu0 %v8834_v35, %s8339_s21  ;;  %3541 = vst.msk [vmem:[#allocation5 + $0x1c0] sm:$0xff] %vm742_vm3, %v9110_v15  ;;  %v9124_v33 = vld [vmem:[#allocation2 + $0x108] sm:$0xff] }
 0x127   :  { %v9126_v36 = vld [vmem:[#allocation2 + $0x109] sm:$0xff]  ;;  %981 = vst.msk [vmem:[#allocation5 + $0x210] sm:$0xff] %vm742_vm3, %v9124_v33 }
 0x128   :  { %3221 = vrot.lane.b32.xlu1 %v8866_v51, %s8339_s21  ;;  %2262 = vst.msk [vmem:[#allocation5 + $0x1e8] sm:$0xff] %vm742_vm3, %v9126_v36 }
 0x129   :  { %v9100_v13 = vld [vmem:[#allocation2 + $0x122] sm:$0xff]  ;;  %v9102_v14 = vld [vmem:[#allocation2 + $0x12a] sm:$0xff] }
 0x12a   :  { %1941 = vrot.lane.b32.xlu0 %v8832_v34, %s8339_s21  ;;  %3543 = vst.msk [vmem:[#allocation5 + $0x1f0] sm:$0xff] %vm742_vm3, %v9100_v13  ;;  %3544 = vst.msk [vmem:[#allocation5 + $0x208] sm:$0xff] %vm742_vm3, %v9102_v14  ;;  %v9116_v34 = vld [vmem:[#allocation2 + $0x120] sm:$0xff]  ;;  %v9118_v24 = vld [vmem:[#allocation2 + $0x128] sm:$0xff] }
 0x12b   :  { %983 = vst.msk [vmem:[#allocation5 + $0x240] sm:$0xff] %vm742_vm3, %v9116_v34  ;;  %984 = vst.msk [vmem:[#allocation5 + $0x258] sm:$0xff] %vm742_vm3, %v9118_v24 }
 0x12c   :  { %2456 = vrot.lane.b32.xlu1 %v2317_v12, %s8340_s24 }
 0x12e   :  { %1175 = vrot.lane.b32.xlu0 %v8834_v35, %s8340_s24  ;;  %v9122_v35 = vld [vmem:[#allocation2 + $0x129] sm:$0xff] }
 0x12f   :  { %2265 = vst.msk [vmem:[#allocation5 + $0x230] sm:$0xff] %vm742_vm3, %v9122_v35 }
 0x130   :  { %1943 = vrot.lane.b32.xlu1 %v8864_v50, %s8339_s21  ;;  %v9136_v50 = vld [vmem:[#allocation2 + $0x110] sm:$0xff] }
 0x131   :  { %982 = vst.msk [vmem:[#allocation5 + $0x228] sm:$0xff] %vm742_vm3, %v9136_v50 }
 0x132   :  { %2831 = vrot.lane.b32.xlu0 %v8849_v43, %s8341_s30 }
 0x134   :  { %1177 = vrot.lane.b32.xlu1 %v8866_v51, %s8340_s24  ;;  %v2315_v51 = vld [vmem:[#allocation2 + $0x82] sm:$0xff] }
 0x136   :  { %3215 = vrot.lane.b32.xlu0 %v8851_v44, %s8339_s21 }
 0x138   :  { %1562 = vrot.lane.b32.xlu1 %v2317_v12, %s8341_s30 }
 0x13a   :  { %1937 = vrot.lane.b32.xlu0 %v8849_v43, %s8339_s21  ;;  %v7972_v43 = vpop.f32.mrf.mxu0 }
 0x13c   :  { %2833 = vrot.lane.b32.xlu1 %v8884_v58, %s8341_s30  ;;  %v519_v45 = vpop.f32.mrf.mxu0 }
 0x13d   :  { %v520_v47 = vadd.f32 %v8707_v23, %v519_v45 }
 0x13e   :  { %1171 = vrot.lane.b32.xlu0 %v8851_v44, %s8340_s24  ;;  %v528_v44 = vadd.f32 %v7972_v43, %v8707_v23 }
 0x13f   :  { %v702_v20 = vmax.f32 %v520_v47, 0.0 }
 0x140   :  { %3217 = vrot.lane.b32.xlu1 %v8886_v59, %s8339_s21  ;;  %v704_v19 = vmax.f32 %v528_v44, 0.0 }
 0x141   :  { %855 = vst.msk [vmem:[#allocation2 + $0x139] sm:$0xff] %vm742_vm3, %v702_v20 }
 0x142   :  { %2454 = vrot.lane.b32.xlu0 %v8862_v49, %s8340_s24  ;;  %857 = vst.msk [vmem:[#allocation2 + $0x151] sm:$0xff] %vm742_vm3, %v704_v19 }
 0x144   :  { %2452 = vrot.lane.b32.xlu1 %v2315_v51, %s8340_s24 }
 0x146   :  { %1560 = vrot.lane.b32.xlu0 %v8862_v49, %s8341_s30 }
 0x148   :  { %1939 = vrot.lane.b32.xlu1 %v8884_v58, %s8339_s21  ;;  %v7973_v58 = vpop.f32.mrf.mxu0  ;;  %v921_v44 = vld [vmem:[#allocation2 + $0x138] sm:$0xff] }
 0x149   :  { %v531_v55 = vadd.f32 %v7973_v58, %v8707_v23  ;;  %v9230_v12 = vld [vmem:[#allocation2 + $0x151] sm:$0xff]  ;;  %985 = vst.msk [vmem:[#allocation5 + $0x270] sm:$0xff] %vm742_vm3, %v921_v44 }
 0x14a   :  { %2450 = vrot.lane.b32.xlu0 %v8882_v57, %s8340_s24  ;;  %2268 = vst.msk [vmem:[#allocation5 + $0x278] sm:$0xff] %vm742_vm3, %v9230_v12  ;;  %v923_v19 = vld [vmem:[#allocation2 + $0x150] sm:$0xff] }
 0x14b   :  { %v705_v60 = vmax.f32 %v531_v55, 0.0  ;;  %987 = vst.msk [vmem:[#allocation5 + $0x2a0] sm:$0xff] %vm742_vm3, %v923_v19 }
 0x14c   :  { %v9174_v3 = vpop.permute.xlu0 %1925  ;;  %1173 = vrot.lane.b32.xlu1 %v8886_v59, %s8340_s24  ;;  %v522_v59 = vpop.f32.mrf.mxu0 }
 0x14d   :  { %858 = vst.msk [vmem:[#allocation2 + $0x159] sm:$0xff] %vm742_vm3, %v705_v60 }
 0x14e   :  { %1556 = vrot.lane.b32.xlu0 %v8882_v57, %s8341_s30  ;;  %v1156_v49 = vpop.permute.xlu1 %1155  ;;  %v523_v57 = vadd.f32 %v8707_v23, %v522_v59  ;;  %v3087_v23 = vld [vmem:[#allocation2 + $0xc1] sm:$0xff]  ;;  %v7976_v55 = vpop.f32.mrf.mxu0 }
 0x14f   :  { %1346 = vst.msk [vmem:[#allocation5 + $0x30] sm:$0xff] %vm1343_vm5, %v1156_v49 }
 0x150   :  { %v1160_v56 = vpop.permute.xlu0 %1159  ;;  %1558 = vrot.lane.b32.xlu1 %v2315_v51, %s8341_s30  ;;  %v703_v61 = vmax.f32 %v523_v57, 0.0 }
 0x151   :  { %1348 = vst.msk [vmem:[#allocation5 + $0x60] sm:$0xff] %vm1343_vm5, %v1160_v56  ;;  %v9279_v56 = vld [vmem:[%s12188_s2] ss:$0 sm:$0xff] }
 0x152   :  { %2843 = vrot.lane.b32.xlu0 %v8897_v63, %s8341_s30  ;;  %v1928_v25 = vpop.permute.xlu1 %1927  ;;  %856 = vst.msk [vmem:[#allocation2 + $0x141] sm:$0xff] %vm742_vm3, %v703_v61  ;;  %v544_v59 = vadd.f32 %v9279_v56, %v7976_v55 }
 0x154   :  { %v2439_v62 = vpop.permute.xlu0 %2438  ;;  %2845 = vrot.lane.b32.xlu1 %v8926_v21, %s8341_s30  ;;  %v9210_v30 = vld [vmem:[#allocation2 + $0x152] sm:$0xff]  ;;  %v9212_v28 = vld [vmem:[#allocation2 + $0x15a] sm:$0xff]  ;;  %v708_v57 = vmax.f32 %v544_v59, 0.0 }
 0x155   :  { %2628 = vst.msk [vmem:[#allocation5 + $0x38] sm:$0xff] %vm1343_vm5, %v2439_v62  ;;  %v9235_v38 = vld [vmem:[#allocation2 + $0x159] sm:$0xff] }
 0x156   :  { %3227 = vrot.lane.b32.xlu0 %v3087_v23, %s8339_s21  ;;  %v1162_v18 = vpop.permute.xlu1 %1161  ;;  %3547 = vst.msk [vmem:[#allocation5 + $0x250] sm:$0xff] %vm742_vm3, %v9210_v30  ;;  %3548 = vst.msk [vmem:[#allocation5 + $0x268] sm:$0xff] %vm742_vm3, %v9212_v28 }
 0x157   :  { %1349 = vst.msk [vmem:[#allocation5 + $0x78] sm:$0xff] %vm1343_vm5, %v1162_v18  ;;  %v2319_v18 = vld [vmem:[#allocation2 + $0xb2] sm:$0xff] }
 0x158   :  { %v2441_v0 = vpop.permute.xlu0 %2440  ;;  %3229 = vrot.lane.b32.xlu1 %v8928_v22, %s8339_s21  ;;  %2269 = vst.msk [vmem:[#allocation5 + $0x290] sm:$0xff] %vm742_vm3, %v9235_v38  ;;  %861 = vst.msk [vmem:[#allocation2 + $0x181] sm:$0xff] %vm742_vm3, %v708_v57 }
 0x159   :  { %2629 = vst.msk [vmem:[#allocation5 + $0x50] sm:$0xff] %vm1343_vm5, %v2441_v0  ;;  %v9220_v5 = vld [vmem:[#allocation2 + $0x13a] sm:$0xff] }
 0x15a   :  { %1949 = vrot.lane.b32.xlu0 %v8897_v63, %s8339_s21  ;;  %v1547_v29 = vpop.permute.xlu1 %1546  ;;  %3545 = vst.msk [vmem:[#allocation5 + $0x220] sm:$0xff] %vm742_vm3, %v9220_v5  ;;  %v9225_v63 = vld [vmem:[#allocation2 + $0x139] sm:$0xff]  ;;  %v9228_v9 = vld [vmem:[#allocation2 + $0x141] sm:$0xff] }
 0x15b   :  { %1734 = vst.msk [vmem:[#allocation5 + $0x78] sm:$0xff] %vm1728_vm6, %v1547_v29  ;;  %v922_v45 = vld [vmem:[#allocation2 + $0x140] sm:$0xff] }
 0x15c   :  { %v1545_v2 = vpop.permute.xlu0 %1544  ;;  %2464 = vrot.lane.b32.xlu1 %v2321_v1, %s8340_s24  ;;  %2266 = vst.msk [vmem:[#allocation5 + $0x248] sm:$0xff] %vm742_vm3, %v9225_v63  ;;  %2267 = vst.msk [vmem:[#allocation5 + $0x260] sm:$0xff] %vm742_vm3, %v9228_v9 }
 0x15d   :  { %1733 = vst.msk [vmem:[#allocation5 + $0x60] sm:$0xff] %vm1728_vm6, %v1545_v2 }
 0x15e   :  { %1183 = vrot.lane.b32.xlu0 %v3087_v23, %s8340_s24  ;;  %v1158_v6 = vpop.permute.xlu1 %1157  ;;  %986 = vst.msk [vmem:[#allocation5 + $0x288] sm:$0xff] %vm742_vm3, %v922_v45 }
 0x15f   :  { %1347 = vst.msk [vmem:[#allocation5 + $0x48] sm:$0xff] %vm1343_vm5, %v1158_v6  ;;  %v9341_v55 = vld [vmem:[#allocation2 + $0x181] sm:$0xff] }
 0x160   :  { %v1541_v51 = vpop.permute.xlu0 %1540  ;;  %1951 = vrot.lane.b32.xlu1 %v8926_v21, %s8339_s21  ;;  %v924_v21 = vld [vmem:[#allocation2 + $0x158] sm:$0xff]  ;;  %2272 = vst.msk [vmem:[#allocation5 + $0x2d8] sm:$0xff] %vm742_vm3, %v9341_v55 }
 0x161   :  { %1731 = vst.msk [vmem:[#allocation5 + $0x30] sm:$0xff] %vm1728_vm6, %v1541_v51 }
 0x162   :  { %2116 = vst.msk [vmem:[#allocation5 + $0x30] sm:$0xff] %vm2113_vm7, %v9174_v3  ;;  %2839 = vrot.lane.b32.xlu0 %v8911_v7, %s8341_s30  ;;  %v1543_v43 = vpop.permute.xlu1 %1542  ;;  %v3482_v3 = vld [vmem:[#allocation2 + $0x142] sm:$0xff] }
 0x163   :  { %1732 = vst.msk [vmem:[#allocation5 + $0x48] sm:$0xff] %vm1728_vm6, %v1543_v43 }
 0x164   :  { %2117 = vst.msk [vmem:[#allocation5 + $0x48] sm:$0xff] %vm2113_vm7, %v1928_v25  ;;  %v9255_v47 = vpop.permute.xlu0 %2827  ;;  %1185 = vrot.lane.b32.xlu1 %v8928_v22, %s8340_s24 }
 0x165   :  { %988 = vst.msk [vmem:[#allocation5 + $0x2b8] sm:$0xff] %vm742_vm3, %v924_v21  ;;  %3546 = vst.msk [vmem:[#allocation5 + $0x238] sm:$0xff] %vm742_vm3, %v3482_v3 }
 0x166   :  { %3223 = vrot.lane.b32.xlu0 %v8913_v8, %s8339_s21  ;;  %v9263_v49 = vpop.permute.xlu1 %2829 }
 0x168   :  { %v9265_v58 = vpop.permute.xlu0 %3211  ;;  %1570 = vrot.lane.b32.xlu1 %v2321_v1, %s8341_s30 }
 0x16a   :  { %1945 = vrot.lane.b32.xlu0 %v8911_v7, %s8339_s21  ;;  %v9270_v20 = vpop.permute.xlu1 %3213  ;;  %v535_v7 = vpop.f32.mrf.mxu0 }
 0x16b   :  { %v536_v10 = vadd.f32 %v9279_v56, %v535_v7  ;;  %v8217_v7 = vld [vmem:[%s12187_s0 + $0xb8] sm:$0xff]  }
 0x16c   :  { %v9272_v22 = vpop.permute.xlu0 %1933  ;;  %2841 = vrot.lane.b32.xlu1 %v8947_v31, %s8341_s30  ;;  %v7977_v11 = vpop.f32.mrf.mxu0 }
 0x16d   :  { %v706_v61 = vmax.f32 %v536_v10, 0.0  ;;  %v547_v62 = vadd.f32 %v9279_v56, %v7977_v11 }
 0x16e   :  { %1179 = vrot.lane.b32.xlu0 %v8913_v8, %s8340_s24  ;;  %v2449_v60 = vpop.permute.xlu1 %2448  ;;  %v538_v23 = vpop.f32.mrf.mxu0 }
 0x16f   :  { %2633 = vst.msk [vmem:[#allocation5 + $0xb0] sm:$0xff] %vm1343_vm5, %v2449_v60  ;;  %v709_v0 = vmax.f32 %v547_v62, 0.0  ;;  %v539_v29 = vadd.f32 %v9279_v56, %v538_v23  ;;  %v3596_v23 = vld [vmem:[#allocation5 + $0x48] sm:$0xff] }
 0x170   :  { %v1168_v25 = vpop.permute.xlu0 %1167  ;;  %3225 = vrot.lane.b32.xlu1 %v8949_v32, %s8339_s21  ;;  %859 = vst.msk [vmem:[#allocation2 + $0x169] sm:$0xff] %vm742_vm3, %v706_v61 }
 0x171   :  { %1352 = vst.msk [vmem:[#allocation5 + $0xc0] sm:$0xff] %vm1343_vm5, %v1168_v25  ;;  %v707_v2 = vmax.f32 %v539_v29, 0.0 }
 0x172   :  { %2462 = vrot.lane.b32.xlu0 %v8924_v17, %s8340_s24  ;;  %v9293_v8 = vpop.permute.xlu1 %1935  ;;  %862 = vst.msk [vmem:[#allocation2 + $0x189] sm:$0xff] %vm742_vm3, %v709_v0 }
 0x173   :  { %860 = vst.msk [vmem:[#allocation2 + $0x171] sm:$0xff] %vm742_vm3, %v707_v2  ;;  %v3593_v2 = vld [vmem:[#allocation5 + $0x30] sm:$0xff] }
 0x174   :  { %v2824_v1 = vpop.permute.xlu0 %2823  ;;  %2460 = vrot.lane.b32.xlu1 %v2319_v18, %s8340_s24 }
 0x175   :  { %3013 = vst.msk [vmem:[#allocation5 + $0x38] sm:$0xff] %vm1728_vm6, %v2824_v1  ;;  %v2325_v1 = vld [vmem:[#allocation2 + $0xfa] sm:$0xff] }
 0x176   :  { %1568 = vrot.lane.b32.xlu0 %v8924_v17, %s8341_s30  ;;  %v1170_v6 = vpop.permute.xlu1 %1169 }
 0x177   :  { %1353 = vst.msk [vmem:[#allocation5 + $0xd8] sm:$0xff] %vm1343_vm5, %v1170_v6  ;;  %v925_v10 = vld [vmem:[#allocation2 + $0x168] sm:$0xff] }
 0x178   :  { %v3208_v51 = vpop.permute.xlu0 %3207  ;;  %1947 = vrot.lane.b32.xlu1 %v8947_v31, %s8339_s21  ;;  %989 = vst.msk [vmem:[#allocation5 + $0x2d0] sm:$0xff] %vm742_vm3, %v925_v10 }
 0x179   :  { %3397 = vst.msk [vmem:[#allocation5 + $0x38] sm:$0xff] %vm2113_vm7, %v3208_v51  ;;  %v9312_v17 = vld [vmem:[#allocation2 + $0x182] sm:$0xff]  ;;  %v9314_v45 = vld [vmem:[#allocation2 + $0x18a] sm:$0xff]  ;;  %v3782_v51 = vpack.c.bf16 %v3596_v23, %v3593_v2 }
 0x17a   :  { %2458 = vrot.lane.b32.xlu0 %v8945_v27, %s8340_s24  ;;  %v1555_v43 = vpop.permute.xlu1 %1554  ;;  %3551 = vst.msk [vmem:[#allocation5 + $0x2b0] sm:$0xff] %vm742_vm3, %v9312_v17  ;;  %3552 = vst.msk [vmem:[#allocation5 + $0x2c8] sm:$0xff] %vm742_vm3, %v9314_v45  ;;  %v9323_v19 = vld [vmem:[#allocation2 + $0x16a] sm:$0xff]  ;;  %v3486_v61 = vld [vmem:[#allocation2 + $0x172] sm:$0xff] }
 0x17b   :  { %1738 = vst.msk [vmem:[#allocation5 + $0xd8] sm:$0xff] %vm1728_vm6, %v1555_v43  ;;  %v9330_v21 = vld [vmem:[#allocation2 + $0x171] sm:$0xff]  ;;  %v9343_v59 = vld [vmem:[#allocation2 + $0x189] sm:$0xff] }
 0x17c   :  { %v1930_v44 = vpop.permute.xlu0 %1929  ;;  %1181 = vrot.lane.b32.xlu1 %v8949_v32, %s8340_s24  ;;  %3549 = vst.msk [vmem:[#allocation5 + $0x280] sm:$0xff] %vm742_vm3, %v9323_v19  ;;  %v9328_v32 = vld [vmem:[#allocation2 + $0x169] sm:$0xff]  ;;  %2271 = vst.msk [vmem:[#allocation5 + $0x2c0] sm:$0xff] %vm742_vm3, %v9330_v21 }
 0x17d   :  { %2118 = vst.msk [vmem:[#allocation5 + $0x60] sm:$0xff] %vm2113_vm7, %v1930_v44  ;;  %v926_v25 = vld [vmem:[#allocation2 + $0x170] sm:$0xff] }
 0x17e   :  { %1564 = vrot.lane.b32.xlu0 %v8945_v27, %s8341_s30  ;;  %v2826_v31 = vpop.permute.xlu1 %2825  ;;  %2270 = vst.msk [vmem:[#allocation5 + $0x2a8] sm:$0xff] %vm742_vm3, %v9328_v32  ;;  %v8216_v27 = vld [vmem:[%s12187_s0 + $0xb0] sm:$0xff]   ;;  %2273 = vst.msk [vmem:[#allocation5 + $0x2f0] sm:$0xff] %vm742_vm3, %v9343_v59 }
 0x17f   :  { %3014 = vst.msk [vmem:[#allocation5 + $0x50] sm:$0xff] %vm1728_vm6, %v2826_v31  ;;  %7990 = vmatprep.mubr.msk.bf16.mxu0 %vm285_vm2, %v8216_v27 }
 0x180   :  { %v1164_v3 = vpop.permute.xlu0 %1163  ;;  %1566 = vrot.lane.b32.xlu1 %v2319_v18, %s8341_s30  ;;  %7991 = vmatmul.mubr.msk.bf16.gmra.mxu0 %vm285_vm2, %v8217_v7  ;;  %990 = vst.msk [vmem:[#allocation5 + $0x2e8] sm:$0xff] %vm742_vm3, %v926_v25  ;;  %3550 = vst.msk [vmem:[#allocation5 + $0x298] sm:$0xff] %vm742_vm3, %v3486_v61  ;;  %v3594_v0 = vld [vmem:[#allocation5 + $0x38] sm:$0xff] }
 0x181   :  { %1350 = vst.msk [vmem:[#allocation5 + $0x90] sm:$0xff] %vm1343_vm5, %v1164_v3 }
 0x182   :  { %2851 = vrot.lane.b32.xlu0 %v8987_v41, %s8341_s30  ;;  %v3210_v60 = vpop.permute.xlu1 %3209 }
 0x183   :  { %3398 = vst.msk [vmem:[#allocation5 + $0x50] sm:$0xff] %vm2113_vm7, %v3210_v60 }
 0x184   :  { %v2447_v57 = vpop.permute.xlu0 %2446  ;;  %2853 = vrot.lane.b32.xlu1 %v8989_v4, %s8341_s30  ;;  %v3599_v31 = vld [vmem:[#allocation5 + $0x60] sm:$0xff] }
 0x185   :  { %2632 = vst.msk [vmem:[#allocation5 + $0x98] sm:$0xff] %vm1343_vm5, %v2447_v57  ;;  %v2323_v57 = vld [vmem:[#allocation2 + $0xe2] sm:$0xff] }
 0x186   :  { %3235 = vrot.lane.b32.xlu0 %v8991_v42, %s8339_s21  ;;  %v2445_v11 = vpop.permute.xlu1 %2444 }
 0x187   :  { %2631 = vst.msk [vmem:[#allocation5 + $0x80] sm:$0xff] %vm1343_vm5, %v2445_v11 }
 0x188   :  { %3016 = vst.msk [vmem:[#allocation5 + $0x80] sm:$0xff] %vm1728_vm6, %v9263_v49  ;;  %v1553_v62 = vpop.permute.xlu0 %1552  ;;  %3237 = vrot.lane.b32.xlu1 %v8997_v46, %s8339_s21 }
 0x189   :  { %3400 = vst.msk [vmem:[#allocation5 + $0x80] sm:$0xff] %vm2113_vm7, %v9270_v20 }
 0x18a   :  { %1737 = vst.msk [vmem:[#allocation5 + $0xc0] sm:$0xff] %vm1728_vm6, %v1553_v62  ;;  %1957 = vrot.lane.b32.xlu0 %v8987_v41, %s8339_s21  ;;  %v1932_v18 = vpop.permute.xlu1 %1931  ;;  %v3597_v29 = vld [vmem:[#allocation5 + $0x50] sm:$0xff]  ;;  %v8219_v62 = vld [vmem:[%s12187_s0 + $0xc8] sm:$0xff]  }
 0x18b   :  { %2119 = vst.msk [vmem:[#allocation5 + $0x78] sm:$0xff] %vm2113_vm7, %v1932_v18  ;;  %v3783_v49 = vpack.c.bf16 %v3597_v29, %v3594_v0 }
 0x18c   :  { %v2443_v6 = vpop.permute.xlu0 %2442  ;;  %2472 = vrot.lane.b32.xlu1 %v2325_v1, %s8340_s24 }
 0x18d   :  { %2630 = vst.msk [vmem:[#allocation5 + $0x68] sm:$0xff] %vm1343_vm5, %v2443_v6  ;;  %4162 = vmatprep.mubr.bf16.mxu1 %v3783_v49 }
 0x18e   :  { %3015 = vst.msk [vmem:[#allocation5 + $0x68] sm:$0xff] %vm1728_vm6, %v9255_v47  ;;  %1191 = vrot.lane.b32.xlu0 %v8991_v42, %s8340_s24  ;;  %v1166_v41 = vpop.permute.xlu1 %1165  ;;  %4163 = vmatmul.mubr.bf16.vlgmr.msra.gmra.mxu1 %v3782_v51 }
 0x18f   :  { %3399 = vst.msk [vmem:[#allocation5 + $0x68] sm:$0xff] %vm2113_vm7, %v9265_v58 }
 0x190   :  { %1351 = vst.msk [vmem:[#allocation5 + $0xa8] sm:$0xff] %vm1343_vm5, %v1166_v41  ;;  %v1549_v20 = vpop.permute.xlu0 %1548  ;;  %1959 = vrot.lane.b32.xlu1 %v8989_v4, %s8339_s21  ;;  %v3603_v43 = vld [vmem:[#allocation5 + $0x80] sm:$0xff] }
 0x191   :  { %1735 = vst.msk [vmem:[#allocation5 + $0x90] sm:$0xff] %vm1728_vm6, %v1549_v20 }
 0x192   :  { %2120 = vst.msk [vmem:[#allocation5 + $0x90] sm:$0xff] %vm2113_vm7, %v9272_v22  ;;  %2847 = vrot.lane.b32.xlu0 %v9013_v48, %s8341_s30  ;;  %v1551_v42 = vpop.permute.xlu1 %1550  ;;  %v3602_v4 = vld [vmem:[#allocation5 + $0x78] sm:$0xff] }
 0x193   :  { %1736 = vst.msk [vmem:[#allocation5 + $0xa8] sm:$0xff] %vm1728_vm6, %v1551_v42 }
 0x194   :  { %2121 = vst.msk [vmem:[#allocation5 + $0xa8] sm:$0xff] %vm2113_vm7, %v9293_v8  ;;  %v9395_v47 = vpop.permute.xlu0 %2835  ;;  %1193 = vrot.lane.b32.xlu1 %v8997_v46, %s8340_s24  ;;  %v3785_v8 = vpack.c.bf16 %v3602_v4, %v3599_v31 }
 0x196   :  { %3231 = vrot.lane.b32.xlu0 %v9019_v52, %s8339_s21  ;;  %v9401_v58 = vpop.permute.xlu1 %2837  ;;  %v3600_v22 = vld [vmem:[#allocation5 + $0x68] sm:$0xff] }
 0x197   :  { %v3786_v44 = vpack.c.bf16 %v3603_v43, %v3600_v22 }
 0x198   :  { %v9403_v3 = vpop.permute.xlu0 %3219  ;;  %1578 = vrot.lane.b32.xlu1 %v2325_v1, %s8341_s30 }
 0x199   :  { %4170 = vmatprep.mubr.bf16.mxu1 %v3786_v44  ;;  %v3605_v6 = vld [vmem:[#allocation5 + $0x90] sm:$0xff] }
 0x19a   :  { %1953 = vrot.lane.b32.xlu0 %v9013_v48, %s8339_s21  ;;  %v9408_v46 = vpop.permute.xlu1 %3221  ;;  %4171 = vmatmul.mubr.bf16.gmra.mxu1 %v3785_v8 }
 0x19b   :  { %v3608_v0 = vld [vmem:[#allocation5 + $0xa8] sm:$0xff] }
 0x19c   :  { %v9410_v27 = vpop.permute.xlu0 %1941  ;;  %2849 = vrot.lane.b32.xlu1 %v9021_v53, %s8341_s30  ;;  %v3788_v41 = vpack.c.bf16 %v3608_v0, %v3605_v6  ;;  %v8221_v6 = vld [vmem:[%s12187_s0 + $0xd8] sm:$0xff]  }
 0x19e   :  { %1187 = vrot.lane.b32.xlu0 %v9019_v52, %s8340_s24  ;;  %v2457_v60 = vpop.permute.xlu1 %2456 }
 0x19f   :  { %2637 = vst.msk [vmem:[#allocation5 + $0x110] sm:$0xff] %vm1343_vm5, %v2457_v60 }
 0x1a0   :  { %v1176_v7 = vpop.permute.xlu0 %1175  ;;  %3233 = vrot.lane.b32.xlu1 %v9023_v54, %s8339_s21 }
 0x1a1   :  { %1356 = vst.msk [vmem:[#allocation5 + $0x120] sm:$0xff] %vm1343_vm5, %v1176_v7 }
 0x1a2   :  { %2470 = vrot.lane.b32.xlu0 %v8970_v39, %s8340_s24  ;;  %v9422_v48 = vpop.permute.xlu1 %1943 }
 0x1a4   :  { %v2832_v10 = vpop.permute.xlu0 %2831  ;;  %2468 = vrot.lane.b32.xlu1 %v2323_v57, %s8340_s24 }
 0x1a5   :  { %3017 = vst.msk [vmem:[#allocation5 + $0x98] sm:$0xff] %vm1728_vm6, %v2832_v10 }
 0x1a6   :  { %1576 = vrot.lane.b32.xlu0 %v8970_v39, %s8341_s30  ;;  %v1178_v52 = vpop.permute.xlu1 %1177 }
 0x1a7   :  { %1357 = vst.msk [vmem:[#allocation5 + $0x138] sm:$0xff] %vm1343_vm5, %v1178_v52 }
 0x1a8   :  { %v3216_v25 = vpop.permute.xlu0 %3215  ;;  %1955 = vrot.lane.b32.xlu1 %v9021_v53, %s8339_s21  ;;  %v8218_v53 = vld [vmem:[%s12187_s0 + $0xc0] sm:$0xff]  }
 0x1a9   :  { %3401 = vst.msk [vmem:[#allocation5 + $0x98] sm:$0xff] %vm2113_vm7, %v3216_v25  ;;  %7994 = vmatprep.mubr.msk.bf16.mxu0 %vm285_vm2, %v8218_v53 }
 0x1aa   :  { %2466 = vrot.lane.b32.xlu0 %v8981_v40, %s8340_s24  ;;  %v1563_v11 = vpop.permute.xlu1 %1562  ;;  %7995 = vmatmul.mubr.msk.bf16.gmra.mxu0 %vm285_vm2, %v8219_v62 }
 0x1ab   :  { %1742 = vst.msk [vmem:[#allocation5 + $0x138] sm:$0xff] %vm1728_vm6, %v1563_v11 }
 0x1ac   :  { %v1938_v61 = vpop.permute.xlu0 %1937  ;;  %1189 = vrot.lane.b32.xlu1 %v9023_v54, %s8340_s24 }
 0x1ad   :  { %2122 = vst.msk [vmem:[#allocation5 + $0xc0] sm:$0xff] %vm2113_vm7, %v1938_v61 }
 0x1ae   :  { %1572 = vrot.lane.b32.xlu0 %v8981_v40, %s8341_s30  ;;  %v2834_v39 = vpop.permute.xlu1 %2833 }
 0x1af   :  { %3018 = vst.msk [vmem:[#allocation5 + $0xb0] sm:$0xff] %vm1728_vm6, %v2834_v39  ;;  %v2327_v39 = vld [vmem:[#allocation2 + $0x112] sm:$0xff] }
 0x1b0   :  { %v1172_v40 = vpop.permute.xlu0 %1171  ;;  %1574 = vrot.lane.b32.xlu1 %v2323_v57, %s8341_s30  ;;  %v3606_v1 = vld [vmem:[#allocation5 + $0x98] sm:$0xff] }
 0x1b1   :  { %1354 = vst.msk [vmem:[#allocation5 + $0xf0] sm:$0xff] %vm1343_vm5, %v1172_v40 }
 0x1b2   :  { %2859 = vrot.lane.b32.xlu0 %v9116_v34, %s8341_s30  ;;  %v3218_v54 = vpop.permute.xlu1 %3217 }
 0x1b3   :  { %3402 = vst.msk [vmem:[#allocation5 + $0xb0] sm:$0xff] %vm2113_vm7, %v3218_v54 }
 0x1b4   :  { %v2455_v16 = vpop.permute.xlu0 %2454  ;;  %2861 = vrot.lane.b32.xlu1 %v9118_v24, %s8341_s30 }
 0x1b5   :  { %2636 = vst.msk [vmem:[#allocation5 + $0xf8] sm:$0xff] %vm1343_vm5, %v2455_v16 }
 0x1b6   :  { %3243 = vrot.lane.b32.xlu0 %v9120_v26, %s8339_s21  ;;  %v2453_v23 = vpop.permute.xlu1 %2452 }
 0x1b7   :  { %2635 = vst.msk [vmem:[#allocation5 + $0xe0] sm:$0xff] %vm1343_vm5, %v2453_v23 }
 0x1b8   :  { %3020 = vst.msk [vmem:[#allocation5 + $0xe0] sm:$0xff] %vm1728_vm6, %v9401_v58  ;;  %v1561_v18 = vpop.permute.xlu0 %1560  ;;  %3245 = vrot.lane.b32.xlu1 %v9122_v35, %s8339_s21 }
 0x1b9   :  { %3404 = vst.msk [vmem:[#allocation5 + $0xe0] sm:$0xff] %vm2113_vm7, %v9408_v46 }
 0x1ba   :  { %1741 = vst.msk [vmem:[#allocation5 + $0x120] sm:$0xff] %vm1728_vm6, %v1561_v18  ;;  %1965 = vrot.lane.b32.xlu0 %v9116_v34, %s8339_s21  ;;  %v1940_v29 = vpop.permute.xlu1 %1939  ;;  %v3609_v49 = vld [vmem:[#allocation5 + $0xb0] sm:$0xff] }
 0x1bb   :  { %2123 = vst.msk [vmem:[#allocation5 + $0xd8] sm:$0xff] %vm2113_vm7, %v1940_v29  ;;  %v3789_v2 = vpack.c.bf16 %v3609_v49, %v3606_v1  ;;  %v8220_v18 = vld [vmem:[%s12187_s0 + $0xd0] sm:$0xff]  }
 0x1bc   :  { %v2451_v51 = vpop.permute.xlu0 %2450  ;;  %2480 = vrot.lane.b32.xlu1 %v9102_v14, %s8340_s24  ;;  %v9575_v29 = vld [vmem:[#allocation2 + $0x150] sm:$0xff]  ;;  %7998 = vmatprep.mubr.msk.bf16.mxu0 %vm285_vm2, %v8220_v18 }
 0x1bd   :  { %2634 = vst.msk [vmem:[#allocation5 + $0xc8] sm:$0xff] %vm1343_vm5, %v2451_v51  ;;  %4178 = vmatprep.mubr.bf16.mxu1 %v3789_v2  ;;  %v9587_v2 = vld [vmem:[#allocation2 + $0x158] sm:$0xff]  ;;  %7999 = vmatmul.mubr.msk.bf16.gmra.mxu0 %vm285_vm2, %v8221_v6 }
 0x1be   :  { %3019 = vst.msk [vmem:[#allocation5 + $0xc8] sm:$0xff] %vm1728_vm6, %v9395_v47  ;;  %1199 = vrot.lane.b32.xlu0 %v9120_v26, %s8340_s24  ;;  %v1174_v34 = vpop.permute.xlu1 %1173  ;;  %4179 = vmatmul.mubr.bf16.gmra.mxu1 %v3788_v41 }
 0x1bf   :  { %3403 = vst.msk [vmem:[#allocation5 + $0xc8] sm:$0xff] %vm2113_vm7, %v9403_v3  ;;  %v3611_v3 = vld [vmem:[#allocation5 + $0xc0] sm:$0xff] }
 0x1c0   :  { %1355 = vst.msk [vmem:[#allocation5 + $0x108] sm:$0xff] %vm1343_vm5, %v1174_v34  ;;  %v1557_v20 = vpop.permute.xlu0 %1556  ;;  %1967 = vrot.lane.b32.xlu1 %v9118_v24, %s8339_s21  ;;  %v3615_v43 = vld [vmem:[#allocation5 + $0xe0] sm:$0xff] }
 0x1c1   :  { %1739 = vst.msk [vmem:[#allocation5 + $0xf0] sm:$0xff] %vm1728_vm6, %v1557_v20  ;;  %v7980_v24 = vpop.f32.mrf.mxu0 }
 0x1c2   :  { %2124 = vst.msk [vmem:[#allocation5 + $0xf0] sm:$0xff] %vm2113_vm7, %v9410_v27  ;;  %2855 = vrot.lane.b32.xlu0 %v9124_v33, %s8341_s30  ;;  %v1559_v26 = vpop.permute.xlu1 %1558  ;;  %v3614_v47 = vld [vmem:[#allocation5 + $0xd8] sm:$0xff]  ;;  %v560_v4 = vadd.f32 %v9279_v56, %v7980_v24 }
 0x1c3   :  { %1740 = vst.msk [vmem:[#allocation5 + $0x108] sm:$0xff] %vm1728_vm6, %v1559_v26  ;;  %v551_v44 = vpop.f32.mrf.mxu0 }
 0x1c4   :  { %2125 = vst.msk [vmem:[#allocation5 + $0x108] sm:$0xff] %vm2113_vm7, %v9422_v48  ;;  %v9514_v42 = vpop.permute.xlu0 %2843  ;;  %1201 = vrot.lane.b32.xlu1 %v9122_v35, %s8340_s24  ;;  %v712_v8 = vmax.f32 %v560_v4, 0.0  ;;  %v552_v46 = vadd.f32 %v9279_v56, %v551_v44  ;;  %v3791_v35 = vpack.c.bf16 %v3614_v47, %v3611_v3  ;;  %v9616_v47 = vld [vmem:[#allocation2 + $0x138] sm:$0xff] }
 0x1c5   :  { %v7981_v60 = vpop.f32.mrf.mxu0 }
 0x1c6   :  { %3239 = vrot.lane.b32.xlu0 %v9126_v36, %s8339_s21  ;;  %v9521_v58 = vpop.permute.xlu1 %2845  ;;  %v3612_v22 = vld [vmem:[#allocation5 + $0xc8] sm:$0xff]  ;;  %865 = vst.msk [vmem:[#allocation2 + $0x1e1] sm:$0xff] %vm742_vm3, %v712_v8  ;;  %v710_v7 = vmax.f32 %v552_v46, 0.0  ;;  %v563_v48 = vadd.f32 %v9279_v56, %v7981_v60 }
 0x1c7   :  { %v3792_v31 = vpack.c.bf16 %v3615_v43, %v3612_v22  ;;  %v554_v10 = vpop.f32.mrf.mxu0  ;;  %v9622_v22 = vld [vmem:[#allocation2 + $0x140] sm:$0xff] }
 0x1c8   :  { %v9524_v27 = vpop.permute.xlu0 %3227  ;;  %2857 = vrot.lane.b32.xlu1 %v9136_v50, %s8341_s30  ;;  %863 = vst.msk [vmem:[#allocation2 + $0x1c9] sm:$0xff] %vm742_vm3, %v710_v7  ;;  %v713_v52 = vmax.f32 %v563_v48, 0.0  ;;  %v555_v25 = vadd.f32 %v9279_v56, %v554_v10 }
 0x1c9   :  { %4186 = vmatprep.mubr.bf16.mxu1 %v3792_v31 }
 0x1ca   :  { %1961 = vrot.lane.b32.xlu0 %v9124_v33, %s8339_s21  ;;  %v9532_v57 = vpop.permute.xlu1 %3229  ;;  %4187 = vmatmul.mubr.bf16.gmra.mxu1 %v3791_v35  ;;  %866 = vst.msk [vmem:[#allocation2 + $0x1e9] sm:$0xff] %vm742_vm3, %v713_v52  ;;  %v711_v61 = vmax.f32 %v555_v25, 0.0 }
 0x1cb   :  { %v3620_v48 = vld [vmem:[#allocation5 + $0x108] sm:$0xff] }
 0x1cc   :  { %v9536_v11 = vpop.permute.xlu0 %1949  ;;  %3241 = vrot.lane.b32.xlu1 %v9138_v37, %s8339_s21  ;;  %864 = vst.msk [vmem:[#allocation2 + $0x1d1] sm:$0xff] %vm742_vm3, %v711_v61 }
 0x1cd   :  { %v931_v20 = vld [vmem:[#allocation2 + $0x1e0] sm:$0xff] }
 0x1ce   :  { %1195 = vrot.lane.b32.xlu0 %v9126_v36, %s8340_s24  ;;  %v2465_v33 = vpop.permute.xlu1 %2464  ;;  %995 = vst.msk [vmem:[#allocation5 + $0x360] sm:$0xff] %vm742_vm3, %v931_v20 }
 0x1cf   :  { %2641 = vst.msk [vmem:[#allocation5 + $0x170] sm:$0xff] %vm1343_vm5, %v2465_v33  ;;  %v9601_v41 = vld [vmem:[#allocation2 + $0x1c9] sm:$0xff] }
 0x1d0   :  { %v1184_v40 = vpop.permute.xlu0 %1183  ;;  %2476 = vrot.lane.b32.xlu1 %v2327_v39, %s8340_s24  ;;  %2274 = vst.msk [vmem:[#allocation5 + $0x308] sm:$0xff] %vm742_vm3, %v9601_v41 }
 0x1d1   :  { %1360 = vst.msk [vmem:[#allocation5 + $0x180] sm:$0xff] %vm1343_vm5, %v1184_v40  ;;  %v9553_v36 = vld [vmem:[#allocation2 + $0x1e2] sm:$0xff]  ;;  %v9555_v62 = vld [vmem:[#allocation2 + $0x1ea] sm:$0xff] }
 0x1d2   :  { %2478 = vrot.lane.b32.xlu0 %v9100_v13, %s8340_s24  ;;  %v9549_v53 = vpop.permute.xlu1 %1951  ;;  %3555 = vst.msk [vmem:[#allocation5 + $0x310] sm:$0xff] %vm742_vm3, %v9553_v36  ;;  %3556 = vst.msk [vmem:[#allocation5 + $0x328] sm:$0xff] %vm742_vm3, %v9555_v62  ;;  %v9581_v1 = vld [vmem:[#allocation2 + $0x1e9] sm:$0xff] }
 0x1d3   :  { %v9592_v51 = vld [vmem:[#allocation2 + $0x1d0] sm:$0xff]  ;;  %2277 = vst.msk [vmem:[#allocation5 + $0x350] sm:$0xff] %vm742_vm3, %v9581_v1  ;;  %v932_v24 = vld [vmem:[#allocation2 + $0x1e8] sm:$0xff] }
 0x1d4   :  { %v2840_v54 = vpop.permute.xlu0 %2839  ;;  %1963 = vrot.lane.b32.xlu1 %v9136_v50, %s8339_s21  ;;  %v9603_v34 = vld [vmem:[#allocation2 + $0x1d1] sm:$0xff]  ;;  %994 = vst.msk [vmem:[#allocation5 + $0x348] sm:$0xff] %vm742_vm3, %v9592_v51  ;;  %996 = vst.msk [vmem:[#allocation5 + $0x378] sm:$0xff] %vm742_vm3, %v932_v24 }
 0x1d5   :  { %3021 = vst.msk [vmem:[#allocation5 + $0xf8] sm:$0xff] %vm1728_vm6, %v2840_v54  ;;  %v3617_v40 = vld [vmem:[#allocation5 + $0xf0] sm:$0xff] }
 0x1d6   :  { %2474 = vrot.lane.b32.xlu0 %v9110_v15, %s8340_s24  ;;  %v1186_v16 = vpop.permute.xlu1 %1185  ;;  %2275 = vst.msk [vmem:[#allocation5 + $0x320] sm:$0xff] %vm742_vm3, %v9603_v34 }
 0x1d7   :  { %1361 = vst.msk [vmem:[#allocation5 + $0x198] sm:$0xff] %vm1343_vm5, %v1186_v16 }
 0x1d8   :  { %v3224_v23 = vpop.permute.xlu0 %3223  ;;  %1197 = vrot.lane.b32.xlu1 %v9138_v37, %s8340_s24  ;;  %v9579_v37 = vld [vmem:[#allocation2 + $0x1e1] sm:$0xff] }
 0x1d9   :  { %3405 = vst.msk [vmem:[#allocation5 + $0xf8] sm:$0xff] %vm2113_vm7, %v3224_v23 }
 0x1da   :  { %1580 = vrot.lane.b32.xlu0 %v9110_v15, %s8341_s30  ;;  %v1571_v50 = vpop.permute.xlu1 %1570  ;;  %v9583_v15 = vld [vmem:[#allocation2 + $0x1c8] sm:$0xff]  ;;  %2276 = vst.msk [vmem:[#allocation5 + $0x338] sm:$0xff] %vm742_vm3, %v9579_v37  ;;  %v7984_v44 = vpop.f32.mrf.mxu0 }
 0x1db   :  { %1746 = vst.msk [vmem:[#allocation5 + $0x198] sm:$0xff] %vm1728_vm6, %v1571_v50  ;;  %v576_v31 = vadd.f32 %v9279_v56, %v7984_v44  ;;  %v3794_v50 = vpack.c.bf16 %v3620_v48, %v3617_v40 }
 0x1dc   :  { %v1946_v0 = vpop.permute.xlu0 %1945  ;;  %1582 = vrot.lane.b32.xlu1 %v2327_v39, %s8341_s30  ;;  %993 = vst.msk [vmem:[#allocation5 + $0x330] sm:$0xff] %vm742_vm3, %v9583_v15  ;;  %v567_v8 = vpop.f32.mrf.mxu0  ;;  %v9644_v39 = vld [vmem:[#allocation2 + $0x142] sm:$0xff] }
 0x1dd   :  { %2126 = vst.msk [vmem:[#allocation5 + $0x120] sm:$0xff] %vm2113_vm7, %v1946_v0  ;;  %v716_v46 = vmax.f32 %v576_v31, 0.0  ;;  %v568_v35 = vadd.f32 %v9279_v56, %v567_v8 }
 0x1de   :  { %2867 = vrot.lane.b32.xlu0 %v9575_v29, %s8341_s30  ;;  %v2842_v49 = vpop.permute.xlu1 %2841  ;;  %v7985_v7 = vpop.f32.mrf.mxu0 }
 0x1df   :  { %3022 = vst.msk [vmem:[#allocation5 + $0x110] sm:$0xff] %vm1728_vm6, %v2842_v49  ;;  %v714_v10 = vmax.f32 %v568_v35, 0.0  ;;  %v579_v52 = vadd.f32 %v9279_v56, %v7985_v7 }
 0x1e0   :  { %v1180_v26 = vpop.permute.xlu0 %1179  ;;  %2869 = vrot.lane.b32.xlu1 %v9587_v2, %s8341_s30  ;;  %869 = vst.msk [vmem:[#allocation2 + $0x211] sm:$0xff] %vm742_vm3, %v716_v46  ;;  %v3618_v25 = vld [vmem:[#allocation5 + $0xf8] sm:$0xff]  ;;  %v570_v33 = vpop.f32.mrf.mxu0 }
 0x1e1   :  { %1358 = vst.msk [vmem:[#allocation5 + $0x150] sm:$0xff] %vm1343_vm5, %v1180_v26  ;;  %v717_v54 = vmax.f32 %v579_v52, 0.0  ;;  %v571_v16 = vadd.f32 %v9279_v56, %v570_v33 }
 0x1e2   :  { %2863 = vrot.lane.b32.xlu0 %v9616_v47, %s8341_s30  ;;  %v3226_v4 = vpop.permute.xlu1 %3225  ;;  %867 = vst.msk [vmem:[#allocation2 + $0x1f9] sm:$0xff] %vm742_vm3, %v714_v10  ;;  %v9712_v10 = vld [vmem:[#allocation2 + $0x168] sm:$0xff] }
 0x1e3   :  { %3406 = vst.msk [vmem:[#allocation5 + $0x110] sm:$0xff] %vm2113_vm7, %v3226_v4  ;;  %v715_v18 = vmax.f32 %v571_v16, 0.0 }
 0x1e4   :  { %v2463_v43 = vpop.permute.xlu0 %2462  ;;  %2865 = vrot.lane.b32.xlu1 %v9622_v22, %s8341_s30  ;;  %870 = vst.msk [vmem:[#allocation2 + $0x219] sm:$0xff] %vm742_vm3, %v717_v54  ;;  %v3623_v4 = vld [vmem:[#allocation5 + $0x120] sm:$0xff] }
 0x1e5   :  { %2640 = vst.msk [vmem:[#allocation5 + $0x158] sm:$0xff] %vm1343_vm5, %v2463_v43  ;;  %v8222_v54 = vld [vmem:[%s12187_s0 + $0xe0] sm:$0xff]  }
 0x1e6   :  { %3247 = vrot.lane.b32.xlu0 %v9225_v63, %s8339_s21  ;;  %v2461_v3 = vpop.permute.xlu1 %2460  ;;  %868 = vst.msk [vmem:[#allocation2 + $0x201] sm:$0xff] %vm742_vm3, %v715_v18  ;;  %8002 = vmatprep.mubr.msk.bf16.mxu0 %vm285_vm2, %v8222_v54  ;;  %v9757_v18 = vld [vmem:[#allocation2 + $0x172] sm:$0xff] }
 0x1e7   :  { %2639 = vst.msk [vmem:[#allocation5 + $0x140] sm:$0xff] %vm1343_vm5, %v2461_v3  ;;  %v2216_v46 = vld [vmem:[#allocation2 + $0x211] sm:$0xff] }
 0x1e8   :  { %3024 = vst.msk [vmem:[#allocation5 + $0x140] sm:$0xff] %vm1728_vm6, %v9521_v58  ;;  %v1569_v60 = vpop.permute.xlu0 %1568  ;;  %3249 = vrot.lane.b32.xlu1 %v9228_v9, %s8339_s21 }
 0x1e9   :  { %3408 = vst.msk [vmem:[#allocation5 + $0x140] sm:$0xff] %vm2113_vm7, %v9532_v57  ;;  %v2214_v8 = vld [vmem:[#allocation2 + $0x1f9] sm:$0xff] }
 0x1ea   :  { %1745 = vst.msk [vmem:[#allocation5 + $0x180] sm:$0xff] %vm1728_vm6, %v1569_v60  ;;  %2482 = vrot.lane.b32.xlu0 %v9220_v5, %s8340_s24  ;;  %v1948_v58 = vpop.permute.xlu1 %1947  ;;  %v3621_v61 = vld [vmem:[#allocation5 + $0x110] sm:$0xff] }
 0x1eb   :  { %2127 = vst.msk [vmem:[#allocation5 + $0x138] sm:$0xff] %vm2113_vm7, %v1948_v58  ;;  %v3795_v57 = vpack.c.bf16 %v3621_v61, %v3618_v25  ;;  %v2217_v35 = vld [vmem:[#allocation2 + $0x219] sm:$0xff]  ;;  %v9723_v25 = vld [vmem:[#allocation2 + $0x170] sm:$0xff] }
 0x1ec   :  { %v2459_v23 = vpop.permute.xlu0 %2458  ;;  %2484 = vrot.lane.b32.xlu1 %v9644_v39, %s8340_s24  ;;  %2278 = vst.msk [vmem:[#allocation5 + $0x368] sm:$0xff] %vm742_vm3, %v2214_v8  ;;  %2280 = vst.msk [vmem:[#allocation5 + $0x398] sm:$0xff] %vm742_vm3, %v2216_v46  ;;  %v936_v52 = vld [vmem:[#allocation2 + $0x218] sm:$0xff] }
 0x1ed   :  { %2638 = vst.msk [vmem:[#allocation5 + $0x128] sm:$0xff] %vm1343_vm5, %v2459_v23  ;;  %4194 = vmatprep.mubr.bf16.mxu1 %v3795_v57  ;;  %v9686_v26 = vld [vmem:[#allocation2 + $0x1fa] sm:$0xff]  ;;  %v3494_v7 = vld [vmem:[#allocation2 + $0x202] sm:$0xff] }
 0x1ee   :  { %3023 = vst.msk [vmem:[#allocation5 + $0x128] sm:$0xff] %vm1728_vm6, %v9514_v42  ;;  %1584 = vrot.lane.b32.xlu0 %v9100_v13, %s8341_s30  ;;  %v1182_v0 = vpop.permute.xlu1 %1181  ;;  %4195 = vmatmul.mubr.bf16.gmra.mxu1 %v3794_v50  ;;  %v934_v48 = vld [vmem:[#allocation2 + $0x200] sm:$0xff] }
 0x1ef   :  { %3407 = vst.msk [vmem:[#allocation5 + $0x128] sm:$0xff] %vm2113_vm7, %v9524_v27  ;;  %v9676_v27 = vld [vmem:[#allocation2 + $0x21a] sm:$0xff] }
 0x1f0   :  { %1359 = vst.msk [vmem:[#allocation5 + $0x168] sm:$0xff] %vm1343_vm5, %v1182_v0  ;;  %v1565_v49 = vpop.permute.xlu0 %1564  ;;  %1586 = vrot.lane.b32.xlu1 %v9102_v14, %s8341_s30  ;;  %v9674_v14 = vld [vmem:[#allocation2 + $0x212] sm:$0xff]  ;;  %v3627_v20 = vld [vmem:[#allocation5 + $0x140] sm:$0xff]  ;;  %v7988_v0 = vpop.f32.mrf.mxu0 }
 0x1f1   :  { %1743 = vst.msk [vmem:[#allocation5 + $0x150] sm:$0xff] %vm1728_vm6, %v1565_v49  ;;  %v592_v49 = vadd.f32 %v9279_v56, %v7988_v0 }
 0x1f2   :  { %2128 = vst.msk [vmem:[#allocation5 + $0x150] sm:$0xff] %vm2113_vm7, %v9536_v11  ;;  %3251 = vrot.lane.b32.xlu0 %v9230_v12, %s8339_s21  ;;  %v1567_v13 = vpop.permute.xlu1 %1566  ;;  %v3626_v6 = vld [vmem:[#allocation5 + $0x138] sm:$0xff] }
 0x1f3   :  { %1744 = vst.msk [vmem:[#allocation5 + $0x168] sm:$0xff] %vm1728_vm6, %v1567_v13  ;;  %v3797_v44 = vpack.c.bf16 %v3626_v6, %v3623_v4  ;;  %v583_v13 = vpop.f32.mrf.mxu0  ;;  %v720_v6 = vmax.f32 %v592_v49, 0.0  ;;  %v1024_v49 = vld [vmem:[#allocation2 + $0x9] sm:$0xff] }
 0x1f4   :  { %2129 = vst.msk [vmem:[#allocation5 + $0x168] sm:$0xff] %vm2113_vm7, %v9549_v53  ;;  %v9670_v42 = vpop.permute.xlu0 %2851  ;;  %3253 = vrot.lane.b32.xlu1 %v9235_v38, %s8339_s21 }
 0x1f5   :  { %3559 = vst.msk [vmem:[#allocation5 + $0x370] sm:$0xff] %vm742_vm3, %v9674_v14  ;;  %3560 = vst.msk [vmem:[#allocation5 + $0x388] sm:$0xff] %vm742_vm3, %v9676_v27 }
 0x1f6   :  { %1969 = vrot.lane.b32.xlu0 %v9616_v47, %s8339_s21  ;;  %v9684_v11 = vpop.permute.xlu1 %2853  ;;  %v3624_v53 = vld [vmem:[#allocation5 + $0x128] sm:$0xff]  ;;  %3557 = vst.msk [vmem:[#allocation5 + $0x340] sm:$0xff] %vm742_vm3, %v9686_v26  ;;  %2281 = vst.msk [vmem:[#allocation5 + $0x3b0] sm:$0xff] %vm742_vm3, %v2217_v35 }
 0x1f7   :  { %v3798_v24 = vpack.c.bf16 %v3627_v20, %v3624_v53  ;;  %3558 = vst.msk [vmem:[#allocation5 + $0x358] sm:$0xff] %vm742_vm3, %v3494_v7  ;;  %998 = vst.msk [vmem:[#allocation5 + $0x3a8] sm:$0xff] %vm742_vm3, %v934_v48  ;;  %v584_v53 = vadd.f32 %v9279_v56, %v583_v13 }
 0x1f8   :  { %v9690_v43 = vpop.permute.xlu0 %3235  ;;  %1971 = vrot.lane.b32.xlu1 %v9622_v22, %s8339_s21  ;;  %v2215_v22 = vld [vmem:[#allocation2 + $0x201] sm:$0xff]  ;;  %1000 = vst.msk [vmem:[#allocation5 + $0x3d8] sm:$0xff] %vm742_vm3, %v936_v52  ;;  %873 = vst.msk [vmem:[#allocation2 + $0x241] sm:$0xff] %vm742_vm3, %v720_v6 }
 0x1f9   :  { %4202 = vmatprep.mubr.bf16.mxu1 %v3798_v24  ;;  %2279 = vst.msk [vmem:[#allocation5 + $0x380] sm:$0xff] %vm742_vm3, %v2215_v22  ;;  %v7989_v24 = vpop.f32.mrf.mxu0  ;;  %v3629_v35 = vld [vmem:[#allocation5 + $0x150] sm:$0xff] }
 0x1fa   :  { %2486 = vrot.lane.b32.xlu0 %v9210_v30, %s8340_s24  ;;  %v9696_v47 = vpop.permute.xlu1 %3237  ;;  %4203 = vmatmul.mubr.bf16.gmra.mxu1 %v3797_v44  ;;  %v718_v44 = vmax.f32 %v584_v53, 0.0 }
 0x1fb   :  { %v3632_v4 = vld [vmem:[#allocation5 + $0x168] sm:$0xff]  ;;  %v586_v22 = vpop.f32.mrf.mxu0 }
 0x1fc   :  { %v9698_v31 = vpop.permute.xlu0 %1957  ;;  %2488 = vrot.lane.b32.xlu1 %v9212_v28, %s8340_s24  ;;  %871 = vst.msk [vmem:[#allocation2 + $0x229] sm:$0xff] %vm742_vm3, %v718_v44  ;;  %v3800_v48 = vpack.c.bf16 %v3632_v4, %v3629_v35  ;;  %v2721_v35 = vld [vmem:[#allocation2 + $0x198] sm:$0xff] }
 0x1fe   :  { %1203 = vrot.lane.b32.xlu0 %v9225_v63, %s8340_s24  ;;  %v2473_v3 = vpop.permute.xlu1 %2472  ;;  %v933_v63 = vld [vmem:[#allocation2 + $0x1f8] sm:$0xff] }
 0x1ff   :  { %2645 = vst.msk [vmem:[#allocation5 + $0x1d0] sm:$0xff] %vm1343_vm5, %v2473_v3  ;;  %v595_v3 = vadd.f32 %v9279_v56, %v7989_v24  ;;  %v2220_v53 = vld [vmem:[#allocation2 + $0x241] sm:$0xff] }
 0x200   :  { %v1192_v60 = vpop.permute.xlu0 %1191  ;;  %1205 = vrot.lane.b32.xlu1 %v9228_v9, %s8340_s24  ;;  %997 = vst.msk [vmem:[#allocation5 + $0x390] sm:$0xff] %vm742_vm3, %v933_v63  ;;  %v935_v9 = vld [vmem:[#allocation2 + $0x210] sm:$0xff]  ;;  %v587_v63 = vadd.f32 %v9279_v56, %v586_v22  ;;  %2284 = vst.msk [vmem:[#allocation5 + $0x3f8] sm:$0xff] %vm742_vm3, %v2220_v53  ;;  %v939_v4 = vld [vmem:[#allocation2 + $0x240] sm:$0xff] }
 0x201   :  { %1364 = vst.msk [vmem:[#allocation5 + $0x1e0] sm:$0xff] %vm1343_vm5, %v1192_v60  ;;  %v721_v60 = vmax.f32 %v595_v3, 0.0 }
 0x202   :  { %2871 = vrot.lane.b32.xlu0 %v9712_v10, %s8341_s30  ;;  %v9719_v58 = vpop.permute.xlu1 %1959  ;;  %999 = vst.msk [vmem:[#allocation5 + $0x3c0] sm:$0xff] %vm742_vm3, %v935_v9  ;;  %v719_v9 = vmax.f32 %v587_v63, 0.0  ;;  %1003 = vst.msk [vmem:[#allocation5 + $0x420] sm:$0xff] %vm742_vm3, %v939_v4  ;;  %v8225_v63 = vld [vmem:[%s12187_s0 + $0xf8] sm:$0xff]  }
 0x203   :  { %874 = vst.msk [vmem:[#allocation2 + $0x249] sm:$0xff] %vm742_vm3, %v721_v60 }
 0x204   :  { %v2848_v61 = vpop.permute.xlu0 %2847  ;;  %2873 = vrot.lane.b32.xlu1 %v9723_v25, %s8341_s30  ;;  %872 = vst.msk [vmem:[#allocation2 + $0x231] sm:$0xff] %vm742_vm3, %v719_v9 }
 0x205   :  { %3025 = vst.msk [vmem:[#allocation5 + $0x158] sm:$0xff] %vm1728_vm6, %v2848_v61 }
 0x206   :  { %1588 = vrot.lane.b32.xlu0 %v9220_v5, %s8341_s30  ;;  %v1194_v33 = vpop.permute.xlu1 %1193 }
 0x207   :  { %1365 = vst.msk [vmem:[#allocation5 + $0x1f8] sm:$0xff] %vm1343_vm5, %v1194_v33 }
 0x208   :  { %v3232_v57 = vpop.permute.xlu0 %3231  ;;  %1590 = vrot.lane.b32.xlu1 %v9644_v39, %s8341_s30  ;;  %v8223_v39 = vld [vmem:[%s12187_s0 + $0xe8] sm:$0xff]  }
 0x209   :  { %3409 = vst.msk [vmem:[#allocation5 + $0x158] sm:$0xff] %vm2113_vm7, %v3232_v57  ;;  %8003 = vmatmul.mubr.msk.bf16.gmra.mxu0 %vm285_vm2, %v8223_v39  ;;  %v896_v57 = vld [vmem:[#allocation2 + $0x8] sm:$0xff] }
 0x20a   :  { %3255 = vrot.lane.b32.xlu0 %v9328_v32, %s8339_s21  ;;  %v1579_v40 = vpop.permute.xlu1 %1578  ;;  %v9813_v61 = vld [vmem:[#allocation2 + $0x24a] sm:$0xff]  ;;  %960 = vst.msk [vmem:[#allocation5 + $0x18] sm:$0xff] %vm742_vm3, %v896_v57 }
 0x20b   :  { %1750 = vst.msk [vmem:[#allocation5 + $0x1f8] sm:$0xff] %vm1728_vm6, %v1579_v40  ;;  %v9824_v33 = vld [vmem:[#allocation2 + $0x22a] sm:$0xff]  ;;  %v9841_v0 = vld [vmem:[#allocation2 + $0x232] sm:$0xff] }
 0x20c   :  { %v1954_v5 = vpop.permute.xlu0 %1953  ;;  %3257 = vrot.lane.b32.xlu1 %v9330_v21, %s8339_s21  ;;  %3564 = vst.msk [vmem:[#allocation5 + $0x3e8] sm:$0xff] %vm742_vm3, %v9813_v61  ;;  %3561 = vst.msk [vmem:[#allocation5 + $0x3a0] sm:$0xff] %vm742_vm3, %v9824_v33  ;;  %v2219_v6 = vld [vmem:[#allocation2 + $0x231] sm:$0xff] }
 0x20d   :  { %2130 = vst.msk [vmem:[#allocation5 + $0x180] sm:$0xff] %vm2113_vm7, %v1954_v5  ;;  %v938_v24 = vld [vmem:[#allocation2 + $0x230] sm:$0xff] }
 0x20e   :  { %1973 = vrot.lane.b32.xlu0 %v9575_v29, %s8339_s21  ;;  %v2850_v16 = vpop.permute.xlu1 %2849  ;;  %3562 = vst.msk [vmem:[#allocation5 + $0x3b8] sm:$0xff] %vm742_vm3, %v9841_v0  ;;  %2283 = vst.msk [vmem:[#allocation5 + $0x3e0] sm:$0xff] %vm742_vm3, %v2219_v6 }
 0x20f   :  { %3026 = vst.msk [vmem:[#allocation5 + $0x170] sm:$0xff] %vm1728_vm6, %v2850_v16 }
 0x210   :  { %v1188_v23 = vpop.permute.xlu0 %1187  ;;  %1975 = vrot.lane.b32.xlu1 %v9587_v2, %s8339_s21  ;;  %v3630_v8 = vld [vmem:[#allocation5 + $0x158] sm:$0xff]  ;;  %1002 = vst.msk [vmem:[#allocation5 + $0x408] sm:$0xff] %vm742_vm3, %v938_v24 }
 0x211   :  { %1362 = vst.msk [vmem:[#allocation5 + $0x1b0] sm:$0xff] %vm1343_vm5, %v1188_v23  ;;  %v2307_v23 = vld [vmem:[#allocation2 + $0x22] sm:$0xff] }
 0x212   :  { %2490 = vrot.lane.b32.xlu0 %v9323_v19, %s8340_s24  ;;  %v3234_v50 = vpop.permute.xlu1 %3233 }
 0x213   :  { %3410 = vst.msk [vmem:[#allocation5 + $0x170] sm:$0xff] %vm2113_vm7, %v3234_v50 }
 0x214   :  { %v2471_v29 = vpop.permute.xlu0 %2470  ;;  %2492 = vrot.lane.b32.xlu1 %v9757_v18, %s8340_s24  ;;  %v3635_v54 = vld [vmem:[#allocation5 + $0x180] sm:$0xff] }
 0x215   :  { %2644 = vst.msk [vmem:[#allocation5 + $0x1b8] sm:$0xff] %vm1343_vm5, %v2471_v29 }
 0x216   :  { %1207 = vrot.lane.b32.xlu0 %v9230_v12, %s8340_s24  ;;  %v2469_v2 = vpop.permute.xlu1 %2468  ;;  %v9774_v12 = vld [vmem:[#allocation2 + $0x180] sm:$0xff] }
 0x217   :  { %2643 = vst.msk [vmem:[#allocation5 + $0x1a0] sm:$0xff] %vm1343_vm5, %v2469_v2  ;;  %v2218_v2 = vld [vmem:[#allocation2 + $0x229] sm:$0xff] }
 0x218   :  { %3028 = vst.msk [vmem:[#allocation5 + $0x1a0] sm:$0xff] %vm1728_vm6, %v9684_v11  ;;  %v1577_v20 = vpop.permute.xlu0 %1576  ;;  %1209 = vrot.lane.b32.xlu1 %v9235_v38, %s8340_s24 }
 0x219   :  { %3412 = vst.msk [vmem:[#allocation5 + $0x1a0] sm:$0xff] %vm2113_vm7, %v9696_v47  ;;  %v9781_v47 = vld [vmem:[#allocation2 + $0x188] sm:$0xff] }
 0x21a   :  { %1749 = vst.msk [vmem:[#allocation5 + $0x1e0] sm:$0xff] %vm1728_vm6, %v1577_v20  ;;  %2875 = vrot.lane.b32.xlu0 %v9774_v12, %s8341_s30  ;;  %v1956_v11 = vpop.permute.xlu1 %1955  ;;  %v3633_v38 = vld [vmem:[#allocation5 + $0x170] sm:$0xff]  ;;  %v937_v20 = vld [vmem:[#allocation2 + $0x228] sm:$0xff] }
 0x21b   :  { %2131 = vst.msk [vmem:[#allocation5 + $0x198] sm:$0xff] %vm2113_vm7, %v1956_v11  ;;  %v3801_v46 = vpack.c.bf16 %v3633_v38, %v3630_v8  ;;  %v2691_v38 = vld [vmem:[#allocation2 + $0x30] sm:$0xff] }
 0x21c   :  { %v2467_v7 = vpop.permute.xlu0 %2466  ;;  %2877 = vrot.lane.b32.xlu1 %v9781_v47, %s8341_s30  ;;  %2282 = vst.msk [vmem:[#allocation5 + $0x3c8] sm:$0xff] %vm742_vm3, %v2218_v2  ;;  %1001 = vst.msk [vmem:[#allocation5 + $0x3f0] sm:$0xff] %vm742_vm3, %v937_v20 }
 0x21d   :  { %2642 = vst.msk [vmem:[#allocation5 + $0x188] sm:$0xff] %vm1343_vm5, %v2467_v7  ;;  %4210 = vmatprep.mubr.bf16.mxu1 %v3801_v46  ;;  %v2692_v46 = vld [vmem:[#allocation2 + $0x38] sm:$0xff] }
 0x21e   :  { %3027 = vst.msk [vmem:[#allocation5 + $0x188] sm:$0xff] %vm1728_vm6, %v9670_v42  ;;  %1592 = vrot.lane.b32.xlu0 %v9210_v30, %s8341_s30  ;;  %v1190_v52 = vpop.permute.xlu1 %1189  ;;  %4211 = vmatmul.mubr.bf16.gmra.mxu1 %v3800_v48  ;;  %v895_v42 = vld [vmem:[#allocation2] sm:$0xff] }
 0x21f   :  { %3411 = vst.msk [vmem:[#allocation5 + $0x188] sm:$0xff] %vm2113_vm7, %v9690_v43  ;;  %v1408_v48 = vld [vmem:[#allocation2 + $0x2] sm:$0xff] }
 0x220   :  { %1363 = vst.msk [vmem:[#allocation5 + $0x1c8] sm:$0xff] %vm1343_vm5, %v1190_v52  ;;  %v1573_v56 = vpop.permute.xlu0 %1572  ;;  %1594 = vrot.lane.b32.xlu1 %v9212_v28, %s8341_s30  ;;  %v9811_v28 = vld [vmem:[#allocation2 + $0x242] sm:$0xff]  ;;  %v1409_v52 = vld [vmem:[#allocation2 + $0xa] sm:$0xff] }
 0x221   :  { %1747 = vst.msk [vmem:[#allocation5 + $0x1b0] sm:$0xff] %vm1728_vm6, %v1573_v56 }
 0x222   :  { %2132 = vst.msk [vmem:[#allocation5 + $0x1b0] sm:$0xff] %vm2113_vm7, %v9698_v31  ;;  %3259 = vrot.lane.b32.xlu0 %v9341_v55, %s8339_s21  ;;  %v1575_v30 = vpop.permute.xlu1 %1574  ;;  %v3639_v31 = vld [vmem:[#allocation5 + $0x1a0] sm:$0xff]  ;;  %v3638_v55 = vld [vmem:[#allocation5 + $0x198] sm:$0xff] }
 0x223   :  { %1748 = vst.msk [vmem:[#allocation5 + $0x1c8] sm:$0xff] %vm1728_vm6, %v1575_v30  ;;  %v3803_v39 = vpack.c.bf16 %v3638_v55, %v3635_v54  ;;  %v9895_v55 = vld [vmem:[%s12188_s2] ss:$0 sm:$0xff] }
 0x224   :  { %2133 = vst.msk [vmem:[#allocation5 + $0x1c8] sm:$0xff] %vm2113_vm7, %v9719_v58  ;;  %v9807_v43 = vpop.permute.xlu0 %2859  ;;  %3261 = vrot.lane.b32.xlu1 %v9343_v59, %s8339_s21 }
 0x225   :  { %959 = vst.msk [vmem:[#allocation5] sm:$0xff] %vm742_vm3, %v895_v42  ;;  %3563 = vst.msk [vmem:[#allocation5 + $0x3d0] sm:$0xff] %vm742_vm3, %v9811_v28 }
 0x226   :  { %1977 = vrot.lane.b32.xlu0 %v9712_v10, %s8339_s21  ;;  %v9822_v58 = vpop.permute.xlu1 %2861  ;;  %v3636_v59 = vld [vmem:[#allocation5 + $0x188] sm:$0xff]  ;;  %v2306_v10 = vld [vmem:[#allocation2 + $0x1a] sm:$0xff] }
 0x227   :  { %v3804_v40 = vpack.c.bf16 %v3639_v31, %v3636_v59 }
 0x228   :  { %v9829_v5 = vpop.permute.xlu0 %3243  ;;  %1979 = vrot.lane.b32.xlu1 %v9723_v25, %s8339_s21  ;;  %v1023_v25 = vld [vmem:[#allocation2 + $0x1] sm:$0xff] }
 0x229   :  { %4218 = vmatprep.mubr.bf16.mxu1 %v3804_v40 }
 0x22a   :  { %2434 = vrot.lane.b32.xlu0 %v2306_v10, %s8340_s24  ;;  %v9834_v16 = vpop.permute.xlu1 %3245  ;;  %4219 = vmatmul.mubr.bf16.gmra.mxu1 %v3803_v39  ;;  %v3641_v10 = vld [vmem:[#allocation5 + $0x1b0] sm:$0xff] }
 0x22b   :  { %v3644_v31 = vld [vmem:[#allocation5 + $0x1c8] sm:$0xff] }
 0x22c   :  { %v9836_v50 = vpop.permute.xlu0 %1965  ;;  %2436 = vrot.lane.b32.xlu1 %v2307_v23, %s8340_s24 }
 0x22e   :  { %2494 = vrot.lane.b32.xlu0 %v9312_v17, %s8340_s24  ;;  %v2481_v29 = vpop.permute.xlu1 %2480  ;;  %v2221_v17 = vld [vmem:[#allocation2 + $0x249] sm:$0xff] }
 0x22f   :  { %2649 = vst.msk [vmem:[#allocation5 + $0x230] sm:$0xff] %vm1343_vm5, %v2481_v29 }
 0x230   :  { %v1200_v13 = vpop.permute.xlu0 %1199  ;;  %2496 = vrot.lane.b32.xlu1 %v9314_v45, %s8340_s24  ;;  %2285 = vst.msk [vmem:[#allocation5 + $0x410] sm:$0xff] %vm742_vm3, %v2221_v17  ;;  %v940_v45 = vld [vmem:[#allocation2 + $0x248] sm:$0xff]  ;;  %v3105_v17 = vld [vmem:[#allocation2 + $0x199] sm:$0xff] }
 0x231   :  { %1368 = vst.msk [vmem:[#allocation5 + $0x240] sm:$0xff] %vm1343_vm5, %v1200_v13 }
 0x232   :  { %1151 = vrot.lane.b32.xlu0 %v1023_v25, %s8340_s24  ;;  %v9854_v44 = vpop.permute.xlu1 %1967  ;;  %1004 = vst.msk [vmem:[#allocation5 + $0x438] sm:$0xff] %vm742_vm3, %v940_v45  ;;  %v3806_v25 = vpack.c.bf16 %v3644_v31, %v3641_v10 }
 0x234   :  { %v2856_v3 = vpop.permute.xlu0 %2855  ;;  %1153 = vrot.lane.b32.xlu1 %v1024_v49, %s8340_s24 }
 0x235   :  { %3029 = vst.msk [vmem:[#allocation5 + $0x1b8] sm:$0xff] %vm1728_vm6, %v2856_v3 }
 0x236   :  { %1211 = vrot.lane.b32.xlu0 %v9328_v32, %s8340_s24  ;;  %v1202_v11 = vpop.permute.xlu1 %1201  ;;  %v8224_v32 = vld [vmem:[%s12187_s0 + $0xf0] sm:$0xff]  }
 0x237   :  { %1369 = vst.msk [vmem:[#allocation5 + $0x258] sm:$0xff] %vm1343_vm5, %v1202_v11  ;;  %8006 = vmatprep.mubr.msk.bf16.mxu0 %vm285_vm2, %v8224_v32  ;;  %v927_v11 = vld [vmem:[#allocation2 + $0x1b0] sm:$0xff] }
 0x238   :  { %v3240_v8 = vpop.permute.xlu0 %3239  ;;  %1213 = vrot.lane.b32.xlu1 %v9330_v21, %s8340_s24  ;;  %v2722_v21 = vld [vmem:[#allocation2 + $0x1a0] sm:$0xff]  ;;  %8007 = vmatmul.mubr.msk.bf16.gmra.mxu0 %vm285_vm2, %v8225_v63  ;;  %991 = vst.msk [vmem:[#allocation5 + $0x300] sm:$0xff] %vm742_vm3, %v927_v11 }
 0x239   :  { %3413 = vst.msk [vmem:[#allocation5 + $0x1b8] sm:$0xff] %vm2113_vm7, %v3240_v8 }
 0x23a   :  { %2819 = vrot.lane.b32.xlu0 %v2691_v38, %s8341_s30  ;;  %v2858_v22 = vpop.permute.xlu1 %2857 }
 0x23b   :  { %3030 = vst.msk [vmem:[#allocation5 + $0x1d0] sm:$0xff] %vm1728_vm6, %v2858_v22 }
 0x23c   :  { %v1962_v60 = vpop.permute.xlu0 %1961  ;;  %2821 = vrot.lane.b32.xlu1 %v2692_v46, %s8341_s30  ;;  %v9932_v46 = vld [vmem:[%s12189_s3 + $0x88] sm:$0xff]  }
 0x23d   :  { %2134 = vst.msk [vmem:[#allocation5 + $0x1e0] sm:$0xff] %vm2113_vm7, %v1962_v60  ;;  %8010 = vmatprep.subr.bf16.mxu0 %v9932_v46 }
 0x23e   :  { %2879 = vrot.lane.b32.xlu0 %v2721_v35, %s8341_s30  ;;  %v3242_v7 = vpop.permute.xlu1 %3241 }
 0x23f   :  { %3414 = vst.msk [vmem:[#allocation5 + $0x1d0] sm:$0xff] %vm2113_vm7, %v3242_v7 }
 0x240   :  { %v1196_v9 = vpop.permute.xlu0 %1195  ;;  %2881 = vrot.lane.b32.xlu1 %v2722_v21, %s8341_s30  ;;  %v7992_v42 = vpop.f32.mrf.mxu0  ;;  %v3642_v57 = vld [vmem:[#allocation5 + $0x1b8] sm:$0xff]  ;;  %v1794_v21 = vld [vmem:[#allocation2 + $0x20] sm:$0xff] }
 0x241   :  { %1366 = vst.msk [vmem:[#allocation5 + $0x210] sm:$0xff] %vm1343_vm5, %v1196_v9  ;;  %v608_v59 = vadd.f32 %v9895_v55, %v7992_v42 }
 0x242   :  { %1536 = vrot.lane.b32.xlu0 %v1408_v48, %s8341_s30  ;;  %v2477_v56 = vpop.permute.xlu1 %2476  ;;  %v599_v54 = vpop.f32.mrf.mxu0  ;;  %v928_v48 = vld [vmem:[#allocation2 + $0x1b8] sm:$0xff] }
 0x243   :  { %2647 = vst.msk [vmem:[#allocation5 + $0x200] sm:$0xff] %vm1343_vm5, %v2477_v56  ;;  %v600_v23 = vadd.f32 %v9895_v55, %v599_v54  ;;  %v9966_v54 = vld [vmem:[#allocation2 + $0x1d2] sm:$0xff] }
 0x244   :  { %3032 = vst.msk [vmem:[#allocation5 + $0x200] sm:$0xff] %vm1728_vm6, %v9822_v58  ;;  %v2479_v30 = vpop.permute.xlu0 %2478  ;;  %1538 = vrot.lane.b32.xlu1 %v1409_v52, %s8341_s30  ;;  %v7993_v49 = vpop.f32.mrf.mxu0  ;;  %v3647_v7 = vld [vmem:[#allocation5 + $0x1e0] sm:$0xff] }
 0x245   :  { %3416 = vst.msk [vmem:[#allocation5 + $0x200] sm:$0xff] %vm2113_vm7, %v9834_v16  ;;  %v724_v16 = vmax.f32 %v608_v59, 0.0  ;;  %v722_v2 = vmax.f32 %v600_v23, 0.0  ;;  %v611_v13 = vadd.f32 %v9895_v55, %v7993_v49  ;;  %v9978_v49 = vld [vmem:[#allocation2 + $0x1e0] sm:$0xff] }
 0x246   :  { %2648 = vst.msk [vmem:[#allocation5 + $0x218] sm:$0xff] %vm1343_vm5, %v2479_v30  ;;  %1596 = vrot.lane.b32.xlu0 %v9323_v19, %s8341_s30  ;;  %v1964_v58 = vpop.permute.xlu1 %1963  ;;  %v3645_v40 = vld [vmem:[#allocation5 + $0x1d0] sm:$0xff]  ;;  %v602_v53 = vpop.f32.mrf.mxu0 }
 0x247   :  { %2135 = vst.msk [vmem:[#allocation5 + $0x1f8] sm:$0xff] %vm2113_vm7, %v1964_v58  ;;  %v3807_v39 = vpack.c.bf16 %v3645_v40, %v3642_v57  ;;  %v3075_v19 = vld [vmem:[#allocation2 + $0x31] sm:$0xff]  ;;  %v725_v20 = vmax.f32 %v611_v13, 0.0  ;;  %v603_v24 = vadd.f32 %v9895_v55, %v602_v53 }
 0x248   :  { %v2475_v29 = vpop.permute.xlu0 %2474  ;;  %1598 = vrot.lane.b32.xlu1 %v9757_v18, %s8341_s30  ;;  %877 = vst.msk [vmem:[#allocation2 + $0x271] sm:$0xff] %vm742_vm3, %v724_v16  ;;  %v3076_v18 = vld [vmem:[#allocation2 + $0x39] sm:$0xff]  ;;  %875 = vst.msk [vmem:[#allocation2 + $0x259] sm:$0xff] %vm742_vm3, %v722_v2  ;;  %v9959_v57 = vld [vmem:[#allocation2 + $0x1ca] sm:$0xff] }
 0x249   :  { %2646 = vst.msk [vmem:[#allocation5 + $0x1e8] sm:$0xff] %vm1343_vm5, %v2475_v29  ;;  %4226 = vmatprep.mubr.bf16.mxu1 %v3807_v39  ;;  %v723_v45 = vmax.f32 %v603_v24, 0.0  ;;  %v1055_v39 = vld [vmem:[#allocation2 + $0x1b1] sm:$0xff]  ;;  %v1056_v16 = vld [vmem:[#allocation2 + $0x1b9] sm:$0xff] }
 0x24a   :  { %3031 = vst.msk [vmem:[#allocation5 + $0x1e8] sm:$0xff] %vm1728_vm6, %v9807_v43  ;;  %3203 = vrot.lane.b32.xlu0 %v3075_v19, %s8339_s21  ;;  %v1198_v6 = vpop.permute.xlu1 %1197  ;;  %4227 = vmatmul.mubr.bf16.gmra.mxu1 %v3806_v25  ;;  %v3106_v43 = vld [vmem:[#allocation2 + $0x1a1] sm:$0xff] }
 0x24b   :  { %3415 = vst.msk [vmem:[#allocation5 + $0x1e8] sm:$0xff] %vm2113_vm7, %v9829_v5 }
 0x24c   :  { %1367 = vst.msk [vmem:[#allocation5 + $0x228] sm:$0xff] %vm1343_vm5, %v1198_v6  ;;  %v1581_v4 = vpop.permute.xlu0 %1580  ;;  %3205 = vrot.lane.b32.xlu1 %v3076_v18, %s8339_s21 }
 0x24d   :  { %1751 = vst.msk [vmem:[#allocation5 + $0x210] sm:$0xff] %vm1728_vm6, %v1581_v4 }
 0x24e   :  { %878 = vst.msk [vmem:[#allocation2 + $0x279] sm:$0xff] %vm742_vm3, %v725_v20  ;;  %3263 = vrot.lane.b32.xlu0 %v3105_v17, %s8339_s21  ;;  %v1583_v5 = vpop.permute.xlu1 %1582  ;;  %v9921_v3 = vpop.f32.mrf.mxu1  ;;  %876 = vst.msk [vmem:[#allocation2 + $0x261] sm:$0xff] %vm742_vm3, %v723_v45  ;;  %v3650_v22 = vld [vmem:[#allocation5 + $0x1f8] sm:$0xff] }
 0x24f   :  { %2136 = vst.msk [vmem:[#allocation5 + $0x210] sm:$0xff] %vm2113_vm7, %v9836_v50  ;;  %v1793_v50 = vld [vmem:[#allocation2 + $0x18] sm:$0xff]  ;;  %v3809_v56 = vpack.c.bf16 %v3650_v22, %v3647_v7 }
 0x250   :  { %1752 = vst.msk [vmem:[#allocation5 + $0x228] sm:$0xff] %vm1728_vm6, %v1583_v5  ;;  %v2868_v8 = vpop.permute.xlu0 %2867  ;;  %3265 = vrot.lane.b32.xlu1 %v3106_v43, %s8339_s21  ;;  %v4166_v38 = vpop.f32.mrf.mxu1  ;;  %v9980_v2 = vld [vmem:[#allocation2 + $0x271] sm:$0xff]  ;;  %v2222_v17 = vld [vmem:[#allocation2 + $0x259] sm:$0xff] }
 0x251   :  { %2137 = vst.msk [vmem:[#allocation5 + $0x228] sm:$0xff] %vm2113_vm7, %v9854_v44  ;;  %v3651_v44 = vld [vmem:[#allocation5 + $0x200] sm:$0xff]  ;;  %v941_v24 = vld [vmem:[#allocation2 + $0x258] sm:$0xff]  ;;  %v943_v5 = vld [vmem:[#allocation2 + $0x270] sm:$0xff] }
 0x252   :  { %1921 = vrot.lane.b32.xlu0 %v1793_v50, %s8339_s21  ;;  %v2870_v35 = vpop.permute.xlu1 %2869  ;;  %v9935_v32 = vpop.f32.mrf.mxu1  ;;  %v3648_v60 = vld [vmem:[#allocation5 + $0x1e8] sm:$0xff]  ;;  %992 = vst.msk [vmem:[#allocation5 + $0x318] sm:$0xff] %vm742_vm3, %v928_v48  ;;  %2288 = vst.msk [vmem:[#allocation5 + $0x458] sm:$0xff] %vm742_vm3, %v9980_v2  ;;  %v1440_v50 = vld [vmem:[#allocation2 + $0x1b2] sm:$0xff] }
 0x253   :  { %v3810_v63 = vpack.c.bf16 %v3651_v44, %v3648_v60  ;;  %2286 = vst.msk [vmem:[#allocation5 + $0x428] sm:$0xff] %vm742_vm3, %v2222_v17  ;;  %1005 = vst.msk [vmem:[#allocation5 + $0x450] sm:$0xff] %vm742_vm3, %v941_v24  ;;  %v1441_v44 = vld [vmem:[#allocation2 + $0x1ba] sm:$0xff] }
 0x254   :  { %v2864_v9 = vpop.permute.xlu0 %2863  ;;  %1923 = vrot.lane.b32.xlu1 %v1794_v21, %s8339_s21  ;;  %v4169_v52 = vpop.f32.mrf.mxu1  ;;  %1007 = vst.msk [vmem:[#allocation5 + $0x480] sm:$0xff] %vm742_vm3, %v943_v5 }
 0x255   :  { %v9939_v30 = vld [vmem:[#allocation2 + $0x272] sm:$0xff]  ;;  %v9941_v42 = vld [vmem:[#allocation2 + $0x27a] sm:$0xff]  ;;  %3033 = vst.msk [vmem:[#allocation5 + $0x218] sm:$0xff] %vm1728_vm6, %v2864_v9  ;;  %4234 = vmatprep.mubr.bf16.mxu1 %v3810_v63  ;;  %v9975_v25 = vld [vmem:[#allocation2 + $0x262] sm:$0xff] }
 0x256   :  { %3567 = vst.msk [vmem:[#allocation5 + $0x430] sm:$0xff] %vm742_vm3, %v9939_v30  ;;  %3568 = vst.msk [vmem:[#allocation5 + $0x448] sm:$0xff] %vm742_vm3, %v9941_v42  ;;  %1981 = vrot.lane.b32.xlu0 %v9774_v12, %s8339_s21  ;;  %v2866_v31 = vpop.permute.xlu1 %2865  ;;  %4235 = vmatmul.mubr.bf16.gmra.mxu1 %v3809_v56  ;;  %v9951_v59 = vld [vmem:[#allocation2 + $0x25a] sm:$0xff]  ;;  %v3653_v22 = vld [vmem:[#allocation5 + $0x210] sm:$0xff] }
 0x257   :  { %3034 = vst.msk [vmem:[#allocation5 + $0x230] sm:$0xff] %vm1728_vm6, %v2866_v31  ;;  %v9986_v18 = vld [vmem:[#allocation2 + $0x279] sm:$0xff]  ;;  %v2223_v20 = vld [vmem:[#allocation2 + $0x261] sm:$0xff] }
 0x258   :  { %3565 = vst.msk [vmem:[#allocation5 + $0x400] sm:$0xff] %vm742_vm3, %v9951_v59  ;;  %v3248_v58 = vpop.permute.xlu0 %3247  ;;  %1983 = vrot.lane.b32.xlu1 %v9781_v47, %s8339_s21  ;;  %v3656_v19 = vld [vmem:[#allocation5 + $0x228] sm:$0xff]  ;;  %3566 = vst.msk [vmem:[#allocation5 + $0x418] sm:$0xff] %vm742_vm3, %v9975_v25  ;;  %v942_v4 = vld [vmem:[#allocation2 + $0x260] sm:$0xff] }
 0x259   :  { %3417 = vst.msk [vmem:[#allocation5 + $0x218] sm:$0xff] %vm2113_vm7, %v3248_v58  ;;  %v944_v11 = vld [vmem:[#allocation2 + $0x278] sm:$0xff]  ;;  %v3812_v60 = vpack.c.bf16 %v3656_v19, %v3653_v22 }
 0x25a   :  { %2498 = vrot.lane.b32.xlu0 %v9959_v57, %s8340_s24  ;;  %v3250_v12 = vpop.permute.xlu1 %3249  ;;  %v9963_v40 = vpop.f32.mrf.mxu1  ;;  %2289 = vst.msk [vmem:[#allocation5 + $0x470] sm:$0xff] %vm742_vm3, %v9986_v18  ;;  %2287 = vst.msk [vmem:[#allocation5 + $0x440] sm:$0xff] %vm742_vm3, %v2223_v20  ;;  %v10037_v20 = vld [vmem:[#allocation2 + $0x1f8] sm:$0xff] }
 0x25b   :  { %3418 = vst.msk [vmem:[#allocation5 + $0x230] sm:$0xff] %vm2113_vm7, %v3250_v12 }
 0x25c   :  { %v2483_v10 = vpop.permute.xlu0 %2482  ;;  %2500 = vrot.lane.b32.xlu1 %v9966_v54, %s8340_s24  ;;  %v4174_v47 = vpop.f32.mrf.mxu1  ;;  %1006 = vst.msk [vmem:[#allocation5 + $0x468] sm:$0xff] %vm742_vm3, %v942_v4  ;;  %1008 = vst.msk [vmem:[#allocation5 + $0x498] sm:$0xff] %vm742_vm3, %v944_v11 }
 0x25d   :  { %2650 = vst.msk [vmem:[#allocation5 + $0x248] sm:$0xff] %vm1343_vm5, %v2483_v10 }
 0x25e   :  { %3035 = vst.msk [vmem:[#allocation5 + $0x248] sm:$0xff] %vm1728_vm6, %v2868_v8  ;;  %1215 = vrot.lane.b32.xlu0 %v1055_v39, %s8340_s24  ;;  %v2485_v23 = vpop.permute.xlu1 %2484  ;;  %v9973_v29 = vpop.f32.mrf.mxu1  ;;  %v10000_v8 = vld [vmem:[#allocation2 + $0x1e8] sm:$0xff] }
 0x25f   :  { %2651 = vst.msk [vmem:[#allocation5 + $0x260] sm:$0xff] %vm1343_vm5, %v2485_v23 }
 0x260   :  { %3036 = vst.msk [vmem:[#allocation5 + $0x260] sm:$0xff] %vm1728_vm6, %v2870_v35  ;;  %v1585_v13 = vpop.permute.xlu0 %1584  ;;  %1217 = vrot.lane.b32.xlu1 %v1056_v16, %s8340_s24  ;;  %v4177_v6 = vpop.f32.mrf.mxu1  ;;  %v3654_v53 = vld [vmem:[#allocation5 + $0x218] sm:$0xff] }
 0x261   :  { %1753 = vst.msk [vmem:[#allocation5 + $0x240] sm:$0xff] %vm1728_vm6, %v1585_v13 }
 0x262   :  { %2883 = vrot.lane.b32.xlu0 %v9978_v49, %s8341_s30  ;;  %v1587_v43 = vpop.permute.xlu1 %1586  ;;  %v3657_v45 = vld [vmem:[#allocation5 + $0x230] sm:$0xff] }
 0x263   :  { %1754 = vst.msk [vmem:[#allocation5 + $0x258] sm:$0xff] %vm1728_vm6, %v1587_v43  ;;  %v3813_v38 = vpack.c.bf16 %v3657_v45, %v3654_v53  ;;  %v10044_v45 = vld [vmem:[#allocation2 + $0x200] sm:$0xff] }
 0x264   :  { %v3252_v35 = vpop.permute.xlu0 %3251  ;;  %2885 = vrot.lane.b32.xlu1 %v10000_v8, %s8341_s30 }
 0x265   :  { %3419 = vst.msk [vmem:[#allocation5 + $0x248] sm:$0xff] %vm2113_vm7, %v3252_v35  ;;  %4242 = vmatprep.mubr.bf16.mxu1 %v3813_v38 }
 0x266   :  { %1600 = vrot.lane.b32.xlu0 %v1440_v50, %s8341_s30  ;;  %v3254_v21 = vpop.permute.xlu1 %3253  ;;  %4243 = vmatmul.mubr.bf16.gmra.mxu1 %v3812_v60 }
 0x267   :  { %3420 = vst.msk [vmem:[#allocation5 + $0x260] sm:$0xff] %vm2113_vm7, %v3254_v21 }
 0x268   :  { %v1970_v63 = vpop.permute.xlu0 %1969  ;;  %1602 = vrot.lane.b32.xlu1 %v1441_v44, %s8341_s30  ;;  %v10061_v44 = vld [vmem:[#allocation2 + $0x1f9] sm:$0xff] }
 0x269   :  { %2138 = vst.msk [vmem:[#allocation5 + $0x240] sm:$0xff] %vm2113_vm7, %v1970_v63  ;;  %v10068_v63 = vld [vmem:[#allocation2 + $0x201] sm:$0xff] }
 0x26a   :  { %3267 = vrot.lane.b32.xlu0 %v9579_v37, %s8339_s21  ;;  %v1972_v7 = vpop.permute.xlu1 %1971  ;;  %v7996_v16 = vpop.f32.mrf.mxu0 }
 0x26b   :  { %2139 = vst.msk [vmem:[#allocation5 + $0x258] sm:$0xff] %vm2113_vm7, %v1972_v7 }
 0x26c   :  { %v2487_v48 = vpop.permute.xlu0 %2486  ;;  %3269 = vrot.lane.b32.xlu1 %v9581_v1, %s8339_s21  ;;  %v3660_v52 = vld [vmem:[#allocation5 + $0x248] sm:$0xff]  ;;  %v615_v19 = vpop.f32.mrf.mxu0 }
 0x26d   :  { %2652 = vst.msk [vmem:[#allocation5 + $0x278] sm:$0xff] %vm1343_vm5, %v2487_v48  ;;  %v616_v6 = vadd.f32 %v9895_v55, %v615_v19 }
 0x26e   :  { %1985 = vrot.lane.b32.xlu0 %v9583_v15, %s8339_s21  ;;  %v2489_v9 = vpop.permute.xlu1 %2488  ;;  %v3663_v56 = vld [vmem:[#allocation5 + $0x260] sm:$0xff]  ;;  %v7997_v17 = vpop.f32.mrf.mxu0 }
 0x26f   :  { %2653 = vst.msk [vmem:[#allocation5 + $0x290] sm:$0xff] %vm1343_vm5, %v2489_v9  ;;  %v3816_v31 = vpack.c.bf16 %v3663_v56, %v3660_v52  ;;  %v726_v24 = vmax.f32 %v616_v6, 0.0 }
 0x270   :  { %v1204_v58 = vpop.permute.xlu0 %1203  ;;  %1987 = vrot.lane.b32.xlu1 %v9592_v51, %s8339_s21  ;;  %v3659_v39 = vld [vmem:[#allocation5 + $0x240] sm:$0xff]  ;;  %v624_v51 = vadd.f32 %v9895_v55, %v7996_v16  ;;  %v618_v43 = vpop.f32.mrf.mxu0 }
 0x271   :  { %1370 = vst.msk [vmem:[#allocation5 + $0x270] sm:$0xff] %vm1343_vm5, %v1204_v58  ;;  %4250 = vmatprep.mubr.bf16.mxu1 %v3816_v31  ;;  %v619_v5 = vadd.f32 %v9895_v55, %v618_v43  ;;  %v10096_v16 = vld [vmem:[#allocation2 + $0x202] sm:$0xff]  ;;  %v10120_v43 = vld [vmem:[#allocation2 + $0x210] sm:$0xff] }
 0x272   :  { %2502 = vrot.lane.b32.xlu0 %v9553_v36, %s8340_s24  ;;  %v1206_v12 = vpop.permute.xlu1 %1205  ;;  %v3662_v10 = vld [vmem:[#allocation5 + $0x258] sm:$0xff]  ;;  %v728_v13 = vmax.f32 %v624_v51, 0.0  ;;  %879 = vst.msk [vmem:[#allocation2 + $0x289] sm:$0xff] %vm742_vm3, %v726_v24 }
 0x273   :  { %1371 = vst.msk [vmem:[#allocation5 + $0x288] sm:$0xff] %vm1343_vm5, %v1206_v12  ;;  %v3815_v15 = vpack.c.bf16 %v3662_v10, %v3659_v39  ;;  %v727_v38 = vmax.f32 %v619_v5, 0.0  ;;  %v3489_v24 = vld [vmem:[#allocation2 + $0x19a] sm:$0xff] }
 0x274   :  { %v2872_v47 = vpop.permute.xlu0 %2871  ;;  %2504 = vrot.lane.b32.xlu1 %v9555_v62, %s8340_s24  ;;  %881 = vst.msk [vmem:[#allocation2 + $0x2a1] sm:$0xff] %vm742_vm3, %v728_v13  ;;  %3553 = vst.msk [vmem:[#allocation5 + $0x2e0] sm:$0xff] %vm742_vm3, %v3489_v24 }
 0x275   :  { %3037 = vst.msk [vmem:[#allocation5 + $0x278] sm:$0xff] %vm1728_vm6, %v2872_v47  ;;  %4251 = vmatmul.mubr.bf16.gmra.mxu1 %v3815_v15 }
 0x276   :  { %1219 = vrot.lane.b32.xlu0 %v9601_v41, %s8340_s24  ;;  %v2874_v23 = vpop.permute.xlu1 %2873  ;;  %v627_v41 = vadd.f32 %v9895_v55, %v7997_v17  ;;  %880 = vst.msk [vmem:[#allocation2 + $0x291] sm:$0xff] %vm742_vm3, %v727_v38 }
 0x277   :  { %3038 = vst.msk [vmem:[#allocation5 + $0x290] sm:$0xff] %vm1728_vm6, %v2874_v23 }
 0x278   :  { %v1589_v53 = vpop.permute.xlu0 %1588  ;;  %1221 = vrot.lane.b32.xlu1 %v9603_v34, %s8340_s24  ;;  %v729_v34 = vmax.f32 %v627_v41, 0.0  ;;  %v3490_v41 = vld [vmem:[#allocation2 + $0x1a2] sm:$0xff] }
 0x279   :  { %1755 = vst.msk [vmem:[#allocation5 + $0x270] sm:$0xff] %vm1728_vm6, %v1589_v53  ;;  %v10105_v6 = vld [vmem:[#allocation2 + $0x289] sm:$0xff] }
 0x27a   :  { %2887 = vrot.lane.b32.xlu0 %v10037_v20, %s8341_s30  ;;  %v1591_v4 = vpop.permute.xlu1 %1590  ;;  %882 = vst.msk [vmem:[#allocation2 + $0x2a9] sm:$0xff] %vm742_vm3, %v729_v34  ;;  %2290 = vst.msk [vmem:[#allocation5 + $0x488] sm:$0xff] %vm742_vm3, %v10105_v6 }
 0x27b   :  { %1756 = vst.msk [vmem:[#allocation5 + $0x288] sm:$0xff] %vm1728_vm6, %v1591_v4  ;;  %v10124_v34 = vld [vmem:[#allocation2 + $0x2a1] sm:$0xff] }
 0x27c   :  { %v3256_v11 = vpop.permute.xlu0 %3255  ;;  %2889 = vrot.lane.b32.xlu1 %v10044_v45, %s8341_s30  ;;  %3554 = vst.msk [vmem:[#allocation5 + $0x2f8] sm:$0xff] %vm742_vm3, %v3490_v41  ;;  %2292 = vst.msk [vmem:[#allocation5 + $0x4b8] sm:$0xff] %vm742_vm3, %v10124_v34  ;;  %v947_v38 = vld [vmem:[#allocation2 + $0x2a0] sm:$0xff] }
 0x27d   :  { %3421 = vst.msk [vmem:[#allocation5 + $0x278] sm:$0xff] %vm2113_vm7, %v3256_v11  ;;  %v10083_v58 = vld [vmem:[#allocation2 + $0x28a] sm:$0xff]  ;;  %v10109_v17 = vld [vmem:[#allocation2 + $0x292] sm:$0xff] }
 0x27e   :  { %1604 = vrot.lane.b32.xlu0 %v9959_v57, %s8341_s30  ;;  %v3258_v50 = vpop.permute.xlu1 %3257  ;;  %v10054_v22 = vpop.f32.mrf.mxu1  ;;  %3569 = vst.msk [vmem:[#allocation5 + $0x460] sm:$0xff] %vm742_vm3, %v10083_v58  ;;  %v10107_v53 = vld [vmem:[#allocation2 + $0x291] sm:$0xff]  ;;  %3570 = vst.msk [vmem:[#allocation5 + $0x478] sm:$0xff] %vm742_vm3, %v10109_v17 }
 0x27f   :  { %3422 = vst.msk [vmem:[#allocation5 + $0x290] sm:$0xff] %vm2113_vm7, %v3258_v50  ;;  %v946_v11 = vld [vmem:[#allocation2 + $0x290] sm:$0xff] }
 0x280   :  { %v1974_v35 = vpop.permute.xlu0 %1973  ;;  %1606 = vrot.lane.b32.xlu1 %v9966_v54, %s8341_s30  ;;  %v4182_v60 = vpop.f32.mrf.mxu1  ;;  %2291 = vst.msk [vmem:[#allocation5 + $0x4a0] sm:$0xff] %vm742_vm3, %v10107_v53  ;;  %1010 = vst.msk [vmem:[#allocation5 + $0x4c8] sm:$0xff] %vm742_vm3, %v946_v11 }
 0x281   :  { %2140 = vst.msk [vmem:[#allocation5 + $0x270] sm:$0xff] %vm2113_vm7, %v1974_v35  ;;  %v10072_v48 = vld [vmem:[#allocation2 + $0x2a2] sm:$0xff]  ;;  %v10074_v9 = vld [vmem:[#allocation2 + $0x2aa] sm:$0xff]  ;;  %v10139_v60 = vld [vmem:[#allocation2 + $0x218] sm:$0xff] }
 0x282   :  { %3271 = vrot.lane.b32.xlu0 %v10061_v44, %s8339_s21  ;;  %v1976_v57 = vpop.permute.xlu1 %1975  ;;  %v10065_v21 = vpop.f32.mrf.mxu1  ;;  %3571 = vst.msk [vmem:[#allocation5 + $0x490] sm:$0xff] %vm742_vm3, %v10072_v48  ;;  %3572 = vst.msk [vmem:[#allocation5 + $0x4a8] sm:$0xff] %vm742_vm3, %v10074_v9  ;;  %v10126_v5 = vld [vmem:[#allocation2 + $0x2a9] sm:$0xff] }
 0x283   :  { %2141 = vst.msk [vmem:[#allocation5 + $0x288] sm:$0xff] %vm2113_vm7, %v1976_v57  ;;  %v948_v35 = vld [vmem:[#allocation2 + $0x2a8] sm:$0xff] }
 0x284   :  { %v2491_v7 = vpop.permute.xlu0 %2490  ;;  %3273 = vrot.lane.b32.xlu1 %v10068_v63, %s8339_s21  ;;  %v4185_v54 = vpop.f32.mrf.mxu1  ;;  %v3666_v56 = vld [vmem:[#allocation5 + $0x278] sm:$0xff]  ;;  %2293 = vst.msk [vmem:[#allocation5 + $0x4d0] sm:$0xff] %vm742_vm3, %v10126_v5  ;;  %1011 = vst.msk [vmem:[#allocation5 + $0x4e0] sm:$0xff] %vm742_vm3, %v947_v38 }
 0x285   :  { %2654 = vst.msk [vmem:[#allocation5 + $0x2a8] sm:$0xff] %vm1343_vm5, %v2491_v7 }
 0x286   :  { %1989 = vrot.lane.b32.xlu0 %v9978_v49, %s8339_s21  ;;  %v2493_v52 = vpop.permute.xlu1 %2492  ;;  %v3669_v31 = vld [vmem:[#allocation5 + $0x290] sm:$0xff]  ;;  %1012 = vst.msk [vmem:[#allocation5 + $0x4f8] sm:$0xff] %vm742_vm3, %v948_v35 }
 0x287   :  { %2655 = vst.msk [vmem:[#allocation5 + $0x2c0] sm:$0xff] %vm1343_vm5, %v2493_v52  ;;  %v3819_v12 = vpack.c.bf16 %v3669_v31, %v3666_v56  ;;  %v10151_v52 = vld [vmem:[#allocation2 + $0x211] sm:$0xff]  ;;  %v10156_v31 = vld [vmem:[#allocation2 + $0x219] sm:$0xff] }
 0x288   :  { %v1208_v39 = vpop.permute.xlu0 %1207  ;;  %1991 = vrot.lane.b32.xlu1 %v10000_v8, %s8339_s21  ;;  %v3665_v15 = vld [vmem:[#allocation5 + $0x270] sm:$0xff] }
 0x289   :  { %1372 = vst.msk [vmem:[#allocation5 + $0x2a0] sm:$0xff] %vm1343_vm5, %v1208_v39  ;;  %4258 = vmatprep.mubr.bf16.mxu1 %v3819_v12 }
 0x28a   :  { %2506 = vrot.lane.b32.xlu0 %v9686_v26, %s8340_s24  ;;  %v1210_v49 = vpop.permute.xlu1 %1209  ;;  %v10093_v10 = vpop.f32.mrf.mxu1  ;;  %v3668_v47 = vld [vmem:[#allocation5 + $0x288] sm:$0xff] }
 0x28b   :  { %1373 = vst.msk [vmem:[#allocation5 + $0x2b8] sm:$0xff] %vm1343_vm5, %v1210_v49  ;;  %v3818_v51 = vpack.c.bf16 %v3668_v47, %v3665_v15  ;;  %v8000_v47 = vpop.f32.mrf.mxu0 }
 0x28c   :  { %v2876_v23 = vpop.permute.xlu0 %2875  ;;  %2508 = vrot.lane.b32.xlu1 %v10096_v16, %s8340_s24  ;;  %v4190_v8 = vpop.f32.mrf.mxu1 }
 0x28d   :  { %3039 = vst.msk [vmem:[#allocation5 + $0x2a8] sm:$0xff] %vm1728_vm6, %v2876_v23  ;;  %4259 = vmatmul.mubr.bf16.gmra.mxu1 %v3818_v51  ;;  %v640_v51 = vadd.f32 %v9895_v55, %v8000_v47 }
 0x28e   :  { %1223 = vrot.lane.b32.xlu0 %v9579_v37, %s8340_s24  ;;  %v2878_v19 = vpop.permute.xlu1 %2877  ;;  %v10103_v13 = vpop.f32.mrf.mxu1 }
 0x28f   :  { %3040 = vst.msk [vmem:[#allocation5 + $0x2c0] sm:$0xff] %vm1728_vm6, %v2878_v19  ;;  %v631_v19 = vpop.f32.mrf.mxu0  ;;  %v732_v41 = vmax.f32 %v640_v51, 0.0  ;;  %v10209_v51 = vld [vmem:[#allocation2 + $0x229] sm:$0xff] }
 0x290   :  { %v1593_v37 = vpop.permute.xlu0 %1592  ;;  %1225 = vrot.lane.b32.xlu1 %v9581_v1, %s8340_s24  ;;  %v4193_v4 = vpop.f32.mrf.mxu1  ;;  %v945_v1 = vld [vmem:[#allocation2 + $0x288] sm:$0xff] }
 0x291   :  { %1757 = vst.msk [vmem:[#allocation5 + $0x2a0] sm:$0xff] %vm1728_vm6, %v1593_v37  ;;  %v632_v37 = vadd.f32 %v9895_v55, %v631_v19  ;;  %v8001_v4 = vpop.f32.mrf.mxu0 }
 0x292   :  { %2891 = vrot.lane.b32.xlu0 %v10120_v43, %s8341_s30  ;;  %v1595_v50 = vpop.permute.xlu1 %1594  ;;  %1009 = vst.msk [vmem:[#allocation5 + $0x4b0] sm:$0xff] %vm742_vm3, %v945_v1  ;;  %885 = vst.msk [vmem:[#allocation2 + $0x2d1] sm:$0xff] %vm742_vm3, %v732_v41  ;;  %v643_v11 = vadd.f32 %v9895_v55, %v8001_v4 }
 0x293   :  { %1758 = vst.msk [vmem:[#allocation5 + $0x2b8] sm:$0xff] %vm1728_vm6, %v1595_v50  ;;  %v730_v1 = vmax.f32 %v632_v37, 0.0  ;;  %v634_v50 = vpop.f32.mrf.mxu0 }
 0x294   :  { %v3260_v57 = vpop.permute.xlu0 %3259  ;;  %2893 = vrot.lane.b32.xlu1 %v10139_v60, %s8341_s30  ;;  %v733_v35 = vmax.f32 %v643_v11, 0.0 }
 0x295   :  { %3423 = vst.msk [vmem:[#allocation5 + $0x2a8] sm:$0xff] %vm2113_vm7, %v3260_v57  ;;  %v635_v57 = vadd.f32 %v9895_v55, %v634_v50 }
 0x296   :  { %1608 = vrot.lane.b32.xlu0 %v9553_v36, %s8341_s30  ;;  %v3262_v7 = vpop.permute.xlu1 %3261  ;;  %883 = vst.msk [vmem:[#allocation2 + $0x2b9] sm:$0xff] %vm742_vm3, %v730_v1  ;;  %886 = vst.msk [vmem:[#allocation2 + $0x2d9] sm:$0xff] %vm742_vm3, %v733_v35 }
 0x297   :  { %3424 = vst.msk [vmem:[#allocation5 + $0x2c0] sm:$0xff] %vm2113_vm7, %v3262_v7 }
 0x298   :  { %v1978_v54 = vpop.permute.xlu0 %1977  ;;  %1610 = vrot.lane.b32.xlu1 %v9555_v62, %s8341_s30 }
 0x299   :  { %2142 = vst.msk [vmem:[#allocation5 + $0x2a0] sm:$0xff] %vm2113_vm7, %v1978_v54  ;;  %v10185_v54 = vld [vmem:[#allocation2 + $0x228] sm:$0xff] }
 0x29a   :  { %3275 = vrot.lane.b32.xlu0 %v10151_v52, %s8339_s21  ;;  %v1980_v56 = vpop.permute.xlu1 %1979 }
 0x29b   :  { %2143 = vst.msk [vmem:[#allocation5 + $0x2b8] sm:$0xff] %vm2113_vm7, %v1980_v56 }
 0x29c   :  { %v2435_v36 = vpop.permute.xlu0 %2434  ;;  %3277 = vrot.lane.b32.xlu1 %v10156_v31, %s8339_s21  ;;  %v3672_v12 = vld [vmem:[#allocation5 + $0x2a8] sm:$0xff] }
 0x29d   :  { %2626 = vst.msk [vmem:[#allocation5 + $0x8] sm:$0xff] %vm1343_vm5, %v2435_v36  ;;  %v10191_v36 = vld [vmem:[#allocation2 + $0x230] sm:$0xff]  ;;  %v10206_v47 = vld [vmem:[#allocation2 + $0x2da] sm:$0xff] }
 0x29e   :  { %1993 = vrot.lane.b32.xlu0 %v10037_v20, %s8339_s21  ;;  %v2437_v62 = vpop.permute.xlu1 %2436  ;;  %v3675_v39 = vld [vmem:[#allocation5 + $0x2c0] sm:$0xff]  ;;  %3576 = vst.msk [vmem:[#allocation5 + $0x508] sm:$0xff] %vm742_vm3, %v10206_v47 }
 0x29f   :  { %2627 = vst.msk [vmem:[#allocation5 + $0x20] sm:$0xff] %vm1343_vm5, %v2437_v62  ;;  %v3822_v49 = vpack.c.bf16 %v3675_v39, %v3672_v12 }
 0x2a0   :  { %v2495_v15 = vpop.permute.xlu0 %2494  ;;  %1995 = vrot.lane.b32.xlu1 %v10044_v45, %s8339_s21  ;;  %v3671_v23 = vld [vmem:[#allocation5 + $0x2a0] sm:$0xff] }
 0x2a1   :  { %2656 = vst.msk [vmem:[#allocation5 + $0x2d8] sm:$0xff] %vm1343_vm5, %v2495_v15  ;;  %4266 = vmatprep.mubr.bf16.mxu1 %v3822_v49  ;;  %v10204_v15 = vld [vmem:[#allocation2 + $0x2d2] sm:$0xff] }
 0x2a2   :  { %2510 = vrot.lane.b32.xlu0 %v9674_v14, %s8340_s24  ;;  %v2497_v20 = vpop.permute.xlu1 %2496  ;;  %v3674_v8 = vld [vmem:[#allocation5 + $0x2b8] sm:$0xff]  ;;  %3575 = vst.msk [vmem:[#allocation5 + $0x4f0] sm:$0xff] %vm742_vm3, %v10204_v15 }
 0x2a3   :  { %2657 = vst.msk [vmem:[#allocation5 + $0x2f0] sm:$0xff] %vm1343_vm5, %v2497_v20  ;;  %v3821_v24 = vpack.c.bf16 %v3674_v8, %v3671_v23  ;;  %v10224_v8 = vld [vmem:[#allocation2 + $0x231] sm:$0xff] }
 0x2a4   :  { %v1152_v45 = vpop.permute.xlu0 %1151  ;;  %2512 = vrot.lane.b32.xlu1 %v9676_v27, %s8340_s24 }
 0x2a5   :  { %1344 = vst.msk [vmem:[#allocation5] sm:$0xff] %vm1343_vm5, %v1152_v45  ;;  %4267 = vmatmul.mubr.bf16.gmra.mxu1 %v3821_v24 }
 0x2a6   :  { %1227 = vrot.lane.b32.xlu0 %v10061_v44, %s8340_s24  ;;  %v1154_v38 = vpop.permute.xlu1 %1153  ;;  %v731_v44 = vmax.f32 %v635_v57, 0.0  ;;  %v2232_v57 = vld [vmem:[#allocation2 + $0x2d1] sm:$0xff] }
 0x2a7   :  { %1345 = vst.msk [vmem:[#allocation5 + $0x18] sm:$0xff] %vm1343_vm5, %v1154_v38  ;;  %v10251_v38 = vld [vmem:[#allocation2 + $0x2b9] sm:$0xff] }
 0x2a8   :  { %v1212_v7 = vpop.permute.xlu0 %1211  ;;  %1229 = vrot.lane.b32.xlu1 %v10068_v63, %s8340_s24  ;;  %884 = vst.msk [vmem:[#allocation2 + $0x2c1] sm:$0xff] %vm742_vm3, %v731_v44  ;;  %2294 = vst.msk [vmem:[#allocation5 + $0x4e8] sm:$0xff] %vm742_vm3, %v10251_v38  ;;  %v949_v44 = vld [vmem:[#allocation2 + $0x2b8] sm:$0xff] }
 0x2a9   :  { %1374 = vst.msk [vmem:[#allocation5 + $0x2d0] sm:$0xff] %vm1343_vm5, %v1212_v7  ;;  %v2233_v7 = vld [vmem:[#allocation2 + $0x2d9] sm:$0xff] }
 0x2aa   :  { %2895 = vrot.lane.b32.xlu0 %v10185_v54, %s8341_s30  ;;  %v1214_v56 = vpop.permute.xlu1 %1213  ;;  %2296 = vst.msk [vmem:[#allocation5 + $0x518] sm:$0xff] %vm742_vm3, %v2232_v57  ;;  %2297 = vst.msk [vmem:[#allocation5 + $0x530] sm:$0xff] %vm742_vm3, %v2233_v7 }
 0x2ab   :  { %1375 = vst.msk [vmem:[#allocation5 + $0x2e8] sm:$0xff] %vm1343_vm5, %v1214_v56  ;;  %v10263_v56 = vld [vmem:[#allocation2 + $0x240] sm:$0xff] }
 0x2ac   :  { %v2820_v62 = vpop.permute.xlu0 %2819  ;;  %2897 = vrot.lane.b32.xlu1 %v10191_v36, %s8341_s30  ;;  %1013 = vst.msk [vmem:[#allocation5 + $0x510] sm:$0xff] %vm742_vm3, %v949_v44 }
 0x2ad   :  { %3011 = vst.msk [vmem:[#allocation5 + $0x8] sm:$0xff] %vm1728_vm6, %v2820_v62 }
 0x2ae   :  { %1612 = vrot.lane.b32.xlu0 %v9686_v26, %s8341_s30  ;;  %v2822_v63 = vpop.permute.xlu1 %2821  ;;  %v10199_v12 = vpop.f32.mrf.mxu1 }
 0x2af   :  { %3012 = vst.msk [vmem:[#allocation5 + $0x20] sm:$0xff] %vm1728_vm6, %v2822_v63  ;;  %v10219_v20 = vld [vmem:[#allocation2 + $0x2ba] sm:$0xff]  ;;  %v10221_v23 = vld [vmem:[#allocation2 + $0x2c2] sm:$0xff] }
 0x2b0   :  { %v2880_v39 = vpop.permute.xlu0 %2879  ;;  %1614 = vrot.lane.b32.xlu1 %v10096_v16, %s8341_s30  ;;  %v4198_v49 = vpop.f32.mrf.mxu1  ;;  %3573 = vst.msk [vmem:[#allocation5 + $0x4c0] sm:$0xff] %vm742_vm3, %v10219_v20  ;;  %3574 = vst.msk [vmem:[#allocation5 + $0x4d8] sm:$0xff] %vm742_vm3, %v10221_v23  ;;  %v10253_v50 = vld [vmem:[#allocation2 + $0x2c1] sm:$0xff] }
 0x2b1   :  { %3041 = vst.msk [vmem:[#allocation5 + $0x2d8] sm:$0xff] %vm1728_vm6, %v2880_v39  ;;  %v950_v62 = vld [vmem:[#allocation2 + $0x2c0] sm:$0xff]  ;;  %v952_v39 = vld [vmem:[#allocation2 + $0x2d8] sm:$0xff]  ;;  %v10272_v49 = vld [vmem:[#allocation2 + $0x248] sm:$0xff] }
 0x2b2   :  { %3279 = vrot.lane.b32.xlu0 %v10209_v51, %s8339_s21  ;;  %v2882_v26 = vpop.permute.xlu1 %2881  ;;  %v10217_v16 = vpop.f32.mrf.mxu1  ;;  %2295 = vst.msk [vmem:[#allocation5 + $0x500] sm:$0xff] %vm742_vm3, %v10253_v50  ;;  %1014 = vst.msk [vmem:[#allocation5 + $0x528] sm:$0xff] %vm742_vm3, %v950_v62 }
 0x2b3   :  { %3042 = vst.msk [vmem:[#allocation5 + $0x2f0] sm:$0xff] %vm1728_vm6, %v2882_v26 }
 0x2b4   :  { %v1537_v19 = vpop.permute.xlu0 %1536  ;;  %3281 = vrot.lane.b32.xlu1 %v10224_v8, %s8339_s21  ;;  %v4201_v24 = vpop.f32.mrf.mxu1  ;;  %1016 = vst.msk [vmem:[#allocation5 + $0x558] sm:$0xff] %vm742_vm3, %v952_v39  ;;  %v8227_v39 = vld [vmem:[%s12189_s3 + $0x80] sm:$0xff]  }
 0x2b5   :  { %1729 = vst.msk [vmem:[#allocation5] sm:$0xff] %vm1728_vm6, %v1537_v19 }
 0x2b6   :  { %1997 = vrot.lane.b32.xlu0 %v10120_v43, %s8339_s21  ;;  %v1539_v41 = vpop.permute.xlu1 %1538 }
 0x2b7   :  { %1730 = vst.msk [vmem:[#allocation5 + $0x18] sm:$0xff] %vm1728_vm6, %v1539_v41 }
 0x2b8   :  { %v1597_v37 = vpop.permute.xlu0 %1596  ;;  %1999 = vrot.lane.b32.xlu1 %v10139_v60, %s8339_s21 }
 0x2b9   :  { %1759 = vst.msk [vmem:[#allocation5 + $0x2d0] sm:$0xff] %vm1728_vm6, %v1597_v37 }
 0x2ba   :  { %2514 = vrot.lane.b32.xlu0 %v9824_v33, %s8340_s24  ;;  %v1599_v45 = vpop.permute.xlu1 %1598  ;;  %v10241_v4 = vpop.f32.mrf.mxu1 }
 0x2bb   :  { %1760 = vst.msk [vmem:[#allocation5 + $0x2e8] sm:$0xff] %vm1728_vm6, %v1599_v45 }
 0x2bc   :  { %v3204_v1 = vpop.permute.xlu0 %3203  ;;  %2516 = vrot.lane.b32.xlu1 %v9841_v0, %s8340_s24  ;;  %v4206_v43 = vpop.f32.mrf.mxu1 }
 0x2bd   :  { %3395 = vst.msk [vmem:[#allocation5 + $0x8] sm:$0xff] %vm2113_vm7, %v3204_v1  ;;  %v10285_v43 = vld [vmem:[#allocation2 + $0x241] sm:$0xff] }
 0x2be   :  { %1231 = vrot.lane.b32.xlu0 %v10151_v52, %s8340_s24  ;;  %v3206_v60 = vpop.permute.xlu1 %3205  ;;  %v10249_v11 = vpop.f32.mrf.mxu1 }
 0x2bf   :  { %3396 = vst.msk [vmem:[#allocation5 + $0x20] sm:$0xff] %vm2113_vm7, %v3206_v60 }
 0x2c0   :  { %v3264_v35 = vpop.permute.xlu0 %3263  ;;  %1233 = vrot.lane.b32.xlu1 %v10156_v31, %s8340_s24  ;;  %v4209_v52 = vpop.f32.mrf.mxu1  ;;  %v951_v31 = vld [vmem:[#allocation2 + $0x2d0] sm:$0xff] }
 0x2c1   :  { %3425 = vst.msk [vmem:[#allocation5 + $0x2d8] sm:$0xff] %vm2113_vm7, %v3264_v35  ;;  %v10290_v35 = vld [vmem:[#allocation2 + $0x249] sm:$0xff] }
 0x2c2   :  { %2899 = vrot.lane.b32.xlu0 %v10263_v56, %s8341_s30  ;;  %v3266_v63 = vpop.permute.xlu1 %3265  ;;  %1015 = vst.msk [vmem:[#allocation5 + $0x540] sm:$0xff] %vm742_vm3, %v951_v31 }
 0x2c3   :  { %3426 = vst.msk [vmem:[#allocation5 + $0x2f0] sm:$0xff] %vm2113_vm7, %v3266_v63  ;;  %v3592_v63 = vld [vmem:[#allocation5 + $0x28] sm:$0xff] }
 0x2c4   :  { %v1922_v26 = vpop.permute.xlu0 %1921  ;;  %2901 = vrot.lane.b32.xlu1 %v10272_v49, %s8341_s30  ;;  %v3588_v24 = vld [vmem:[#allocation5 + $0x8] sm:$0xff] }
 0x2c5   :  { %2114 = vst.msk [vmem:[#allocation5] sm:$0xff] %vm2113_vm7, %v1922_v26 }
 0x2c6   :  { %1616 = vrot.lane.b32.xlu0 %v9674_v14, %s8341_s30  ;;  %v1924_v19 = vpop.permute.xlu1 %1923  ;;  %v3591_v41 = vld [vmem:[#allocation5 + $0x20] sm:$0xff] }
 0x2c7   :  { %2115 = vst.msk [vmem:[#allocation5 + $0x18] sm:$0xff] %vm2113_vm7, %v1924_v19  ;;  %v3780_v37 = vpack.c.bf16 %v3591_v41, %v3588_v24 }
 0x2c8   :  { %v1982_v45 = vpop.permute.xlu0 %1981  ;;  %1618 = vrot.lane.b32.xlu1 %v9676_v27, %s8341_s30  ;;  %v3678_v1 = vld [vmem:[#allocation5 + $0x2d8] sm:$0xff]  ;;  %v3589_v27 = vld [vmem:[#allocation5 + $0x10] sm:$0xff] }
 0x2c9   :  { %2144 = vst.msk [vmem:[#allocation5 + $0x2d0] sm:$0xff] %vm2113_vm7, %v1982_v45  ;;  %4154 = vmatprep.mubr.bf16.mxu0 %v3780_v37  ;;  %v8004_v26 = vpop.f32.mrf.mxu0 }
 0x2ca   :  { %3283 = vrot.lane.b32.xlu0 %v10285_v43, %s8339_s21  ;;  %v1984_v14 = vpop.permute.xlu1 %1983  ;;  %v3681_v60 = vld [vmem:[#allocation5 + $0x2f0] sm:$0xff]  ;;  %v656_v24 = vadd.f32 %v9895_v55, %v8004_v26 }
 0x2cb   :  { %2145 = vst.msk [vmem:[#allocation5 + $0x2e8] sm:$0xff] %vm2113_vm7, %v1984_v14  ;;  %v3825_v52 = vpack.c.bf16 %v3681_v60, %v3678_v1  ;;  %v647_v41 = vpop.f32.mrf.mxu0 }
 0x2cc   :  { %v2499_v57 = vpop.permute.xlu0 %2498  ;;  %3285 = vrot.lane.b32.xlu1 %v10290_v35, %s8339_s21  ;;  %v3587_v44 = vld [vmem:[#allocation5] sm:$0xff]  ;;  %v736_v14 = vmax.f32 %v656_v24, 0.0  ;;  %v648_v60 = vadd.f32 %v9895_v55, %v647_v41 }
 0x2cd   :  { %2658 = vst.msk [vmem:[#allocation5 + $0x308] sm:$0xff] %vm1343_vm5, %v2499_v57  ;;  %4274 = vmatprep.mubr.bf16.mxu1 %v3825_v52  ;;  %v8005_v52 = vpop.f32.mrf.mxu0 }
 0x2ce   :  { %2001 = vrot.lane.b32.xlu0 %v10185_v54, %s8339_s21  ;;  %v2501_v7 = vpop.permute.xlu1 %2500  ;;  %v3590_v62 = vld [vmem:[#allocation5 + $0x18] sm:$0xff]  ;;  %v3781_v54 = vpack.c.bf16 %v3592_v63, %v3589_v27  ;;  %v3595_v27 = vld [vmem:[#allocation5 + $0x40] sm:$0xff]  ;;  %889 = vst.msk [vmem:[#allocation2 + $0x301] sm:$0xff] %vm742_vm3, %v736_v14  ;;  %v3604_v63 = vld [vmem:[#allocation5 + $0x88] sm:$0xff] }
 0x2cf   :  { %2659 = vst.msk [vmem:[#allocation5 + $0x320] sm:$0xff] %vm1343_vm5, %v2501_v7  ;;  %v3779_v31 = vpack.c.bf16 %v3590_v62, %v3587_v44  ;;  %v3598_v7 = vld [vmem:[#allocation5 + $0x58] sm:$0xff]  ;;  %v659_v44 = vadd.f32 %v9895_v55, %v8005_v52  ;;  %v3601_v62 = vld [vmem:[#allocation5 + $0x70] sm:$0xff] }
 0x2d0   :  { %v1216_v19 = vpop.permute.xlu0 %1215  ;;  %2003 = vrot.lane.b32.xlu1 %v10191_v36, %s8339_s21  ;;  %v3677_v45 = vld [vmem:[#allocation5 + $0x2d0] sm:$0xff]  ;;  %v3610_v14 = vld [vmem:[#allocation5 + $0xb8] sm:$0xff] }
 0x2d1   :  { %1376 = vst.msk [vmem:[#allocation5 + $0x300] sm:$0xff] %vm1343_vm5, %v1216_v19  ;;  %4155 = vmatmul.mubr.bf16.vlgmr.msra.gmra.mxu0 %v3779_v31  ;;  %v650_v31 = vpop.f32.mrf.mxu0  ;;  %v737_v19 = vmax.f32 %v659_v44, 0.0 }
 0x2d2   :  { %2518 = vrot.lane.b32.xlu0 %v9811_v28, %s8340_s24  ;;  %8011 = vmatpush3.bf16.msra.mxu0 %v9932_v46  ;;  %v1218_v37 = vpop.permute.xlu1 %1217  ;;  %v3680_v1 = vld [vmem:[#allocation5 + $0x2e8] sm:$0xff]  ;;  %v734_v46 = vmax.f32 %v648_v60, 0.0  ;;  %v651_v24 = vadd.f32 %v9895_v55, %v650_v31  ;;  %v3613_v60 = vld [vmem:[#allocation5 + $0xd0] sm:$0xff] }
 0x2d3   :  { %8014 = vmatprep.mubr.msk.bf16.mxu0 %vm742_vm3, %v3781_v54  ;;  %1377 = vst.msk [vmem:[#allocation5 + $0x318] sm:$0xff] %vm1343_vm5, %v1218_v37  ;;  %v3824_v36 = vpack.c.bf16 %v3680_v1, %v3677_v45  ;;  %8012 = vmatprep.subr.bf16.mxu0 %v8227_v39  ;;  %v3784_v54 = vpack.c.bf16 %v3598_v7, %v3595_v27  ;;  %v3607_v1 = vld [vmem:[#allocation5 + $0xa0] sm:$0xff] }
 0x2d4   :  { %v2884_v57 = vpop.permute.xlu0 %2883  ;;  %2520 = vrot.lane.b32.xlu1 %v9813_v61, %s8340_s24  ;;  %887 = vst.msk [vmem:[#allocation2 + $0x2e9] sm:$0xff] %vm742_vm3, %v734_v46  ;;  %v3787_v37 = vpack.c.bf16 %v3604_v63, %v3601_v62  ;;  %890 = vst.msk [vmem:[#allocation2 + $0x309] sm:$0xff] %vm742_vm3, %v737_v19  ;;  %v735_v45 = vmax.f32 %v651_v24, 0.0  ;;  %v3790_v27 = vpack.c.bf16 %v3610_v14, %v3607_v1  ;;  %v10371_v24 = vld [vmem:[#allocation2 + $0x261] sm:$0xff] }
 0x2d5   :  { %3043 = vst.msk [vmem:[#allocation5 + $0x308] sm:$0xff] %vm1728_vm6, %v2884_v57  ;;  %4275 = vmatmul.mubr.bf16.gmra.mxu1 %v3824_v36  ;;  %v3616_v36 = vld [vmem:[#allocation5 + $0xe8] sm:$0xff] }
 0x2d6   :  { %1235 = vrot.lane.b32.xlu0 %v10209_v51, %s8340_s24  ;;  %8013 = vmatpush3.bf16.msra.mxu0 %v8227_v39  ;;  %v2886_v26 = vpop.permute.xlu1 %2885  ;;  %v10326_v51 = vld [vmem:[#allocation2 + $0x258] sm:$0xff]  ;;  %888 = vst.msk [vmem:[#allocation2 + $0x2f1] sm:$0xff] %vm742_vm3, %v735_v45  ;;  %v3793_v63 = vpack.c.bf16 %v3616_v36, %v3613_v60 }
 0x2d7   :  { %3044 = vst.msk [vmem:[#allocation5 + $0x320] sm:$0xff] %vm1728_vm6, %v2886_v26  ;;  %v3622_v45 = vld [vmem:[#allocation5 + $0x118] sm:$0xff] }
 0x2d8   :  { %v1601_v41 = vpop.permute.xlu0 %1600  ;;  %1237 = vrot.lane.b32.xlu1 %v10224_v8, %s8340_s24  ;;  %v10333_v8 = vld [vmem:[#allocation2 + $0x260] sm:$0xff] }
 0x2d9   :  { %1761 = vst.msk [vmem:[#allocation5 + $0x300] sm:$0xff] %vm1728_vm6, %v1601_v41  ;;  %8015 = vmatmul.mubr.msk.bf16.vlgmr.msra.gmra.mxu0 %vm742_vm3, %v3784_v54 }
 0x2da   :  { %2903 = vrot.lane.b32.xlu0 %v10326_v51, %s8341_s30  ;;  %8018 = vmatprep.mubr.msk.bf16.mxu0 %vm742_vm3, %v3787_v37  ;;  %v1603_v55 = vpop.permute.xlu1 %1602  ;;  %v3619_v37 = vld [vmem:[#allocation5 + $0x100] sm:$0xff] }
 0x2db   :  { %1762 = vst.msk [vmem:[#allocation5 + $0x318] sm:$0xff] %vm1728_vm6, %v1603_v55  ;;  %v10343_v7 = vld [vmem:[#allocation2 + $0x302] sm:$0xff]  ;;  %v10345_v46 = vld [vmem:[#allocation2 + $0x30a] sm:$0xff] }
 0x2dc   :  { %v3268_v39 = vpop.permute.xlu0 %3267  ;;  %2905 = vrot.lane.b32.xlu1 %v10333_v8, %s8341_s30  ;;  %3579 = vst.msk [vmem:[#allocation5 + $0x550] sm:$0xff] %vm742_vm3, %v10343_v7  ;;  %3580 = vst.msk [vmem:[#allocation5 + $0x568] sm:$0xff] %vm742_vm3, %v10345_v46  ;;  %v3625_v55 = vld [vmem:[#allocation5 + $0x130] sm:$0xff] }
 0x2dd   :  { %3427 = vst.msk [vmem:[#allocation5 + $0x308] sm:$0xff] %vm2113_vm7, %v3268_v39  ;;  %v10357_v31 = vld [vmem:[#allocation2 + $0x2ea] sm:$0xff]  ;;  %v10359_v26 = vld [vmem:[#allocation2 + $0x2f2] sm:$0xff] }
 0x2de   :  { %1620 = vrot.lane.b32.xlu0 %v9824_v33, %s8341_s30  ;;  %v3270_v52 = vpop.permute.xlu1 %3269  ;;  %v10340_v57 = vpop.f32.mrf.mxu1  ;;  %v10355_v33 = vld [vmem:[#allocation2 + $0x259] sm:$0xff]  ;;  %3577 = vst.msk [vmem:[#allocation5 + $0x520] sm:$0xff] %vm742_vm3, %v10357_v31  ;;  %3578 = vst.msk [vmem:[#allocation5 + $0x538] sm:$0xff] %vm742_vm3, %v10359_v26  ;;  %v3628_v39 = vld [vmem:[#allocation5 + $0x148] sm:$0xff] }
 0x2df   :  { %3428 = vst.msk [vmem:[#allocation5 + $0x320] sm:$0xff] %vm2113_vm7, %v3270_v52  ;;  %v3796_v52 = vpack.c.bf16 %v3622_v45, %v3619_v37  ;;  %v3631_v37 = vld [vmem:[#allocation5 + $0x160] sm:$0xff]  ;;  %v3634_v45 = vld [vmem:[#allocation5 + $0x178] sm:$0xff] }
 0x2e0   :  { %v1986_v44 = vpop.permute.xlu0 %1985  ;;  %1622 = vrot.lane.b32.xlu1 %v9841_v0, %s8341_s30  ;;  %v4214_v62 = vpop.f32.mrf.mxu1 }
 0x2e1   :  { %2146 = vst.msk [vmem:[#allocation5 + $0x300] sm:$0xff] %vm2113_vm7, %v1986_v44  ;;  %8019 = vmatmul.mubr.msk.bf16.gmra.mxu0 %vm742_vm3, %v3790_v27  ;;  %v3799_v44 = vpack.c.bf16 %v3628_v39, %v3625_v55  ;;  %v3637_v55 = vld [vmem:[#allocation5 + $0x190] sm:$0xff]  ;;  %v3640_v39 = vld [vmem:[#allocation5 + $0x1a8] sm:$0xff] }
 0x2e2   :  { %3287 = vrot.lane.b32.xlu0 %v10355_v33, %s8339_s21  ;;  %8022 = vmatprep.mubr.msk.bf16.mxu0 %vm742_vm3, %v3793_v63  ;;  %v1988_v0 = vpop.permute.xlu1 %1987  ;;  %v10364_v19 = vpop.f32.mrf.mxu1 }
 0x2e3   :  { %2147 = vst.msk [vmem:[#allocation5 + $0x318] sm:$0xff] %vm2113_vm7, %v1988_v0 }
 0x2e4   :  { %v2503_v54 = vpop.permute.xlu0 %2502  ;;  %3289 = vrot.lane.b32.xlu1 %v10371_v24, %s8339_s21  ;;  %v4217_v41 = vpop.f32.mrf.mxu1  ;;  %v3684_v14 = vld [vmem:[#allocation5 + $0x308] sm:$0xff] }
 0x2e5   :  { %2660 = vst.msk [vmem:[#allocation5 + $0x338] sm:$0xff] %vm1343_vm5, %v2503_v54 }
 0x2e6   :  { %2005 = vrot.lane.b32.xlu0 %v10263_v56, %s8339_s21  ;;  %v2505_v1 = vpop.permute.xlu1 %2504  ;;  %v3687_v60 = vld [vmem:[#allocation5 + $0x320] sm:$0xff] }
 0x2e7   :  { %2661 = vst.msk [vmem:[#allocation5 + $0x350] sm:$0xff] %vm1343_vm5, %v2505_v1  ;;  %v3828_v36 = vpack.c.bf16 %v3687_v60, %v3684_v14  ;;  %v3802_v60 = vpack.c.bf16 %v3634_v45, %v3631_v37  ;;  %v10411_v37 = vld [vmem:[#allocation2 + $0x278] sm:$0xff]  ;;  %v956_v45 = vld [vmem:[#allocation2 + $0x308] sm:$0xff] }
 0x2e8   :  { %v1220_v27 = vpop.permute.xlu0 %1219  ;;  %2007 = vrot.lane.b32.xlu1 %v10272_v49, %s8339_s21  ;;  %v3683_v63 = vld [vmem:[#allocation5 + $0x300] sm:$0xff]  ;;  %1020 = vst.msk [vmem:[#allocation5 + $0x5b8] sm:$0xff] %vm742_vm3, %v956_v45 }
 0x2e9   :  { %1378 = vst.msk [vmem:[#allocation5 + $0x330] sm:$0xff] %vm1343_vm5, %v1220_v27  ;;  %4282 = vmatprep.mubr.bf16.mxu1 %v3828_v36  ;;  %8023 = vmatmul.mubr.msk.bf16.gmra.mxu0 %vm742_vm3, %v3796_v52  ;;  %v3805_v27 = vpack.c.bf16 %v3640_v39, %v3637_v55  ;;  %v3643_v39 = vld [vmem:[#allocation5 + $0x1c0] sm:$0xff] }
 0x2ea   :  { %2522 = vrot.lane.b32.xlu0 %v9951_v59, %s8340_s24  ;;  %8026 = vmatprep.mubr.msk.bf16.mxu0 %vm742_vm3, %v3799_v44  ;;  %v1222_v56 = vpop.permute.xlu1 %1221  ;;  %v10386_v62 = vpop.f32.mrf.mxu1  ;;  %v3686_v0 = vld [vmem:[#allocation5 + $0x318] sm:$0xff]  ;;  %v2234_v44 = vld [vmem:[#allocation2 + $0x2e9] sm:$0xff] }
 0x2eb   :  { %1379 = vst.msk [vmem:[#allocation5 + $0x348] sm:$0xff] %vm1343_vm5, %v1222_v56  ;;  %v3827_v54 = vpack.c.bf16 %v3686_v0, %v3683_v63  ;;  %v2235_v56 = vld [vmem:[#allocation2 + $0x2f1] sm:$0xff]  ;;  %v2236_v63 = vld [vmem:[#allocation2 + $0x301] sm:$0xff]  ;;  %v2237_v0 = vld [vmem:[#allocation2 + $0x309] sm:$0xff] }
 0x2ec   :  { %v2888_v49 = vpop.permute.xlu0 %2887  ;;  %2524 = vrot.lane.b32.xlu1 %v9975_v25, %s8340_s24  ;;  %v4222_v41 = vpop.f32.mrf.mxu1  ;;  %2298 = vst.msk [vmem:[#allocation5 + $0x548] sm:$0xff] %vm742_vm3, %v2234_v44  ;;  %2299 = vst.msk [vmem:[#allocation5 + $0x560] sm:$0xff] %vm742_vm3, %v2235_v56 }
 0x2ed   :  { %3045 = vst.msk [vmem:[#allocation5 + $0x338] sm:$0xff] %vm1728_vm6, %v2888_v49  ;;  %4283 = vmatmul.mubr.bf16.gmra.mxu1 %v3827_v54  ;;  %v953_v54 = vld [vmem:[#allocation2 + $0x2e8] sm:$0xff]  ;;  %v954_v49 = vld [vmem:[#allocation2 + $0x2f0] sm:$0xff]  ;;  %v955_v41 = vld [vmem:[#allocation2 + $0x300] sm:$0xff] }
 0x2ee   :  { %1239 = vrot.lane.b32.xlu0 %v10285_v43, %s8340_s24  ;;  %v2890_v1 = vpop.permute.xlu1 %2889  ;;  %v10394_v14 = vpop.f32.mrf.mxu1  ;;  %v10401_v43 = vld [vmem:[#allocation2 + $0x270] sm:$0xff]  ;;  %2300 = vst.msk [vmem:[#allocation5 + $0x578] sm:$0xff] %vm742_vm3, %v2236_v63  ;;  %2301 = vst.msk [vmem:[#allocation5 + $0x590] sm:$0xff] %vm742_vm3, %v2237_v0  ;;  %v3655_v0 = vld [vmem:[#allocation5 + $0x220] sm:$0xff] }
 0x2ef   :  { %3046 = vst.msk [vmem:[#allocation5 + $0x350] sm:$0xff] %vm1728_vm6, %v2890_v1  ;;  %v3646_v1 = vld [vmem:[#allocation5 + $0x1d8] sm:$0xff] }
 0x2f0   :  { %v1605_v36 = vpop.permute.xlu0 %1604  ;;  %1241 = vrot.lane.b32.xlu1 %v10290_v35, %s8340_s24  ;;  %v4225_v52 = vpop.f32.mrf.mxu1  ;;  %1017 = vst.msk [vmem:[#allocation5 + $0x570] sm:$0xff] %vm742_vm3, %v953_v54  ;;  %1018 = vst.msk [vmem:[#allocation5 + $0x588] sm:$0xff] %vm742_vm3, %v954_v49  ;;  %v3664_v54 = vld [vmem:[#allocation5 + $0x268] sm:$0xff] }
 0x2f1   :  { %1763 = vst.msk [vmem:[#allocation5 + $0x330] sm:$0xff] %vm1728_vm6, %v1605_v36  ;;  %8027 = vmatmul.mubr.msk.bf16.gmra.mxu0 %vm742_vm3, %v3802_v60  ;;  %v3649_v60 = vld [vmem:[#allocation5 + $0x1f0] sm:$0xff]  ;;  %v3652_v36 = vld [vmem:[#allocation5 + $0x208] sm:$0xff] }
 0x2f2   :  { %2907 = vrot.lane.b32.xlu0 %v10401_v43, %s8341_s30  ;;  %8030 = vmatprep.mubr.msk.bf16.mxu0 %vm742_vm3, %v3805_v27  ;;  %v1607_v35 = vpop.permute.xlu1 %1606  ;;  %1019 = vst.msk [vmem:[#allocation5 + $0x5a0] sm:$0xff] %vm742_vm3, %v955_v41  ;;  %v3808_v27 = vpack.c.bf16 %v3646_v1, %v3643_v39  ;;  %v3811_v56 = vpack.c.bf16 %v3652_v36, %v3649_v60 }
 0x2f3   :  { %1764 = vst.msk [vmem:[#allocation5 + $0x348] sm:$0xff] %vm1728_vm6, %v1607_v35  ;;  %v3658_v35 = vld [vmem:[#allocation5 + $0x238] sm:$0xff] }
 0x2f4   :  { %v3272_v55 = vpop.permute.xlu0 %3271  ;;  %2909 = vrot.lane.b32.xlu1 %v10411_v37, %s8341_s30  ;;  %v3814_v39 = vpack.c.bf16 %v3658_v35, %v3655_v0 }
 0x2f5   :  { %3429 = vst.msk [vmem:[#allocation5 + $0x338] sm:$0xff] %vm2113_vm7, %v3272_v55 }
 0x2f6   :  { %1624 = vrot.lane.b32.xlu0 %v9811_v28, %s8341_s30  ;;  %v3274_v52 = vpop.permute.xlu1 %3273 }
 0x2f7   :  { %3430 = vst.msk [vmem:[#allocation5 + $0x350] sm:$0xff] %vm2113_vm7, %v3274_v52  ;;  %v8332_v52 = vld [vmem:[%s12188_s2] ss:$0 sm:$0xff] }
 0x2f8   :  { %v1990_v44 = vpop.permute.xlu0 %1989  ;;  %1626 = vrot.lane.b32.xlu1 %v9813_v61, %s8341_s30  ;;  %v3661_v61 = vld [vmem:[#allocation5 + $0x250] sm:$0xff]  ;;  %v8008_v1 = vpop.f32.mrf.mxu0 }
 0x2f9   :  { %2148 = vst.msk [vmem:[#allocation5 + $0x330] sm:$0xff] %vm2113_vm7, %v1990_v44  ;;  %8031 = vmatmul.mubr.msk.bf16.gmra.mxu0 %vm742_vm3, %v3808_v27  ;;  %v3817_v36 = vpack.c.bf16 %v3664_v54, %v3661_v61  ;;  %v672_v27 = vadd.f32 %v8332_v52, %v8008_v1  ;;  %v3667_v54 = vld [vmem:[#allocation5 + $0x280] sm:$0xff] }
 0x2fa   :  { %3291 = vrot.lane.b32.xlu0 %v9980_v2, %s8339_s21  ;;  %8034 = vmatprep.mubr.msk.bf16.mxu0 %vm742_vm3, %v3811_v56  ;;  %v1992_v63 = vpop.permute.xlu1 %1991 }
 0x2fb   :  { %2149 = vst.msk [vmem:[#allocation5 + $0x348] sm:$0xff] %vm2113_vm7, %v1992_v63  ;;  %v740_v63 = vmax.f32 %v672_v27, 0.0 }
 0x2fc   :  { %v2507_v28 = vpop.permute.xlu0 %2506  ;;  %3293 = vrot.lane.b32.xlu1 %v9986_v18, %s8339_s21  ;;  %v3690_v41 = vld [vmem:[#allocation5 + $0x338] sm:$0xff] }
 0x2fd   :  { %2662 = vst.msk [vmem:[#allocation5 + $0x368] sm:$0xff] %vm1343_vm5, %v2507_v28 }
 0x2fe   :  { %2009 = vrot.lane.b32.xlu0 %v10326_v51, %s8339_s21  ;;  %v2509_v49 = vpop.permute.xlu1 %2508  ;;  %v3693_v45 = vld [vmem:[#allocation5 + $0x350] sm:$0xff]  ;;  %v663_v51 = vpop.f32.mrf.mxu0  ;;  %893 = vst.msk [vmem:[#allocation2 + $0x331] sm:$0xff] %vm742_vm3, %v740_v63 }
 0x2ff   :  { %2663 = vst.msk [vmem:[#allocation5 + $0x380] sm:$0xff] %vm1343_vm5, %v2509_v49  ;;  %v3831_v55 = vpack.c.bf16 %v3693_v45, %v3690_v41  ;;  %v664_v28 = vadd.f32 %v8332_v52, %v663_v51  ;;  %v3670_v49 = vld [vmem:[#allocation5 + $0x298] sm:$0xff] }
 0x300   :  { %v1224_v60 = vpop.permute.xlu0 %1223  ;;  %2011 = vrot.lane.b32.xlu1 %v10333_v8, %s8339_s21  ;;  %v3689_v56 = vld [vmem:[#allocation5 + $0x330] sm:$0xff]  ;;  %v8009_v35 = vpop.f32.mrf.mxu0  ;;  %v3820_v51 = vpack.c.bf16 %v3670_v49, %v3667_v54 }
 0x301   :  { %1380 = vst.msk [vmem:[#allocation5 + $0x360] sm:$0xff] %vm1343_vm5, %v1224_v60  ;;  %4290 = vmatprep.mubr.bf16.mxu1 %v3831_v55  ;;  %8035 = vmatmul.mubr.msk.bf16.gmra.mxu0 %vm742_vm3, %v3814_v39  ;;  %v738_v41 = vmax.f32 %v664_v28, 0.0  ;;  %v675_v45 = vadd.f32 %v8332_v52, %v8009_v35  ;;  %v3673_v55 = vld [vmem:[#allocation5 + $0x2b0] sm:$0xff]  ;;  %v3676_v39 = vld [vmem:[#allocation5 + $0x2c8] sm:$0xff]  ;;  %v3679_v28 = vld [vmem:[#allocation5 + $0x2e0] sm:$0xff] }
 0x302   :  { %2526 = vrot.lane.b32.xlu0 %v9939_v30, %s8340_s24  ;;  %8038 = vmatprep.mubr.msk.bf16.mxu0 %vm742_vm3, %v3817_v36  ;;  %v1226_v44 = vpop.permute.xlu1 %1225  ;;  %v3692_v8 = vld [vmem:[#allocation5 + $0x348] sm:$0xff]  ;;  %v666_v1 = vpop.f32.mrf.mxu0  ;;  %v3685_v49 = vld [vmem:[#allocation5 + $0x310] sm:$0xff] }
 0x303   :  { %1381 = vst.msk [vmem:[#allocation5 + $0x378] sm:$0xff] %vm1343_vm5, %v1226_v44  ;;  %v3830_v0 = vpack.c.bf16 %v3692_v8, %v3689_v56  ;;  %v741_v36 = vmax.f32 %v675_v45, 0.0  ;;  %v667_v27 = vadd.f32 %v8332_v52, %v666_v1  ;;  %v3823_v56 = vpack.c.bf16 %v3676_v39, %v3673_v55 }
 0x304   :  { %v2892_v61 = vpop.permute.xlu0 %2891  ;;  %2528 = vrot.lane.b32.xlu1 %v9941_v42, %s8340_s24  ;;  %891 = vst.msk [vmem:[#allocation2 + $0x319] sm:$0xff] %vm742_vm3, %v738_v41  ;;  %v3688_v41 = vld [vmem:[#allocation5 + $0x328] sm:$0xff] }
 0x305   :  { %3047 = vst.msk [vmem:[#allocation5 + $0x368] sm:$0xff] %vm1728_vm6, %v2892_v61  ;;  %4291 = vmatmul.mubr.bf16.gmra.mxu1 %v3830_v0  ;;  %v739_v8 = vmax.f32 %v667_v27, 0.0  ;;  %v10470_v0 = vld [vmem:[#allocation2 + $0x290] sm:$0xff]  ;;  %v3829_v27 = vpack.c.bf16 %v3688_v41, %v3685_v49 }
 0x306   :  { %1243 = vrot.lane.b32.xlu0 %v10355_v33, %s8340_s24  ;;  %v2894_v60 = vpop.permute.xlu1 %2893  ;;  %894 = vst.msk [vmem:[#allocation2 + $0x339] sm:$0xff] %vm742_vm3, %v741_v36  ;;  %v10461_v33 = vld [vmem:[#allocation2 + $0x288] sm:$0xff] }
 0x307   :  { %3048 = vst.msk [vmem:[#allocation5 + $0x380] sm:$0xff] %vm1728_vm6, %v2894_v60 }
 0x308   :  { %v1609_v44 = vpop.permute.xlu0 %1608  ;;  %1245 = vrot.lane.b32.xlu1 %v10371_v24, %s8340_s24  ;;  %v3682_v24 = vld [vmem:[#allocation5 + $0x2f8] sm:$0xff]  ;;  %892 = vst.msk [vmem:[#allocation2 + $0x321] sm:$0xff] %vm742_vm3, %v739_v8 }
 0x309   :  { %1765 = vst.msk [vmem:[#allocation5 + $0x360] sm:$0xff] %vm1728_vm6, %v1609_v44  ;;  %8039 = vmatmul.mubr.msk.bf16.gmra.mxu0 %vm742_vm3, %v3820_v51  ;;  %v3826_v54 = vpack.c.bf16 %v3682_v24, %v3679_v28  ;;  %v3694_v8 = vld [vmem:[#allocation5 + $0x358] sm:$0xff]  ;;  %v3700_v28 = vld [vmem:[#allocation5 + $0x388] sm:$0xff] }
 0x30a   :  { %2911 = vrot.lane.b32.xlu0 %v10461_v33, %s8341_s30  ;;  %8042 = vmatprep.mubr.msk.bf16.mxu0 %vm742_vm3, %v3823_v56  ;;  %v1611_v52 = vpop.permute.xlu1 %1610  ;;  %v10466_v63 = vpop.f32.mrf.mxu1  ;;  %v3691_v56 = vld [vmem:[#allocation5 + $0x340] sm:$0xff] }
 0x30b   :  { %1766 = vst.msk [vmem:[#allocation5 + $0x378] sm:$0xff] %vm1728_vm6, %v1611_v52  ;;  %v3697_v52 = vld [vmem:[#allocation5 + $0x370] sm:$0xff]  ;;  %v3832_v41 = vpack.c.bf16 %v3694_v8, %v3691_v56 }
 0x30c   :  { %v3276_v35 = vpop.permute.xlu0 %3275  ;;  %2913 = vrot.lane.b32.xlu1 %v10470_v0, %s8341_s30  ;;  %v4230_v61 = vpop.f32.mrf.mxu1 }
 0x30d   :  { %3431 = vst.msk [vmem:[#allocation5 + $0x368] sm:$0xff] %vm2113_vm7, %v3276_v35  ;;  %v10480_v39 = vld [vmem:[#allocation2 + $0x332] sm:$0xff]  ;;  %v10482_v1 = vld [vmem:[#allocation2 + $0x33a] sm:$0xff] }
 0x30e   :  { %1628 = vrot.lane.b32.xlu0 %v9951_v59, %s8341_s30  ;;  %v3278_v45 = vpop.permute.xlu1 %3277  ;;  %v10477_v55 = vpop.f32.mrf.mxu1  ;;  %3583 = vst.msk [vmem:[#allocation5 + $0x5b0] sm:$0xff] %vm742_vm3, %v10480_v39  ;;  %3584 = vst.msk [vmem:[#allocation5 + $0x5c8] sm:$0xff] %vm742_vm3, %v10482_v1 }
 0x30f   :  { %3432 = vst.msk [vmem:[#allocation5 + $0x380] sm:$0xff] %vm2113_vm7, %v3278_v45  ;;  %v10492_v59 = vld [vmem:[#allocation2 + $0x31a] sm:$0xff]  ;;  %v10494_v51 = vld [vmem:[#allocation2 + $0x322] sm:$0xff] }
 0x310   :  { %v1994_v60 = vpop.permute.xlu0 %1993  ;;  %1630 = vrot.lane.b32.xlu1 %v9975_v25, %s8341_s30  ;;  %v4233_v36 = vpop.f32.mrf.mxu1  ;;  %3581 = vst.msk [vmem:[#allocation5 + $0x580] sm:$0xff] %vm742_vm3, %v10492_v59  ;;  %3582 = vst.msk [vmem:[#allocation5 + $0x598] sm:$0xff] %vm742_vm3, %v10494_v51 }
 0x311   :  { %2150 = vst.msk [vmem:[#allocation5 + $0x360] sm:$0xff] %vm2113_vm7, %v1994_v60  ;;  %8043 = vmatmul.mubr.msk.bf16.gmra.mxu0 %vm742_vm3, %v3826_v54  ;;  %v3835_v36 = vpack.c.bf16 %v3700_v28, %v3697_v52  ;;  %v3703_v52 = vld [vmem:[#allocation5 + $0x3a0] sm:$0xff]  ;;  %v3706_v28 = vld [vmem:[#allocation5 + $0x3b8] sm:$0xff] }
 0x312   :  { %3295 = vrot.lane.b32.xlu0 %v10105_v6, %s8339_s21  ;;  %8046 = vmatprep.mubr.msk.bf16.mxu0 %vm742_vm3, %v3829_v27  ;;  %v1996_v25 = vpop.permute.xlu1 %1995 }
 0x313   :  { %2151 = vst.msk [vmem:[#allocation5 + $0x378] sm:$0xff] %vm2113_vm7, %v1996_v25 }
 0x314   :  { %v2511_v44 = vpop.permute.xlu0 %2510  ;;  %3297 = vrot.lane.b32.xlu1 %v10107_v53, %s8339_s21  ;;  %v3696_v61 = vld [vmem:[#allocation5 + $0x368] sm:$0xff] }
 0x315   :  { %2664 = vst.msk [vmem:[#allocation5 + $0x398] sm:$0xff] %vm1343_vm5, %v2511_v44 }
 0x316   :  { %2013 = vrot.lane.b32.xlu0 %v10401_v43, %s8339_s21  ;;  %v2513_v24 = vpop.permute.xlu1 %2512  ;;  %v10509_v35 = vpop.f32.mrf.mxu1  ;;  %v3699_v54 = vld [vmem:[#allocation5 + $0x380] sm:$0xff] }
 0x317   :  { %2665 = vst.msk [vmem:[#allocation5 + $0x3b0] sm:$0xff] %vm1343_vm5, %v2513_v24  ;;  %v3834_v49 = vpack.c.bf16 %v3699_v54, %v3696_v61  ;;  %v3709_v24 = vld [vmem:[#allocation5 + $0x3d0] sm:$0xff]  ;;  %v3712_v61 = vld [vmem:[#allocation5 + $0x3e8] sm:$0xff] }
 0x318   :  { %v1228_v45 = vpop.permute.xlu0 %1227  ;;  %2015 = vrot.lane.b32.xlu1 %v10411_v37, %s8339_s21  ;;  %v4238_v60 = vpop.f32.mrf.mxu1  ;;  %v3695_v25 = vld [vmem:[#allocation5 + $0x360] sm:$0xff] }
 0x319   :  { %1382 = vst.msk [vmem:[#allocation5 + $0x390] sm:$0xff] %vm1343_vm5, %v1228_v45  ;;  %4298 = vmatprep.mubr.bf16.mxu1 %v3834_v49  ;;  %8047 = vmatmul.mubr.msk.bf16.gmra.mxu0 %vm742_vm3, %v3832_v41  ;;  %v3838_v49 = vpack.c.bf16 %v3706_v28, %v3703_v52  ;;  %v10528_v41 = vld [vmem:[#allocation2 + $0x331] sm:$0xff]  ;;  %v3841_v60 = vpack.c.bf16 %v3712_v61, %v3709_v24  ;;  %v3715_v52 = vld [vmem:[#allocation5 + $0x400] sm:$0xff]  ;;  %v3724_v61 = vld [vmem:[#allocation5 + $0x448] sm:$0xff] }
 0x31a   :  { %2530 = vrot.lane.b32.xlu0 %v10083_v58, %s8340_s24  ;;  %8050 = vmatprep.mubr.msk.bf16.mxu0 %vm742_vm3, %v3835_v36  ;;  %v1230_v43 = vpop.permute.xlu1 %1229  ;;  %v10519_v27 = vpop.f32.mrf.mxu1  ;;  %v3698_v44 = vld [vmem:[#allocation5 + $0x378] sm:$0xff]  ;;  %2304 = vst.msk [vmem:[#allocation5 + $0x5d8] sm:$0xff] %vm742_vm3, %v10528_v41  ;;  %v3721_v24 = vld [vmem:[#allocation5 + $0x430] sm:$0xff] }
 0x31b   :  { %1383 = vst.msk [vmem:[#allocation5 + $0x3a8] sm:$0xff] %vm1343_vm5, %v1230_v43  ;;  %v3833_v37 = vpack.c.bf16 %v3698_v44, %v3695_v25  ;;  %v10532_v36 = vld [vmem:[#allocation2 + $0x339] sm:$0xff]  ;;  %v2239_v25 = vld [vmem:[#allocation2 + $0x321] sm:$0xff] }
 0x31c   :  { %v2896_v56 = vpop.permute.xlu0 %2895  ;;  %2532 = vrot.lane.b32.xlu1 %v10109_v17, %s8340_s24  ;;  %v4241_v8 = vpop.f32.mrf.mxu1  ;;  %v2238_v43 = vld [vmem:[#allocation2 + $0x319] sm:$0xff]  ;;  %2303 = vst.msk [vmem:[#allocation5 + $0x5c0] sm:$0xff] %vm742_vm3, %v2239_v25  ;;  %2305 = vst.msk [vmem:[#allocation5 + $0x5f0] sm:$0xff] %vm742_vm3, %v10532_v36  ;;  %v3847_v25 = vpack.c.bf16 %v3724_v61, %v3721_v24 }
 0x31d   :  { %3049 = vst.msk [vmem:[#allocation5 + $0x398] sm:$0xff] %vm1728_vm6, %v2896_v56  ;;  %4299 = vmatmul.mubr.bf16.gmra.mxu1 %v3833_v37  ;;  %v958_v44 = vld [vmem:[#allocation2 + $0x320] sm:$0xff]  ;;  %v10550_v56 = vld [vmem:[#allocation2 + $0x2a8] sm:$0xff]  ;;  %v3718_v28 = vld [vmem:[#allocation5 + $0x418] sm:$0xff] }
 0x31e   :  { %1247 = vrot.lane.b32.xlu0 %v9980_v2, %s8340_s24  ;;  %v2898_v54 = vpop.permute.xlu1 %2897  ;;  %v10538_v2 = vld [vmem:[#allocation2 + $0x2a0] sm:$0xff]  ;;  %2302 = vst.msk [vmem:[#allocation5 + $0x5a8] sm:$0xff] %vm742_vm3, %v2238_v43  ;;  %1022 = vst.msk [vmem:[#allocation5 + $0x5e8] sm:$0xff] %vm742_vm3, %v958_v44 }
 0x31f   :  { %3050 = vst.msk [vmem:[#allocation5 + $0x3b0] sm:$0xff] %vm1728_vm6, %v2898_v54 }
 0x320   :  { %v1613_v45 = vpop.permute.xlu0 %1612  ;;  %1249 = vrot.lane.b32.xlu1 %v9986_v18, %s8340_s24  ;;  %v957_v18 = vld [vmem:[#allocation2 + $0x318] sm:$0xff] }
 0x321   :  { %1767 = vst.msk [vmem:[#allocation5 + $0x390] sm:$0xff] %vm1728_vm6, %v1613_v45  ;;  %8051 = vmatmul.mubr.msk.bf16.gmra.mxu0 %vm742_vm3, %v3838_v49  ;;  %v3844_v45 = vpack.c.bf16 %v3718_v28, %v3715_v52  ;;  %v3733_v52 = vld [vmem:[#allocation5 + $0x490] sm:$0xff]  ;;  %v3736_v28 = vld [vmem:[#allocation5 + $0x4a8] sm:$0xff] }
 0x322   :  { %2915 = vrot.lane.b32.xlu0 %v10538_v2, %s8341_s30  ;;  %8054 = vmatprep.mubr.msk.bf16.mxu0 %vm742_vm3, %v3841_v60  ;;  %v1615_v37 = vpop.permute.xlu1 %1614  ;;  %1021 = vst.msk [vmem:[#allocation5 + $0x5d0] sm:$0xff] %vm742_vm3, %v957_v18 }
 0x323   :  { %1768 = vst.msk [vmem:[#allocation5 + $0x3a8] sm:$0xff] %vm1728_vm6, %v1615_v37  ;;  %v3727_v37 = vld [vmem:[#allocation5 + $0x460] sm:$0xff] }
 0x324   :  { %v3280_v8 = vpop.permute.xlu0 %3279  ;;  %2917 = vrot.lane.b32.xlu1 %v10550_v56, %s8341_s30 }
 0x325   :  { %3433 = vst.msk [vmem:[#allocation5 + $0x398] sm:$0xff] %vm2113_vm7, %v3280_v8  ;;  %v3730_v8 = vld [vmem:[#allocation5 + $0x478] sm:$0xff] }
 0x326   :  { %1632 = vrot.lane.b32.xlu0 %v9939_v30, %s8341_s30  ;;  %v3282_v54 = vpop.permute.xlu1 %3281  ;;  %v10557_v49 = vpop.f32.mrf.mxu1 }
 0x327   :  { %3434 = vst.msk [vmem:[#allocation5 + $0x3b0] sm:$0xff] %vm2113_vm7, %v3282_v54 }
 0x328   :  { %v1998_v60 = vpop.permute.xlu0 %1997  ;;  %1634 = vrot.lane.b32.xlu1 %v9941_v42, %s8341_s30  ;;  %v4246_v43 = vpop.f32.mrf.mxu1 }
 0x329   :  { %2152 = vst.msk [vmem:[#allocation5 + $0x390] sm:$0xff] %vm2113_vm7, %v1998_v60  ;;  %8055 = vmatmul.mubr.msk.bf16.gmra.mxu0 %vm742_vm3, %v3844_v45  ;;  %v3850_v60 = vpack.c.bf16 %v3730_v8, %v3727_v37  ;;  %v3742_v37 = vld [vmem:[#allocation5 + $0x4d8] sm:$0xff] }
 0x32a   :  { %3299 = vrot.lane.b32.xlu0 %v10124_v34, %s8339_s21  ;;  %8058 = vmatprep.mubr.msk.bf16.mxu0 %vm742_vm3, %v3847_v25  ;;  %v2000_v30 = vpop.permute.xlu1 %1999  ;;  %v10567_v18 = vpop.f32.mrf.mxu1  ;;  %v3853_v25 = vpack.c.bf16 %v3736_v28, %v3733_v52  ;;  %v3748_v52 = vld [vmem:[#allocation5 + $0x508] sm:$0xff] }
 0x32b   :  { %2153 = vst.msk [vmem:[#allocation5 + $0x3a8] sm:$0xff] %vm2113_vm7, %v2000_v30  ;;  %v3739_v30 = vld [vmem:[#allocation5 + $0x4c0] sm:$0xff] }
 0x32c   :  { %v2515_v44 = vpop.permute.xlu0 %2514  ;;  %3301 = vrot.lane.b32.xlu1 %v10126_v5, %s8339_s21  ;;  %v4249_v42 = vpop.f32.mrf.mxu1  ;;  %v3702_v61 = vld [vmem:[#allocation5 + $0x398] sm:$0xff] }
 0x32d   :  { %2666 = vst.msk [vmem:[#allocation5 + $0x3c8] sm:$0xff] %vm1343_vm5, %v2515_v44 }
 0x32e   :  { %2017 = vrot.lane.b32.xlu0 %v10461_v33, %s8339_s21  ;;  %v2517_v24 = vpop.permute.xlu1 %2516  ;;  %v3705_v54 = vld [vmem:[#allocation5 + $0x3b0] sm:$0xff] }
 0x32f   :  { %2667 = vst.msk [vmem:[#allocation5 + $0x3e0] sm:$0xff] %vm1343_vm5, %v2517_v24  ;;  %v3837_v45 = vpack.c.bf16 %v3705_v54, %v3702_v61  ;;  %v3856_v61 = vpack.c.bf16 %v3742_v37, %v3739_v30  ;;  %v3751_v30 = vld [vmem:[#allocation5 + $0x520] sm:$0xff]  ;;  %v3757_v37 = vld [vmem:[#allocation5 + $0x550] sm:$0xff] }
 0x330   :  { %v1232_v43 = vpop.permute.xlu0 %1231  ;;  %2019 = vrot.lane.b32.xlu1 %v10470_v0, %s8339_s21  ;;  %v3701_v44 = vld [vmem:[#allocation5 + $0x390] sm:$0xff] }
 0x331   :  { %1384 = vst.msk [vmem:[#allocation5 + $0x3c0] sm:$0xff] %vm1343_vm5, %v1232_v43  ;;  %4306 = vmatprep.mubr.bf16.mxu1 %v3837_v45  ;;  %8059 = vmatmul.mubr.msk.bf16.gmra.mxu0 %vm742_vm3, %v3850_v60  ;;  %v3745_v0 = vld [vmem:[#allocation5 + $0x4f0] sm:$0xff] }
 0x332   :  { %2534 = vrot.lane.b32.xlu0 %v10072_v48, %s8340_s24  ;;  %8062 = vmatprep.mubr.msk.bf16.mxu0 %vm742_vm3, %v3853_v25  ;;  %v1234_v33 = vpop.permute.xlu1 %1233  ;;  %v3704_v42 = vld [vmem:[#allocation5 + $0x3a8] sm:$0xff]  ;;  %v3859_v45 = vpack.c.bf16 %v3748_v52, %v3745_v0 }
 0x333   :  { %1385 = vst.msk [vmem:[#allocation5 + $0x3d8] sm:$0xff] %vm1343_vm5, %v1234_v33  ;;  %v3836_v8 = vpack.c.bf16 %v3704_v42, %v3701_v44  ;;  %v10597_v33 = vld [vmem:[#allocation2 + $0x2b8] sm:$0xff] }
 0x334   :  { %v2900_v28 = vpop.permute.xlu0 %2899  ;;  %2536 = vrot.lane.b32.xlu1 %v10074_v9, %s8340_s24  ;;  %v3754_v44 = vld [vmem:[#allocation5 + $0x538] sm:$0xff] }
 0x335   :  { %3051 = vst.msk [vmem:[#allocation5 + $0x3c8] sm:$0xff] %vm1728_vm6, %v2900_v28  ;;  %v10587_v24 = vpop.f32.mrf.mxu1  ;;  %4307 = vmatmul.mubr.bf16.gmra.mxu1 %v3836_v8  ;;  %v3760_v8 = vld [vmem:[#allocation5 + $0x568] sm:$0xff]  ;;  %v3862_v52 = vpack.c.bf16 %v3754_v44, %v3751_v30 }
 0x336   :  { %1251 = vrot.lane.b32.xlu0 %v10105_v6, %s8340_s24  ;;  %v2902_v54 = vpop.permute.xlu1 %2901 }
 0x337   :  { %3052 = vst.msk [vmem:[#allocation5 + $0x3e0] sm:$0xff] %vm1728_vm6, %v2902_v54  ;;  %v4254_v60 = vpop.f32.mrf.mxu1 }
 0x338   :  { %v1617_v43 = vpop.permute.xlu0 %1616  ;;  %1253 = vrot.lane.b32.xlu1 %v10107_v53, %s8340_s24  ;;  %v10604_v53 = vld [vmem:[#allocation2 + $0x2c0] sm:$0xff] }
 0x339   :  { %1769 = vst.msk [vmem:[#allocation5 + $0x3c0] sm:$0xff] %vm1728_vm6, %v1617_v43  ;;  %v10595_v25 = vpop.f32.mrf.mxu1  ;;  %8063 = vmatmul.mubr.msk.bf16.gmra.mxu0 %vm742_vm3, %v3856_v61  ;;  %v3865_v61 = vpack.c.bf16 %v3760_v8, %v3757_v37  ;;  %v3763_v60 = vld [vmem:[#allocation5 + $0x580] sm:$0xff]  ;;  %v3769_v43 = vld [vmem:[#allocation5 + $0x5b0] sm:$0xff] }
 0x33a   :  { %2919 = vrot.lane.b32.xlu0 %v10597_v33, %s8341_s30  ;;  %v1619_v6 = vpop.permute.xlu1 %1618  ;;  %8066 = vmatprep.mubr.msk.bf16.mxu0 %vm742_vm3, %v3859_v45 }
 0x33b   :  { %1770 = vst.msk [vmem:[#allocation5 + $0x3d8] sm:$0xff] %vm1728_vm6, %v1619_v6  ;;  %v4257_v42 = vpop.f32.mrf.mxu1  ;;  %v3772_v6 = vld [vmem:[#allocation5 + $0x5c8] sm:$0xff] }
 0x33c   :  { %v3284_v0 = vpop.permute.xlu0 %3283  ;;  %2921 = vrot.lane.b32.xlu1 %v10604_v53, %s8341_s30  ;;  %v3871_v8 = vpack.c.bf16 %v3772_v6, %v3769_v43 }
 0x33d   :  { %3435 = vst.msk [vmem:[#allocation5 + $0x3c8] sm:$0xff] %vm2113_vm7, %v3284_v0 }
 0x33e   :  { %1636 = vrot.lane.b32.xlu0 %v10083_v58, %s8341_s30  ;;  %v3286_v28 = vpop.permute.xlu1 %3285  ;;  %v3766_v58 = vld [vmem:[#allocation5 + $0x598] sm:$0xff] }
 0x33f   :  { %3436 = vst.msk [vmem:[#allocation5 + $0x3e0] sm:$0xff] %vm2113_vm7, %v3286_v28 }
 0x340   :  { %v2002_v54 = vpop.permute.xlu0 %2001  ;;  %1638 = vrot.lane.b32.xlu1 %v10109_v17, %s8341_s30  ;;  %v3868_v17 = vpack.c.bf16 %v3766_v58, %v3763_v60 }
 0x341   :  { %2154 = vst.msk [vmem:[#allocation5 + $0x3c0] sm:$0xff] %vm2113_vm7, %v2002_v54  ;;  %8067 = vmatmul.mubr.msk.bf16.gmra.mxu0 %vm742_vm3, %v3862_v52 }
 0x342   :  { %3303 = vrot.lane.b32.xlu0 %v10251_v38, %s8339_s21  ;;  %v2004_v45 = vpop.permute.xlu1 %2003  ;;  %8070 = vmatprep.mubr.msk.bf16.mxu0 %vm742_vm3, %v3865_v61 }
 0x343   :  { %2155 = vst.msk [vmem:[#allocation5 + $0x3d8] sm:$0xff] %vm2113_vm7, %v2004_v45 }
 0x344   :  { %v2519_v30 = vpop.permute.xlu0 %2518  ;;  %3305 = vrot.lane.b32.xlu1 %v10253_v50, %s8339_s21  ;;  %v3708_v42 = vld [vmem:[#allocation5 + $0x3c8] sm:$0xff] }
 0x345   :  { %2668 = vst.msk [vmem:[#allocation5 + $0x3f8] sm:$0xff] %vm1343_vm5, %v2519_v30  ;;  %v10647_v30 = vld [vmem:[#allocation2 + $0x2d0] sm:$0xff] }
 0x346   :  { %2021 = vrot.lane.b32.xlu0 %v10538_v2, %s8339_s21  ;;  %v2521_v44 = vpop.permute.xlu1 %2520  ;;  %v3711_v37 = vld [vmem:[#allocation5 + $0x3e0] sm:$0xff] }
 0x347   :  { %2669 = vst.msk [vmem:[#allocation5 + $0x410] sm:$0xff] %vm1343_vm5, %v2521_v44  ;;  %v3840_v0 = vpack.c.bf16 %v3711_v37, %v3708_v42  ;;  %v10652_v44 = vld [vmem:[#allocation2 + $0x2d8] sm:$0xff] }
 0x348   :  { %v1236_v52 = vpop.permute.xlu0 %1235  ;;  %2023 = vrot.lane.b32.xlu1 %v10550_v56, %s8339_s21  ;;  %v3707_v28 = vld [vmem:[#allocation5 + $0x3c0] sm:$0xff] }
 0x349   :  { %1386 = vst.msk [vmem:[#allocation5 + $0x3f0] sm:$0xff] %vm1343_vm5, %v1236_v52  ;;  %4314 = vmatprep.mubr.bf16.mxu1 %v3840_v0  ;;  %8071 = vmatmul.mubr.msk.bf16.gmra.mxu0 %vm742_vm3, %v3868_v17  ;;  %v10668_v52 = vld [vmem:[#allocation2 + $0x2d9] sm:$0xff] }
 0x34a   :  { %2538 = vrot.lane.b32.xlu0 %v10219_v20, %s8340_s24  ;;  %v1238_v2 = vpop.permute.xlu1 %1237  ;;  %v3710_v61 = vld [vmem:[#allocation5 + $0x3d8] sm:$0xff]  ;;  %8074 = vmatprep.mubr.msk.bf16.mxu0 %vm742_vm3, %v3871_v8 }
 0x34b   :  { %1387 = vst.msk [vmem:[#allocation5 + $0x408] sm:$0xff] %vm1343_vm5, %v1238_v2  ;;  %v3839_v54 = vpack.c.bf16 %v3710_v61, %v3707_v28  ;;  %v10663_v8 = vld [vmem:[#allocation2 + $0x2d1] sm:$0xff] }
 0x34c   :  { %v2904_v45 = vpop.permute.xlu0 %2903  ;;  %2540 = vrot.lane.b32.xlu1 %v10221_v23, %s8340_s24 }
 0x34d   :  { %3053 = vst.msk [vmem:[#allocation5 + $0x3f8] sm:$0xff] %vm1728_vm6, %v2904_v45  ;;  %v10637_v56 = vpop.f32.mrf.mxu1  ;;  %4315 = vmatmul.mubr.bf16.gmra.mxu1 %v3839_v54 }
 0x34e   :  { %1255 = vrot.lane.b32.xlu0 %v10124_v34, %s8340_s24  ;;  %v2906_v60 = vpop.permute.xlu1 %2905 }
 0x34f   :  { %3054 = vst.msk [vmem:[#allocation5 + $0x410] sm:$0xff] %vm1728_vm6, %v2906_v60  ;;  %v4262_v58 = vpop.f32.mrf.mxu1 }
 0x350   :  { %v1621_v43 = vpop.permute.xlu0 %1620  ;;  %1257 = vrot.lane.b32.xlu1 %v10126_v5, %s8340_s24 }
 0x351   :  { %1771 = vst.msk [vmem:[#allocation5 + $0x3f0] sm:$0xff] %vm1728_vm6, %v1621_v43  ;;  %v10645_v6 = vpop.f32.mrf.mxu1 }
 0x352   :  { %2923 = vrot.lane.b32.xlu0 %v10647_v30, %s8341_s30  ;;  %v1623_v17 = vpop.permute.xlu1 %1622 }
 0x353   :  { %1772 = vst.msk [vmem:[#allocation5 + $0x408] sm:$0xff] %vm1728_vm6, %v1623_v17  ;;  %v4265_v34 = vpop.f32.mrf.mxu1 }
 0x354   :  { %v3288_v42 = vpop.permute.xlu0 %3287  ;;  %2925 = vrot.lane.b32.xlu1 %v10652_v44, %s8341_s30 }
 0x355   :  { %3437 = vst.msk [vmem:[#allocation5 + $0x3f8] sm:$0xff] %vm2113_vm7, %v3288_v42 }
 0x356   :  { %1640 = vrot.lane.b32.xlu0 %v10072_v48, %s8341_s30  ;;  %v3290_v5 = vpop.permute.xlu1 %3289 }
 0x357   :  { %3438 = vst.msk [vmem:[#allocation5 + $0x410] sm:$0xff] %vm2113_vm7, %v3290_v5 }
 0x358   :  { %v2006_v37 = vpop.permute.xlu0 %2005  ;;  %1642 = vrot.lane.b32.xlu1 %v10074_v9, %s8341_s30 }
 0x359   :  { %2156 = vst.msk [vmem:[#allocation5 + $0x3f0] sm:$0xff] %vm2113_vm7, %v2006_v37  ;;  %v10695_v37 = vld [vmem:[#allocation2 + $0x2e8] sm:$0xff] }
 0x35a   :  { %3307 = vrot.lane.b32.xlu0 %v10663_v8, %s8339_s21  ;;  %v2008_v0 = vpop.permute.xlu1 %2007 }
 0x35b   :  { %2157 = vst.msk [vmem:[#allocation5 + $0x408] sm:$0xff] %vm2113_vm7, %v2008_v0 }
 0x35c   :  { %v2523_v48 = vpop.permute.xlu0 %2522  ;;  %3309 = vrot.lane.b32.xlu1 %v10668_v52, %s8339_s21  ;;  %v3714_v2 = vld [vmem:[#allocation5 + $0x3f8] sm:$0xff] }
 0x35d   :  { %2670 = vst.msk [vmem:[#allocation5 + $0x428] sm:$0xff] %vm1343_vm5, %v2523_v48  ;;  %v10700_v48 = vld [vmem:[#allocation2 + $0x2f0] sm:$0xff] }
 0x35e   :  { %2025 = vrot.lane.b32.xlu0 %v10597_v33, %s8339_s21  ;;  %v2525_v9 = vpop.permute.xlu1 %2524  ;;  %v3717_v28 = vld [vmem:[#allocation5 + $0x410] sm:$0xff] }
 0x35f   :  { %2671 = vst.msk [vmem:[#allocation5 + $0x440] sm:$0xff] %vm1343_vm5, %v2525_v9  ;;  %v3843_v61 = vpack.c.bf16 %v3717_v28, %v3714_v2  ;;  %v10711_v28 = vld [vmem:[#allocation2 + $0x2e9] sm:$0xff] }
 0x360   :  { %v1240_v54 = vpop.permute.xlu0 %1239  ;;  %2027 = vrot.lane.b32.xlu1 %v10604_v53, %s8339_s21  ;;  %v3713_v60 = vld [vmem:[#allocation5 + $0x3f0] sm:$0xff] }
 0x361   :  { %1388 = vst.msk [vmem:[#allocation5 + $0x420] sm:$0xff] %vm1343_vm5, %v1240_v54  ;;  %4322 = vmatprep.mubr.bf16.mxu1 %v3843_v61  ;;  %v10716_v54 = vld [vmem:[#allocation2 + $0x2f1] sm:$0xff] }
 0x362   :  { %2542 = vrot.lane.b32.xlu0 %v10204_v15, %s8340_s24  ;;  %v1242_v45 = vpop.permute.xlu1 %1241  ;;  %v3716_v58 = vld [vmem:[#allocation5 + $0x408] sm:$0xff] }
 0x363   :  { %1389 = vst.msk [vmem:[#allocation5 + $0x438] sm:$0xff] %vm1343_vm5, %v1242_v45  ;;  %v3842_v33 = vpack.c.bf16 %v3716_v58, %v3713_v60 }
 0x364   :  { %v2908_v43 = vpop.permute.xlu0 %2907  ;;  %2544 = vrot.lane.b32.xlu1 %v10206_v47, %s8340_s24 }
 0x365   :  { %3055 = vst.msk [vmem:[#allocation5 + $0x428] sm:$0xff] %vm1728_vm6, %v2908_v43  ;;  %v10685_v17 = vpop.f32.mrf.mxu1  ;;  %4323 = vmatmul.mubr.bf16.gmra.mxu1 %v3842_v33  ;;  %v5621_v43 = vld [vmem:[#allocation3 + $0x92] sm:$0xff] }
 0x366   :  { %1259 = vrot.lane.b32.xlu0 %v10251_v38, %s8340_s24  ;;  %v2910_v53 = vpop.permute.xlu1 %2909  ;;  %5637 = vst.msk [vmem:[#allocation6 + $0xb8] sm:$0xff] %vm742_vm3, %v5621_v43 }
 0x367   :  { %3056 = vst.msk [vmem:[#allocation5 + $0x440] sm:$0xff] %vm1728_vm6, %v2910_v53  ;;  %v4270_v34 = vpop.f32.mrf.mxu1 }
 0x368   :  { %v1625_v42 = vpop.permute.xlu0 %1624  ;;  %1261 = vrot.lane.b32.xlu1 %v10253_v50, %s8340_s24 }
 0x369   :  { %1773 = vst.msk [vmem:[#allocation5 + $0x420] sm:$0xff] %vm1728_vm6, %v1625_v42  ;;  %v10693_v5 = vpop.f32.mrf.mxu1 }
 0x36a   :  { %2927 = vrot.lane.b32.xlu0 %v10695_v37, %s8341_s30  ;;  %v1627_v0 = vpop.permute.xlu1 %1626 }
 0x36b   :  { %1774 = vst.msk [vmem:[#allocation5 + $0x438] sm:$0xff] %vm1728_vm6, %v1627_v0  ;;  %v4273_v38 = vpop.f32.mrf.mxu1 }
 0x36c   :  { %v3292_v9 = vpop.permute.xlu0 %3291  ;;  %2929 = vrot.lane.b32.xlu1 %v10700_v48, %s8341_s30 }
 0x36d   :  { %3439 = vst.msk [vmem:[#allocation5 + $0x428] sm:$0xff] %vm2113_vm7, %v3292_v9  ;;  %v10739_v9 = vld [vmem:[#allocation6 + $0xb8] sm:$0xff] }
 0x36e   :  { %1644 = vrot.lane.b32.xlu0 %v10219_v20, %s8341_s30  ;;  %v3294_v50 = vpop.permute.xlu1 %3293  ;;  %6782 = vst.msk [vmem:[#allocation6 + $0xb8] sm:$0xff] %vm742_vm3, %v5621_v43 }
 0x36f   :  { %3440 = vst.msk [vmem:[#allocation5 + $0x440] sm:$0xff] %vm2113_vm7, %v3294_v50  ;;  %v10742_v50 = vld [vmem:[#allocation2 + $0x300] sm:$0xff] }
 0x370   :  { %v2010_v2 = vpop.permute.xlu0 %2009  ;;  %1646 = vrot.lane.b32.xlu1 %v10221_v23, %s8341_s30 }
 0x371   :  { %2158 = vst.msk [vmem:[#allocation5 + $0x420] sm:$0xff] %vm2113_vm7, %v2010_v2 }
 0x372   :  { %3311 = vrot.lane.b32.xlu0 %v10711_v28, %s8339_s21  ;;  %v2012_v61 = vpop.permute.xlu1 %2011 }
 0x373   :  { %2159 = vst.msk [vmem:[#allocation5 + $0x438] sm:$0xff] %vm2113_vm7, %v2012_v61 }
 0x374   :  { %v2527_v20 = vpop.permute.xlu0 %2526  ;;  %3313 = vrot.lane.b32.xlu1 %v10716_v54, %s8339_s21  ;;  %v3720_v45 = vld [vmem:[#allocation5 + $0x428] sm:$0xff] }
 0x375   :  { %2672 = vst.msk [vmem:[#allocation5 + $0x458] sm:$0xff] %vm1343_vm5, %v2527_v20 }
 0x376   :  { %2029 = vrot.lane.b32.xlu0 %v10647_v30, %s8339_s21  ;;  %v2529_v23 = vpop.permute.xlu1 %2528  ;;  %v3723_v60 = vld [vmem:[#allocation5 + $0x440] sm:$0xff] }
 0x377   :  { %2673 = vst.msk [vmem:[#allocation5 + $0x470] sm:$0xff] %vm1343_vm5, %v2529_v23  ;;  %v3846_v58 = vpack.c.bf16 %v3723_v60, %v3720_v45  ;;  %v10759_v23 = vld [vmem:[#allocation2 + $0x301] sm:$0xff]  ;;  %v10764_v60 = vld [vmem:[#allocation2 + $0x309] sm:$0xff] }
 0x378   :  { %v1244_v33 = vpop.permute.xlu0 %1243  ;;  %2031 = vrot.lane.b32.xlu1 %v10652_v44, %s8339_s21  ;;  %v3719_v53 = vld [vmem:[#allocation5 + $0x420] sm:$0xff] }
 0x379   :  { %1390 = vst.msk [vmem:[#allocation5 + $0x450] sm:$0xff] %vm1343_vm5, %v1244_v33  ;;  %4330 = vmatprep.mubr.bf16.mxu1 %v3846_v58 }
 0x37a   :  { %2546 = vrot.lane.b32.xlu0 %v10357_v31, %s8340_s24  ;;  %v1246_v30 = vpop.permute.xlu1 %1245  ;;  %v3722_v34 = vld [vmem:[#allocation5 + $0x438] sm:$0xff] }
 0x37b   :  { %1391 = vst.msk [vmem:[#allocation5 + $0x468] sm:$0xff] %vm1343_vm5, %v1246_v30  ;;  %v3845_v42 = vpack.c.bf16 %v3722_v34, %v3719_v53 }
 0x37c   :  { %v2912_v0 = vpop.permute.xlu0 %2911  ;;  %2548 = vrot.lane.b32.xlu1 %v10359_v26, %s8340_s24 }
 0x37d   :  { %3057 = vst.msk [vmem:[#allocation5 + $0x458] sm:$0xff] %vm1728_vm6, %v2912_v0  ;;  %4331 = vmatmul.mubr.bf16.gmra.mxu1 %v3845_v42 }
 0x37e   :  { %1263 = vrot.lane.b32.xlu0 %v10663_v8, %s8340_s24  ;;  %v2914_v44 = vpop.permute.xlu1 %2913  ;;  %v10748_v8 = vld [vmem:[#allocation2 + $0x308] sm:$0xff] }
 0x37f   :  { %3058 = vst.msk [vmem:[#allocation5 + $0x470] sm:$0xff] %vm1728_vm6, %v2914_v44 }
 0x380   :  { %v1629_v38 = vpop.permute.xlu0 %1628  ;;  %1265 = vrot.lane.b32.xlu1 %v10668_v52, %s8340_s24 }
 0x381   :  { %1775 = vst.msk [vmem:[#allocation5 + $0x450] sm:$0xff] %vm1728_vm6, %v1629_v38 }
 0x382   :  { %2931 = vrot.lane.b32.xlu0 %v10742_v50, %s8341_s30  ;;  %v1631_v2 = vpop.permute.xlu1 %1630 }
 0x383   :  { %1776 = vst.msk [vmem:[#allocation5 + $0x468] sm:$0xff] %vm1728_vm6, %v1631_v2 }
 0x384   :  { %v3296_v61 = vpop.permute.xlu0 %3295  ;;  %2933 = vrot.lane.b32.xlu1 %v10748_v8, %s8341_s30 }
 0x385   :  { %3441 = vst.msk [vmem:[#allocation5 + $0x458] sm:$0xff] %vm2113_vm7, %v3296_v61 }
 0x386   :  { %1648 = vrot.lane.b32.xlu0 %v10204_v15, %s8341_s30  ;;  %v3298_v52 = vpop.permute.xlu1 %3297 }
 0x387   :  { %3442 = vst.msk [vmem:[#allocation5 + $0x470] sm:$0xff] %vm2113_vm7, %v3298_v52 }
 0x388   :  { %v2014_v20 = vpop.permute.xlu0 %2013  ;;  %1650 = vrot.lane.b32.xlu1 %v10206_v47, %s8341_s30 }
 0x389   :  { %2160 = vst.msk [vmem:[#allocation5 + $0x450] sm:$0xff] %vm2113_vm7, %v2014_v20 }
 0x38a   :  { %3315 = vrot.lane.b32.xlu0 %v10759_v23, %s8339_s21  ;;  %v2016_v45 = vpop.permute.xlu1 %2015 }
 0x38b   :  { %2161 = vst.msk [vmem:[#allocation5 + $0x468] sm:$0xff] %vm2113_vm7, %v2016_v45 }
 0x38c   :  { %v2531_v15 = vpop.permute.xlu0 %2530  ;;  %3317 = vrot.lane.b32.xlu1 %v10764_v60, %s8339_s21  ;;  %v3726_v58 = vld [vmem:[#allocation5 + $0x458] sm:$0xff] }
 0x38d   :  { %2674 = vst.msk [vmem:[#allocation5 + $0x488] sm:$0xff] %vm1343_vm5, %v2531_v15 }
 0x38e   :  { %2033 = vrot.lane.b32.xlu0 %v10695_v37, %s8339_s21  ;;  %v2533_v47 = vpop.permute.xlu1 %2532  ;;  %v3729_v33 = vld [vmem:[#allocation5 + $0x470] sm:$0xff] }
 0x38f   :  { %2675 = vst.msk [vmem:[#allocation5 + $0x4a0] sm:$0xff] %vm1343_vm5, %v2533_v47  ;;  %v3849_v43 = vpack.c.bf16 %v3729_v33, %v3726_v58 }
 0x390   :  { %v1248_v30 = vpop.permute.xlu0 %1247  ;;  %2035 = vrot.lane.b32.xlu1 %v10700_v48, %s8339_s21  ;;  %v3725_v42 = vld [vmem:[#allocation5 + $0x450] sm:$0xff]  ;;  %v10783_v48 = vld [vmem:[%s12190_s4] ss:$0 sm:$0xff] }
 0x391   :  { %1392 = vst.msk [vmem:[#allocation5 + $0x480] sm:$0xff] %vm1343_vm5, %v1248_v30  ;;  %v4156_v53 = vpop.f32.mrf.mxu0  ;;  %4338 = vmatprep.mubr.bf16.mxu1 %v3849_v43  ;;  %v4165_v15 = vadd.f32 %v10783_v48, %v9921_v3  ;;  %v10798_v43 = vld [vmem:[#allocation2 + $0x318] sm:$0xff] }
 0x392   :  { %2550 = vrot.lane.b32.xlu0 %v10343_v7, %s8340_s24  ;;  %v1250_v34 = vpop.permute.xlu1 %1249  ;;  %v3728_v37 = vld [vmem:[#allocation5 + $0x468] sm:$0xff] }
 0x393   :  { %1393 = vst.msk [vmem:[#allocation5 + $0x498] sm:$0xff] %vm1343_vm5, %v1250_v34  ;;  %v4158_v0 = vpop.f32.mrf.mxu0  ;;  %v3848_v44 = vpack.c.bf16 %v3728_v37, %v3725_v42  ;;  %v10804_v37 = vld [vmem:[#allocation2 + $0x320] sm:$0xff] }
 0x394   :  { %v2916_v38 = vpop.permute.xlu0 %2915  ;;  %2552 = vrot.lane.b32.xlu1 %v10345_v46, %s8340_s24 }
 0x395   :  { %3059 = vst.msk [vmem:[#allocation5 + $0x488] sm:$0xff] %vm1728_vm6, %v2916_v38  ;;  %v4159_v2 = vpop.f32.mrf.mxu0  ;;  %v10786_v61 = vpop.f32.mrf.mxu1  ;;  %4339 = vmatmul.mubr.bf16.gmra.mxu1 %v3848_v44 }
 0x396   :  { %1267 = vrot.lane.b32.xlu0 %v10711_v28, %s8340_s24  ;;  %v2918_v52 = vpop.permute.xlu1 %2917  ;;  %v4157_v28 = vadd.f32 %v10783_v48, %v4156_v53  ;;  %v4160_v38 = vadd.f32 %v10783_v48, %v4159_v2 }
 0x397   :  { %3060 = vst.msk [vmem:[#allocation5 + $0x4a0] sm:$0xff] %vm1728_vm6, %v2918_v52  ;;  %v4161_v20 = vpop.f32.mrf.mxu0  ;;  %v4278_v45 = vpop.f32.mrf.mxu1 }
 0x398   :  { %v1633_v47 = vpop.permute.xlu0 %1632  ;;  %1269 = vrot.lane.b32.xlu1 %v10716_v54, %s8340_s24  ;;  %v4168_v54 = vadd.f32 %v10783_v48, %v9935_v32 }
 0x399   :  { %1777 = vst.msk [vmem:[#allocation5 + $0x480] sm:$0xff] %vm1728_vm6, %v1633_v47  ;;  %v10796_v58 = vpop.f32.mrf.mxu1  ;;  %v8016_v33 = vpop.f32.mrf.mxu0  ;;  %v4181_v47 = vadd.f32 %v10783_v48, %v10054_v22 }
 0x39a   :  { %v4454_v30 = vadd.f32 %v8016_v33, %v4165_v15  ;;  %2935 = vrot.lane.b32.xlu0 %v10798_v43, %s8341_s30  ;;  %v1635_v34 = vpop.permute.xlu1 %1634 }
 0x39b   :  { %1778 = vst.msk [vmem:[#allocation5 + $0x498] sm:$0xff] %vm1728_vm6, %v1635_v34  ;;  %v4281_v3 = vpop.f32.mrf.mxu1  ;;  %v4445_v42 = vpop.f32.mrf.mxu0 }
 0x39c   :  { %v4446_v0 = vadd.f32 %v4445_v42, %v4157_v28  ;;  %v3300_v44 = vpop.permute.xlu0 %3299  ;;  %2937 = vrot.lane.b32.xlu1 %v10804_v37, %s8341_s30  ;;  %v4702_v52 = vmax.f32 %v4454_v30, 0.0  ;;  %v10820_v30 = vld [vmem:[#allocation2 + $0x319] sm:$0xff] }
 0x39d   :  { %3443 = vst.msk [vmem:[#allocation5 + $0x488] sm:$0xff] %vm2113_vm7, %v3300_v44  ;;  %v8017_v53 = vpop.f32.mrf.mxu0  ;;  %v4184_v44 = vadd.f32 %v10783_v48, %v10065_v21 }
 0x39e   :  { %v4700_v20 = vmax.f32 %v4446_v0, 0.0  ;;  %v4457_v45 = vadd.f32 %v8017_v53, %v4168_v54  ;;  %1652 = vrot.lane.b32.xlu0 %v10357_v31, %s8341_s30  ;;  %v3302_v15 = vpop.permute.xlu1 %3301  ;;  %v4173_v31 = vadd.f32 %v10783_v48, %v9963_v40  ;;  %v10828_v0 = vld [vmem:[#allocation2 + $0x321] sm:$0xff] }
 0x39f   :  { %3444 = vst.msk [vmem:[#allocation5 + $0x4a0] sm:$0xff] %vm2113_vm7, %v3302_v15  ;;  %v4448_v32 = vpop.f32.mrf.mxu0  ;;  %v8228_v15 = vld [vmem:[%s12191_s5 + $0x88] sm:$0xff]  }
 0x3a0   :  { %v4764_v33 = vmax.f32 %v4700_v20, %v4702_v52  ;;  %v4449_v28 = vadd.f32 %v4448_v32, %v4160_v38  ;;  %v2018_v34 = vpop.permute.xlu0 %2017  ;;  %1654 = vrot.lane.b32.xlu1 %v10359_v26, %s8341_s30  ;;  %v4703_v3 = vmax.f32 %v4457_v45, 0.0  ;;  %v4176_v32 = vadd.f32 %v10783_v48, %v9973_v29  ;;  %8078 = vmatprep.subr.bf16.mxu1 %v8228_v15 }
 0x3a1   :  { %2162 = vst.msk [vmem:[#allocation5 + $0x480] sm:$0xff] %vm2113_vm7, %v2018_v34  ;;  %v8020_v2 = vpop.f32.mrf.mxu0  ;;  %8079 = vmatpush3.bf16.msra.mxu1 %v8228_v15 }
 0x3a2   :  { %4796 = vst.msk [vmem:[#allocation4] sm:$0xff] %vm742_vm3, %v4764_v33  ;;  %v4701_v42 = vmax.f32 %v4449_v28, 0.0  ;;  %v4470_v54 = vadd.f32 %v8020_v2, %v4181_v47  ;;  %3319 = vrot.lane.b32.xlu0 %v10820_v30, %s8339_s21  ;;  %v2020_v22 = vpop.permute.xlu1 %2019 }
 0x3a3   :  { %2163 = vst.msk [vmem:[#allocation5 + $0x498] sm:$0xff] %vm2113_vm7, %v2020_v22  ;;  %v4461_v26 = vpop.f32.mrf.mxu0 }
 0x3a4   :  { %v4765_v53 = vmax.f32 %v4701_v42, %v4703_v3  ;;  %v4462_v38 = vadd.f32 %v4461_v26, %v4173_v31  ;;  %v2535_v40 = vpop.permute.xlu0 %2534  ;;  %3321 = vrot.lane.b32.xlu1 %v10828_v0, %s8339_s21  ;;  %v3732_v52 = vld [vmem:[#allocation5 + $0x488] sm:$0xff]  ;;  %v4706_v20 = vmax.f32 %v4470_v54, 0.0  ;;  %v4197_v31 = vadd.f32 %v10783_v48, %v10199_v12 }
 0x3a5   :  { %2676 = vst.msk [vmem:[#allocation5 + $0x4b8] sm:$0xff] %vm1343_vm5, %v2535_v40  ;;  %v8021_v45 = vpop.f32.mrf.mxu0  ;;  %v4189_v26 = vadd.f32 %v10783_v48, %v10093_v10  ;;  %v4192_v10 = vadd.f32 %v10783_v48, %v10103_v13 }
 0x3a6   :  { %4797 = vst.msk [vmem:[#allocation4 + $0x8] sm:$0xff] %vm742_vm3, %v4765_v53  ;;  %v4704_v21 = vmax.f32 %v4462_v38, 0.0  ;;  %v4473_v47 = vadd.f32 %v8021_v45, %v4184_v44  ;;  %2037 = vrot.lane.b32.xlu0 %v10742_v50, %s8339_s21  ;;  %v2537_v33 = vpop.permute.xlu1 %2536  ;;  %v3735_v28 = vld [vmem:[#allocation5 + $0x4a0] sm:$0xff] }
 0x3a7   :  { %2677 = vst.msk [vmem:[#allocation5 + $0x4d0] sm:$0xff] %vm1343_vm5, %v2537_v33  ;;  %v4464_v34 = vpop.f32.mrf.mxu0  ;;  %v3852_v2 = vpack.c.bf16 %v3735_v28, %v3732_v52  ;;  %v4200_v52 = vadd.f32 %v10783_v48, %v10217_v16 }
 0x3a8   :  { %v4766_v3 = vmax.f32 %v4704_v21, %v4706_v20  ;;  %v4707_v42 = vmax.f32 %v4473_v47, 0.0  ;;  %v4465_v29 = vadd.f32 %v4464_v34, %v4176_v32  ;;  %v1252_v54 = vpop.permute.xlu0 %1251  ;;  %2039 = vrot.lane.b32.xlu1 %v10748_v8, %s8339_s21  ;;  %v3731_v22 = vld [vmem:[#allocation5 + $0x480] sm:$0xff] }
 0x3a9   :  { %1394 = vst.msk [vmem:[#allocation5 + $0x4b0] sm:$0xff] %vm1343_vm5, %v1252_v54  ;;  %4346 = vmatprep.mubr.bf16.mxu1 %v3852_v2  ;;  %v8024_v50 = vpop.f32.mrf.mxu0 }
 0x3aa   :  { %4798 = vst.msk [vmem:[#allocation4 + $0x10] sm:$0xff] %vm742_vm3, %v4766_v3  ;;  %v4705_v44 = vmax.f32 %v4465_v29, 0.0  ;;  %v4486_v12 = vadd.f32 %v8024_v50, %v4197_v31  ;;  %2554 = vrot.lane.b32.xlu0 %v10492_v59, %s8340_s24  ;;  %v1254_v53 = vpop.permute.xlu1 %1253  ;;  %v3734_v38 = vld [vmem:[#allocation5 + $0x498] sm:$0xff]  ;;  %v10872_v50 = vld [vmem:[#allocation2 + $0x330] sm:$0xff] }
 0x3ab   :  { %1395 = vst.msk [vmem:[#allocation5 + $0x4c8] sm:$0xff] %vm1343_vm5, %v1254_v53  ;;  %v4477_v8 = vpop.f32.mrf.mxu0  ;;  %v3851_v40 = vpack.c.bf16 %v3734_v38, %v3731_v22 }
 0x3ac   :  { %v4767_v20 = vmax.f32 %v4705_v44, %v4707_v42  ;;  %v4478_v45 = vadd.f32 %v4477_v8, %v4189_v26  ;;  %v2920_v15 = vpop.permute.xlu0 %2919  ;;  %2556 = vrot.lane.b32.xlu1 %v10494_v51, %s8340_s24  ;;  %v4710_v16 = vmax.f32 %v4486_v12, 0.0  ;;  %v4213_v42 = vadd.f32 %v10783_v48, %v10340_v57 }
 0x3ad   :  { %v4828_v32 = vld [vmem:[#allocation4] ss:$2 sm:$0xff]  ;;  %v4860_v21 = vld [vmem:[#allocation4 + $0x1] ss:$2 sm:$0xff]  ;;  %3061 = vst.msk [vmem:[#allocation5 + $0x4b8] sm:$0xff] %vm1728_vm6, %v2920_v15  ;;  %v10862_v47 = vpop.f32.mrf.mxu1  ;;  %4347 = vmatmul.mubr.bf16.gmra.mxu1 %v3851_v40  ;;  %v8025_v33 = vpop.f32.mrf.mxu0  ;;  %v4205_v44 = vadd.f32 %v10783_v48, %v10241_v4  ;;  %v10884_v40 = vld [vmem:[#allocation2 + $0x338] sm:$0xff]  ;;  %v4208_v15 = vadd.f32 %v10783_v48, %v10249_v11 }
 0x3ae   :  { %4799 = vst.msk [vmem:[#allocation4 + $0x18] sm:$0xff] %vm742_vm3, %v4767_v20  ;;  %v4708_v28 = vmax.f32 %v4478_v45, 0.0  ;;  %v4489_v34 = vadd.f32 %v8025_v33, %v4200_v52  ;;  %1271 = vrot.lane.b32.xlu0 %v10759_v23, %s8340_s24  ;;  %v2922_v2 = vpop.permute.xlu1 %2921  ;;  %v4891_v31 = vmax.f32 %v4828_v32, %v4860_v21  ;;  %v4216_v52 = vadd.f32 %v10783_v48, %v10364_v19 }
 0x3af   :  { %3062 = vst.msk [vmem:[#allocation5 + $0x4d0] sm:$0xff] %vm1728_vm6, %v2922_v2  ;;  %v4286_v13 = vpop.f32.mrf.mxu1  ;;  %v4480_v3 = vpop.f32.mrf.mxu0 }
 0x3b0   :  { %v4768_v29 = vmax.f32 %v4708_v28, %v4710_v16  ;;  %v4481_v54 = vadd.f32 %v4480_v3, %v4192_v10  ;;  %v1637_v22 = vpop.permute.xlu0 %1636  ;;  %1273 = vrot.lane.b32.xlu1 %v10764_v60, %s8340_s24  ;;  %4957 = vst.msk [vmem:[#allocation3 + $0x11] sm:$0xff] %vm742_vm3, %v4891_v31  ;;  %v4711_v57 = vmax.f32 %v4489_v34, 0.0  ;;  %v4229_v13 = vadd.f32 %v10783_v48, %v10466_v63 }
 0x3b1   :  { %1779 = vst.msk [vmem:[#allocation5 + $0x4b0] sm:$0xff] %vm1728_vm6, %v1637_v22  ;;  %v10876_v23 = vpop.f32.mrf.mxu1  ;;  %v8028_v26 = vpop.f32.mrf.mxu0  ;;  %v4221_v63 = vadd.f32 %v10783_v48, %v10386_v62 }
 0x3b2   :  { %4800 = vst.msk [vmem:[#allocation4 + $0x20] sm:$0xff] %vm742_vm3, %v4768_v29  ;;  %v4709_v12 = vmax.f32 %v4481_v54, 0.0  ;;  %v4502_v53 = vadd.f32 %v8028_v26, %v4213_v42  ;;  %2939 = vrot.lane.b32.xlu0 %v10872_v50, %s8341_s30  ;;  %v1639_v60 = vpop.permute.xlu1 %1638 }
 0x3b3   :  { %1780 = vst.msk [vmem:[#allocation5 + $0x4c8] sm:$0xff] %vm1728_vm6, %v1639_v60  ;;  %v4289_v38 = vpop.f32.mrf.mxu1  ;;  %v4493_v8 = vpop.f32.mrf.mxu0 }
 0x3b4   :  { %v4769_v20 = vmax.f32 %v4709_v12, %v4711_v57  ;;  %v4494_v4 = vadd.f32 %v4493_v8, %v4205_v44  ;;  %v3304_v45 = vpop.permute.xlu0 %3303  ;;  %2941 = vrot.lane.b32.xlu1 %v10884_v40, %s8341_s30  ;;  %v4714_v33 = vmax.f32 %v4502_v53, 0.0  ;;  %v3521_v57 = vld [vmem:[#allocation2 + $0x34a] sm:$0xff]  ;;  %v3522_v12 = vld [vmem:[#allocation2 + $0x352] sm:$0xff]  ;;  %v4232_v53 = vadd.f32 %v10783_v48, %v10477_v55 }
 0x3b5   :  { %v4830_v10 = vld [vmem:[#allocation4 + $0x10] ss:$2 sm:$0xff]  ;;  %v4862_v32 = vld [vmem:[#allocation4 + $0x11] ss:$2 sm:$0xff]  ;;  %3445 = vst.msk [vmem:[#allocation5 + $0x4b8] sm:$0xff] %vm2113_vm7, %v3304_v45  ;;  %v8029_v21 = vpop.f32.mrf.mxu0 }
 0x3b6   :  { %4801 = vst.msk [vmem:[#allocation4 + $0x28] sm:$0xff] %vm742_vm3, %v4769_v20  ;;  %v4712_v16 = vmax.f32 %v4494_v4, 0.0  ;;  %v4505_v28 = vadd.f32 %v8029_v21, %v4216_v52  ;;  %1656 = vrot.lane.b32.xlu0 %v10343_v7, %s8341_s30  ;;  %v3306_v19 = vpop.permute.xlu1 %3305  ;;  %v4892_v34 = vmax.f32 %v4830_v10, %v4862_v32  ;;  %3585 = vst.msk [vmem:[#allocation5 + $0x5e0] sm:$0xff] %vm742_vm3, %v3521_v57 }
 0x3b7   :  { %3446 = vst.msk [vmem:[#allocation5 + $0x4d0] sm:$0xff] %vm2113_vm7, %v3306_v19  ;;  %v4496_v2 = vpop.f32.mrf.mxu0  ;;  %v10897_v31 = vld [vmem:[#allocation3 + $0x11] sm:$0xff] }
 0x3b8   :  { %v10899_v11 = vld [vmem:[#allocation3 + $0x10] sm:$0xff]  ;;  %v4770_v3 = vmax.f32 %v4712_v16, %v4714_v33  ;;  %v4497_v42 = vadd.f32 %v4496_v2, %v4208_v15  ;;  %v2022_v29 = vpop.permute.xlu0 %2021  ;;  %1658 = vrot.lane.b32.xlu1 %v10345_v46, %s8341_s30  ;;  %4958 = vst.msk [vmem:[#allocation3 + $0x21] sm:$0xff] %vm742_vm3, %v4892_v34  ;;  %5309 = vst.msk [vmem:[#allocation6 + $0x8] sm:$0xff] %vm742_vm3, %v10897_v31  ;;  %v4715_v54 = vmax.f32 %v4505_v28, 0.0 }
 0x3b9   :  { %4990 = vst.msk [vmem:[#allocation6 + $0x18] sm:$0xff] %vm742_vm3, %v10899_v11  ;;  %v8032_v7 = vpop.f32.mrf.mxu0  ;;  %3586 = vst.msk [vmem:[#allocation5 + $0x5f8] sm:$0xff] %vm742_vm3, %v3522_v12  ;;  %v4245_v28 = vadd.f32 %v10783_v48, %v10557_v49  ;;  %v4237_v49 = vadd.f32 %v10783_v48, %v10509_v35  ;;  %v4248_v35 = vadd.f32 %v10783_v48, %v10567_v18 }
 0x3ba   :  { %2164 = vst.msk [vmem:[#allocation5 + $0x4b0] sm:$0xff] %vm2113_vm7, %v2022_v29  ;;  %v4713_v22 = vmax.f32 %v4497_v42, 0.0  ;;  %v4518_v26 = vadd.f32 %v8032_v7, %v4229_v13  ;;  %3323 = vrot.lane.b32.xlu0 %v10528_v41, %s8339_s21  ;;  %v2024_v46 = vpop.permute.xlu1 %2023  ;;  %v4224_v41 = vadd.f32 %v10783_v48, %v10394_v14 }
 0x3bb   :  { %4802 = vst.msk [vmem:[#allocation4 + $0x30] sm:$0xff] %vm742_vm3, %v4770_v3  ;;  %v4509_v44 = vpop.f32.mrf.mxu0 }
 0x3bc   :  { %2165 = vst.msk [vmem:[#allocation5 + $0x4c8] sm:$0xff] %vm2113_vm7, %v2024_v46  ;;  %v4771_v60 = vmax.f32 %v4713_v22, %v4715_v54  ;;  %v4510_v38 = vadd.f32 %v4509_v44, %v4221_v63  ;;  %v2539_v62 = vpop.permute.xlu0 %2538  ;;  %3325 = vrot.lane.b32.xlu1 %v10532_v36, %s8339_s21  ;;  %v4718_v55 = vmax.f32 %v4518_v26, 0.0  ;;  %v3738_v15 = vld [vmem:[#allocation5 + $0x4b8] sm:$0xff] }
 0x3bd   :  { %v4832_v8 = vld [vmem:[#allocation4 + $0x20] ss:$2 sm:$0xff]  ;;  %v4864_v52 = vld [vmem:[#allocation4 + $0x21] ss:$2 sm:$0xff]  ;;  %2678 = vst.msk [vmem:[#allocation5 + $0x4e8] sm:$0xff] %vm1343_vm5, %v2539_v62  ;;  %v8033_v20 = vpop.f32.mrf.mxu0 }
 0x3be   :  { %4803 = vst.msk [vmem:[#allocation4 + $0x38] sm:$0xff] %vm742_vm3, %v4771_v60  ;;  %v4716_v4 = vmax.f32 %v4510_v38, 0.0  ;;  %v4521_v45 = vadd.f32 %v8033_v20, %v4232_v53  ;;  %2041 = vrot.lane.b32.xlu0 %v10798_v43, %s8339_s21  ;;  %v2541_v36 = vpop.permute.xlu1 %2540  ;;  %v3741_v10 = vld [vmem:[#allocation5 + $0x4d0] sm:$0xff]  ;;  %v4893_v32 = vmax.f32 %v4832_v8, %v4864_v52  ;;  %v3775_v26 = vld [vmem:[#allocation5 + $0x5e0] sm:$0xff] }
 0x3bf   :  { %2679 = vst.msk [vmem:[#allocation5 + $0x500] sm:$0xff] %vm1343_vm5, %v2541_v36  ;;  %v4512_v14 = vpop.f32.mrf.mxu0  ;;  %v3855_v21 = vpack.c.bf16 %v3741_v10, %v3738_v15  ;;  %v10930_v33 = vld [vmem:[#allocation3 + $0x22] sm:$0xff]  ;;  %v4261_v15 = vadd.f32 %v10783_v48, %v10637_v56 }
 0x3c0   :  { %v10932_v16 = vld [vmem:[#allocation3 + $0x21] sm:$0xff]  ;;  %v4772_v19 = vmax.f32 %v4716_v4, %v4718_v55  ;;  %v4513_v34 = vadd.f32 %v4512_v14, %v4224_v41  ;;  %v1256_v2 = vpop.permute.xlu0 %1255  ;;  %2043 = vrot.lane.b32.xlu1 %v10804_v37, %s8339_s21  ;;  %4959 = vst.msk [vmem:[#allocation3 + $0x31] sm:$0xff] %vm742_vm3, %v4893_v32  ;;  %5630 = vst.msk [vmem:[#allocation6 + $0x10] sm:$0xff] %vm742_vm3, %v10930_v33  ;;  %v4719_v37 = vmax.f32 %v4521_v45, 0.0  ;;  %v3778_v46 = vld [vmem:[#allocation5 + $0x5f8] sm:$0xff] }
 0x3c1   :  { %5310 = vst.msk [vmem:[#allocation6 + $0x20] sm:$0xff] %vm742_vm3, %v10932_v16  ;;  %v4975_v43 = vld [vmem:[#allocation3 + $0x20] sm:$0xff]  ;;  %4354 = vmatprep.mubr.bf16.mxu1 %v3855_v21  ;;  %v8036_v13 = vpop.f32.mrf.mxu0  ;;  %v3737_v7 = vld [vmem:[#allocation5 + $0x4b0] sm:$0xff]  ;;  %v3874_v53 = vpack.c.bf16 %v3778_v46, %v3775_v26  ;;  %v2753_v4 = vld [vmem:[#allocation2 + $0x348] sm:$0xff] }
 0x3c2   :  { %1396 = vst.msk [vmem:[#allocation5 + $0x4e0] sm:$0xff] %vm1343_vm5, %v1256_v2  ;;  %v4717_v3 = vmax.f32 %v4513_v34, 0.0  ;;  %v4534_v42 = vadd.f32 %v8036_v13, %v4245_v28  ;;  %2558 = vrot.lane.b32.xlu0 %v10480_v39, %s8340_s24  ;;  %v1258_v29 = vpop.permute.xlu1 %1257  ;;  %v4240_v39 = vadd.f32 %v10783_v48, %v10519_v27  ;;  %v2754_v28 = vld [vmem:[#allocation2 + $0x350] sm:$0xff] }
 0x3c3   :  { %4991 = vst.msk [vmem:[#allocation6 + $0x30] sm:$0xff] %vm742_vm3, %v4975_v43  ;;  %4804 = vst.msk [vmem:[#allocation4 + $0x40] sm:$0xff] %vm742_vm3, %v4772_v19  ;;  %v3740_v63 = vld [vmem:[#allocation5 + $0x4c8] sm:$0xff]  ;;  %v4525_v54 = vpop.f32.mrf.mxu0  ;;  %8075 = vmatmul.mubr.msk.bf16.gmra.mxu0 %vm742_vm3, %v3874_v53 }
 0x3c4   :  { %1397 = vst.msk [vmem:[#allocation5 + $0x4f8] sm:$0xff] %vm1343_vm5, %v1258_v29  ;;  %v3854_v22 = vpack.c.bf16 %v3740_v63, %v3737_v7  ;;  %v4773_v44 = vmax.f32 %v4717_v3, %v4719_v37  ;;  %v4526_v57 = vadd.f32 %v4525_v54, %v4237_v49  ;;  %v2924_v12 = vpop.permute.xlu0 %2923  ;;  %2560 = vrot.lane.b32.xlu1 %v10482_v1, %s8340_s24  ;;  %v4722_v18 = vmax.f32 %v4534_v42, 0.0 }
 0x3c5   :  { %v4834_v60 = vld [vmem:[#allocation4 + $0x30] ss:$2 sm:$0xff]  ;;  %v4866_v38 = vld [vmem:[#allocation4 + $0x31] ss:$2 sm:$0xff]  ;;  %3063 = vst.msk [vmem:[#allocation5 + $0x4e8] sm:$0xff] %vm1728_vm6, %v2924_v12  ;;  %v10958_v62 = vpop.f32.mrf.mxu1  ;;  %v8037_v41 = vpop.f32.mrf.mxu0  ;;  %v4264_v37 = vadd.f32 %v10783_v48, %v10645_v6 }
 0x3c6   :  { %4355 = vmatmul.mubr.bf16.gmra.mxu1 %v3854_v22  ;;  %4805 = vst.msk [vmem:[#allocation4 + $0x48] sm:$0xff] %vm742_vm3, %v4773_v44  ;;  %v4720_v8 = vmax.f32 %v4526_v57, 0.0  ;;  %v4537_v52 = vadd.f32 %v8037_v41, %v4248_v35  ;;  %1275 = vrot.lane.b32.xlu0 %v10820_v30, %s8340_s24  ;;  %v2926_v1 = vpop.permute.xlu1 %2925  ;;  %v4894_v20 = vmax.f32 %v4834_v60, %v4866_v38  ;;  %v8229_v22 = vld [vmem:[%s12191_s5 + $0x78] sm:$0xff]   ;;  %v3137_v12 = vld [vmem:[#allocation2 + $0x349] sm:$0xff] }
 0x3c7   :  { %3064 = vst.msk [vmem:[#allocation5 + $0x500] sm:$0xff] %vm1728_vm6, %v2926_v1  ;;  %v4294_v27 = vpop.f32.mrf.mxu1  ;;  %v4528_v55 = vpop.f32.mrf.mxu0  ;;  %v10965_v45 = vld [vmem:[#allocation3 + $0x31] sm:$0xff]  ;;  %7784 = vmatprep.subr.bf16.mxu0 %v8229_v22  ;;  %v4277_v60 = vadd.f32 %v10783_v48, %v10786_v61 }
 0x3c8   :  { %v10967_v36 = vld [vmem:[#allocation3 + $0x32] sm:$0xff]  ;;  %v4774_v10 = vmax.f32 %v4720_v8, %v4722_v18  ;;  %v4529_v32 = vadd.f32 %v4528_v55, %v4240_v39  ;;  %v1641_v14 = vpop.permute.xlu0 %1640  ;;  %1277 = vrot.lane.b32.xlu1 %v10828_v0, %s8340_s24  ;;  %4960 = vst.msk [vmem:[#allocation3 + $0x41] sm:$0xff] %vm742_vm3, %v4894_v20  ;;  %5311 = vst.msk [vmem:[#allocation6 + $0x38] sm:$0xff] %vm742_vm3, %v10965_v45  ;;  %v4253_v0 = vadd.f32 %v10783_v48, %v10587_v24  ;;  %v4973_v18 = vld [vmem:[#allocation3] sm:$0xff] }
 0x3c9   :  { %5631 = vst.msk [vmem:[#allocation6 + $0x28] sm:$0xff] %vm742_vm3, %v10967_v36  ;;  %v4976_v30 = vld [vmem:[#allocation3 + $0x30] sm:$0xff]  ;;  %v10979_v21 = vpop.f32.mrf.mxu1  ;;  %v8040_v56 = vpop.f32.mrf.mxu0  ;;  %v4723_v19 = vmax.f32 %v4537_v52, 0.0  ;;  %v4256_v24 = vadd.f32 %v10783_v48, %v10595_v25  ;;  %v8230_v25 = vld [vmem:[%s12191_s5 + $0x38] sm:$0xff]   ;;  %4989 = vst.msk [vmem:[#allocation6] sm:$0xff] %vm742_vm3, %v4973_v18  ;;  %v4269_v20 = vadd.f32 %v10783_v48, %v10685_v17  ;;  %v4272_v17 = vadd.f32 %v10783_v48, %v10693_v5 }
 0x3ca   :  { %1781 = vst.msk [vmem:[#allocation5 + $0x4e0] sm:$0xff] %vm1728_vm6, %v1641_v14  ;;  %v4721_v34 = vmax.f32 %v4529_v32, 0.0  ;;  %v4550_v2 = vadd.f32 %v8040_v56, %v4261_v15  ;;  %2943 = vrot.lane.b32.xlu0 %v2753_v4, %s8341_s30  ;;  %v1643_v43 = vpop.permute.xlu1 %1642  ;;  %7785 = vmatpush3.bf16.msra.mxu0 %v8230_v25  ;;  %v3138_v52 = vld [vmem:[#allocation2 + $0x351] sm:$0xff]  ;;  %v4280_v32 = vadd.f32 %v10783_v48, %v10796_v58  ;;  %v8233_v18 = vld [vmem:[%s12191_s5 + $0x68] sm:$0xff]  }
 0x3cb   :  { %4992 = vst.msk [vmem:[#allocation6 + $0x48] sm:$0xff] %vm742_vm3, %v4976_v30  ;;  %4806 = vst.msk [vmem:[#allocation4 + $0x50] sm:$0xff] %vm742_vm3, %v4774_v10  ;;  %v4297_v13 = vpop.f32.mrf.mxu1  ;;  %v4541_v49 = vpop.f32.mrf.mxu0  ;;  %v8232_v1 = vld [vmem:[%s12191_s5 + $0x30] sm:$0xff]  }
 0x3cc   :  { %1782 = vst.msk [vmem:[#allocation5 + $0x4f8] sm:$0xff] %vm1728_vm6, %v1643_v43  ;;  %v4775_v3 = vmax.f32 %v4721_v34, %v4723_v19  ;;  %v4542_v42 = vadd.f32 %v4541_v49, %v4253_v0  ;;  %v3308_v29 = vpop.permute.xlu0 %3307  ;;  %2945 = vrot.lane.b32.xlu1 %v2754_v28, %s8341_s30  ;;  %v4726_v6 = vmax.f32 %v4550_v2, 0.0 }
 0x3cd   :  { %v4836_v7 = vld [vmem:[#allocation4 + $0x40] ss:$2 sm:$0xff]  ;;  %v4868_v63 = vld [vmem:[#allocation4 + $0x41] ss:$2 sm:$0xff]  ;;  %3447 = vst.msk [vmem:[#allocation5 + $0x4e8] sm:$0xff] %vm2113_vm7, %v3308_v29  ;;  %v8041_v54 = vpop.f32.mrf.mxu0 }
 0x3ce   :  { %4807 = vst.msk [vmem:[#allocation4 + $0x58] sm:$0xff] %vm742_vm3, %v4775_v3  ;;  %v4724_v26 = vmax.f32 %v4542_v42, 0.0  ;;  %v4553_v46 = vadd.f32 %v8041_v54, %v4264_v37  ;;  %1660 = vrot.lane.b32.xlu0 %v10492_v59, %s8341_s30  ;;  %v3310_v35 = vpop.permute.xlu1 %3309  ;;  %v4895_v44 = vmax.f32 %v4836_v7, %v4868_v63 }
 0x3cf   :  { %3448 = vst.msk [vmem:[#allocation5 + $0x500] sm:$0xff] %vm2113_vm7, %v3310_v35  ;;  %v4544_v57 = vpop.f32.mrf.mxu0  ;;  %v11003_v53 = vld [vmem:[#allocation3 + $0x42] sm:$0xff] }
 0x3d0   :  { %v11005_v39 = vld [vmem:[#allocation3 + $0x41] sm:$0xff]  ;;  %v4776_v38 = vmax.f32 %v4724_v26, %v4726_v6  ;;  %v4545_v59 = vadd.f32 %v4544_v57, %v4256_v24  ;;  %v2026_v41 = vpop.permute.xlu0 %2025  ;;  %1662 = vrot.lane.b32.xlu1 %v10494_v51, %s8341_s30  ;;  %4961 = vst.msk [vmem:[#allocation3 + $0x51] sm:$0xff] %vm742_vm3, %v4895_v44  ;;  %5632 = vst.msk [vmem:[#allocation6 + $0x40] sm:$0xff] %vm742_vm3, %v11003_v53  ;;  %v8231_v51 = vld [vmem:[%s12191_s5 + $0x70] sm:$0xff]   ;;  %v4727_v27 = vmax.f32 %v4553_v46, 0.0 }
 0x3d1   :  { %5312 = vst.msk [vmem:[#allocation6 + $0x50] sm:$0xff] %vm742_vm3, %v11005_v39  ;;  %v4977_v8 = vld [vmem:[#allocation3 + $0x40] sm:$0xff]  ;;  %v8044_v61 = vpop.f32.mrf.mxu0  ;;  %7786 = vmatprep.subr.bf16.mxu0 %v8231_v51  ;;  %v4293_v24 = vadd.f32 %v10783_v48, %v10958_v62  ;;  %v11054_v62 = vld [vmem:[#allocation3 + $0x12] sm:$0xff] }
 0x3d2   :  { %2166 = vst.msk [vmem:[#allocation5 + $0x4e0] sm:$0xff] %vm2113_vm7, %v2026_v41  ;;  %v4725_v55 = vmax.f32 %v4545_v59, 0.0  ;;  %v4566_v4 = vadd.f32 %v8044_v61, %v4277_v60  ;;  %3327 = vrot.lane.b32.xlu0 %v3137_v12, %s8339_s21  ;;  %v2028_v15 = vpop.permute.xlu1 %2027  ;;  %7787 = vmatpush3.bf16.msra.mxu0 %v8232_v1  ;;  %v5005_v60 = vld [vmem:[#allocation3 + $0x1] sm:$0xff] }
 0x3d3   :  { %4993 = vst.msk [vmem:[#allocation6 + $0x60] sm:$0xff] %vm742_vm3, %v4977_v8  ;;  %4808 = vst.msk [vmem:[#allocation4 + $0x60] sm:$0xff] %vm742_vm3, %v4776_v38  ;;  %v4557_v10 = vpop.f32.mrf.mxu0  ;;  %v4296_v38 = vadd.f32 %v10783_v48, %v10979_v21  ;;  %v4288_v8 = vadd.f32 %v10783_v48, %v10876_v23  ;;  %v8234_v1 = vld [vmem:[%s12191_s5 + $0x28] sm:$0xff]   ;;  %7788 = vmatprep.subr.bf16.mxu0 %v8233_v18 }
 0x3d4   :  { %2167 = vst.msk [vmem:[#allocation5 + $0x4f8] sm:$0xff] %vm2113_vm7, %v2028_v15  ;;  %v4777_v14 = vmax.f32 %v4725_v55, %v4727_v27  ;;  %v4558_v30 = vadd.f32 %v4557_v10, %v4269_v20  ;;  %v2543_v56 = vpop.permute.xlu0 %2542  ;;  %3329 = vrot.lane.b32.xlu1 %v3138_v52, %s8339_s21  ;;  %v4730_v34 = vmax.f32 %v4566_v4, 0.0  ;;  %v3744_v13 = vld [vmem:[#allocation5 + $0x4e8] sm:$0xff] }
 0x3d5   :  { %v4838_v28 = vld [vmem:[#allocation4 + $0x50] ss:$2 sm:$0xff]  ;;  %v4870_v0 = vld [vmem:[#allocation4 + $0x51] ss:$2 sm:$0xff]  ;;  %2680 = vst.msk [vmem:[#allocation5 + $0x518] sm:$0xff] %vm1343_vm5, %v2543_v56  ;;  %v8045_v19 = vpop.f32.mrf.mxu0 }
 0x3d6   :  { %4809 = vst.msk [vmem:[#allocation4 + $0x68] sm:$0xff] %vm742_vm3, %v4777_v14  ;;  %v4728_v2 = vmax.f32 %v4558_v30, 0.0  ;;  %v4569_v43 = vadd.f32 %v8045_v19, %v4280_v32  ;;  %2045 = vrot.lane.b32.xlu0 %v10872_v50, %s8339_s21  ;;  %v2545_v58 = vpop.permute.xlu1 %2544  ;;  %v3747_v49 = vld [vmem:[#allocation5 + $0x500] sm:$0xff]  ;;  %v4896_v37 = vmax.f32 %v4838_v28, %v4870_v0  ;;  %7789 = vmatpush3.bf16.msra.mxu0 %v8234_v1 }
 0x3d7   :  { %2681 = vst.msk [vmem:[#allocation5 + $0x530] sm:$0xff] %vm1343_vm5, %v2545_v58  ;;  %v4560_v5 = vpop.f32.mrf.mxu0  ;;  %v3858_v3 = vpack.c.bf16 %v3747_v49, %v3744_v13  ;;  %v11040_v42 = vld [vmem:[#allocation3 + $0x51] sm:$0xff]  ;;  %v8235_v28 = vld [vmem:[%s12191_s5 + $0x60] sm:$0xff]  }
 0x3d8   :  { %v11042_v29 = vld [vmem:[#allocation3 + $0x52] sm:$0xff]  ;;  %v4778_v7 = vmax.f32 %v4728_v2, %v4730_v34  ;;  %v4561_v63 = vadd.f32 %v4560_v5, %v4272_v17  ;;  %v1260_v54 = vpop.permute.xlu0 %1259  ;;  %2047 = vrot.lane.b32.xlu1 %v10884_v40, %s8339_s21  ;;  %4962 = vst.msk [vmem:[#allocation3 + $0x61] sm:$0xff] %vm742_vm3, %v4896_v37  ;;  %5313 = vst.msk [vmem:[#allocation6 + $0x68] sm:$0xff] %vm742_vm3, %v11040_v42  ;;  %v4285_v40 = vadd.f32 %v10783_v48, %v10862_v47  ;;  %v8236_v0 = vld [vmem:[%s12191_s5 + $0x80] sm:$0xff]  }
 0x3d9   :  { %5633 = vst.msk [vmem:[#allocation6 + $0x58] sm:$0xff] %vm742_vm3, %v11042_v29  ;;  %v4978_v50 = vld [vmem:[#allocation3 + $0x50] sm:$0xff]  ;;  %4362 = vmatprep.mubr.bf16.mxu1 %v3858_v3  ;;  %v8048_v22 = vpop.f32.mrf.mxu0  ;;  %v4731_v6 = vmax.f32 %v4569_v43, 0.0  ;;  %v3743_v44 = vld [vmem:[#allocation5 + $0x4e0] sm:$0xff]  ;;  %7790 = vmatprep.subr.bf16.mxu0 %v8235_v28  ;;  %v8238_v13 = vld [vmem:[%s12191_s5 + $0x58] sm:$0xff]  }
 0x3da   :  { %1398 = vst.msk [vmem:[#allocation5 + $0x510] sm:$0xff] %vm1343_vm5, %v1260_v54  ;;  %v4729_v26 = vmax.f32 %v4561_v63, 0.0  ;;  %v4582_v46 = vadd.f32 %v8048_v22, %v4293_v24  ;;  %v1262_v35 = vpop.permute.xlu1 %1261  ;;  %5357 = vrot.lane.b32.xlu0 %v11054_v62, %s8340_s24  ;;  %v11105_v19 = vld [vmem:[#allocation3 + $0x20] sm:$0xff]  ;;  %v11117_v37 = vld [vmem:[#allocation3 + $0x30] sm:$0xff]  ;;  %8080 = vmatprep.subr.bf16.mxu1 %v8236_v0  ;;  %v8239_v3 = vld [vmem:[%s12191_s5 + $0x18] sm:$0xff]  }
 0x3db   :  { %4994 = vst.msk [vmem:[#allocation6 + $0x78] sm:$0xff] %vm742_vm3, %v4978_v50  ;;  %4810 = vst.msk [vmem:[#allocation4 + $0x70] sm:$0xff] %vm742_vm3, %v4778_v7  ;;  %v3746_v25 = vld [vmem:[#allocation5 + $0x4f8] sm:$0xff]  ;;  %v4573_v57 = vpop.f32.mrf.mxu0  ;;  %v8237_v34 = vld [vmem:[%s12191_s5 + $0x20] sm:$0xff]   ;;  %8081 = vmatpush3.bf16.msra.mxu1 %v8236_v0 }
 0x3dc   :  { %1399 = vst.msk [vmem:[#allocation5 + $0x528] sm:$0xff] %vm1343_vm5, %v1262_v35  ;;  %v3857_v12 = vpack.c.bf16 %v3746_v25, %v3743_v44  ;;  %v4779_v47 = vmax.f32 %v4729_v26, %v4731_v6  ;;  %v4574_v59 = vadd.f32 %v4573_v57, %v4285_v40  ;;  %v2928_v41 = vpop.permute.xlu0 %2927  ;;  %5359 = vrot.lane.b32.xlu1 %v10930_v33, %s8340_s24  ;;  %v4734_v20 = vmax.f32 %v4582_v46, 0.0  ;;  %v5101_v5 = vld [vmem:[#allocation3 + $0x2] sm:$0xff]  ;;  %v8240_v63 = vld [vmem:[%s12191_s5 + $0x50] sm:$0xff]  }
 0x3dd   :  { %v4840_v61 = vld [vmem:[#allocation4 + $0x60] ss:$2 sm:$0xff]  ;;  %v4872_v52 = vld [vmem:[#allocation4 + $0x61] ss:$2 sm:$0xff]  ;;  %3065 = vst.msk [vmem:[#allocation5 + $0x518] sm:$0xff] %vm1728_vm6, %v2928_v41  ;;  %v11073_v51 = vpop.f32.mrf.mxu1  ;;  %v8049_v21 = vpop.f32.mrf.mxu0  ;;  %7791 = vmatpush3.bf16.msra.mxu0 %v8237_v34  ;;  %v8241_v6 = vld [vmem:[%s12191_s5 + $0x10] sm:$0xff]  }
 0x3de   :  { %4363 = vmatmul.mubr.bf16.gmra.mxu1 %v3857_v12  ;;  %4811 = vst.msk [vmem:[#allocation4 + $0x78] sm:$0xff] %vm742_vm3, %v4779_v47  ;;  %v4732_v27 = vmax.f32 %v4574_v59, 0.0  ;;  %v4585_v55 = vadd.f32 %v8049_v21, %v4296_v38  ;;  %v2930_v4 = vpop.permute.xlu1 %2929  ;;  %5037 = vrot.lane.b32.xlu0 %v5005_v60, %s8340_s24  ;;  %v4897_v48 = vmax.f32 %v4840_v61, %v4872_v52  ;;  %v8242_v25 = vld [vmem:[%s12191_s5 + $0x48] sm:$0xff]   ;;  %v8244_v38 = vld [vmem:[%s12191_s5 + $0x40] sm:$0xff]  }
 0x3df   :  { %3066 = vst.msk [vmem:[#allocation5 + $0x530] sm:$0xff] %vm1728_vm6, %v2930_v4  ;;  %v4302_v23 = vpop.f32.mrf.mxu1  ;;  %v4576_v15 = vpop.f32.mrf.mxu0  ;;  %v11081_v10 = vld [vmem:[#allocation3 + $0x62] sm:$0xff]  ;;  %7792 = vmatprep.subr.bf16.mxu0 %v8238_v13 }
 0x3e0   :  { %v11083_v32 = vld [vmem:[#allocation3 + $0x60] sm:$0xff]  ;;  %v4780_v30 = vmax.f32 %v4732_v27, %v4734_v20  ;;  %v4577_v56 = vadd.f32 %v4576_v15, %v4288_v8  ;;  %v1645_v17 = vpop.permute.xlu0 %1644  ;;  %5039 = vrot.lane.b32.xlu1 %v10897_v31, %s8340_s24  ;;  %4963 = vst.msk [vmem:[#allocation3 + $0x71] sm:$0xff] %vm742_vm3, %v4897_v48  ;;  %5634 = vst.msk [vmem:[#allocation6 + $0x70] sm:$0xff] %vm742_vm3, %v11081_v10  ;;  %v4735_v2 = vmax.f32 %v4585_v55, 0.0  ;;  %v8243_v12 = vld [vmem:[%s12191_s5 + $0x8] sm:$0xff]  }
 0x3e1   :  { %v11085_v14 = vld [vmem:[#allocation3 + $0x61] sm:$0xff]  ;;  %4995 = vst.msk [vmem:[#allocation6 + $0x90] sm:$0xff] %vm742_vm3, %v11083_v32  ;;  %v11103_v31 = vpop.f32.mrf.mxu1  ;;  %7793 = vmatpush3.bf16.msra.mxu0 %v8239_v3 }
 0x3e2   :  { %5314 = vst.msk [vmem:[#allocation6 + $0x80] sm:$0xff] %vm742_vm3, %v11085_v14  ;;  %4812 = vst.msk [vmem:[#allocation4 + $0x80] sm:$0xff] %vm742_vm3, %v4780_v30  ;;  %v4733_v43 = vmax.f32 %v4577_v56, 0.0  ;;  %v1647_v58 = vpop.permute.xlu1 %1646  ;;  %5454 = vrot.lane.b32.xlu0 %v11105_v19, %s8341_s30  ;;  %7794 = vmatprep.subr.bf16.mxu0 %v8240_v63  ;;  %v8245_v27 = vld [vmem:[%s12191_s5] sm:$0xff]  }
 0x3e3   :  { %1783 = vst.msk [vmem:[#allocation5 + $0x510] sm:$0xff] %vm1728_vm6, %v1645_v17  ;;  %1784 = vst.msk [vmem:[#allocation5 + $0x528] sm:$0xff] %vm1728_vm6, %v1647_v58  ;;  %v4305_v49 = vpop.f32.mrf.mxu1  ;;  %v11189_v30 = vld [vmem:[%s12190_s4] ss:$0 sm:$0xff] }
 0x3e4   :  { %v4781_v24 = vmax.f32 %v4733_v43, %v4735_v2  ;;  %v3312_v7 = vpop.permute.xlu0 %3311  ;;  %5456 = vrot.lane.b32.xlu1 %v11117_v37, %s8341_s30  ;;  %v4301_v56 = vadd.f32 %v11189_v30, %v11073_v51  ;;  %v4304_v13 = vadd.f32 %v11189_v30, %v11103_v31  ;;  %v5424_v3 = vld [vmem:[#allocation3 + $0x40] sm:$0xff] }
 0x3e5   :  { %v4842_v54 = vld [vmem:[#allocation4 + $0x70] ss:$2 sm:$0xff]  ;;  %v4874_v50 = vld [vmem:[#allocation4 + $0x71] ss:$2 sm:$0xff]  ;;  %3449 = vst.msk [vmem:[#allocation5 + $0x518] sm:$0xff] %vm2113_vm7, %v3312_v7  ;;  %7795 = vmatpush3.bf16.msra.mxu0 %v8241_v6 }
 0x3e6   :  { %4813 = vst.msk [vmem:[#allocation4 + $0x88] sm:$0xff] %vm742_vm3, %v4781_v24  ;;  %v3314_v22 = vpop.permute.xlu1 %3313  ;;  %5133 = vrot.lane.b32.xlu0 %v5101_v5, %s8341_s30  ;;  %v4898_v40 = vmax.f32 %v4842_v54, %v4874_v50  ;;  %7796 = vmatprep.subr.bf16.mxu0 %v8242_v25  ;;  %v11216_v50 = vld [vmem:[#allocation3 + $0x50] sm:$0xff] }
 0x3e7   :  { %3450 = vst.msk [vmem:[#allocation5 + $0x530] sm:$0xff] %vm2113_vm7, %v3314_v22  ;;  %v11134_v26 = vld [vmem:[#allocation3 + $0x70] sm:$0xff] }
 0x3e8   :  { %v11136_v46 = vld [vmem:[#allocation3 + $0x71] sm:$0xff]  ;;  %v2030_v44 = vpop.permute.xlu0 %2029  ;;  %5135 = vrot.lane.b32.xlu1 %v11054_v62, %s8341_s30  ;;  %4964 = vst.msk [vmem:[#allocation3 + $0x81] sm:$0xff] %vm742_vm3, %v4898_v40  ;;  %4996 = vst.msk [vmem:[#allocation6 + $0xa8] sm:$0xff] %vm742_vm3, %v11134_v26  ;;  %v8052_v62 = vpop.f32.mrf.mxu0 }
 0x3e9   :  { %v11138_v35 = vld [vmem:[#allocation3 + $0x72] sm:$0xff]  ;;  %5315 = vst.msk [vmem:[#allocation6 + $0x98] sm:$0xff] %vm742_vm3, %v11136_v46  ;;  %7797 = vmatpush3.bf16.msra.mxu0 %v8243_v12 }
 0x3ea   :  { %5635 = vst.msk [vmem:[#allocation6 + $0x88] sm:$0xff] %vm742_vm3, %v11138_v35  ;;  %v2032_v57 = vpop.permute.xlu1 %2031  ;;  %5550 = vrot.lane.b32.xlu0 %v10932_v16, %s8339_s21  ;;  %v4589_v52 = vpop.f32.mrf.mxu0  ;;  %7798 = vmatprep.subr.bf16.mxu0 %v8244_v38 }
 0x3eb   :  { %2168 = vst.msk [vmem:[#allocation5 + $0x510] sm:$0xff] %vm2113_vm7, %v2030_v44  ;;  %2169 = vst.msk [vmem:[#allocation5 + $0x528] sm:$0xff] %vm2113_vm7, %v2032_v57  ;;  %v4590_v0 = vadd.f32 %v4589_v52, %v4301_v56 }
 0x3ec   :  { %v2547_v60 = vpop.permute.xlu0 %2546  ;;  %5552 = vrot.lane.b32.xlu1 %v10965_v45, %s8339_s21  ;;  %v3750_v18 = vld [vmem:[#allocation5 + $0x518] sm:$0xff]  ;;  %v8053_v23 = vpop.f32.mrf.mxu0 }
 0x3ed   :  { %v4844_v47 = vld [vmem:[#allocation4 + $0x80] ss:$2 sm:$0xff]  ;;  %v4876_v59 = vld [vmem:[#allocation4 + $0x81] ss:$2 sm:$0xff]  ;;  %2682 = vst.msk [vmem:[#allocation5 + $0x548] sm:$0xff] %vm1343_vm5, %v2547_v60  ;;  %7799 = vmatpush3.bf16.msra.mxu0 %v8245_v27  ;;  %v4736_v24 = vmax.f32 %v4590_v0, 0.0 }
 0x3ee   :  { %v2549_v41 = vpop.permute.xlu1 %2548  ;;  %5229 = vrot.lane.b32.xlu0 %v10899_v11, %s8339_s21  ;;  %v3753_v8 = vld [vmem:[#allocation5 + $0x530] sm:$0xff]  ;;  %v4899_v61 = vmax.f32 %v4844_v47, %v4876_v59  ;;  %v4592_v2 = vpop.f32.mrf.mxu0 }
 0x3ef   :  { %2683 = vst.msk [vmem:[#allocation5 + $0x560] sm:$0xff] %vm1343_vm5, %v2549_v41  ;;  %v3861_v21 = vpack.c.bf16 %v3753_v8, %v3750_v18  ;;  %v11168_v1 = vld [vmem:[#allocation3 + $0x82] sm:$0xff]  ;;  %v4593_v7 = vadd.f32 %v4592_v2, %v4304_v13 }
 0x3f0   :  { %v11170_v20 = vld [vmem:[#allocation3 + $0x81] sm:$0xff]  ;;  %v1264_v55 = vpop.permute.xlu0 %1263  ;;  %5231 = vrot.lane.b32.xlu1 %v11105_v19, %s8339_s21  ;;  %4965 = vst.msk [vmem:[#allocation3 + $0xb1] sm:$0xff] %vm742_vm3, %v4899_v61  ;;  %5636 = vst.msk [vmem:[#allocation6 + $0xa0] sm:$0xff] %vm742_vm3, %v11168_v1  ;;  %v8056_v13 = vpop.f32.mrf.mxu0 }
 0x3f1   :  { %5316 = vst.msk [vmem:[#allocation6 + $0xb0] sm:$0xff] %vm742_vm3, %v11170_v20  ;;  %4370 = vmatprep.mubr.bf16.mxu1 %v3861_v21  ;;  %v4737_v44 = vmax.f32 %v4593_v7, 0.0 }
 0x3f2   :  { %1400 = vst.msk [vmem:[#allocation5 + $0x540] sm:$0xff] %vm1343_vm5, %v1264_v55  ;;  %v1266_v11 = vpop.permute.xlu1 %1265  ;;  %5361 = vrot.lane.b32.xlu0 %v10967_v36, %s8340_s24  ;;  %v3749_v4 = vld [vmem:[#allocation5 + $0x510] sm:$0xff]  ;;  %v3752_v48 = vld [vmem:[#allocation5 + $0x528] sm:$0xff] }
 0x3f3   :  { %1401 = vst.msk [vmem:[#allocation5 + $0x558] sm:$0xff] %vm1343_vm5, %v1266_v11  ;;  %v3860_v15 = vpack.c.bf16 %v3752_v48, %v3749_v4 }
 0x3f4   :  { %v2932_v17 = vpop.permute.xlu0 %2931  ;;  %5363 = vrot.lane.b32.xlu1 %v11003_v53, %s8340_s24 }
 0x3f5   :  { %3067 = vst.msk [vmem:[#allocation5 + $0x548] sm:$0xff] %vm1728_vm6, %v2932_v17  ;;  %v4308_v28 = vpop.f32.mrf.mxu1  ;;  %4371 = vmatmul.mubr.bf16.gmra.mxu1 %v3860_v15 }
 0x3f6   :  { %v4309_v19 = vadd.f32 %v11189_v30, %v4308_v28  ;;  %v2934_v34 = vpop.permute.xlu1 %2933  ;;  %5041 = vrot.lane.b32.xlu0 %v10932_v16, %s8340_s24 }
 0x3f7   :  { %3068 = vst.msk [vmem:[#allocation5 + $0x560] sm:$0xff] %vm1728_vm6, %v2934_v34  ;;  %v4310_v43 = vpop.f32.mrf.mxu1  ;;  %v11200_v51 = vld [vmem:[#allocation3 + $0xb1] sm:$0xff] }
 0x3f8   :  { %v11202_v58 = vld [vmem:[#allocation3 + $0xb0] sm:$0xff]  ;;  %v4598_v49 = vadd.f32 %v8052_v62, %v4309_v19  ;;  %v1649_v5 = vpop.permute.xlu0 %1648  ;;  %5043 = vrot.lane.b32.xlu1 %v10965_v45, %s8340_s24  ;;  %5317 = vst.msk [vmem:[#allocation6 + $0xc8] sm:$0xff] %vm742_vm3, %v11200_v51 }
 0x3f9   :  { %4998 = vst.msk [vmem:[#allocation6 + $0xd8] sm:$0xff] %vm742_vm3, %v11202_v58  ;;  %v4311_v16 = vpop.f32.mrf.mxu1 }
 0x3fa   :  { %1785 = vst.msk [vmem:[#allocation5 + $0x540] sm:$0xff] %vm1728_vm6, %v1649_v5  ;;  %v4738_v63 = vmax.f32 %v4598_v49, 0.0  ;;  %v4312_v31 = vadd.f32 %v11189_v30, %v4311_v16  ;;  %v1651_v54 = vpop.permute.xlu1 %1650  ;;  %5458 = vrot.lane.b32.xlu0 %v5424_v3, %s8341_s30 }
 0x3fb   :  { %1786 = vst.msk [vmem:[#allocation5 + $0x558] sm:$0xff] %vm1728_vm6, %v1651_v54  ;;  %v4313_v45 = vpop.f32.mrf.mxu1 }
 0x3fc   :  { %v4782_v22 = vmax.f32 %v4736_v24, %v4738_v63  ;;  %v4601_v40 = vadd.f32 %v8053_v23, %v4312_v31  ;;  %v3316_v6 = vpop.permute.xlu0 %3315  ;;  %5460 = vrot.lane.b32.xlu1 %v11216_v50, %s8341_s30 }
 0x3fd   :  { %3451 = vst.msk [vmem:[#allocation5 + $0x548] sm:$0xff] %vm2113_vm7, %v3316_v6 }
 0x3fe   :  { %4814 = vst.msk [vmem:[#allocation4 + $0x90] sm:$0xff] %vm742_vm3, %v4782_v22  ;;  %v4739_v25 = vmax.f32 %v4601_v40, 0.0  ;;  %v3318_v57 = vpop.permute.xlu1 %3317  ;;  %5137 = vrot.lane.b32.xlu0 %v10930_v33, %s8341_s30 }
 0x3ff   :  { %3452 = vst.msk [vmem:[#allocation5 + $0x560] sm:$0xff] %vm2113_vm7, %v3318_v57 }
 0x400   :  { %v4783_v62 = vmax.f32 %v4737_v44, %v4739_v25  ;;  %v2034_v12 = vpop.permute.xlu0 %2033  ;;  %5139 = vrot.lane.b32.xlu1 %v10967_v36, %s8341_s30 }
 0x401   :  { %2170 = vst.msk [vmem:[#allocation5 + $0x540] sm:$0xff] %vm2113_vm7, %v2034_v12 }
 0x402   :  { %4815 = vst.msk [vmem:[#allocation4 + $0x98] sm:$0xff] %vm742_vm3, %v4783_v62  ;;  %v2036_v60 = vpop.permute.xlu1 %2035  ;;  %5554 = vrot.lane.b32.xlu0 %v11005_v39, %s8339_s21 }
 0x403   :  { %2171 = vst.msk [vmem:[#allocation5 + $0x558] sm:$0xff] %vm2113_vm7, %v2036_v60  ;;  %v5428_v60 = vld [vmem:[#allocation3 + $0x80] sm:$0xff] }
 0x404   :  { %v2551_v38 = vpop.permute.xlu0 %2550  ;;  %5556 = vrot.lane.b32.xlu1 %v11040_v42, %s8339_s21  ;;  %v3756_v36 = vld [vmem:[#allocation5 + $0x548] sm:$0xff] }
 0x405   :  { %2684 = vst.msk [vmem:[#allocation5 + $0x578] sm:$0xff] %vm1343_vm5, %v2551_v38  ;;  %v5429_v38 = vld [vmem:[#allocation3 + $0x90] sm:$0xff] }
 0x406   :  { %v2553_v33 = vpop.permute.xlu1 %2552  ;;  %5233 = vrot.lane.b32.xlu0 %v11117_v37, %s8339_s21  ;;  %v3759_v47 = vld [vmem:[#allocation5 + $0x560] sm:$0xff] }
 0x407   :  { %2685 = vst.msk [vmem:[#allocation5 + $0x590] sm:$0xff] %vm1343_vm5, %v2553_v33  ;;  %v3864_v59 = vpack.c.bf16 %v3759_v47, %v3756_v36 }
 0x408   :  { %v1268_v41 = vpop.permute.xlu0 %1267  ;;  %5235 = vrot.lane.b32.xlu1 %v5424_v3, %s8339_s21  ;;  %v3755_v52 = vld [vmem:[#allocation5 + $0x540] sm:$0xff]  ;;  %v4605_v3 = vpop.f32.mrf.mxu0 }
 0x409   :  { %1402 = vst.msk [vmem:[#allocation5 + $0x570] sm:$0xff] %vm1343_vm5, %v1268_v41  ;;  %4378 = vmatprep.mubr.bf16.mxu1 %v3864_v59  ;;  %v4846_v18 = vld [vmem:[#allocation4 + $0x90] ss:$2 sm:$0xff]  ;;  %v4878_v8 = vld [vmem:[#allocation4 + $0x91] ss:$2 sm:$0xff] }
 0x40a   :  { %v1270_v61 = vpop.permute.xlu1 %1269  ;;  %5365 = vrot.lane.b32.xlu0 %v11042_v29, %s8340_s24  ;;  %v3758_v21 = vld [vmem:[#allocation5 + $0x558] sm:$0xff]  ;;  %v4900_v37 = vmax.f32 %v4846_v18, %v4878_v8 }
 0x40b   :  { %1403 = vst.msk [vmem:[#allocation5 + $0x588] sm:$0xff] %vm1343_vm5, %v1270_v61  ;;  %v3863_v27 = vpack.c.bf16 %v3758_v21, %v3755_v52 }
 0x40c   :  { %v2936_v55 = vpop.permute.xlu0 %2935  ;;  %5367 = vrot.lane.b32.xlu1 %v11081_v10, %s8340_s24  ;;  %4966 = vst.msk [vmem:[#allocation3 + $0xc1] sm:$0xff] %vm742_vm3, %v4900_v37  ;;  %v4981_v37 = vld [vmem:[#allocation3 + $0xa0] sm:$0xff] }
 0x40d   :  { %3069 = vst.msk [vmem:[#allocation5 + $0x578] sm:$0xff] %vm1728_vm6, %v2936_v55  ;;  %v4316_v11 = vpop.f32.mrf.mxu1  ;;  %4379 = vmatmul.mubr.bf16.gmra.mxu1 %v3863_v27 }
 0x40e   :  { %v2938_v4 = vpop.permute.xlu1 %2937  ;;  %5045 = vrot.lane.b32.xlu0 %v11005_v39, %s8340_s24  ;;  %v4317_v24 = vadd.f32 %v11189_v30, %v4316_v11  ;;  %4997 = vst.msk [vmem:[#allocation6 + $0xc0] sm:$0xff] %vm742_vm3, %v4981_v37  ;;  %v5525_v11 = vld [vmem:[#allocation3 + $0x91] sm:$0xff] }
 0x40f   :  { %3070 = vst.msk [vmem:[#allocation5 + $0x590] sm:$0xff] %vm1728_vm6, %v2938_v4  ;;  %v4318_v48 = vpop.f32.mrf.mxu1 }
 0x410   :  { %v1653_v23 = vpop.permute.xlu0 %1652  ;;  %5047 = vrot.lane.b32.xlu1 %v11040_v42, %s8340_s24  ;;  %v4606_v22 = vadd.f32 %v4605_v3, %v4317_v24 }
 0x411   :  { %1787 = vst.msk [vmem:[#allocation5 + $0x570] sm:$0xff] %vm1728_vm6, %v1653_v23  ;;  %v4319_v15 = vpop.f32.mrf.mxu1 }
 0x412   :  { %v1655_v56 = vpop.permute.xlu1 %1654  ;;  %5462 = vrot.lane.b32.xlu0 %v11083_v32, %s8341_s30  ;;  %v4320_v40 = vadd.f32 %v11189_v30, %v4319_v15  ;;  %v4740_v33 = vmax.f32 %v4606_v22, 0.0 }
 0x413   :  { %1788 = vst.msk [vmem:[#allocation5 + $0x588] sm:$0xff] %vm1728_vm6, %v1655_v56  ;;  %v4321_v17 = vpop.f32.mrf.mxu1  ;;  %v11256_v28 = vld [vmem:[#allocation3 + $0xc2] sm:$0xff] }
 0x414   :  { %v11258_v39 = vld [vmem:[#allocation3 + $0xc0] sm:$0xff]  ;;  %v3320_v19 = vpop.permute.xlu0 %3319  ;;  %5464 = vrot.lane.b32.xlu1 %v11134_v26, %s8341_s30  ;;  %5638 = vst.msk [vmem:[#allocation6 + $0xd0] sm:$0xff] %vm742_vm3, %v11256_v28 }
 0x415   :  { %v11260_v0 = vld [vmem:[#allocation3 + $0xc1] sm:$0xff]  ;;  %4999 = vst.msk [vmem:[#allocation6 + $0xf0] sm:$0xff] %vm742_vm3, %v11258_v39 }
 0x416   :  { %5318 = vst.msk [vmem:[#allocation6 + $0xe0] sm:$0xff] %vm742_vm3, %v11260_v0  ;;  %v3322_v42 = vpop.permute.xlu1 %3321  ;;  %5141 = vrot.lane.b32.xlu0 %v11003_v53, %s8341_s30 }
 0x417   :  { %3453 = vst.msk [vmem:[#allocation5 + $0x578] sm:$0xff] %vm2113_vm7, %v3320_v19  ;;  %3454 = vst.msk [vmem:[#allocation5 + $0x590] sm:$0xff] %vm2113_vm7, %v3322_v42 }
 0x418   :  { %v2038_v34 = vpop.permute.xlu0 %2037  ;;  %5143 = vrot.lane.b32.xlu1 %v11042_v29, %s8341_s30 }
 0x419   :  { %2172 = vst.msk [vmem:[#allocation5 + $0x570] sm:$0xff] %vm2113_vm7, %v2038_v34 }
 0x41a   :  { %v2040_v2 = vpop.permute.xlu1 %2039  ;;  %5558 = vrot.lane.b32.xlu0 %v11085_v14, %s8339_s21 }
 0x41b   :  { %2173 = vst.msk [vmem:[#allocation5 + $0x588] sm:$0xff] %vm2113_vm7, %v2040_v2 }
 0x41c   :  { %v2555_v43 = vpop.permute.xlu0 %2554  ;;  %5560 = vrot.lane.b32.xlu1 %v11136_v46, %s8339_s21 }
 0x41d   :  { %2686 = vst.msk [vmem:[#allocation5 + $0x5a8] sm:$0xff] %vm1343_vm5, %v2555_v43 }
 0x41e   :  { %v2557_v53 = vpop.permute.xlu1 %2556  ;;  %5237 = vrot.lane.b32.xlu0 %v11216_v50, %s8339_s21  ;;  %v3762_v29 = vld [vmem:[#allocation5 + $0x578] sm:$0xff]  ;;  %v3765_v49 = vld [vmem:[#allocation5 + $0x590] sm:$0xff] }
 0x41f   :  { %2687 = vst.msk [vmem:[#allocation5 + $0x5c0] sm:$0xff] %vm1343_vm5, %v2557_v53  ;;  %v3867_v5 = vpack.c.bf16 %v3765_v49, %v3762_v29 }
 0x420   :  { %v1272_v16 = vpop.permute.xlu0 %1271  ;;  %5239 = vrot.lane.b32.xlu1 %v11083_v32, %s8339_s21  ;;  %v3761_v63 = vld [vmem:[#allocation5 + $0x570] sm:$0xff]  ;;  %v8057_v32 = vpop.f32.mrf.mxu0 }
 0x421   :  { %1404 = vst.msk [vmem:[#allocation5 + $0x5a0] sm:$0xff] %vm1343_vm5, %v1272_v16  ;;  %4386 = vmatprep.mubr.bf16.mxu1 %v3867_v5 }
 0x422   :  { %v1274_v7 = vpop.permute.xlu1 %1273  ;;  %5369 = vrot.lane.b32.xlu0 %v11138_v35, %s8340_s24  ;;  %v3764_v31 = vld [vmem:[#allocation5 + $0x588] sm:$0xff] }
 0x423   :  { %1405 = vst.msk [vmem:[#allocation5 + $0x5b8] sm:$0xff] %vm1343_vm5, %v1274_v7  ;;  %v3866_v54 = vpack.c.bf16 %v3764_v31, %v3761_v63  ;;  %v5109_v7 = vld [vmem:[#allocation3 + $0xa2] sm:$0xff] }
 0x424   :  { %v2940_v45 = vpop.permute.xlu0 %2939  ;;  %5371 = vrot.lane.b32.xlu1 %v11168_v1, %s8340_s24  ;;  %v4608_v1 = vpop.f32.mrf.mxu0 }
 0x425   :  { %3071 = vst.msk [vmem:[#allocation5 + $0x5a8] sm:$0xff] %vm1728_vm6, %v2940_v45  ;;  %v4324_v50 = vpop.f32.mrf.mxu1  ;;  %4387 = vmatmul.mubr.bf16.gmra.mxu1 %v3866_v54  ;;  %v4609_v36 = vadd.f32 %v4608_v1, %v4320_v40 }
 0x426   :  { %v4325_v6 = vadd.f32 %v11189_v30, %v4324_v50  ;;  %v2942_v44 = vpop.permute.xlu1 %2941  ;;  %5049 = vrot.lane.b32.xlu0 %v11085_v14, %s8340_s24 }
 0x427   :  { %3072 = vst.msk [vmem:[#allocation5 + $0x5c0] sm:$0xff] %vm1728_vm6, %v2942_v44  ;;  %v4326_v25 = vpop.f32.mrf.mxu1  ;;  %v4741_v61 = vmax.f32 %v4609_v36, 0.0  ;;  %v8060_v44 = vpop.f32.mrf.mxu0 }
 0x428   :  { %v4614_v57 = vadd.f32 %v8056_v13, %v4325_v6  ;;  %v1657_v62 = vpop.permute.xlu0 %1656  ;;  %5051 = vrot.lane.b32.xlu1 %v11136_v46, %s8340_s24  ;;  %v5013_v13 = vld [vmem:[#allocation3 + $0xa1] sm:$0xff] }
 0x429   :  { %1789 = vst.msk [vmem:[#allocation5 + $0x5a0] sm:$0xff] %vm1728_vm6, %v1657_v62  ;;  %v4327_v12 = vpop.f32.mrf.mxu1 }
 0x42a   :  { %v4742_v47 = vmax.f32 %v4614_v57, 0.0  ;;  %v4328_v59 = vadd.f32 %v11189_v30, %v4327_v12  ;;  %v1659_v14 = vpop.permute.xlu1 %1658  ;;  %5466 = vrot.lane.b32.xlu0 %v5428_v60, %s8341_s30  ;;  %v4621_v12 = vpop.f32.mrf.mxu0 }
 0x42b   :  { %1790 = vst.msk [vmem:[#allocation5 + $0x5b8] sm:$0xff] %vm1728_vm6, %v1659_v14  ;;  %v4329_v41 = vpop.f32.mrf.mxu1 }
 0x42c   :  { %v4784_v18 = vmax.f32 %v4740_v33, %v4742_v47  ;;  %v4617_v8 = vadd.f32 %v8057_v32, %v4328_v59  ;;  %v3324_v46 = vpop.permute.xlu0 %3323  ;;  %5468 = vrot.lane.b32.xlu1 %v5429_v38, %s8341_s30  ;;  %v5648_v59 = vld [vmem:[#allocation6 + $0x10] sm:$0xff] }
 0x42d   :  { %3455 = vst.msk [vmem:[#allocation5 + $0x5a8] sm:$0xff] %vm2113_vm7, %v3324_v46 }
 0x42e   :  { %4816 = vst.msk [vmem:[#allocation4 + $0xa0] sm:$0xff] %vm742_vm3, %v4784_v18  ;;  %v4743_v52 = vmax.f32 %v4617_v8, 0.0  ;;  %v3326_v21 = vpop.permute.xlu1 %3325  ;;  %5145 = vrot.lane.b32.xlu0 %v11081_v10, %s8341_s30 }
 0x42f   :  { %3456 = vst.msk [vmem:[#allocation5 + $0x5c0] sm:$0xff] %vm2113_vm7, %v3326_v21 }
 0x430   :  { %v4785_v27 = vmax.f32 %v4741_v61, %v4743_v52  ;;  %v2042_v55 = vpop.permute.xlu0 %2041  ;;  %5147 = vrot.lane.b32.xlu1 %v11138_v35, %s8341_s30 }
 0x431   :  { %2174 = vst.msk [vmem:[#allocation5 + $0x5a0] sm:$0xff] %vm2113_vm7, %v2042_v55  ;;  %v5657_v55 = vld [vmem:[#allocation6 + $0x58] sm:$0xff] }
 0x432   :  { %4817 = vst.msk [vmem:[#allocation4 + $0xa8] sm:$0xff] %vm742_vm3, %v4785_v27  ;;  %v2044_v4 = vpop.permute.xlu1 %2043  ;;  %5562 = vrot.lane.b32.xlu0 %v11170_v20, %s8339_s21  ;;  %v5333_v20 = vld [vmem:[#allocation3 + $0xb2] sm:$0xff] }
 0x433   :  { %2175 = vst.msk [vmem:[#allocation5 + $0x5b8] sm:$0xff] %vm2113_vm7, %v2044_v4 }
 0x434   :  { %v2559_v10 = vpop.permute.xlu0 %2558  ;;  %5564 = vrot.lane.b32.xlu1 %v5525_v11, %s8339_s21  ;;  %v3768_v35 = vld [vmem:[#allocation5 + $0x5a8] sm:$0xff] }
 0x435   :  { %2688 = vst.msk [vmem:[#allocation5 + $0x5d8] sm:$0xff] %vm1343_vm5, %v2559_v10  ;;  %v5663_v10 = vld [vmem:[#allocation6 + $0x88] sm:$0xff] }
 0x436   :  { %v2561_v48 = vpop.permute.xlu1 %2560  ;;  %5241 = vrot.lane.b32.xlu0 %v11134_v26, %s8339_s21  ;;  %v3771_v23 = vld [vmem:[#allocation5 + $0x5c0] sm:$0xff] }
 0x437   :  { %2689 = vst.msk [vmem:[#allocation5 + $0x5f0] sm:$0xff] %vm1343_vm5, %v2561_v48  ;;  %v3870_v15 = vpack.c.bf16 %v3771_v23, %v3768_v35 }
 0x438   :  { %v1276_v56 = vpop.permute.xlu0 %1275  ;;  %5243 = vrot.lane.b32.xlu1 %v5428_v60, %s8339_s21  ;;  %v3767_v34 = vld [vmem:[#allocation5 + $0x5a0] sm:$0xff]  ;;  %v5651_v60 = vld [vmem:[#allocation6 + $0x28] sm:$0xff] }
 0x439   :  { %1406 = vst.msk [vmem:[#allocation5 + $0x5d0] sm:$0xff] %vm1343_vm5, %v1276_v56  ;;  %4394 = vmatprep.mubr.bf16.mxu1 %v3870_v15  ;;  %v4848_v17 = vld [vmem:[#allocation4 + $0xa0] ss:$2 sm:$0xff]  ;;  %v4880_v19 = vld [vmem:[#allocation4 + $0xa1] ss:$2 sm:$0xff]  ;;  %v5696_v41 = vpack.c.bf16 %v5651_v60, %v5648_v59 }
 0x43a   :  { %v1278_v42 = vpop.permute.xlu1 %1277  ;;  %5373 = vrot.lane.b32.xlu0 %v5333_v20, %s8340_s24  ;;  %v3770_v2 = vld [vmem:[#allocation5 + $0x5b8] sm:$0xff]  ;;  %v4901_v26 = vmax.f32 %v4848_v17, %v4880_v19  ;;  %v5660_v19 = vld [vmem:[#allocation6 + $0x70] sm:$0xff] }
 0x43b   :  { %1407 = vst.msk [vmem:[#allocation5 + $0x5e8] sm:$0xff] %vm1343_vm5, %v1278_v42  ;;  %v3869_v43 = vpack.c.bf16 %v3770_v2, %v3767_v34 }
 0x43c   :  { %v2944_v53 = vpop.permute.xlu0 %2943  ;;  %5375 = vrot.lane.b32.xlu1 %v11256_v28, %s8340_s24  ;;  %4967 = vst.msk [vmem:[#allocation3 + $0xd1] sm:$0xff] %vm742_vm3, %v4901_v26  ;;  %v5702_v26 = vpack.c.bf16 %v5663_v10, %v5660_v19 }
 0x43d   :  { %3073 = vst.msk [vmem:[#allocation5 + $0x5d8] sm:$0xff] %vm1728_vm6, %v2944_v53  ;;  %v4332_v29 = vpop.f32.mrf.mxu1  ;;  %4395 = vmatmul.mubr.bf16.gmra.mxu1 %v3869_v43 }
 0x43e   :  { %v2946_v49 = vpop.permute.xlu1 %2945  ;;  %5053 = vrot.lane.b32.xlu0 %v5013_v13, %s8340_s24  ;;  %v4333_v38 = vadd.f32 %v11189_v30, %v4332_v29 }
 0x43f   :  { %3074 = vst.msk [vmem:[#allocation5 + $0x5f0] sm:$0xff] %vm1728_vm6, %v2946_v49  ;;  %v4334_v5 = vpop.f32.mrf.mxu1 }
 0x440   :  { %v1661_v16 = vpop.permute.xlu0 %1660  ;;  %5055 = vrot.lane.b32.xlu1 %v11200_v51, %s8340_s24  ;;  %v4622_v8 = vadd.f32 %v4621_v12, %v4333_v38  ;;  %v5666_v5 = vld [vmem:[#allocation6 + $0xa0] sm:$0xff] }
 0x441   :  { %1791 = vst.msk [vmem:[#allocation5 + $0x5d0] sm:$0xff] %vm1728_vm6, %v1661_v16  ;;  %v4335_v3 = vpop.f32.mrf.mxu1 }
 0x442   :  { %v1663_v24 = vpop.permute.xlu1 %1662  ;;  %5470 = vrot.lane.b32.xlu0 %v11258_v39, %s8341_s30  ;;  %v4336_v46 = vadd.f32 %v11189_v30, %v4335_v3  ;;  %v4744_v48 = vmax.f32 %v4622_v8, 0.0 }
 0x443   :  { %1792 = vst.msk [vmem:[#allocation5 + $0x5e8] sm:$0xff] %vm1728_vm6, %v1663_v24  ;;  %v4337_v63 = vpop.f32.mrf.mxu1  ;;  %v11342_v31 = vld [vmem:[#allocation3 + $0xd0] sm:$0xff]  ;;  %v5705_v24 = vpack.c.bf16 %v10739_v9, %v5666_v5 }
 0x444   :  { %v11344_v54 = vld [vmem:[#allocation3 + $0xd1] sm:$0xff]  ;;  %v3328_v32 = vpop.permute.xlu0 %3327  ;;  %5472 = vrot.lane.b32.xlu1 %v11342_v31, %s8341_s30  ;;  %5000 = vst.msk [vmem:[#allocation6 + $0x108] sm:$0xff] %vm742_vm3, %v11342_v31 }
 0x445   :  { %v11346_v45 = vld [vmem:[#allocation3 + $0xd2] sm:$0xff]  ;;  %5319 = vst.msk [vmem:[#allocation6 + $0xf8] sm:$0xff] %vm742_vm3, %v11344_v54 }
 0x446   :  { %5639 = vst.msk [vmem:[#allocation6 + $0xe8] sm:$0xff] %vm742_vm3, %v11346_v45  ;;  %v3330_v51 = vpop.permute.xlu1 %3329  ;;  %5149 = vrot.lane.b32.xlu0 %v5109_v7, %s8341_s30  ;;  %v5672_v7 = vld [vmem:[#allocation6 + $0xd0] sm:$0xff] }
 0x447   :  { %3457 = vst.msk [vmem:[#allocation5 + $0x5d8] sm:$0xff] %vm2113_vm7, %v3328_v32  ;;  %3458 = vst.msk [vmem:[#allocation5 + $0x5f0] sm:$0xff] %vm2113_vm7, %v3330_v51 }
 0x448   :  { %v2046_v50 = vpop.permute.xlu0 %2045  ;;  %5151 = vrot.lane.b32.xlu1 %v5333_v20, %s8341_s30  ;;  %v5654_v20 = vld [vmem:[#allocation6 + $0x40] sm:$0xff] }
 0x449   :  { %2176 = vst.msk [vmem:[#allocation5 + $0x5d0] sm:$0xff] %vm2113_vm7, %v2046_v50  ;;  %v5699_v17 = vpack.c.bf16 %v5657_v55, %v5654_v20 }
 0x44a   :  { %v2048_v22 = vpop.permute.xlu1 %2047  ;;  %5566 = vrot.lane.b32.xlu0 %v11260_v0, %s8339_s21 }
 0x44b   :  { %2177 = vst.msk [vmem:[#allocation5 + $0x5e8] sm:$0xff] %vm2113_vm7, %v2048_v22 }
 0x44c   :  { %v5358_v40 = vpop.permute.xlu0 %5357  ;;  %5568 = vrot.lane.b32.xlu1 %v11344_v54, %s8339_s21 }
 0x44d   :  { %5405 = vst.msk [vmem:[#allocation6 + $0x8] sm:$0xff] %vm1343_vm5, %v5358_v40  ;;  %v5675_v16 = vld [vmem:[#allocation6 + $0xe8] sm:$0xff] }
 0x44e   :  { %v3774_v6 = vld [vmem:[#allocation5 + $0x5d8] sm:$0xff]  ;;  %v5360_v25 = vpop.permute.xlu1 %5359  ;;  %5245 = vrot.lane.b32.xlu0 %v11202_v58, %s8339_s21  ;;  %v3777_v57 = vld [vmem:[#allocation5 + $0x5f0] sm:$0xff]  ;;  %v5708_v32 = vpack.c.bf16 %v5675_v16, %v5672_v7 }
 0x44f   :  { %5406 = vst.msk [vmem:[#allocation6 + $0x20] sm:$0xff] %vm1343_vm5, %v5360_v25  ;;  %v3873_v62 = vpack.c.bf16 %v3777_v57, %v3774_v6 }
 0x450   :  { %v5038_v1 = vpop.permute.xlu0 %5037  ;;  %5247 = vrot.lane.b32.xlu1 %v11258_v39, %s8339_s21  ;;  %v3773_v58 = vld [vmem:[#allocation5 + $0x5d0] sm:$0xff]  ;;  %v8061_v39 = vpop.f32.mrf.mxu0 }
 0x451   :  { %5085 = vst.msk [vmem:[#allocation6] sm:$0xff] %vm1343_vm5, %v5038_v1  ;;  %4402 = vmatprep.mubr.bf16.mxu1 %v3873_v62 }
 0x452   :  { %5377 = vrot.lane.b32.xlu0 %v11346_v45, %s8340_s24  ;;  %v5040_v33 = vpop.permute.xlu1 %5039  ;;  %v3776_v36 = vld [vmem:[#allocation5 + $0x5e8] sm:$0xff]  ;;  %v4624_v11 = vpop.f32.mrf.mxu0 }
 0x453   :  { %5086 = vst.msk [vmem:[#allocation6 + $0x18] sm:$0xff] %vm1343_vm5, %v5040_v33  ;;  %v3872_v47 = vpack.c.bf16 %v3776_v36, %v3773_v58  ;;  %v4625_v35 = vadd.f32 %v4624_v11, %v4336_v46 }
 0x454   :  { %v5455_v14 = vpop.permute.xlu0 %5454 }
 0x455   :  { %5502 = vst.msk [vmem:[#allocation6 + $0x8] sm:$0xff] %vm1728_vm6, %v5455_v14  ;;  %v4340_v18 = vpop.f32.mrf.mxu1  ;;  %4403 = vmatmul.mubr.bf16.gmra.mxu1 %v3872_v47  ;;  %v4745_v43 = vmax.f32 %v4625_v35, 0.0 }
 0x456   :  { %v4341_v61 = vadd.f32 %v11189_v30, %v4340_v18  ;;  %8082 = vmatprep.mubr.msk.bf16.mxu1 %vm742_vm3, %v5696_v41  ;;  %5057 = vrot.lane.b32.xlu0 %v11260_v0, %s8340_s24  ;;  %v5457_v52 = vpop.permute.xlu1 %5456 }
 0x457   :  { %5503 = vst.msk [vmem:[#allocation6 + $0x20] sm:$0xff] %vm1728_vm6, %v5457_v52  ;;  %v4342_v21 = vpop.f32.mrf.mxu1 }
 0x458   :  { %v4630_v37 = vadd.f32 %v8060_v44, %v4341_v61  ;;  %v5134_v27 = vpop.permute.xlu0 %5133 }
 0x459   :  { %5181 = vst.msk [vmem:[#allocation6] sm:$0xff] %vm1728_vm6, %v5134_v27  ;;  %v4343_v4 = vpop.f32.mrf.mxu1 }
 0x45a   :  { %v4746_v23 = vmax.f32 %v4630_v37, 0.0  ;;  %v4344_v15 = vadd.f32 %v11189_v30, %v4343_v4  ;;  %v5136_v56 = vpop.permute.xlu1 %5135  ;;  %v8064_v37 = vpop.f32.mrf.mxu0 }
 0x45b   :  { %5182 = vst.msk [vmem:[#allocation6 + $0x18] sm:$0xff] %vm1728_vm6, %v5136_v56  ;;  %v4345_v0 = vpop.f32.mrf.mxu1 }
 0x45c   :  { %v4786_v42 = vmax.f32 %v4744_v48, %v4746_v23  ;;  %v4633_v34 = vadd.f32 %v8061_v39, %v4344_v15  ;;  %v5551_v2 = vpop.permute.xlu0 %5550  ;;  %v4637_v4 = vpop.f32.mrf.mxu0 }
 0x45d   :  { %5598 = vst.msk [vmem:[#allocation6 + $0x8] sm:$0xff] %vm2113_vm7, %v5551_v2  ;;  %8083 = vmatmul.mubr.msk.bf16.vlgmr.msra.gmra.mxu1 %vm742_vm3, %v5699_v17 }
 0x45e   :  { %4818 = vst.msk [vmem:[#allocation4 + $0xb0] sm:$0xff] %vm742_vm3, %v4786_v42  ;;  %v4747_v13 = vmax.f32 %v4633_v34, 0.0  ;;  %8086 = vmatprep.mubr.msk.bf16.mxu1 %vm742_vm3, %v5702_v26  ;;  %v5553_v53 = vpop.permute.xlu1 %5552  ;;  %v8065_v20 = vpop.f32.mrf.mxu0 }
 0x45f   :  { %5599 = vst.msk [vmem:[#allocation6 + $0x20] sm:$0xff] %vm2113_vm7, %v5553_v53 }
 0x460   :  { %v4787_v29 = vmax.f32 %v4745_v43, %v4747_v13  ;;  %v5230_v49 = vpop.permute.xlu0 %5229  ;;  %v4640_v43 = vpop.f32.mrf.mxu0 }
 0x461   :  { %5277 = vst.msk [vmem:[#allocation6] sm:$0xff] %vm2113_vm7, %v5230_v49 }
 0x462   :  { %4819 = vst.msk [vmem:[#allocation4 + $0xb8] sm:$0xff] %vm742_vm3, %v4787_v29  ;;  %v5232_v3 = vpop.permute.xlu1 %5231 }
 0x463   :  { %5278 = vst.msk [vmem:[#allocation6 + $0x18] sm:$0xff] %vm2113_vm7, %v5232_v3 }
 0x464   :  { %v5362_v63 = vpop.permute.xlu0 %5361  ;;  %v5647_v50 = vld [vmem:[#allocation6 + $0x8] sm:$0xff] }
 0x465   :  { %5407 = vst.msk [vmem:[#allocation6 + $0x38] sm:$0xff] %vm1343_vm5, %v5362_v63  ;;  %8087 = vmatmul.mubr.msk.bf16.gmra.mxu1 %vm742_vm3, %v5705_v24 }
 0x466   :  { %8090 = vmatprep.mubr.msk.bf16.mxu1 %vm742_vm3, %v5708_v32  ;;  %v5364_v51 = vpop.permute.xlu1 %5363  ;;  %v5650_v22 = vld [vmem:[#allocation6 + $0x20] sm:$0xff] }
 0x467   :  { %5408 = vst.msk [vmem:[#allocation6 + $0x50] sm:$0xff] %vm1343_vm5, %v5364_v51  ;;  %v5695_v40 = vpack.c.bf16 %v5650_v22, %v5647_v50 }
 0x468   :  { %v5042_v6 = vpop.permute.xlu0 %5041  ;;  %v5646_v57 = vld [vmem:[#allocation6] sm:$0xff] }
 0x469   :  { %5087 = vst.msk [vmem:[#allocation6 + $0x30] sm:$0xff] %vm1343_vm5, %v5042_v6  ;;  %5925 = vmatprep.mubr.bf16.mxu0 %v5695_v40  ;;  %v4850_v9 = vld [vmem:[#allocation4 + $0xb0] ss:$2 sm:$0xff]  ;;  %v4882_v44 = vld [vmem:[#allocation4 + $0xb1] ss:$2 sm:$0xff] }
 0x46a   :  { %v5044_v25 = vpop.permute.xlu1 %5043  ;;  %v5649_v62 = vld [vmem:[#allocation6 + $0x18] sm:$0xff]  ;;  %v4902_v1 = vmax.f32 %v4850_v9, %v4882_v44 }
 0x46b   :  { %5088 = vst.msk [vmem:[#allocation6 + $0x48] sm:$0xff] %vm1343_vm5, %v5044_v25  ;;  %v5694_v12 = vpack.c.bf16 %v5649_v62, %v5646_v57 }
 0x46c   :  { %v5459_v60 = vpop.permute.xlu0 %5458  ;;  %4968 = vst.msk [vmem:[#allocation3 + $0xe1] sm:$0xff] %vm742_vm3, %v4902_v1 }
 0x46d   :  { %5504 = vst.msk [vmem:[#allocation6 + $0x38] sm:$0xff] %vm1728_vm6, %v5459_v60  ;;  %v4348_v38 = vpop.f32.mrf.mxu1  ;;  %5926 = vmatmul.mubr.bf16.vlgmr.msra.gmra.mxu0 %v5694_v12 }
 0x46e   :  { %v5461_v33 = vpop.permute.xlu1 %5460  ;;  %v4349_v10 = vadd.f32 %v11189_v30, %v4348_v38 }
 0x46f   :  { %5505 = vst.msk [vmem:[#allocation6 + $0x50] sm:$0xff] %vm1728_vm6, %v5461_v33  ;;  %v4350_v58 = vpop.f32.mrf.mxu1 }
 0x470   :  { %v5138_v36 = vpop.permute.xlu0 %5137 }
 0x471   :  { %5183 = vst.msk [vmem:[#allocation6 + $0x30] sm:$0xff] %vm1728_vm6, %v5138_v36  ;;  %v4351_v47 = vpop.f32.mrf.mxu1 }
 0x472   :  { %v5140_v59 = vpop.permute.xlu1 %5139  ;;  %v4352_v17 = vadd.f32 %v11189_v30, %v4351_v47 }
 0x473   :  { %5184 = vst.msk [vmem:[#allocation6 + $0x48] sm:$0xff] %vm1728_vm6, %v5140_v59  ;;  %v4353_v14 = vpop.f32.mrf.mxu1  ;;  %v11407_v41 = vld [vmem:[#allocation3 + $0xe0] sm:$0xff] }
 0x474   :  { %v11409_v39 = vld [vmem:[#allocation3 + $0xe2] sm:$0xff]  ;;  %5474 = vrot.lane.b32.xlu0 %v11407_v41, %s8341_s30  ;;  %v5555_v8 = vpop.permute.xlu0 %5554  ;;  %5001 = vst.msk [vmem:[#allocation6 + $0x120] sm:$0xff] %vm742_vm3, %v11407_v41  ;;  %v4641_v29 = vadd.f32 %v4640_v43, %v4352_v17 }
 0x475   :  { %v11411_v18 = vld [vmem:[#allocation3 + $0xe1] sm:$0xff]  ;;  %5379 = vrot.lane.b32.xlu1 %v11409_v39, %s8340_s24  ;;  %5640 = vst.msk [vmem:[#allocation6 + $0x100] sm:$0xff] %vm742_vm3, %v11409_v39 }
 0x476   :  { %5320 = vst.msk [vmem:[#allocation6 + $0x110] sm:$0xff] %vm742_vm3, %v11411_v18  ;;  %v5557_v46 = vpop.permute.xlu1 %5556  ;;  %v4749_v32 = vmax.f32 %v4641_v29, 0.0 }
 0x477   :  { %5600 = vst.msk [vmem:[#allocation6 + $0x38] sm:$0xff] %vm2113_vm7, %v5555_v8  ;;  %5601 = vst.msk [vmem:[#allocation6 + $0x50] sm:$0xff] %vm2113_vm7, %v5557_v46 }
 0x478   :  { %5153 = vrot.lane.b32.xlu0 %v11256_v28, %s8341_s30  ;;  %v5234_v61 = vpop.permute.xlu0 %5233 }
 0x479   :  { %5059 = vrot.lane.b32.xlu1 %v11344_v54, %s8340_s24  ;;  %5279 = vst.msk [vmem:[#allocation6 + $0x30] sm:$0xff] %vm2113_vm7, %v5234_v61 }
 0x47a   :  { %v5236_v52 = vpop.permute.xlu1 %5235 }
 0x47b   :  { %5280 = vst.msk [vmem:[#allocation6 + $0x48] sm:$0xff] %vm2113_vm7, %v5236_v52 }
 0x47c   :  { %5570 = vrot.lane.b32.xlu0 %v11411_v18, %s8339_s21  ;;  %v5366_v21 = vpop.permute.xlu0 %5365 }
 0x47d   :  { %5409 = vst.msk [vmem:[#allocation6 + $0x68] sm:$0xff] %vm1343_vm5, %v5366_v21 }
 0x47e   :  { %v5368_v27 = vpop.permute.xlu1 %5367  ;;  %v5653_v55 = vld [vmem:[#allocation6 + $0x38] sm:$0xff]  ;;  %v5656_v11 = vld [vmem:[#allocation6 + $0x50] sm:$0xff] }
 0x47f   :  { %5410 = vst.msk [vmem:[#allocation6 + $0x80] sm:$0xff] %vm1343_vm5, %v5368_v27  ;;  %v5698_v28 = vpack.c.bf16 %v5656_v11, %v5653_v55 }
 0x480   :  { %5249 = vrot.lane.b32.xlu0 %v11342_v31, %s8339_s21  ;;  %v5046_v54 = vpop.permute.xlu0 %5045  ;;  %v5652_v35 = vld [vmem:[#allocation6 + $0x30] sm:$0xff]  ;;  %v4638_v31 = vadd.f32 %v4637_v4, %v4349_v10 }
 0x481   :  { %5089 = vst.msk [vmem:[#allocation6 + $0x60] sm:$0xff] %vm1343_vm5, %v5046_v54  ;;  %5933 = vmatprep.mubr.bf16.mxu0 %v5698_v28 }
 0x482   :  { %v5048_v48 = vpop.permute.xlu1 %5047  ;;  %v5655_v23 = vld [vmem:[#allocation6 + $0x48] sm:$0xff]  ;;  %v4748_v53 = vmax.f32 %v4638_v31, 0.0 }
 0x483   :  { %5090 = vst.msk [vmem:[#allocation6 + $0x78] sm:$0xff] %vm1343_vm5, %v5048_v48  ;;  %v5697_v15 = vpack.c.bf16 %v5655_v23, %v5652_v35  ;;  %v5678_v48 = vld [vmem:[#allocation6 + $0x100] sm:$0xff] }
 0x484   :  { %v5463_v56 = vpop.permute.xlu0 %5462 }
 0x485   :  { %5506 = vst.msk [vmem:[#allocation6 + $0x68] sm:$0xff] %vm1728_vm6, %v5463_v56  ;;  %5934 = vmatmul.mubr.bf16.gmra.mxu0 %v5697_v15  ;;  %v8068_v56 = vpop.f32.mrf.mxu0 }
 0x486   :  { %v4356_v0 = vpop.f32.mrf.mxu1  ;;  %v5465_v42 = vpop.permute.xlu1 %5464 }
 0x487   :  { %v4357_v19 = vadd.f32 %v11189_v30, %v4356_v0  ;;  %5507 = vst.msk [vmem:[#allocation6 + $0x80] sm:$0xff] %vm1728_vm6, %v5465_v42  ;;  %v4653_v17 = vpop.f32.mrf.mxu0 }
 0x488   :  { %v4358_v34 = vpop.f32.mrf.mxu1  ;;  %v5142_v26 = vpop.permute.xlu0 %5141 }
 0x489   :  { %v4646_v2 = vadd.f32 %v8064_v37, %v4357_v19  ;;  %5185 = vst.msk [vmem:[#allocation6 + $0x60] sm:$0xff] %vm1728_vm6, %v5142_v26 }
 0x48a   :  { %v4359_v13 = vpop.f32.mrf.mxu1  ;;  %v5144_v16 = vpop.permute.xlu1 %5143 }
 0x48b   :  { %v4750_v49 = vmax.f32 %v4646_v2, 0.0  ;;  %v4360_v5 = vadd.f32 %v11189_v30, %v4359_v13  ;;  %5186 = vst.msk [vmem:[#allocation6 + $0x78] sm:$0xff] %vm1728_vm6, %v5144_v16  ;;  %v8069_v13 = vpop.f32.mrf.mxu0 }
 0x48c   :  { %v4361_v3 = vpop.f32.mrf.mxu1  ;;  %v5559_v63 = vpop.permute.xlu0 %5558 }
 0x48d   :  { %v4788_v24 = vmax.f32 %v4748_v53, %v4750_v49  ;;  %v4649_v7 = vadd.f32 %v8065_v20, %v4360_v5  ;;  %5602 = vst.msk [vmem:[#allocation6 + $0x68] sm:$0xff] %vm2113_vm7, %v5559_v63 }
 0x48e   :  { %v5561_v50 = vpop.permute.xlu1 %5560 }
 0x48f   :  { %4820 = vst.msk [vmem:[#allocation4 + $0xc0] sm:$0xff] %vm742_vm3, %v4788_v24  ;;  %v4751_v51 = vmax.f32 %v4649_v7, 0.0  ;;  %v4656_v7 = vpop.f32.mrf.mxu0 }
 0x490   :  { %5603 = vst.msk [vmem:[#allocation6 + $0x80] sm:$0xff] %vm2113_vm7, %v5561_v50  ;;  %v5238_v40 = vpop.permute.xlu0 %5237 }
 0x491   :  { %v4789_v22 = vmax.f32 %v4749_v32, %v4751_v51  ;;  %5281 = vst.msk [vmem:[#allocation6 + $0x60] sm:$0xff] %vm2113_vm7, %v5238_v40 }
 0x492   :  { %v5240_v6 = vpop.permute.xlu1 %5239 }
 0x493   :  { %4821 = vst.msk [vmem:[#allocation4 + $0xc8] sm:$0xff] %vm742_vm3, %v4789_v22 }
 0x494   :  { %5282 = vst.msk [vmem:[#allocation6 + $0x78] sm:$0xff] %vm2113_vm7, %v5240_v6  ;;  %v5370_v9 = vpop.permute.xlu0 %5369  ;;  %v5659_v25 = vld [vmem:[#allocation6 + $0x68] sm:$0xff] }
 0x495   :  { %5411 = vst.msk [vmem:[#allocation6 + $0x98] sm:$0xff] %vm1343_vm5, %v5370_v9 }
 0x496   :  { %v5372_v44 = vpop.permute.xlu1 %5371 }
 0x497   :  { %v5662_v57 = vld [vmem:[#allocation6 + $0x80] sm:$0xff]  ;;  %5412 = vst.msk [vmem:[#allocation6 + $0xb0] sm:$0xff] %vm1343_vm5, %v5372_v44 }
 0x498   :  { %v5701_v62 = vpack.c.bf16 %v5662_v57, %v5659_v25  ;;  %v5050_v1 = vpop.permute.xlu0 %5049  ;;  %v5658_v33 = vld [vmem:[#allocation6 + $0x60] sm:$0xff]  ;;  %v5629_v57 = vld [vmem:[#allocation3 + $0x132] sm:$0xff] }
 0x499   :  { %5091 = vst.msk [vmem:[#allocation6 + $0x90] sm:$0xff] %vm1343_vm5, %v5050_v1 }
 0x49a   :  { %5941 = vmatprep.mubr.bf16.mxu0 %v5701_v62  ;;  %v4852_v12 = vld [vmem:[#allocation4 + $0xc0] ss:$2 sm:$0xff]  ;;  %v4884_v60 = vld [vmem:[#allocation4 + $0xc1] ss:$2 sm:$0xff]  ;;  %v5052_v38 = vpop.permute.xlu1 %5051  ;;  %5645 = vst.msk [vmem:[#allocation6 + $0x178] sm:$0xff] %vm742_vm3, %v5629_v57 }
 0x49b   :  { %v5661_v58 = vld [vmem:[#allocation6 + $0x78] sm:$0xff]  ;;  %v4903_v36 = vmax.f32 %v4852_v12, %v4884_v60  ;;  %5092 = vst.msk [vmem:[#allocation6 + $0xa8] sm:$0xff] %vm1343_vm5, %v5052_v38 }
 0x49c   :  { %v5700_v47 = vpack.c.bf16 %v5661_v58, %v5658_v33  ;;  %v5467_v59 = vpop.permute.xlu0 %5466 }
 0x49d   :  { %4969 = vst.msk [vmem:[#allocation3 + $0xf1] sm:$0xff] %vm742_vm3, %v4903_v36 }
 0x49e   :  { %5508 = vst.msk [vmem:[#allocation6 + $0x98] sm:$0xff] %vm1728_vm6, %v5467_v59  ;;  %v4364_v14 = vpop.f32.mrf.mxu1  ;;  %5942 = vmatmul.mubr.bf16.gmra.mxu0 %v5700_v47  ;;  %v5469_v8 = vpop.permute.xlu1 %5468 }
 0x49f   :  { %5509 = vst.msk [vmem:[#allocation6 + $0xb0] sm:$0xff] %vm1728_vm6, %v5469_v8  ;;  %v4365_v19 = vadd.f32 %v11189_v30, %v4364_v14 }
 0x4a0   :  { %v4366_v46 = vpop.f32.mrf.mxu1  ;;  %v5146_v61 = vpop.permute.xlu0 %5145 }
 0x4a1   :  { %5187 = vst.msk [vmem:[#allocation6 + $0x90] sm:$0xff] %vm1728_vm6, %v5146_v61  ;;  %v4654_v29 = vadd.f32 %v4653_v17, %v4365_v19  ;;  %v11515_v36 = vld [vmem:[#allocation6 + $0x178] sm:$0xff] }
 0x4a2   :  { %v4367_v52 = vpop.f32.mrf.mxu1  ;;  %v5148_v21 = vpop.permute.xlu1 %5147  ;;  %6790 = vst.msk [vmem:[#allocation6 + $0x178] sm:$0xff] %vm742_vm3, %v5629_v57 }
 0x4a3   :  { %5188 = vst.msk [vmem:[#allocation6 + $0xa8] sm:$0xff] %vm1728_vm6, %v5148_v21  ;;  %v4752_v32 = vmax.f32 %v4654_v29, 0.0 }
 0x4a4   :  { %v4369_v37 = vpop.f32.mrf.mxu1  ;;  %v11462_v27 = vld [vmem:[#allocation3 + $0xf2] sm:$0xff]  ;;  %v5563_v28 = vpop.permute.xlu0 %5562 }
 0x4a5   :  { %v11464_v55 = vld [vmem:[#allocation3 + $0xf0] sm:$0xff]  ;;  %5381 = vrot.lane.b32.xlu0 %v11462_v27, %s8340_s24  ;;  %5641 = vst.msk [vmem:[#allocation6 + $0x118] sm:$0xff] %vm742_vm3, %v11462_v27 }
 0x4a6   :  { %v11466_v11 = vld [vmem:[#allocation3 + $0xf1] sm:$0xff]  ;;  %5476 = vrot.lane.b32.xlu1 %v11464_v55, %s8341_s30  ;;  %5002 = vst.msk [vmem:[#allocation6 + $0x138] sm:$0xff] %vm742_vm3, %v11464_v55  ;;  %v5565_v54 = vpop.permute.xlu1 %5564 }
 0x4a7   :  { %5321 = vst.msk [vmem:[#allocation6 + $0x128] sm:$0xff] %vm742_vm3, %v11466_v11 }
 0x4a8   :  { %5604 = vst.msk [vmem:[#allocation6 + $0x98] sm:$0xff] %vm2113_vm7, %v5563_v28  ;;  %5605 = vst.msk [vmem:[#allocation6 + $0xb0] sm:$0xff] %vm2113_vm7, %v5565_v54  ;;  %v5242_v4 = vpop.permute.xlu0 %5241 }
 0x4a9   :  { %5061 = vrot.lane.b32.xlu0 %v11411_v18, %s8340_s24  ;;  %5283 = vst.msk [vmem:[#allocation6 + $0x90] sm:$0xff] %vm2113_vm7, %v5242_v4 }
 0x4aa   :  { %5155 = vrot.lane.b32.xlu1 %v11346_v45, %s8341_s30  ;;  %v5244_v10 = vpop.permute.xlu1 %5243 }
 0x4ab   :  { %5284 = vst.msk [vmem:[#allocation6 + $0xa8] sm:$0xff] %vm2113_vm7, %v5244_v10 }
 0x4ac   :  { %v5681_v35 = vld [vmem:[#allocation6 + $0x118] sm:$0xff]  ;;  %v5374_v23 = vpop.permute.xlu0 %5373 }
 0x4ad   :  { %v5711_v15 = vpack.c.bf16 %v5681_v35, %v5678_v48  ;;  %5413 = vst.msk [vmem:[#allocation6 + $0xc8] sm:$0xff] %vm1343_vm5, %v5374_v23 }
 0x4ae   :  { %5572 = vrot.lane.b32.xlu1 %v11466_v11, %s8339_s21  ;;  %v5376_v18 = vpop.permute.xlu1 %5375 }
 0x4af   :  { %8091 = vmatmul.mubr.msk.bf16.gmra.mxu1 %vm742_vm3, %v5711_v15  ;;  %v5665_v20 = vld [vmem:[#allocation6 + $0x98] sm:$0xff]  ;;  %v5668_v45 = vld [vmem:[#allocation6 + $0xb0] sm:$0xff]  ;;  %5414 = vst.msk [vmem:[#allocation6 + $0xe0] sm:$0xff] %vm1343_vm5, %v5376_v18 }
 0x4b0   :  { %v5704_v0 = vpack.c.bf16 %v5668_v45, %v5665_v20  ;;  %v5054_v31 = vpop.permute.xlu0 %5053  ;;  %v5664_v34 = vld [vmem:[#allocation6 + $0x90] sm:$0xff] }
 0x4b1   :  { %5093 = vst.msk [vmem:[#allocation6 + $0xc0] sm:$0xff] %vm1343_vm5, %v5054_v31 }
 0x4b2   :  { %5251 = vrot.lane.b32.xlu1 %v11407_v41, %s8339_s21  ;;  %5949 = vmatprep.mubr.bf16.mxu0 %v5704_v0  ;;  %v5056_v42 = vpop.permute.xlu1 %5055  ;;  %v5667_v2 = vld [vmem:[#allocation6 + $0xa8] sm:$0xff]  ;;  %v11500_v41 = vld [vmem:[%s12190_s4] ss:$0 sm:$0xff] }
 0x4b3   :  { %5094 = vst.msk [vmem:[#allocation6 + $0xd8] sm:$0xff] %vm1343_vm5, %v5056_v42  ;;  %v5703_v26 = vpack.c.bf16 %v5667_v2, %v5664_v34  ;;  %v4368_v30 = vadd.f32 %v11500_v41, %v4367_v52 }
 0x4b4   :  { %v5471_v43 = vpop.permute.xlu0 %5470 }
 0x4b5   :  { %5510 = vst.msk [vmem:[#allocation6 + $0xc8] sm:$0xff] %vm1728_vm6, %v5471_v43  ;;  %v4372_v53 = vpop.f32.mrf.mxu1  ;;  %5950 = vmatmul.mubr.bf16.gmra.mxu0 %v5703_v26  ;;  %v4657_v51 = vadd.f32 %v4656_v7, %v4368_v30 }
 0x4b6   :  { %v4373_v49 = vadd.f32 %v11500_v41, %v4372_v53  ;;  %v5473_v5 = vpop.permute.xlu1 %5472 }
 0x4b7   :  { %5511 = vst.msk [vmem:[#allocation6 + $0xe0] sm:$0xff] %vm1728_vm6, %v5473_v5  ;;  %v4374_v16 = vpop.f32.mrf.mxu1  ;;  %v4753_v62 = vmax.f32 %v4657_v51, 0.0  ;;  %v8246_v51 = vld [vmem:[%s12192_s7 + $0x88] sm:$0xff]  }
 0x4b8   :  { %v4662_v3 = vadd.f32 %v8068_v56, %v4373_v49  ;;  %v5150_v24 = vpop.permute.xlu0 %5149  ;;  %v8072_v56 = vpop.f32.mrf.mxu0  ;;  %8098 = vmatprep.subr.bf16.mxu1 %v8246_v51 }
 0x4b9   :  { %5189 = vst.msk [vmem:[#allocation6 + $0xc0] sm:$0xff] %vm1728_vm6, %v5150_v24  ;;  %v4375_v63 = vpop.f32.mrf.mxu1  ;;  %8099 = vmatpush3.bf16.msra.mxu1 %v8246_v51 }
 0x4ba   :  { %v4754_v50 = vmax.f32 %v4662_v3, 0.0  ;;  %v4376_v22 = vadd.f32 %v11500_v41, %v4375_v63  ;;  %v5152_v40 = vpop.permute.xlu1 %5151  ;;  %v4669_v18 = vpop.f32.mrf.mxu0 }
 0x4bb   :  { %5190 = vst.msk [vmem:[#allocation6 + $0xd8] sm:$0xff] %vm1728_vm6, %v5152_v40  ;;  %v4377_v6 = vpop.f32.mrf.mxu1 }
 0x4bc   :  { %v4790_v9 = vmax.f32 %v4752_v32, %v4754_v50  ;;  %v4665_v44 = vadd.f32 %v8069_v13, %v4376_v22  ;;  %v5567_v25 = vpop.permute.xlu0 %5566  ;;  %v8073_v45 = vpop.f32.mrf.mxu0  ;;  %v8247_v50 = vld [vmem:[%s12192_s7 + $0x80] sm:$0xff]  }
 0x4bd   :  { %5606 = vst.msk [vmem:[#allocation6 + $0xc8] sm:$0xff] %vm2113_vm7, %v5567_v25  ;;  %8100 = vmatprep.subr.bf16.mxu1 %v8247_v50 }
 0x4be   :  { %4822 = vst.msk [vmem:[#allocation4 + $0xd0] sm:$0xff] %vm742_vm3, %v4790_v9  ;;  %v4755_v1 = vmax.f32 %v4665_v44, 0.0  ;;  %v5569_v12 = vpop.permute.xlu1 %5568  ;;  %v4672_v2 = vpop.f32.mrf.mxu0  ;;  %8101 = vmatpush3.bf16.msra.mxu1 %v8247_v50 }
 0x4bf   :  { %5607 = vst.msk [vmem:[#allocation6 + $0xe0] sm:$0xff] %vm2113_vm7, %v5569_v12 }
 0x4c0   :  { %v4791_v60 = vmax.f32 %v4753_v62, %v4755_v1  ;;  %v5246_v38 = vpop.permute.xlu0 %5245 }
 0x4c1   :  { %5285 = vst.msk [vmem:[#allocation6 + $0xc0] sm:$0xff] %vm2113_vm7, %v5246_v38 }
 0x4c2   :  { %4823 = vst.msk [vmem:[#allocation4 + $0xd8] sm:$0xff] %vm742_vm3, %v4791_v60  ;;  %v5248_v33 = vpop.permute.xlu1 %5247  ;;  %v8076_v60 = vpop.f32.mrf.mxu0 }
 0x4c3   :  { %5286 = vst.msk [vmem:[#allocation6 + $0xd8] sm:$0xff] %vm2113_vm7, %v5248_v33 }
 0x4c4   :  { %v5378_v58 = vpop.permute.xlu0 %5377  ;;  %v5671_v47 = vld [vmem:[#allocation6 + $0xc8] sm:$0xff] }
 0x4c5   :  { %5415 = vst.msk [vmem:[#allocation6 + $0xf8] sm:$0xff] %vm1343_vm5, %v5378_v58 }
 0x4c6   :  { %v5674_v59 = vld [vmem:[#allocation6 + $0xe0] sm:$0xff] }
 0x4c7   :  { %v5707_v14 = vpack.c.bf16 %v5674_v59, %v5671_v47  ;;  %v4685_v47 = vpop.f32.mrf.mxu0 }
 0x4c8   :  { %v5058_v8 = vpop.permute.xlu0 %5057  ;;  %v5670_v52 = vld [vmem:[#allocation6 + $0xc0] sm:$0xff] }
 0x4c9   :  { %5095 = vst.msk [vmem:[#allocation6 + $0xf0] sm:$0xff] %vm1343_vm5, %v5058_v8  ;;  %5957 = vmatprep.mubr.bf16.mxu0 %v5707_v14  ;;  %v4854_v46 = vld [vmem:[#allocation4 + $0xd0] ss:$2 sm:$0xff]  ;;  %v4886_v61 = vld [vmem:[#allocation4 + $0xd1] ss:$2 sm:$0xff]  ;;  %v8077_v14 = vpop.f32.mrf.mxu0 }
 0x4ca   :  { %v5673_v21 = vld [vmem:[#allocation6 + $0xd8] sm:$0xff]  ;;  %v4904_v37 = vmax.f32 %v4854_v46, %v4886_v61 }
 0x4cb   :  { %v5706_v28 = vpack.c.bf16 %v5673_v21, %v5670_v52 }
 0x4cc   :  { %4970 = vst.msk [vmem:[#allocation3 + $0x101] sm:$0xff] %vm742_vm3, %v4904_v37  ;;  %v4688_v37 = vpop.f32.mrf.mxu0 }
 0x4cd   :  { %v4380_v54 = vpop.f32.mrf.mxu1  ;;  %5958 = vmatmul.mubr.bf16.gmra.mxu0 %v5706_v28 }
 0x4ce   :  { %v4381_v20 = vadd.f32 %v11500_v41, %v4380_v54 }
 0x4cf   :  { %v4382_v4 = vpop.f32.mrf.mxu1 }
 0x4d0   :  { %v4670_v31 = vadd.f32 %v4669_v18, %v4381_v20 }
 0x4d1   :  { %v4383_v10 = vpop.f32.mrf.mxu1 }
 0x4d2   :  { %v4384_v17 = vadd.f32 %v11500_v41, %v4383_v10  ;;  %v4756_v26 = vmax.f32 %v4670_v31, 0.0 }
 0x4d3   :  { %v4385_v48 = vpop.f32.mrf.mxu1  ;;  %v11521_v35 = vld [vmem:[#allocation3 + $0x100] sm:$0xff] }
 0x4d4   :  { %v11523_v23 = vld [vmem:[#allocation3 + $0x102] sm:$0xff]  ;;  %5478 = vrot.lane.b32.xlu0 %v11521_v35, %s8341_s30  ;;  %5003 = vst.msk [vmem:[#allocation6 + $0x150] sm:$0xff] %vm742_vm3, %v11521_v35  ;;  %v4673_v43 = vadd.f32 %v4672_v2, %v4384_v17 }
 0x4d5   :  { %v11525_v15 = vld [vmem:[#allocation3 + $0x101] sm:$0xff]  ;;  %5383 = vrot.lane.b32.xlu1 %v11523_v23, %s8340_s24  ;;  %5642 = vst.msk [vmem:[#allocation6 + $0x130] sm:$0xff] %vm742_vm3, %v11523_v23 }
 0x4d6   :  { %5322 = vst.msk [vmem:[#allocation6 + $0x140] sm:$0xff] %vm742_vm3, %v11525_v15  ;;  %v4757_v3 = vmax.f32 %v4673_v43, 0.0 }
 0x4d8   :  { %5157 = vrot.lane.b32.xlu0 %v11409_v39, %s8341_s30 }
 0x4d9   :  { %5063 = vrot.lane.b32.xlu1 %v11466_v11, %s8340_s24 }
 0x4dc   :  { %5574 = vrot.lane.b32.xlu0 %v11525_v15, %s8339_s21  ;;  %v5684_v38 = vld [vmem:[#allocation6 + $0x130] sm:$0xff] }
 0x4e0   :  { %5253 = vrot.lane.b32.xlu0 %v11464_v55, %s8339_s21 }
 0x4e5   :  { %v4388_v0 = vpop.f32.mrf.mxu1 }
 0x4e6   :  { %v4389_v39 = vadd.f32 %v11500_v41, %v4388_v0  ;;  %v5475_v19 = vpop.permute.xlu0 %5474 }
 0x4e7   :  { %v5380_v42 = vpop.permute.xlu1 %5379  ;;  %5512 = vst.msk [vmem:[#allocation6 + $0xf8] sm:$0xff] %vm1728_vm6, %v5475_v19  ;;  %v4390_v11 = vpop.f32.mrf.mxu1 }
 0x4e8   :  { %5416 = vst.msk [vmem:[#allocation6 + $0x110] sm:$0xff] %vm1343_vm5, %v5380_v42  ;;  %v4678_v34 = vadd.f32 %v8072_v56, %v4389_v39 }
 0x4e9   :  { %v4391_v55 = vpop.f32.mrf.mxu1 }
 0x4ea   :  { %v4758_v13 = vmax.f32 %v4678_v34, 0.0  ;;  %v4392_v53 = vadd.f32 %v11500_v41, %v4391_v55  ;;  %v5154_v29 = vpop.permute.xlu0 %5153 }
 0x4eb   :  { %v5060_v30 = vpop.permute.xlu1 %5059  ;;  %5191 = vst.msk [vmem:[#allocation6 + $0xf0] sm:$0xff] %vm1728_vm6, %v5154_v29  ;;  %v4393_v49 = vpop.f32.mrf.mxu1 }
 0x4ec   :  { %5096 = vst.msk [vmem:[#allocation6 + $0x108] sm:$0xff] %vm1343_vm5, %v5060_v30  ;;  %v4792_v5 = vmax.f32 %v4756_v26, %v4758_v13  ;;  %v4681_v16 = vadd.f32 %v8073_v45, %v4392_v53 }
 0x4ee   :  { %4824 = vst.msk [vmem:[#allocation4 + $0xe0] sm:$0xff] %vm742_vm3, %v4792_v5  ;;  %v4759_v24 = vmax.f32 %v4681_v16, 0.0  ;;  %v5571_v7 = vpop.permute.xlu0 %5570  ;;  %v11607_v5 = vld [vmem:[%s12193_s6] ss:$0 sm:$0xff] }
 0x4ef   :  { %5608 = vst.msk [vmem:[#allocation6 + $0xf8] sm:$0xff] %vm2113_vm7, %v5571_v7 }
 0x4f0   :  { %v4793_v63 = vmax.f32 %v4757_v3, %v4759_v24 }
 0x4f2   :  { %4825 = vst.msk [vmem:[#allocation4 + $0xe8] sm:$0xff] %vm742_vm3, %v4793_v63  ;;  %v5250_v32 = vpop.permute.xlu0 %5249 }
 0x4f3   :  { %5287 = vst.msk [vmem:[#allocation6 + $0xf0] sm:$0xff] %vm2113_vm7, %v5250_v32 }
 0x4f6   :  { %v5677_v42 = vld [vmem:[#allocation6 + $0xf8] sm:$0xff] }
 0x4f9   :  { %v4856_v22 = vld [vmem:[#allocation4 + $0xe0] ss:$2 sm:$0xff]  ;;  %v4888_v40 = vld [vmem:[#allocation4 + $0xe1] ss:$2 sm:$0xff] }
 0x4fa   :  { %v4905_v6 = vmax.f32 %v4856_v22, %v4888_v40  ;;  %v5676_v26 = vld [vmem:[#allocation6 + $0xf0] sm:$0xff] }
 0x4fc   :  { %4971 = vst.msk [vmem:[#allocation3 + $0x111] sm:$0xff] %vm742_vm3, %v4905_v6 }
 0x4fd   :  { %v4396_v9 = vpop.f32.mrf.mxu1 }
 0x4fe   :  { %v4397_v59 = vadd.f32 %v11500_v41, %v4396_v9 }
 0x4ff   :  { %v4398_v44 = vpop.f32.mrf.mxu1 }
 0x500   :  { %v4686_v46 = vadd.f32 %v4685_v47, %v4397_v59 }
 0x501   :  { %v4399_v25 = vpop.f32.mrf.mxu1 }
 0x502   :  { %v4760_v10 = vmax.f32 %v4686_v46, 0.0 }
 0x503   :  { %v4401_v57 = vpop.f32.mrf.mxu1  ;;  %v11564_v62 = vld [vmem:[#allocation3 + $0x112] sm:$0xff] }
 0x504   :  { %v11566_v1 = vld [vmem:[#allocation3 + $0x110] sm:$0xff]  ;;  %5385 = vrot.lane.b32.xlu0 %v11564_v62, %s8340_s24  ;;  %5643 = vst.msk [vmem:[#allocation6 + $0x148] sm:$0xff] %vm742_vm3, %v11564_v62 }
 0x505   :  { %v11568_v12 = vld [vmem:[#allocation3 + $0x111] sm:$0xff]  ;;  %5480 = vrot.lane.b32.xlu1 %v11566_v1, %s8341_s30  ;;  %5004 = vst.msk [vmem:[#allocation6 + $0x168] sm:$0xff] %vm742_vm3, %v11566_v1 }
 0x506   :  { %5323 = vst.msk [vmem:[#allocation6 + $0x158] sm:$0xff] %vm742_vm3, %v11568_v12 }
 0x508   :  { %5065 = vrot.lane.b32.xlu0 %v11525_v15, %s8340_s24 }
 0x509   :  { %5159 = vrot.lane.b32.xlu1 %v11462_v27, %s8341_s30  ;;  %v4400_v27 = vadd.f32 %v11500_v41, %v4399_v25 }
 0x50b   :  { %v5687_v33 = vld [vmem:[#allocation6 + $0x148] sm:$0xff]  ;;  %v4689_v48 = vadd.f32 %v4688_v37, %v4400_v27 }
 0x50c   :  { %v5714_v58 = vpack.c.bf16 %v5687_v33, %v5684_v38  ;;  %v8252_v37 = vld [vmem:[%s12192_s7 + $0x68] sm:$0xff]  }
 0x50d   :  { %5576 = vrot.lane.b32.xlu1 %v11568_v12, %s8339_s21  ;;  %v4761_v31 = vmax.f32 %v4689_v48, 0.0  ;;  %v8254_v48 = vld [vmem:[%s12192_s7 + $0x60] sm:$0xff]  }
 0x50e   :  { %8094 = vmatprep.mubr.msk.bf16.mxu1 %vm742_vm3, %v5714_v58  ;;  %v6119_v58 = vld [vmem:[#allocation3] sm:$0xff] }
 0x50f   :  { %6135 = vst.msk [vmem:[#allocation6] sm:$0xff] %vm742_vm3, %v6119_v58 }
 0x511   :  { %5255 = vrot.lane.b32.xlu1 %v11521_v35, %s8339_s21 }
 0x515   :  { %v4404_v8 = vpop.f32.mrf.mxu1 }
 0x516   :  { %v4405_v61 = vadd.f32 %v11500_v41, %v4404_v8  ;;  %v8250_v8 = vld [vmem:[%s12192_s7 + $0x70] sm:$0xff]  }
 0x517   :  { %v5382_v52 = vpop.permute.xlu0 %5381  ;;  %v4406_v28 = vpop.f32.mrf.mxu1 }
 0x518   :  { %v5477_v21 = vpop.permute.xlu1 %5476  ;;  %5417 = vst.msk [vmem:[#allocation6 + $0x128] sm:$0xff] %vm1343_vm5, %v5382_v52  ;;  %v4694_v54 = vadd.f32 %v8076_v60, %v4405_v61  ;;  %v11622_v60 = vld [vmem:[#allocation3 + $0x130] sm:$0xff] }
 0x519   :  { %5513 = vst.msk [vmem:[#allocation6 + $0x110] sm:$0xff] %vm1728_vm6, %v5477_v21  ;;  %v4407_v4 = vpop.f32.mrf.mxu1  ;;  %v8251_v61 = vld [vmem:[%s12192_s7 + $0x30] sm:$0xff]   ;;  %v6151_v21 = vld [vmem:[#allocation3 + $0x1] sm:$0xff] }
 0x51a   :  { %v4762_v35 = vmax.f32 %v4694_v54, 0.0  ;;  %v4408_v15 = vadd.f32 %v11500_v41, %v4407_v4 }
 0x51b   :  { %v5062_v56 = vpop.permute.xlu0 %5061  ;;  %v4409_v20 = vpop.f32.mrf.mxu1 }
 0x51c   :  { %v5156_v18 = vpop.permute.xlu1 %5155  ;;  %5097 = vst.msk [vmem:[#allocation6 + $0x120] sm:$0xff] %vm1343_vm5, %v5062_v56  ;;  %v4794_v45 = vmax.f32 %v4760_v10, %v4762_v35  ;;  %v4697_v0 = vadd.f32 %v8077_v14, %v4408_v15  ;;  %v11646_v14 = vld [vmem:[#allocation3 + $0x131] sm:$0xff]  ;;  %v8253_v10 = vld [vmem:[%s12192_s7 + $0x28] sm:$0xff]  }
 0x51d   :  { %5192 = vst.msk [vmem:[#allocation6 + $0x108] sm:$0xff] %vm1728_vm6, %v5156_v18  ;;  %v11601_v53 = vpop.f32.mrf.mxu1 }
 0x51e   :  { %4826 = vst.msk [vmem:[#allocation4 + $0xf0] sm:$0xff] %vm742_vm3, %v4794_v45  ;;  %v4763_v17 = vmax.f32 %v4697_v0, 0.0  ;;  %v8255_v0 = vld [vmem:[%s12192_s7 + $0x20] sm:$0xff]  }
 0x51f   :  { %v6024_v49 = vpop.f32.mrf.mxu1 }
 0x520   :  { %v5573_v39 = vpop.permute.xlu1 %5572  ;;  %v4795_v19 = vmax.f32 %v4761_v31, %v4763_v17  ;;  %v8256_v31 = vld [vmem:[%s12192_s7 + $0x58] sm:$0xff]  }
 0x521   :  { %5609 = vst.msk [vmem:[#allocation6 + $0x110] sm:$0xff] %vm2113_vm7, %v5573_v39  ;;  %v11610_v63 = vpop.f32.mrf.mxu1 }
 0x522   :  { %4827 = vst.msk [vmem:[#allocation4 + $0xf8] sm:$0xff] %vm742_vm3, %v4795_v19  ;;  %v6247_v19 = vld [vmem:[#allocation3 + $0x2] sm:$0xff] }
 0x523   :  { %v6027_v25 = vpop.f32.mrf.mxu1 }
 0x524   :  { %v5252_v41 = vpop.permute.xlu1 %5251 }
 0x525   :  { %5288 = vst.msk [vmem:[#allocation6 + $0x108] sm:$0xff] %vm2113_vm7, %v5252_v41 }
 0x528   :  { %v5680_v11 = vld [vmem:[#allocation6 + $0x110] sm:$0xff] }
 0x529   :  { %v5710_v34 = vpack.c.bf16 %v5680_v11, %v5677_v42  ;;  %v4858_v2 = vld [vmem:[#allocation4 + $0xf0] ss:$2 sm:$0xff]  ;;  %v4890_v55 = vld [vmem:[#allocation4 + $0xf1] ss:$2 sm:$0xff] }
 0x52a   :  { %v4906_v13 = vmax.f32 %v4858_v2, %v4890_v55  ;;  %v8258_v2 = vld [vmem:[%s12192_s7 + $0x50] sm:$0xff]  }
 0x52b   :  { %5965 = vmatprep.mubr.bf16.mxu0 %v5710_v34  ;;  %v8257_v34 = vld [vmem:[%s12192_s7 + $0x18] sm:$0xff]  }
 0x52c   :  { %v5679_v43 = vld [vmem:[#allocation6 + $0x108] sm:$0xff]  ;;  %4972 = vst.msk [vmem:[#allocation3 + $0x121] sm:$0xff] %vm742_vm3, %v4906_v13  ;;  %v8259_v13 = vld [vmem:[%s12192_s7 + $0x10] sm:$0xff]  }
 0x52d   :  { %v5709_v29 = vpack.c.bf16 %v5679_v43, %v5676_v26  ;;  %v7800_v30 = vpop.f32.mrf.mxu0 }
 0x52f   :  { %5966 = vmatmul.mubr.bf16.gmra.mxu0 %v5709_v29  ;;  %v7801_v16 = vpop.f32.mrf.mxu0 }
 0x530   :  { %v7802_v3 = vadd.f32 %v7801_v16, %v7800_v30  ;;  %v8261_v16 = vld [vmem:[%s12192_s7 + $0x8] sm:$0xff]  }
 0x531   :  { %v7803_v24 = vpop.f32.mrf.mxu0 }
 0x532   :  { %v5928_v7 = vadd.f32 %v7802_v3, %v11607_v5  ;;  %v8262_v3 = vld [vmem:[%s12192_s7 + $0x40] sm:$0xff]  }
 0x533   :  { %v7804_v32 = vpop.f32.mrf.mxu0  ;;  %v5436_v51 = vld [vmem:[#allocation3 + $0x120] sm:$0xff] }
 0x534   :  { %v5340_v50 = vld [vmem:[#allocation3 + $0x122] sm:$0xff]  ;;  %v6025_v40 = vadd.f32 %v6024_v49, %v5928_v7  ;;  %v7805_v6 = vadd.f32 %v7804_v32, %v7803_v24  ;;  %5482 = vrot.lane.b32.xlu0 %v5436_v51, %s8341_s30  ;;  %v11736_v24 = vpop.f32.mrf.mxu1 }
 0x535   :  { %v5532_v22 = vld [vmem:[#allocation3 + $0x121] sm:$0xff]  ;;  %5387 = vrot.lane.b32.xlu1 %v5340_v50, %s8340_s24  ;;  %5644 = vst.msk [vmem:[#allocation6 + $0x160] sm:$0xff] %vm742_vm3, %v5340_v50 }
 0x536   :  { %5324 = vst.msk [vmem:[#allocation6 + $0x170] sm:$0xff] %vm742_vm3, %v5532_v22  ;;  %v6087_v9 = vmax.f32 %v6025_v40, 0.0  ;;  %v5931_v44 = vadd.f32 %v7805_v6, %v11607_v5 }
 0x538   :  { %6103 = vst.msk [vmem:[#allocation3 + $0x11] sm:$0xff] %vm742_vm3, %v6087_v9  ;;  %v6028_v57 = vadd.f32 %v6027_v25, %v5931_v44  ;;  %5161 = vrot.lane.b32.xlu0 %v11523_v23, %s8341_s30  ;;  %v8248_v23 = vld [vmem:[%s12192_s7 + $0x78] sm:$0xff]  }
 0x539   :  { %5067 = vrot.lane.b32.xlu1 %v11568_v12, %s8340_s24  ;;  %7858 = vmatprep.subr.bf16.mxu0 %v8248_v23 }
 0x53a   :  { %v6088_v38 = vmax.f32 %v6028_v57, 0.0 }
 0x53c   :  { %v5690_v33 = vld [vmem:[#allocation6 + $0x160] sm:$0xff]  ;;  %6104 = vst.msk [vmem:[#allocation3 + $0x21] sm:$0xff] %vm742_vm3, %v6088_v38  ;;  %5578 = vrot.lane.b32.xlu0 %v5532_v22, %s8339_s21  ;;  %v6040_v22 = vpop.f32.mrf.mxu1 }
 0x53d   :  { %5484 = vrot.lane.b32.xlu1 %v11622_v60, %s8341_s30  ;;  %v5717_v47 = vpack.c.bf16 %v11515_v36, %v5690_v33  ;;  %v8249_v36 = vld [vmem:[%s12192_s7 + $0x38] sm:$0xff]  }
 0x53e   :  { %7859 = vmatpush3.bf16.msra.mxu0 %v8249_v36  ;;  %v8089_v33 = vpop.f32.mrf.mxu1 }
 0x53f   :  { %8095 = vmatmul.mubr.msk.bf16.gmra.mxu1 %vm742_vm3, %v5717_v47  ;;  %v6152_v12 = vld [vmem:[#allocation3 + $0x11] sm:$0xff]  ;;  %7860 = vmatprep.subr.bf16.mxu0 %v8250_v8 }
 0x540   :  { %v11634_v59 = vld [vmem:[#allocation3 + $0x10] sm:$0xff]  ;;  %5257 = vrot.lane.b32.xlu0 %v11566_v1, %s8339_s21  ;;  %6455 = vst.msk [vmem:[#allocation6 + $0x8] sm:$0xff] %vm742_vm3, %v6152_v12  ;;  %v6043_v36 = vpop.f32.mrf.mxu1 }
 0x541   :  { %5163 = vrot.lane.b32.xlu1 %v11564_v62, %s8341_s30  ;;  %6136 = vst.msk [vmem:[#allocation6 + $0x18] sm:$0xff] %vm742_vm3, %v11634_v59  ;;  %v11651_v46 = vld [vmem:[#allocation3 + $0x12] sm:$0xff] }
 0x542   :  { %7861 = vmatpush3.bf16.msra.mxu0 %v8251_v61 }
 0x543   :  { %v11653_v1 = vld [vmem:[#allocation3 + $0x22] sm:$0xff]  ;;  %7862 = vmatprep.subr.bf16.mxu0 %v8252_v37 }
 0x544   :  { %v11655_v62 = vld [vmem:[#allocation3 + $0x20] sm:$0xff]  ;;  %6503 = vrot.lane.b32.xlu0 %v11651_v46, %s8340_s24  ;;  %6775 = vst.msk [vmem:[#allocation6 + $0x10] sm:$0xff] %vm742_vm3, %v11653_v1 }
 0x545   :  { %v11657_v27 = vld [vmem:[#allocation3 + $0x21] sm:$0xff]  ;;  %5580 = vrot.lane.b32.xlu1 %v11646_v14, %s8339_s21  ;;  %6137 = vst.msk [vmem:[#allocation6 + $0x30] sm:$0xff] %vm742_vm3, %v11655_v62  ;;  %v7806_v52 = vpop.f32.mrf.mxu0 }
 0x546   :  { %6456 = vst.msk [vmem:[#allocation6 + $0x20] sm:$0xff] %vm742_vm3, %v11657_v27  ;;  %v5479_v28 = vpop.permute.xlu0 %5478  ;;  %7863 = vmatpush3.bf16.msra.mxu0 %v8253_v10 }
 0x547   :  { %v5384_v54 = vpop.permute.xlu1 %5383  ;;  %5514 = vst.msk [vmem:[#allocation6 + $0x128] sm:$0xff] %vm1728_vm6, %v5479_v28  ;;  %v7807_v4 = vpop.f32.mrf.mxu0  ;;  %7864 = vmatprep.subr.bf16.mxu0 %v8254_v48 }
 0x548   :  { %5418 = vst.msk [vmem:[#allocation6 + $0x140] sm:$0xff] %vm1343_vm5, %v5384_v54  ;;  %v7808_v35 = vadd.f32 %v7807_v4, %v7806_v52  ;;  %6183 = vrot.lane.b32.xlu0 %v6151_v21, %s8340_s24 }
 0x549   :  { %5259 = vrot.lane.b32.xlu1 %v5436_v51, %s8339_s21  ;;  %v7809_v15 = vpop.f32.mrf.mxu0  ;;  %v8263_v51 = vld [vmem:[%s12192_s7] sm:$0xff]  }
 0x54a   :  { %v5936_v56 = vadd.f32 %v7808_v35, %v11607_v5  ;;  %v5158_v18 = vpop.permute.xlu0 %5157  ;;  %7865 = vmatpush3.bf16.msra.mxu0 %v8255_v0 }
 0x54b   :  { %v5064_v20 = vpop.permute.xlu1 %5063  ;;  %5193 = vst.msk [vmem:[#allocation6 + $0x120] sm:$0xff] %vm1728_vm6, %v5158_v18  ;;  %v7810_v45 = vpop.f32.mrf.mxu0  ;;  %7866 = vmatprep.subr.bf16.mxu0 %v8256_v31  ;;  %v6793_v6 = vld [vmem:[#allocation6 + $0x10] sm:$0xff] }
 0x54c   :  { %5098 = vst.msk [vmem:[#allocation6 + $0x138] sm:$0xff] %vm1343_vm5, %v5064_v20  ;;  %v6033_v17 = vadd.f32 %v11601_v53, %v5936_v56  ;;  %v7811_v39 = vadd.f32 %v7810_v45, %v7809_v15  ;;  %6599 = vrot.lane.b32.xlu0 %v11655_v62, %s8341_s30  ;;  %v8260_v53 = vld [vmem:[%s12192_s7 + $0x48] sm:$0xff]  }
 0x54d   :  { %6505 = vrot.lane.b32.xlu1 %v11653_v1, %s8340_s24 }
 0x54e   :  { %v6089_v41 = vmax.f32 %v6033_v17, 0.0  ;;  %v5939_v42 = vadd.f32 %v7811_v39, %v11607_v5  ;;  %v5575_v11 = vpop.permute.xlu0 %5574  ;;  %7867 = vmatpush3.bf16.msra.mxu0 %v8257_v34 }
 0x54f   :  { %5610 = vst.msk [vmem:[#allocation6 + $0x128] sm:$0xff] %vm2113_vm7, %v5575_v11  ;;  %7868 = vmatprep.subr.bf16.mxu0 %v8258_v2 }
 0x550   :  { %6105 = vst.msk [vmem:[#allocation3 + $0x31] sm:$0xff] %vm742_vm3, %v6089_v41  ;;  %v6036_v55 = vadd.f32 %v11610_v63, %v5939_v42  ;;  %6279 = vrot.lane.b32.xlu0 %v6247_v19, %s8341_s30 }
 0x551   :  { %6185 = vrot.lane.b32.xlu1 %v6152_v12, %s8340_s24 }
 0x552   :  { %v6090_v26 = vmax.f32 %v6036_v55, 0.0  ;;  %v5254_v43 = vpop.permute.xlu0 %5253  ;;  %7869 = vmatpush3.bf16.msra.mxu0 %v8259_v13 }
 0x553   :  { %5289 = vst.msk [vmem:[#allocation6 + $0x120] sm:$0xff] %vm2113_vm7, %v5254_v43  ;;  %7870 = vmatprep.subr.bf16.mxu0 %v8260_v53 }
 0x554   :  { %6106 = vst.msk [vmem:[#allocation3 + $0x41] sm:$0xff] %vm742_vm3, %v6090_v26  ;;  %6695 = vrot.lane.b32.xlu0 %v11657_v27, %s8339_s21 }
 0x555   :  { %6281 = vrot.lane.b32.xlu1 %v11651_v46, %s8341_s30 }
 0x556   :  { %7871 = vmatpush3.bf16.msra.mxu0 %v8261_v16  ;;  %v5683_v2 = vld [vmem:[#allocation6 + $0x128] sm:$0xff] }
 0x557   :  { %v6473_v29 = vld [vmem:[#allocation3 + $0x32] sm:$0xff]  ;;  %7872 = vmatprep.subr.bf16.mxu0 %v8262_v3 }
 0x558   :  { %v6568_v30 = vld [vmem:[#allocation3 + $0x30] sm:$0xff]  ;;  %6375 = vrot.lane.b32.xlu0 %v11634_v59, %s8339_s21  ;;  %6776 = vst.msk [vmem:[#allocation6 + $0x28] sm:$0xff] %vm742_vm3, %v6473_v29 }
 0x559   :  { %v6664_v49 = vld [vmem:[#allocation3 + $0x31] sm:$0xff]  ;;  %6377 = vrot.lane.b32.xlu1 %v11655_v62, %s8339_s21  ;;  %6138 = vst.msk [vmem:[#allocation6 + $0x48] sm:$0xff] %vm742_vm3, %v6568_v30 }
 0x55a   :  { %6457 = vst.msk [vmem:[#allocation6 + $0x38] sm:$0xff] %vm742_vm3, %v6664_v49  ;;  %7873 = vmatpush3.bf16.msra.mxu0 %v8263_v51 }
 0x55b   :  { %v6569_v7 = vld [vmem:[#allocation3 + $0x40] sm:$0xff] }
 0x55c   :  { %v11738_v63 = vld [vmem:[#allocation3 + $0x42] sm:$0xff]  ;;  %6507 = vrot.lane.b32.xlu0 %v6473_v29, %s8340_s24  ;;  %6139 = vst.msk [vmem:[#allocation6 + $0x60] sm:$0xff] %vm742_vm3, %v6569_v7 }
 0x55d   :  { %v6665_v32 = vld [vmem:[#allocation3 + $0x41] sm:$0xff]  ;;  %6601 = vrot.lane.b32.xlu1 %v6568_v30, %s8341_s30  ;;  %6777 = vst.msk [vmem:[#allocation6 + $0x40] sm:$0xff] %vm742_vm3, %v11738_v63 }
 0x55e   :  { %6458 = vst.msk [vmem:[#allocation6 + $0x50] sm:$0xff] %vm742_vm3, %v6665_v32  ;;  %v7812_v50 = vpop.f32.mrf.mxu0 }
 0x55f   :  { %v6796_v9 = vld [vmem:[#allocation6 + $0x28] sm:$0xff] }
 0x560   :  { %v7813_v40 = vpop.f32.mrf.mxu0  ;;  %6187 = vrot.lane.b32.xlu0 %v11657_v27, %s8340_s24  ;;  %v6841_v25 = vpack.c.bf16 %v6796_v9, %v6793_v6  ;;  %v6814_v9 = vld [vmem:[#allocation6 + $0xb8] sm:$0xff] }
 0x561   :  { %v7814_v44 = vadd.f32 %v7813_v40, %v7812_v50  ;;  %6697 = vrot.lane.b32.xlu1 %v6664_v49, %s8339_s21 }
 0x562   :  { %v7815_v57 = vpop.f32.mrf.mxu0  ;;  %8102 = vmatprep.mubr.msk.bf16.mxu1 %vm742_vm3, %v6841_v25 }
 0x563   :  { %v5944_v38 = vadd.f32 %v7814_v44, %v11607_v5 }
 0x564   :  { %v7816_v58 = vpop.f32.mrf.mxu0  ;;  %6603 = vrot.lane.b32.xlu0 %v6569_v7, %s8341_s30  ;;  %v6799_v10 = vld [vmem:[#allocation6 + $0x40] sm:$0xff] }
 0x565   :  { %v6041_v47 = vadd.f32 %v6040_v22, %v5944_v38  ;;  %v7817_v23 = vadd.f32 %v7816_v58, %v7815_v57  ;;  %6189 = vrot.lane.b32.xlu1 %v6664_v49, %s8340_s24 }
 0x567   :  { %v6091_v12 = vmax.f32 %v6041_v47, 0.0  ;;  %v5947_v59 = vadd.f32 %v7817_v23, %v11607_v5 }
 0x568   :  { %6283 = vrot.lane.b32.xlu0 %v11653_v1, %s8341_s30 }
 0x569   :  { %6107 = vst.msk [vmem:[#allocation3 + $0x51] sm:$0xff] %vm742_vm3, %v6091_v12  ;;  %v6044_v8 = vadd.f32 %v6043_v36, %v5947_v59  ;;  %6509 = vrot.lane.b32.xlu1 %v11738_v63, %s8340_s24  ;;  %v6127_v12 = vld [vmem:[#allocation3 + $0xa0] sm:$0xff] }
 0x56a   :  { %6143 = vst.msk [vmem:[#allocation6 + $0xc0] sm:$0xff] %vm742_vm3, %v6127_v12 }
 0x56b   :  { %v6092_v46 = vmax.f32 %v6044_v8, 0.0 }
 0x56c   :  { %6699 = vrot.lane.b32.xlu0 %v6665_v32, %s8339_s21 }
 0x56d   :  { %6108 = vst.msk [vmem:[#allocation3 + $0x61] sm:$0xff] %vm742_vm3, %v6092_v46  ;;  %6285 = vrot.lane.b32.xlu1 %v6473_v29, %s8341_s30  ;;  %v5682_v29 = vld [vmem:[#allocation6 + $0x120] sm:$0xff] }
 0x56f   :  { %v11809_v49 = vpop.f32.mrf.mxu1 }
 0x570   :  { %v6570_v62 = vld [vmem:[#allocation3 + $0x50] sm:$0xff]  ;;  %6379 = vrot.lane.b32.xlu0 %v6568_v30, %s8339_s21 }
 0x571   :  { %v6666_v27 = vld [vmem:[#allocation3 + $0x51] sm:$0xff]  ;;  %6381 = vrot.lane.b32.xlu1 %v6569_v7, %s8339_s21  ;;  %6140 = vst.msk [vmem:[#allocation6 + $0x78] sm:$0xff] %vm742_vm3, %v6570_v62 }
 0x572   :  { %v6762_v61 = vld [vmem:[#allocation3 + $0x52] sm:$0xff]  ;;  %6459 = vst.msk [vmem:[#allocation6 + $0x68] sm:$0xff] %vm742_vm3, %v6666_v27 }
 0x573   :  { %6778 = vst.msk [vmem:[#allocation6 + $0x58] sm:$0xff] %vm742_vm3, %v6762_v61 }
 0x574   :  { %v6571_v1 = vld [vmem:[#allocation3 + $0x60] sm:$0xff]  ;;  %6191 = vrot.lane.b32.xlu0 %v6665_v32, %s8340_s24 }
 0x575   :  { %v11770_v52 = vld [vmem:[#allocation3 + $0x61] sm:$0xff]  ;;  %6605 = vrot.lane.b32.xlu1 %v6570_v62, %s8341_s30  ;;  %6141 = vst.msk [vmem:[#allocation6 + $0x90] sm:$0xff] %vm742_vm3, %v6571_v1  ;;  %v7818_v37 = vpop.f32.mrf.mxu0 }
 0x576   :  { %v11772_v21 = vld [vmem:[#allocation3 + $0x62] sm:$0xff]  ;;  %6460 = vst.msk [vmem:[#allocation6 + $0x80] sm:$0xff] %vm742_vm3, %v11770_v52  ;;  %v5386_v28 = vpop.permute.xlu0 %5385 }
 0x577   :  { %6779 = vst.msk [vmem:[#allocation6 + $0x70] sm:$0xff] %vm742_vm3, %v11772_v21  ;;  %v5481_v54 = vpop.permute.xlu1 %5480  ;;  %v7819_v4 = vpop.f32.mrf.mxu0 }
 0x578   :  { %5419 = vst.msk [vmem:[#allocation6 + $0x158] sm:$0xff] %vm1343_vm5, %v5386_v28  ;;  %v7820_v35 = vadd.f32 %v7819_v4, %v7818_v37  ;;  %6287 = vrot.lane.b32.xlu0 %v11738_v63, %s8341_s30  ;;  %v6056_v63 = vpop.f32.mrf.mxu1  ;;  %v6255_v4 = vld [vmem:[#allocation3 + $0xa2] sm:$0xff] }
 0x579   :  { %5515 = vst.msk [vmem:[#allocation6 + $0x140] sm:$0xff] %vm1728_vm6, %v5481_v54  ;;  %6701 = vrot.lane.b32.xlu1 %v6666_v27, %s8339_s21  ;;  %v7821_v56 = vpop.f32.mrf.mxu0 }
 0x57a   :  { %v6802_v48 = vld [vmem:[#allocation6 + $0x58] sm:$0xff]  ;;  %v5952_v18 = vadd.f32 %v7820_v35, %v11607_v5  ;;  %v5066_v20 = vpop.permute.xlu0 %5065  ;;  %v11820_v25 = vpop.f32.mrf.mxu1 }
 0x57b   :  { %v6844_v15 = vpack.c.bf16 %v6802_v48, %v6799_v10  ;;  %v5160_v45 = vpop.permute.xlu1 %5159  ;;  %5099 = vst.msk [vmem:[#allocation6 + $0x150] sm:$0xff] %vm1343_vm5, %v5066_v20  ;;  %v7822_v0 = vpop.f32.mrf.mxu0 }
 0x57c   :  { %5194 = vst.msk [vmem:[#allocation6 + $0x138] sm:$0xff] %vm1728_vm6, %v5160_v45  ;;  %v6049_v31 = vadd.f32 %v11736_v24, %v5952_v18  ;;  %v7823_v17 = vadd.f32 %v7822_v0, %v7821_v56  ;;  %6511 = vrot.lane.b32.xlu0 %v6762_v61, %s8340_s24  ;;  %v6059_v8 = vpop.f32.mrf.mxu1 }
 0x57d   :  { %8103 = vmatmul.mubr.msk.bf16.vlgmr.msra.gmra.mxu1 %vm742_vm3, %v6844_v15  ;;  %6193 = vrot.lane.b32.xlu1 %v6666_v27, %s8340_s24 }
 0x57e   :  { %v6093_v39 = vmax.f32 %v6049_v31, 0.0  ;;  %v5955_v19 = vadd.f32 %v7823_v17, %v11607_v5  ;;  %v6805_v51 = vld [vmem:[#allocation6 + $0x70] sm:$0xff] }
 0x57f   :  { %v5577_v41 = vpop.permute.xlu1 %5576 }
 0x580   :  { %5611 = vst.msk [vmem:[#allocation6 + $0x140] sm:$0xff] %vm2113_vm7, %v5577_v41  ;;  %v6052_v42 = vadd.f32 %v8089_v33, %v5955_v19  ;;  %6607 = vrot.lane.b32.xlu0 %v6571_v1, %s8341_s30 }
 0x581   :  { %6109 = vst.msk [vmem:[#allocation3 + $0x71] sm:$0xff] %vm742_vm3, %v6093_v39  ;;  %6289 = vrot.lane.b32.xlu1 %v6762_v61, %s8341_s30 }
 0x582   :  { %v6094_v11 = vmax.f32 %v6052_v42, 0.0 }
 0x583   :  { %v5256_v34 = vpop.permute.xlu1 %5255 }
 0x584   :  { %5290 = vst.msk [vmem:[#allocation6 + $0x138] sm:$0xff] %vm2113_vm7, %v5256_v34  ;;  %6703 = vrot.lane.b32.xlu0 %v11770_v52, %s8339_s21 }
 0x585   :  { %6110 = vst.msk [vmem:[#allocation3 + $0x81] sm:$0xff] %vm742_vm3, %v6094_v11  ;;  %6513 = vrot.lane.b32.xlu1 %v11772_v21, %s8340_s24 }
 0x587   :  { %v5686_v55 = vld [vmem:[#allocation6 + $0x140] sm:$0xff] }
 0x588   :  { %v5713_v26 = vpack.c.bf16 %v5686_v55, %v5683_v2  ;;  %v6477_v43 = vld [vmem:[#allocation3 + $0x72] sm:$0xff]  ;;  %6383 = vrot.lane.b32.xlu0 %v6570_v62, %s8339_s21 }
 0x589   :  { %v6572_v13 = vld [vmem:[#allocation3 + $0x70] sm:$0xff]  ;;  %6385 = vrot.lane.b32.xlu1 %v6571_v1, %s8339_s21  ;;  %6780 = vst.msk [vmem:[#allocation6 + $0x88] sm:$0xff] %vm742_vm3, %v6477_v43 }
 0x58a   :  { %v6668_v53 = vld [vmem:[#allocation3 + $0x71] sm:$0xff]  ;;  %6142 = vst.msk [vmem:[#allocation6 + $0xa8] sm:$0xff] %vm742_vm3, %v6572_v13  ;;  %5973 = vmatprep.mubr.bf16.mxu0 %v5713_v26 }
 0x58b   :  { %6461 = vst.msk [vmem:[#allocation6 + $0x98] sm:$0xff] %vm742_vm3, %v6668_v53  ;;  %v5685_v30 = vld [vmem:[#allocation6 + $0x138] sm:$0xff]  ;;  %v6574_v62 = vld [vmem:[#allocation3 + $0x90] sm:$0xff] }
 0x58c   :  { %v5712_v16 = vpack.c.bf16 %v5685_v30, %v5682_v29  ;;  %v6765_v3 = vld [vmem:[#allocation3 + $0x82] sm:$0xff]  ;;  %6515 = vrot.lane.b32.xlu0 %v6477_v43, %s8340_s24 }
 0x58d   :  { %v6669_v24 = vld [vmem:[#allocation3 + $0x81] sm:$0xff]  ;;  %6609 = vrot.lane.b32.xlu1 %v6572_v13, %s8341_s30  ;;  %6781 = vst.msk [vmem:[#allocation6 + $0xa0] sm:$0xff] %vm742_vm3, %v6765_v3  ;;  %v7824_v7 = vpop.f32.mrf.mxu0 }
 0x58e   :  { %6462 = vst.msk [vmem:[#allocation6 + $0xb0] sm:$0xff] %vm742_vm3, %v6669_v24  ;;  %5974 = vmatmul.mubr.bf16.gmra.mxu0 %v5712_v16  ;;  %v6573_v38 = vld [vmem:[#allocation3 + $0x80] sm:$0xff] }
 0x58f   :  { %v7825_v32 = vpop.f32.mrf.mxu0 }
 0x590   :  { %v6808_v50 = vld [vmem:[#allocation6 + $0x88] sm:$0xff]  ;;  %v7826_v22 = vadd.f32 %v7825_v32, %v7824_v7  ;;  %6195 = vrot.lane.b32.xlu0 %v11770_v52, %s8340_s24 }
 0x591   :  { %6705 = vrot.lane.b32.xlu1 %v6668_v53, %s8339_s21  ;;  %v6847_v40 = vpack.c.bf16 %v6808_v50, %v6805_v51  ;;  %v7827_v6 = vpop.f32.mrf.mxu0  ;;  %v6159_v52 = vld [vmem:[#allocation3 + $0xa1] sm:$0xff] }
 0x592   :  { %v5960_v44 = vadd.f32 %v7826_v22, %v11607_v5 }
 0x593   :  { %8106 = vmatprep.mubr.msk.bf16.mxu1 %vm742_vm3, %v6847_v40  ;;  %v7828_v57 = vpop.f32.mrf.mxu0 }
 0x594   :  { %v6811_v33 = vld [vmem:[#allocation6 + $0xa0] sm:$0xff]  ;;  %v6057_v58 = vadd.f32 %v6056_v63, %v5960_v44  ;;  %v7829_v47 = vadd.f32 %v7828_v57, %v7827_v6  ;;  %6611 = vrot.lane.b32.xlu0 %v6573_v38, %s8341_s30 }
 0x595   :  { %6197 = vrot.lane.b32.xlu1 %v6668_v53, %s8340_s24  ;;  %v6850_v23 = vpack.c.bf16 %v6814_v9, %v6811_v33 }
 0x596   :  { %v6095_v59 = vmax.f32 %v6057_v58, 0.0  ;;  %v5963_v36 = vadd.f32 %v7829_v47, %v11607_v5 }
 0x597   :  { %8107 = vmatmul.mubr.msk.bf16.gmra.mxu1 %vm742_vm3, %v6850_v23 }
 0x598   :  { %6111 = vst.msk [vmem:[#allocation3 + $0xb1] sm:$0xff] %vm742_vm3, %v6095_v59  ;;  %v6060_v46 = vadd.f32 %v6059_v8, %v5963_v36  ;;  %6291 = vrot.lane.b32.xlu0 %v11772_v21, %s8341_s30  ;;  %v6670_v21 = vld [vmem:[#allocation3 + $0x91] sm:$0xff] }
 0x599   :  { %6517 = vrot.lane.b32.xlu1 %v6765_v3, %s8340_s24 }
 0x59a   :  { %v6096_v27 = vmax.f32 %v6060_v46, 0.0 }
 0x59c   :  { %6112 = vst.msk [vmem:[#allocation3 + $0xc1] sm:$0xff] %vm742_vm3, %v6096_v27  ;;  %6707 = vrot.lane.b32.xlu0 %v6669_v24, %s8339_s21 }
 0x59d   :  { %6613 = vrot.lane.b32.xlu1 %v6574_v62, %s8341_s30 }
 0x59f   :  { %v6351_v61 = vld [vmem:[#allocation3 + $0xb0] sm:$0xff] }
 0x5a0   :  { %v6160_v1 = vld [vmem:[#allocation3 + $0xb1] sm:$0xff]  ;;  %6387 = vrot.lane.b32.xlu0 %v6572_v13, %s8339_s21  ;;  %6144 = vst.msk [vmem:[#allocation6 + $0xd8] sm:$0xff] %vm742_vm3, %v6351_v61 }
 0x5a1   :  { %6293 = vrot.lane.b32.xlu1 %v6477_v43, %s8341_s30  ;;  %6463 = vst.msk [vmem:[#allocation6 + $0xc8] sm:$0xff] %vm742_vm3, %v6160_v1  ;;  %v6479_v56 = vld [vmem:[#allocation3 + $0xb2] sm:$0xff] }
 0x5a3   :  { %v6575_v37 = vld [vmem:[#allocation3 + $0xc0] sm:$0xff] }
 0x5a4   :  { %v6671_v28 = vld [vmem:[#allocation3 + $0xc1] sm:$0xff]  ;;  %6199 = vrot.lane.b32.xlu0 %v6159_v52, %s8340_s24  ;;  %6145 = vst.msk [vmem:[#allocation6 + $0xf0] sm:$0xff] %vm742_vm3, %v6575_v37 }
 0x5a5   :  { %v6480_v54 = vld [vmem:[#allocation3 + $0xc2] sm:$0xff]  ;;  %6709 = vrot.lane.b32.xlu1 %v6670_v21, %s8339_s21  ;;  %6464 = vst.msk [vmem:[#allocation6 + $0xe0] sm:$0xff] %vm742_vm3, %v6671_v28 }
 0x5a6   :  { %6783 = vst.msk [vmem:[#allocation6 + $0xd0] sm:$0xff] %vm742_vm3, %v6480_v54  ;;  %v5483_v10 = vpop.permute.xlu0 %5482 }
 0x5a7   :  { %v5388_v48 = vpop.permute.xlu1 %5387  ;;  %5516 = vst.msk [vmem:[#allocation6 + $0x158] sm:$0xff] %vm1728_vm6, %v5483_v10 }
 0x5a8   :  { %5420 = vst.msk [vmem:[#allocation6 + $0x170] sm:$0xff] %vm1343_vm5, %v5388_v48  ;;  %6295 = vrot.lane.b32.xlu0 %v6255_v4, %s8341_s30 }
 0x5a9   :  { %6389 = vrot.lane.b32.xlu1 %v6573_v38, %s8339_s21 }
 0x5aa   :  { %v5162_v35 = vpop.permute.xlu0 %5161 }
 0x5ab   :  { %v5068_v15 = vpop.permute.xlu1 %5067  ;;  %5195 = vst.msk [vmem:[#allocation6 + $0x150] sm:$0xff] %vm1728_vm6, %v5162_v35 }
 0x5ac   :  { %5100 = vst.msk [vmem:[#allocation6 + $0x168] sm:$0xff] %vm1343_vm5, %v5068_v15  ;;  %6519 = vrot.lane.b32.xlu0 %v6479_v56, %s8340_s24 }
 0x5ad   :  { %6629 = vrot.lane.b32.xlu1 %v11622_v60, %s8341_s30 }
 0x5ae   :  { %v5579_v18 = vpop.permute.xlu0 %5578 }
 0x5af   :  { %v5485_v20 = vpop.permute.xlu1 %5484  ;;  %5612 = vst.msk [vmem:[#allocation6 + $0x158] sm:$0xff] %vm2113_vm7, %v5579_v18 }
 0x5b0   :  { %5517 = vst.msk [vmem:[#allocation6 + $0x170] sm:$0xff] %vm1728_vm6, %v5485_v20  ;;  %6391 = vrot.lane.b32.xlu0 %v6351_v61, %s8339_s21 }
 0x5b1   :  { %6725 = vrot.lane.b32.xlu1 %v11646_v14, %s8339_s21 }
 0x5b2   :  { %v5258_v45 = vpop.permute.xlu0 %5257 }
 0x5b3   :  { %v5164_v0 = vpop.permute.xlu1 %5163  ;;  %5291 = vst.msk [vmem:[#allocation6 + $0x150] sm:$0xff] %vm2113_vm7, %v5258_v45 }
 0x5b4   :  { %5196 = vst.msk [vmem:[#allocation6 + $0x168] sm:$0xff] %vm1728_vm6, %v5164_v0  ;;  %6615 = vrot.lane.b32.xlu0 %v6575_v37, %s8341_s30 }
 0x5b5   :  { %6201 = vrot.lane.b32.xlu1 %v6160_v1, %s8340_s24 }
 0x5b6   :  { %v6504_v31 = vpop.permute.xlu0 %6503  ;;  %v5689_v41 = vld [vmem:[#allocation6 + $0x158] sm:$0xff] }
 0x5b7   :  { %v5581_v60 = vpop.permute.xlu1 %5580  ;;  %6551 = vst.msk [vmem:[#allocation6 + $0x8] sm:$0xff] %vm1343_vm5, %v6504_v31 }
 0x5b8   :  { %5613 = vst.msk [vmem:[#allocation6 + $0x170] sm:$0xff] %vm2113_vm7, %v5581_v60  ;;  %6711 = vrot.lane.b32.xlu0 %v6671_v28, %s8339_s21 }
 0x5b9   :  { %6297 = vrot.lane.b32.xlu1 %v6479_v56, %s8341_s30 }
 0x5ba   :  { %v6184_v17 = vpop.permute.xlu0 %6183  ;;  %v5688_v55 = vld [vmem:[#allocation6 + $0x150] sm:$0xff] }
 0x5bb   :  { %v5260_v14 = vpop.permute.xlu1 %5259  ;;  %6231 = vst.msk [vmem:[#allocation6] sm:$0xff] %vm1343_vm5, %v6184_v17 }
 0x5bc   :  { %5292 = vst.msk [vmem:[#allocation6 + $0x168] sm:$0xff] %vm2113_vm7, %v5260_v14  ;;  %6203 = vrot.lane.b32.xlu0 %v6671_v28, %s8340_s24 }
 0x5bd   :  { %6521 = vrot.lane.b32.xlu1 %v6480_v54, %s8340_s24 }
 0x5be   :  { %v6600_v19 = vpop.permute.xlu0 %6599 }
 0x5bf   :  { %v6506_v39 = vpop.permute.xlu1 %6505  ;;  %v5692_v42 = vld [vmem:[#allocation6 + $0x170] sm:$0xff]  ;;  %6647 = vst.msk [vmem:[#allocation6 + $0x8] sm:$0xff] %vm1728_vm6, %v6600_v19 }
 0x5c0   :  { %6552 = vst.msk [vmem:[#allocation6 + $0x20] sm:$0xff] %vm1343_vm5, %v6506_v39  ;;  %v5716_v11 = vpack.c.bf16 %v5692_v42, %v5689_v41  ;;  %6299 = vrot.lane.b32.xlu0 %v6480_v54, %s8341_s30 }
 0x5c1   :  { %6393 = vrot.lane.b32.xlu1 %v6575_v37, %s8339_s21 }
 0x5c2   :  { %5981 = vmatprep.mubr.bf16.mxu0 %v5716_v11  ;;  %v6280_v34 = vpop.permute.xlu0 %6279 }
 0x5c3   :  { %v6186_v2 = vpop.permute.xlu1 %6185  ;;  %v5691_v26 = vld [vmem:[#allocation6 + $0x168] sm:$0xff]  ;;  %6327 = vst.msk [vmem:[#allocation6] sm:$0xff] %vm1728_vm6, %v6280_v34 }
 0x5c4   :  { %6232 = vst.msk [vmem:[#allocation6 + $0x18] sm:$0xff] %vm1343_vm5, %v6186_v2  ;;  %v5715_v43 = vpack.c.bf16 %v5691_v26, %v5688_v55 }
 0x5c6   :  { %5982 = vmatmul.mubr.bf16.gmra.mxu0 %v5715_v43  ;;  %v6696_v13 = vpop.permute.xlu0 %6695 }
 0x5c7   :  { %v6282_v53 = vpop.permute.xlu1 %6281  ;;  %6743 = vst.msk [vmem:[#allocation6 + $0x8] sm:$0xff] %vm2113_vm7, %v6696_v13  ;;  %v6817_v13 = vld [vmem:[#allocation6 + $0xd0] sm:$0xff] }
 0x5c8   :  { %6328 = vst.msk [vmem:[#allocation6 + $0x18] sm:$0xff] %vm1728_vm6, %v6282_v53 }
 0x5ca   :  { %v6376_v29 = vpop.permute.xlu0 %6375 }
 0x5cb   :  { %v6378_v30 = vpop.permute.xlu1 %6377  ;;  %6423 = vst.msk [vmem:[#allocation6] sm:$0xff] %vm2113_vm7, %v6376_v29 }
 0x5cc   :  { %6424 = vst.msk [vmem:[#allocation6 + $0x18] sm:$0xff] %vm2113_vm7, %v6378_v30 }
 0x5ce   :  { %v6508_v16 = vpop.permute.xlu0 %6507  ;;  %v6792_v6 = vld [vmem:[#allocation6 + $0x8] sm:$0xff] }
 0x5cf   :  { %v6602_v3 = vpop.permute.xlu1 %6601  ;;  %6553 = vst.msk [vmem:[#allocation6 + $0x38] sm:$0xff] %vm1343_vm5, %v6508_v16 }
 0x5d0   :  { %6648 = vst.msk [vmem:[#allocation6 + $0x20] sm:$0xff] %vm1728_vm6, %v6602_v3 }
 0x5d2   :  { %v6188_v24 = vpop.permute.xlu0 %6187  ;;  %v6791_v51 = vld [vmem:[#allocation6] sm:$0xff] }
 0x5d3   :  { %v6698_v7 = vpop.permute.xlu1 %6697  ;;  %6233 = vst.msk [vmem:[#allocation6 + $0x30] sm:$0xff] %vm1343_vm5, %v6188_v24  ;;  %v6794_v50 = vld [vmem:[#allocation6 + $0x18] sm:$0xff] }
 0x5d4   :  { %6744 = vst.msk [vmem:[#allocation6 + $0x20] sm:$0xff] %vm2113_vm7, %v6698_v7  ;;  %v6839_v57 = vpack.c.bf16 %v6794_v50, %v6791_v51 }
 0x5d6   :  { %v6604_v63 = vpop.permute.xlu0 %6603 }
 0x5d7   :  { %v6190_v32 = vpop.permute.xlu1 %6189  ;;  %6649 = vst.msk [vmem:[#allocation6 + $0x38] sm:$0xff] %vm1728_vm6, %v6604_v63 }
 0x5d8   :  { %6234 = vst.msk [vmem:[#allocation6 + $0x48] sm:$0xff] %vm1343_vm5, %v6190_v32 }
 0x5da   :  { %v6284_v22 = vpop.permute.xlu0 %6283 }
 0x5db   :  { %v6510_v40 = vpop.permute.xlu1 %6509  ;;  %v6795_v9 = vld [vmem:[#allocation6 + $0x20] sm:$0xff]  ;;  %6329 = vst.msk [vmem:[#allocation6 + $0x30] sm:$0xff] %vm1728_vm6, %v6284_v22 }
 0x5dc   :  { %6554 = vst.msk [vmem:[#allocation6 + $0x50] sm:$0xff] %vm1343_vm5, %v6510_v40  ;;  %v6840_v44 = vpack.c.bf16 %v6795_v9, %v6792_v6 }
 0x5de   :  { %7070 = vmatprep.mubr.bf16.mxu0 %v6840_v44  ;;  %v6700_v38 = vpop.permute.xlu0 %6699 }
 0x5df   :  { %v6286_v33 = vpop.permute.xlu1 %6285  ;;  %7071 = vmatmul.mubr.bf16.vlgmr.msra.gmra.mxu0 %v6839_v57  ;;  %6745 = vst.msk [vmem:[#allocation6 + $0x38] sm:$0xff] %vm2113_vm7, %v6700_v38 }
 0x5e0   :  { %6330 = vst.msk [vmem:[#allocation6 + $0x48] sm:$0xff] %vm1728_vm6, %v6286_v33 }
 0x5e2   :  { %v6380_v58 = vpop.permute.xlu0 %6379 }
 0x5e3   :  { %v6382_v47 = vpop.permute.xlu1 %6381  ;;  %6425 = vst.msk [vmem:[#allocation6 + $0x30] sm:$0xff] %vm2113_vm7, %v6380_v58 }
 0x5e4   :  { %6426 = vst.msk [vmem:[#allocation6 + $0x48] sm:$0xff] %vm2113_vm7, %v6382_v47 }
 0x5e6   :  { %v6192_v23 = vpop.permute.xlu0 %6191  ;;  %v6798_v4 = vld [vmem:[#allocation6 + $0x38] sm:$0xff] }
 0x5e7   :  { %v6606_v12 = vpop.permute.xlu1 %6605  ;;  %6235 = vst.msk [vmem:[#allocation6 + $0x60] sm:$0xff] %vm1343_vm5, %v6192_v23 }
 0x5e8   :  { %6650 = vst.msk [vmem:[#allocation6 + $0x50] sm:$0xff] %vm1728_vm6, %v6606_v12 }
 0x5ea   :  { %v6288_v59 = vpop.permute.xlu0 %6287  ;;  %v6797_v52 = vld [vmem:[#allocation6 + $0x30] sm:$0xff] }
 0x5eb   :  { %v6702_v36 = vpop.permute.xlu1 %6701  ;;  %6331 = vst.msk [vmem:[#allocation6 + $0x60] sm:$0xff] %vm1728_vm6, %v6288_v59  ;;  %v6800_v21 = vld [vmem:[#allocation6 + $0x48] sm:$0xff] }
 0x5ec   :  { %6746 = vst.msk [vmem:[#allocation6 + $0x50] sm:$0xff] %vm2113_vm7, %v6702_v36  ;;  %v6842_v18 = vpack.c.bf16 %v6800_v21, %v6797_v52 }
 0x5ee   :  { %v6512_v46 = vpop.permute.xlu0 %6511 }
 0x5ef   :  { %v7830_v8 = vpop.f32.mrf.mxu0  ;;  %v6194_v62 = vpop.permute.xlu1 %6193  ;;  %6555 = vst.msk [vmem:[#allocation6 + $0x68] sm:$0xff] %vm1343_vm5, %v6512_v46 }
 0x5f0   :  { %6236 = vst.msk [vmem:[#allocation6 + $0x78] sm:$0xff] %vm1343_vm5, %v6194_v62 }
 0x5f1   :  { %v7831_v27 = vpop.f32.mrf.mxu0 }
 0x5f2   :  { %v7832_v61 = vadd.f32 %v7831_v27, %v7830_v8  ;;  %v6608_v28 = vpop.permute.xlu0 %6607 }
 0x5f3   :  { %v7833_v1 = vpop.f32.mrf.mxu0  ;;  %v6290_v54 = vpop.permute.xlu1 %6289  ;;  %v6801_v10 = vld [vmem:[#allocation6 + $0x50] sm:$0xff]  ;;  %6651 = vst.msk [vmem:[#allocation6 + $0x68] sm:$0xff] %vm1728_vm6, %v6608_v28 }
 0x5f4   :  { %v5968_v37 = vadd.f32 %v7832_v61, %v11607_v5  ;;  %6332 = vst.msk [vmem:[#allocation6 + $0x78] sm:$0xff] %vm1728_vm6, %v6290_v54  ;;  %v6843_v35 = vpack.c.bf16 %v6801_v10, %v6798_v4  ;;  %v8264_v4 = vld [vmem:[%s12194_s9 + $0x8] sm:$0xff]   ;;  %v8265_v10 = vld [vmem:[%s12194_s9] sm:$0xff]  }
 0x5f5   :  { %v7834_v48 = vpop.f32.mrf.mxu0  ;;  %8118 = vmatprep.subr.bf16.mxu1 %v8264_v4 }
 0x5f6   :  { %v6065_v15 = vadd.f32 %v11809_v49, %v5968_v37  ;;  %v7835_v56 = vadd.f32 %v7834_v48, %v7833_v1  ;;  %7078 = vmatprep.mubr.bf16.mxu0 %v6843_v35  ;;  %v6704_v0 = vpop.permute.xlu0 %6703  ;;  %8119 = vmatpush3.bf16.msra.mxu1 %v8264_v4 }
 0x5f7   :  { %v6514_v60 = vpop.permute.xlu1 %6513  ;;  %7079 = vmatmul.mubr.bf16.gmra.mxu0 %v6842_v18  ;;  %6747 = vst.msk [vmem:[#allocation6 + $0x68] sm:$0xff] %vm2113_vm7, %v6704_v0  ;;  %8120 = vmatprep.subr.bf16.mxu1 %v8265_v10 }
 0x5f8   :  { %v6097_v20 = vmax.f32 %v6065_v15, 0.0  ;;  %v5971_v45 = vadd.f32 %v7835_v56, %v11607_v5  ;;  %6556 = vst.msk [vmem:[#allocation6 + $0x80] sm:$0xff] %vm1343_vm5, %v6514_v60 }
 0x5fa   :  { %6113 = vst.msk [vmem:[#allocation3 + $0xd1] sm:$0xff] %vm742_vm3, %v6097_v20  ;;  %v6068_v31 = vadd.f32 %v11820_v25, %v5971_v45  ;;  %v6384_v17 = vpop.permute.xlu0 %6383  ;;  %8121 = vmatpush3.bf16.msra.mxu1 %v8265_v10  ;;  %v11969_v45 = vld [vmem:[%s12193_s6] ss:$0 sm:$0xff] }
 0x5fb   :  { %v6386_v49 = vpop.permute.xlu1 %6385  ;;  %6427 = vst.msk [vmem:[#allocation6 + $0x60] sm:$0xff] %vm2113_vm7, %v6384_v17 }
 0x5fc   :  { %v6098_v14 = vmax.f32 %v6068_v31, 0.0  ;;  %6428 = vst.msk [vmem:[#allocation6 + $0x78] sm:$0xff] %vm2113_vm7, %v6386_v49 }
 0x5fe   :  { %6114 = vst.msk [vmem:[#allocation3 + $0xe1] sm:$0xff] %vm742_vm3, %v6098_v14  ;;  %v6516_v5 = vpop.permute.xlu0 %6515  ;;  %v6804_v7 = vld [vmem:[#allocation6 + $0x68] sm:$0xff] }
 0x5ff   :  { %6557 = vst.msk [vmem:[#allocation6 + $0x98] sm:$0xff] %vm1343_vm5, %v6516_v5  ;;  %v6610_v39 = vpop.permute.xlu1 %6609  ;;  %v11964_v48 = vpop.f32.mrf.mxu1 }
 0x600   :  { %6652 = vst.msk [vmem:[#allocation6 + $0x80] sm:$0xff] %vm1728_vm6, %v6610_v39 }
 0x601   :  { %v6481_v19 = vld [vmem:[#allocation3 + $0xd2] sm:$0xff]  ;;  %v6072_v15 = vpop.f32.mrf.mxu1 }
 0x602   :  { %v6576_v41 = vld [vmem:[#allocation3 + $0xd0] sm:$0xff]  ;;  %6523 = vrot.lane.b32.xlu0 %v6481_v19, %s8340_s24  ;;  %6784 = vst.msk [vmem:[#allocation6 + $0xe8] sm:$0xff] %vm742_vm3, %v6481_v19  ;;  %v6196_v25 = vpop.permute.xlu0 %6195  ;;  %v6803_v16 = vld [vmem:[#allocation6 + $0x60] sm:$0xff] }
 0x603   :  { %v6672_v42 = vld [vmem:[#allocation3 + $0xd1] sm:$0xff]  ;;  %6617 = vrot.lane.b32.xlu1 %v6576_v41, %s8341_s30  ;;  %6146 = vst.msk [vmem:[#allocation6 + $0x108] sm:$0xff] %vm742_vm3, %v6576_v41  ;;  %v6706_v11 = vpop.permute.xlu1 %6705  ;;  %v11972_v60 = vpop.f32.mrf.mxu1 }
 0x604   :  { %6465 = vst.msk [vmem:[#allocation6 + $0xf8] sm:$0xff] %vm742_vm3, %v6672_v42  ;;  %v6806_v3 = vld [vmem:[#allocation6 + $0x78] sm:$0xff] }
 0x605   :  { %6237 = vst.msk [vmem:[#allocation6 + $0x90] sm:$0xff] %vm1343_vm5, %v6196_v25  ;;  %v6577_v34 = vld [vmem:[#allocation3 + $0xe0] sm:$0xff]  ;;  %v6845_v51 = vpack.c.bf16 %v6806_v3, %v6803_v16  ;;  %v6075_v39 = vpop.f32.mrf.mxu1 }
 0x606   :  { %v6673_v2 = vld [vmem:[#allocation3 + $0xe1] sm:$0xff]  ;;  %6748 = vst.msk [vmem:[#allocation6 + $0x80] sm:$0xff] %vm2113_vm7, %v6706_v11  ;;  %6395 = vrot.lane.b32.xlu0 %v6576_v41, %s8339_s21  ;;  %v6612_v26 = vpop.permute.xlu0 %6611 }
 0x607   :  { %v6482_v55 = vld [vmem:[#allocation3 + $0xe2] sm:$0xff]  ;;  %6713 = vrot.lane.b32.xlu1 %v6672_v42, %s8339_s21  ;;  %6147 = vst.msk [vmem:[#allocation6 + $0x120] sm:$0xff] %vm742_vm3, %v6577_v34  ;;  %6466 = vst.msk [vmem:[#allocation6 + $0x110] sm:$0xff] %vm742_vm3, %v6673_v2  ;;  %v6198_v43 = vpop.permute.xlu1 %6197 }
 0x608   :  { %6785 = vst.msk [vmem:[#allocation6 + $0x100] sm:$0xff] %vm742_vm3, %v6482_v55 }
 0x609   :  { %6653 = vst.msk [vmem:[#allocation6 + $0x98] sm:$0xff] %vm1728_vm6, %v6612_v26  ;;  %v6820_v53 = vld [vmem:[#allocation6 + $0xe8] sm:$0xff] }
 0x60a   :  { %6238 = vst.msk [vmem:[#allocation6 + $0xa8] sm:$0xff] %vm1343_vm5, %v6198_v43  ;;  %6619 = vrot.lane.b32.xlu0 %v6577_v34, %s8341_s30  ;;  %v6853_v29 = vpack.c.bf16 %v6820_v53, %v6817_v13  ;;  %v6292_v30 = vpop.permute.xlu0 %6291 }
 0x60b   :  { %6205 = vrot.lane.b32.xlu1 %v6672_v42, %s8340_s24  ;;  %6333 = vst.msk [vmem:[#allocation6 + $0x90] sm:$0xff] %vm1728_vm6, %v6292_v30  ;;  %v6518_v24 = vpop.permute.xlu1 %6517 }
 0x60c   :  { %8110 = vmatprep.mubr.msk.bf16.mxu1 %vm742_vm3, %v6853_v29  ;;  %6558 = vst.msk [vmem:[#allocation6 + $0xb0] sm:$0xff] %vm1343_vm5, %v6518_v24 }
 0x60d   :  { %v6807_v63 = vld [vmem:[#allocation6 + $0x80] sm:$0xff] }
 0x60e   :  { %6715 = vrot.lane.b32.xlu0 %v6673_v2, %s8339_s21  ;;  %v6846_v32 = vpack.c.bf16 %v6807_v63, %v6804_v7  ;;  %v6708_v50 = vpop.permute.xlu0 %6707 }
 0x60f   :  { %6301 = vrot.lane.b32.xlu1 %v6481_v19, %s8341_s30  ;;  %6749 = vst.msk [vmem:[#allocation6 + $0x98] sm:$0xff] %vm2113_vm7, %v6708_v50  ;;  %v6614_v22 = vpop.permute.xlu1 %6613  ;;  %v6823_v26 = vld [vmem:[#allocation6 + $0x100] sm:$0xff] }
 0x610   :  { %7086 = vmatprep.mubr.bf16.mxu0 %v6846_v32  ;;  %6654 = vst.msk [vmem:[#allocation6 + $0xb0] sm:$0xff] %vm1728_vm6, %v6614_v22 }
 0x611   :  { %7087 = vmatmul.mubr.bf16.gmra.mxu0 %v6845_v51 }
 0x612   :  { %6207 = vrot.lane.b32.xlu0 %v6673_v2, %s8340_s24  ;;  %v6388_v40 = vpop.permute.xlu0 %6387 }
 0x613   :  { %6525 = vrot.lane.b32.xlu1 %v6482_v55, %s8340_s24  ;;  %6429 = vst.msk [vmem:[#allocation6 + $0x90] sm:$0xff] %vm2113_vm7, %v6388_v40  ;;  %v6294_v6 = vpop.permute.xlu1 %6293 }
 0x614   :  { %6334 = vst.msk [vmem:[#allocation6 + $0xa8] sm:$0xff] %vm1728_vm6, %v6294_v6 }
 0x616   :  { %6303 = vrot.lane.b32.xlu0 %v6482_v55, %s8341_s30  ;;  %v6200_v9 = vpop.permute.xlu0 %6199  ;;  %v6810_v47 = vld [vmem:[#allocation6 + $0x98] sm:$0xff] }
 0x617   :  { %6397 = vrot.lane.b32.xlu1 %v6577_v34, %s8339_s21  ;;  %6239 = vst.msk [vmem:[#allocation6 + $0xc0] sm:$0xff] %vm1343_vm5, %v6200_v9  ;;  %v6710_v44 = vpop.permute.xlu1 %6709 }
 0x618   :  { %6750 = vst.msk [vmem:[#allocation6 + $0xb0] sm:$0xff] %vm2113_vm7, %v6710_v44 }
 0x61a   :  { %v6296_v57 = vpop.permute.xlu0 %6295  ;;  %v6809_v8 = vld [vmem:[#allocation6 + $0x90] sm:$0xff] }
 0x61b   :  { %6335 = vst.msk [vmem:[#allocation6 + $0xc0] sm:$0xff] %vm1728_vm6, %v6296_v57  ;;  %v6390_v38 = vpop.permute.xlu1 %6389 }
 0x61c   :  { %6430 = vst.msk [vmem:[#allocation6 + $0xa8] sm:$0xff] %vm2113_vm7, %v6390_v38 }
 0x61e   :  { %v6520_v33 = vpop.permute.xlu0 %6519 }
 0x61f   :  { %6559 = vst.msk [vmem:[#allocation6 + $0xc8] sm:$0xff] %vm1343_vm5, %v6520_v33  ;;  %v11945_v58 = vpop.permute.xlu1 %6629  ;;  %v6813_v23 = vld [vmem:[#allocation6 + $0xb0] sm:$0xff] }
 0x620   :  { %v6849_v12 = vpack.c.bf16 %v6813_v23, %v6810_v47 }
 0x622   :  { %7094 = vmatprep.mubr.bf16.mxu0 %v6849_v12  ;;  %v6392_v59 = vpop.permute.xlu0 %6391 }
 0x623   :  { %6431 = vst.msk [vmem:[#allocation6 + $0xc0] sm:$0xff] %vm2113_vm7, %v6392_v59  ;;  %v11948_v36 = vpop.permute.xlu1 %6725  ;;  %v6812_v46 = vld [vmem:[#allocation6 + $0xa8] sm:$0xff] }
 0x624   :  { %v6848_v62 = vpack.c.bf16 %v6812_v46, %v6809_v8 }
 0x626   :  { %7095 = vmatmul.mubr.bf16.gmra.mxu0 %v6848_v62  ;;  %v6616_v27 = vpop.permute.xlu0 %6615 }
 0x627   :  { %6655 = vst.msk [vmem:[#allocation6 + $0xc8] sm:$0xff] %vm1728_vm6, %v6616_v27  ;;  %v6202_v61 = vpop.permute.xlu1 %6201 }
 0x628   :  { %6240 = vst.msk [vmem:[#allocation6 + $0xd8] sm:$0xff] %vm1343_vm5, %v6202_v61 }
 0x62a   :  { %v6712_v1 = vpop.permute.xlu0 %6711  ;;  %v6815_v40 = vld [vmem:[#allocation6 + $0xc0] sm:$0xff] }
 0x62b   :  { %6751 = vst.msk [vmem:[#allocation6 + $0xc8] sm:$0xff] %vm2113_vm7, %v6712_v1  ;;  %v6298_v52 = vpop.permute.xlu1 %6297 }
 0x62c   :  { %6336 = vst.msk [vmem:[#allocation6 + $0xd8] sm:$0xff] %vm1728_vm6, %v6298_v52 }
 0x62e   :  { %v6204_v21 = vpop.permute.xlu0 %6203 }
 0x62f   :  { %6241 = vst.msk [vmem:[#allocation6 + $0xf0] sm:$0xff] %vm1343_vm5, %v6204_v21  ;;  %v6522_v37 = vpop.permute.xlu1 %6521 }
 0x630   :  { %6560 = vst.msk [vmem:[#allocation6 + $0xe0] sm:$0xff] %vm1343_vm5, %v6522_v37 }
 0x632   :  { %v6300_v28 = vpop.permute.xlu0 %6299  ;;  %v6816_v51 = vld [vmem:[#allocation6 + $0xc8] sm:$0xff] }
 0x633   :  { %6337 = vst.msk [vmem:[#allocation6 + $0xf0] sm:$0xff] %vm1728_vm6, %v6300_v28  ;;  %v6394_v54 = vpop.permute.xlu1 %6393 }
 0x634   :  { %6432 = vst.msk [vmem:[#allocation6 + $0xd8] sm:$0xff] %vm2113_vm7, %v6394_v54 }
 0x63b   :  { %v6818_v7 = vld [vmem:[#allocation6 + $0xd8] sm:$0xff] }
 0x63c   :  { %v6851_v6 = vpack.c.bf16 %v6818_v7, %v6815_v40 }
 0x64e   :  { %v7836_v35 = vpop.f32.mrf.mxu0 }
 0x650   :  { %v7837_v56 = vpop.f32.mrf.mxu0 }
 0x651   :  { %v7838_v18 = vadd.f32 %v7837_v56, %v7836_v35 }
 0x652   :  { %v7839_v20 = vpop.f32.mrf.mxu0 }
 0x653   :  { %v5976_v0 = vadd.f32 %v11969_v45, %v7838_v18 }
 0x654   :  { %v7840_v31 = vpop.f32.mrf.mxu0 }
 0x655   :  { %v6073_v14 = vadd.f32 %v6072_v15, %v5976_v0  ;;  %v7841_v17 = vadd.f32 %v7840_v31, %v7839_v20  ;;  %v12028_v20 = vld [vmem:[%s12195_s8] ss:$0 sm:$0xff]  ;;  %v6838_v31 = vld [vmem:[#allocation6 + $0x178] sm:$0xff] }
 0x657   :  { %v6099_v49 = vmax.f32 %v6073_v14, 0.0  ;;  %v5979_v5 = vadd.f32 %v11969_v45, %v7841_v17 }
 0x659   :  { %6115 = vst.msk [vmem:[#allocation3 + $0xf1] sm:$0xff] %vm742_vm3, %v6099_v49  ;;  %v6076_v19 = vadd.f32 %v6075_v39, %v5979_v5 }
 0x65b   :  { %v6100_v41 = vmax.f32 %v6076_v19, 0.0 }
 0x65d   :  { %6116 = vst.msk [vmem:[#allocation3 + $0x101] sm:$0xff] %vm742_vm3, %v6100_v41 }
 0x660   :  { %v6483_v42 = vld [vmem:[#allocation3 + $0xf2] sm:$0xff] }
 0x661   :  { %v6578_v25 = vld [vmem:[#allocation3 + $0xf0] sm:$0xff]  ;;  %6527 = vrot.lane.b32.xlu0 %v6483_v42, %s8340_s24  ;;  %6786 = vst.msk [vmem:[#allocation6 + $0x118] sm:$0xff] %vm742_vm3, %v6483_v42 }
 0x662   :  { %v6674_v11 = vld [vmem:[#allocation3 + $0xf1] sm:$0xff]  ;;  %6621 = vrot.lane.b32.xlu1 %v6578_v25, %s8341_s30  ;;  %6148 = vst.msk [vmem:[#allocation6 + $0x138] sm:$0xff] %vm742_vm3, %v6578_v25 }
 0x663   :  { %6467 = vst.msk [vmem:[#allocation6 + $0x128] sm:$0xff] %vm742_vm3, %v6674_v11 }
 0x664   :  { %v6579_v34 = vld [vmem:[#allocation3 + $0x100] sm:$0xff] }
 0x665   :  { %v6675_v2 = vld [vmem:[#allocation3 + $0x101] sm:$0xff]  ;;  %6399 = vrot.lane.b32.xlu0 %v6578_v25, %s8339_s21  ;;  %6149 = vst.msk [vmem:[#allocation6 + $0x150] sm:$0xff] %vm742_vm3, %v6579_v34 }
 0x666   :  { %v6484_v55 = vld [vmem:[#allocation3 + $0x102] sm:$0xff]  ;;  %6717 = vrot.lane.b32.xlu1 %v6674_v11, %s8339_s21  ;;  %6468 = vst.msk [vmem:[#allocation6 + $0x140] sm:$0xff] %vm742_vm3, %v6675_v2 }
 0x667   :  { %6787 = vst.msk [vmem:[#allocation6 + $0x130] sm:$0xff] %vm742_vm3, %v6484_v55 }
 0x668   :  { %v6826_v43 = vld [vmem:[#allocation6 + $0x118] sm:$0xff] }
 0x669   :  { %6623 = vrot.lane.b32.xlu0 %v6579_v34, %s8341_s30  ;;  %v6856_v13 = vpack.c.bf16 %v6826_v43, %v6823_v26 }
 0x66a   :  { %6209 = vrot.lane.b32.xlu1 %v6674_v11, %s8340_s24 }
 0x66b   :  { %8111 = vmatmul.mubr.msk.bf16.gmra.mxu1 %vm742_vm3, %v6856_v13 }
 0x66d   :  { %6719 = vrot.lane.b32.xlu0 %v6675_v2, %s8339_s21 }
 0x66e   :  { %6305 = vrot.lane.b32.xlu1 %v6483_v42, %s8341_s30  ;;  %v6829_v15 = vld [vmem:[#allocation6 + $0x130] sm:$0xff] }
 0x671   :  { %6211 = vrot.lane.b32.xlu0 %v6675_v2, %s8340_s24 }
 0x672   :  { %6529 = vrot.lane.b32.xlu1 %v6484_v55, %s8340_s24 }
 0x674   :  { %v6524_v53 = vpop.permute.xlu0 %6523 }
 0x675   :  { %v6618_v29 = vpop.permute.xlu1 %6617  ;;  %6561 = vst.msk [vmem:[#allocation6 + $0xf8] sm:$0xff] %vm1343_vm5, %v6524_v53  ;;  %6307 = vrot.lane.b32.xlu0 %v6484_v55, %s8341_s30 }
 0x676   :  { %6656 = vst.msk [vmem:[#allocation6 + $0xe0] sm:$0xff] %vm1728_vm6, %v6618_v29  ;;  %6401 = vrot.lane.b32.xlu1 %v6579_v34, %s8339_s21 }
 0x678   :  { %v6396_v30 = vpop.permute.xlu0 %6395 }
 0x679   :  { %v6714_v16 = vpop.permute.xlu1 %6713  ;;  %6433 = vst.msk [vmem:[#allocation6 + $0xf0] sm:$0xff] %vm2113_vm7, %v6396_v30 }
 0x67a   :  { %6752 = vst.msk [vmem:[#allocation6 + $0xe0] sm:$0xff] %vm2113_vm7, %v6714_v16 }
 0x67c   :  { %v6620_v3 = vpop.permute.xlu0 %6619 }
 0x67d   :  { %v6206_v24 = vpop.permute.xlu1 %6205  ;;  %6657 = vst.msk [vmem:[#allocation6 + $0xf8] sm:$0xff] %vm1728_vm6, %v6620_v3 }
 0x67e   :  { %6242 = vst.msk [vmem:[#allocation6 + $0x108] sm:$0xff] %vm1343_vm5, %v6206_v24 }
 0x680   :  { %v6716_v63 = vpop.permute.xlu0 %6715 }
 0x681   :  { %v6302_v32 = vpop.permute.xlu1 %6301  ;;  %v6819_v50 = vld [vmem:[#allocation6 + $0xe0] sm:$0xff]  ;;  %6753 = vst.msk [vmem:[#allocation6 + $0xf8] sm:$0xff] %vm2113_vm7, %v6716_v63 }
 0x682   :  { %6338 = vst.msk [vmem:[#allocation6 + $0x108] sm:$0xff] %vm1728_vm6, %v6302_v32  ;;  %v6852_v22 = vpack.c.bf16 %v6819_v50, %v6816_v51 }
 0x684   :  { %7102 = vmatprep.mubr.bf16.mxu0 %v6852_v22  ;;  %v6208_v9 = vpop.permute.xlu0 %6207 }
 0x685   :  { %v6526_v44 = vpop.permute.xlu1 %6525  ;;  %7103 = vmatmul.mubr.bf16.gmra.mxu0 %v6851_v6  ;;  %6243 = vst.msk [vmem:[#allocation6 + $0x120] sm:$0xff] %vm1343_vm5, %v6208_v9 }
 0x686   :  { %6562 = vst.msk [vmem:[#allocation6 + $0x110] sm:$0xff] %vm1343_vm5, %v6526_v44  ;;  %v7842_v57 = vpop.f32.mrf.mxu0 }
 0x688   :  { %v6304_v38 = vpop.permute.xlu0 %6303  ;;  %v7843_v47 = vpop.f32.mrf.mxu0 }
 0x689   :  { %v6398_v33 = vpop.permute.xlu1 %6397  ;;  %6339 = vst.msk [vmem:[#allocation6 + $0x120] sm:$0xff] %vm1728_vm6, %v6304_v38  ;;  %v7844_v23 = vadd.f32 %v7843_v47, %v7842_v57 }
 0x68a   :  { %6434 = vst.msk [vmem:[#allocation6 + $0x108] sm:$0xff] %vm2113_vm7, %v6398_v33  ;;  %v7845_v12 = vpop.f32.mrf.mxu0 }
 0x68b   :  { %v5984_v59 = vadd.f32 %v11969_v45, %v7844_v23 }
 0x68c   :  { %v7846_v8 = vpop.f32.mrf.mxu0 }
 0x68d   :  { %v6081_v46 = vadd.f32 %v11964_v48, %v5984_v59  ;;  %v7847_v62 = vadd.f32 %v7846_v8, %v7845_v12  ;;  %v8104_v48 = vpop.f32.mrf.mxu1 }
 0x68f   :  { %v6101_v27 = vmax.f32 %v6081_v46, 0.0  ;;  %v5987_v61 = vadd.f32 %v11969_v45, %v7847_v62  ;;  %v7169_v18 = vpop.f32.mrf.mxu1 }
 0x691   :  { %6117 = vst.msk [vmem:[#allocation3 + $0x111] sm:$0xff] %vm742_vm3, %v6101_v27  ;;  %v6084_v1 = vadd.f32 %v11972_v60, %v5987_v61  ;;  %v8105_v5 = vpop.f32.mrf.mxu1 }
 0x693   :  { %v6102_v52 = vmax.f32 %v6084_v1, 0.0  ;;  %v7172_v11 = vpop.f32.mrf.mxu1 }
 0x695   :  { %6118 = vst.msk [vmem:[#allocation3 + $0x121] sm:$0xff] %vm742_vm3, %v6102_v52  ;;  %v8108_v22 = vpop.f32.mrf.mxu1 }
 0x697   :  { %v7185_v6 = vpop.f32.mrf.mxu1 }
 0x698   :  { %v6485_v21 = vld [vmem:[#allocation3 + $0x112] sm:$0xff] }
 0x699   :  { %v6580_v37 = vld [vmem:[#allocation3 + $0x110] sm:$0xff]  ;;  %6531 = vrot.lane.b32.xlu0 %v6485_v21, %s8340_s24  ;;  %6788 = vst.msk [vmem:[#allocation6 + $0x148] sm:$0xff] %vm742_vm3, %v6485_v21  ;;  %v8109_v23 = vpop.f32.mrf.mxu1 }
 0x69a   :  { %v6676_v28 = vld [vmem:[#allocation3 + $0x111] sm:$0xff]  ;;  %6625 = vrot.lane.b32.xlu1 %v6580_v37, %s8341_s30  ;;  %6150 = vst.msk [vmem:[#allocation6 + $0x168] sm:$0xff] %vm742_vm3, %v6580_v37 }
 0x69b   :  { %6469 = vst.msk [vmem:[#allocation6 + $0x158] sm:$0xff] %vm742_vm3, %v6676_v28  ;;  %v7188_v61 = vpop.f32.mrf.mxu1 }
 0x69c   :  { %v6581_v54 = vld [vmem:[#allocation3 + $0x120] sm:$0xff] }
 0x69d   :  { %v6677_v4 = vld [vmem:[#allocation3 + $0x121] sm:$0xff]  ;;  %6627 = vrot.lane.b32.xlu0 %v6581_v54, %s8341_s30 }
 0x69e   :  { %v6773_v10 = vld [vmem:[#allocation3 + $0x122] sm:$0xff]  ;;  %6721 = vrot.lane.b32.xlu1 %v6676_v28, %s8339_s21  ;;  %6470 = vst.msk [vmem:[#allocation6 + $0x170] sm:$0xff] %vm742_vm3, %v6677_v4 }
 0x69f   :  { %6789 = vst.msk [vmem:[#allocation6 + $0x160] sm:$0xff] %vm742_vm3, %v6773_v10  ;;  %v7874_v35 = vpop.f32.mrf.mxu0 }
 0x6a0   :  { %v6832_v56 = vld [vmem:[#allocation6 + $0x148] sm:$0xff] }
 0x6a1   :  { %6723 = vrot.lane.b32.xlu0 %v6677_v4, %s8339_s21  ;;  %v7875_v45 = vpop.f32.mrf.mxu0  ;;  %v6859_v0 = vpack.c.bf16 %v6832_v56, %v6829_v15 }
 0x6a2   :  { %6213 = vrot.lane.b32.xlu1 %v6676_v28, %s8340_s24  ;;  %v7876_v60 = vadd.f32 %v7875_v45, %v7874_v35  ;;  %v6822_v35 = vld [vmem:[#allocation6 + $0xf8] sm:$0xff] }
 0x6a3   :  { %v7877_v14 = vpop.f32.mrf.mxu0  ;;  %8114 = vmatprep.mubr.msk.bf16.mxu1 %vm742_vm3, %v6859_v0 }
 0x6a4   :  { %v7073_v17 = vadd.f32 %v7876_v60, %v12028_v20 }
 0x6a5   :  { %6403 = vrot.lane.b32.xlu0 %v6580_v37, %s8339_s21  ;;  %v7878_v39 = vpop.f32.mrf.mxu0 }
 0x6a6   :  { %v6835_v49 = vld [vmem:[#allocation6 + $0x160] sm:$0xff]  ;;  %6309 = vrot.lane.b32.xlu1 %v6485_v21, %s8341_s30  ;;  %v7879_v41 = vadd.f32 %v7878_v39, %v7877_v14  ;;  %v7170_v42 = vadd.f32 %v7169_v18, %v7073_v17  ;;  %v6821_v18 = vld [vmem:[#allocation6 + $0xf0] sm:$0xff] }
 0x6a7   :  { %v6862_v19 = vpack.c.bf16 %v6838_v31, %v6835_v49 }
 0x6a8   :  { %v7076_v25 = vadd.f32 %v7879_v41, %v12028_v20  ;;  %v7232_v2 = vmax.f32 %v7170_v42, 0.0 }
 0x6a9   :  { %8115 = vmatmul.mubr.msk.bf16.gmra.mxu1 %vm742_vm3, %v6862_v19 }
 0x6aa   :  { %6533 = vrot.lane.b32.xlu1 %v6773_v10, %s8340_s24  ;;  %v7173_v34 = vadd.f32 %v7172_v11, %v7076_v25 }
 0x6ac   :  { %v7233_v55 = vmax.f32 %v7173_v34, 0.0 }
 0x6ae   :  { %6405 = vrot.lane.b32.xlu1 %v6581_v54, %s8339_s21  ;;  %v7248_v26 = vpack.c.bf16 %v7233_v55, %v7232_v2  ;;  %v6824_v54 = vld [vmem:[#allocation6 + $0x108] sm:$0xff] }
 0x6af   :  { %v6854_v45 = vpack.c.bf16 %v6824_v54, %v6821_v18 }
 0x6b0   :  { %8122 = vmatprep.mubr.msk.bf16.mxu1 %vm742_vm3, %v7248_v26 }
 0x6b7   :  { %v7880_v43 = vpop.f32.mrf.mxu0 }
 0x6b9   :  { %v7881_v13 = vpop.f32.mrf.mxu0 }
 0x6ba   :  { %v7882_v53 = vadd.f32 %v7881_v13, %v7880_v43 }
 0x6bb   :  { %v7883_v29 = vpop.f32.mrf.mxu0 }
 0x6bc   :  { %v7081_v30 = vadd.f32 %v7882_v53, %v12028_v20 }
 0x6bd   :  { %v7884_v16 = vpop.f32.mrf.mxu0 }
 0x6be   :  { %v7885_v3 = vadd.f32 %v7884_v16, %v7883_v29  ;;  %v7178_v24 = vadd.f32 %v8104_v48, %v7081_v30 }
 0x6c0   :  { %v7084_v7 = vadd.f32 %v7885_v3, %v12028_v20  ;;  %v7234_v32 = vmax.f32 %v7178_v24, 0.0 }
 0x6c2   :  { %v7181_v63 = vadd.f32 %v8105_v5, %v7084_v7 }
 0x6c4   :  { %v7235_v51 = vmax.f32 %v7181_v63, 0.0 }
 0x6c6   :  { %v7249_v50 = vpack.c.bf16 %v7235_v51, %v7234_v32 }
 0x6c8   :  { %8123 = vmatmul.mubr.msk.bf16.vlgmr.msra.gmra.mxu1 %vm742_vm3, %v7249_v50 }
 0x6d1   :  { %v7886_v40 = vpop.f32.mrf.mxu0 }
 0x6d3   :  { %v7887_v9 = vpop.f32.mrf.mxu0  ;;  %v6528_v57 = vpop.permute.xlu0 %6527 }
 0x6d4   :  { %v7888_v44 = vadd.f32 %v7887_v9, %v7886_v40  ;;  %v6622_v38 = vpop.permute.xlu1 %6621  ;;  %6563 = vst.msk [vmem:[#allocation6 + $0x128] sm:$0xff] %vm1343_vm5, %v6528_v57 }
 0x6d5   :  { %6658 = vst.msk [vmem:[#allocation6 + $0x110] sm:$0xff] %vm1728_vm6, %v6622_v38  ;;  %v7889_v33 = vpop.f32.mrf.mxu0 }
 0x6d6   :  { %v7089_v47 = vadd.f32 %v7888_v44, %v12028_v20 }
 0x6d7   :  { %v7890_v12 = vpop.f32.mrf.mxu0  ;;  %v6400_v8 = vpop.permute.xlu0 %6399 }
 0x6d8   :  { %v7891_v59 = vadd.f32 %v7890_v12, %v7889_v33  ;;  %v6718_v46 = vpop.permute.xlu1 %6717  ;;  %6435 = vst.msk [vmem:[#allocation6 + $0x120] sm:$0xff] %vm2113_vm7, %v6400_v8  ;;  %v7186_v62 = vadd.f32 %v7185_v6, %v7089_v47 }
 0x6d9   :  { %6754 = vst.msk [vmem:[#allocation6 + $0x110] sm:$0xff] %vm2113_vm7, %v6718_v46 }
 0x6da   :  { %v7092_v27 = vadd.f32 %v7891_v59, %v12028_v20  ;;  %v7236_v37 = vmax.f32 %v7186_v62, 0.0 }
 0x6db   :  { %v6624_v52 = vpop.permute.xlu0 %6623 }
 0x6dc   :  { %v7189_v1 = vadd.f32 %v7188_v61, %v7092_v27  ;;  %v6210_v21 = vpop.permute.xlu1 %6209  ;;  %6659 = vst.msk [vmem:[#allocation6 + $0x128] sm:$0xff] %vm1728_vm6, %v6624_v52 }
 0x6dd   :  { %6244 = vst.msk [vmem:[#allocation6 + $0x138] sm:$0xff] %vm1343_vm5, %v6210_v21 }
 0x6de   :  { %v7237_v28 = vmax.f32 %v7189_v1, 0.0 }
 0x6df   :  { %v6720_v10 = vpop.permute.xlu0 %6719  ;;  %v6827_v50 = vld [vmem:[#allocation6 + $0x120] sm:$0xff] }
 0x6e0   :  { %v7250_v4 = vpack.c.bf16 %v7237_v28, %v7236_v37  ;;  %v6306_v48 = vpop.permute.xlu1 %6305  ;;  %v6825_v15 = vld [vmem:[#allocation6 + $0x110] sm:$0xff]  ;;  %6755 = vst.msk [vmem:[#allocation6 + $0x128] sm:$0xff] %vm2113_vm7, %v6720_v10 }
 0x6e1   :  { %6340 = vst.msk [vmem:[#allocation6 + $0x138] sm:$0xff] %vm1728_vm6, %v6306_v48  ;;  %v6855_v56 = vpack.c.bf16 %v6825_v15, %v6822_v35 }
 0x6e2   :  { %8126 = vmatprep.mubr.msk.bf16.mxu1 %vm742_vm3, %v7250_v4 }
 0x6e3   :  { %7110 = vmatprep.mubr.bf16.mxu0 %v6855_v56  ;;  %v6212_v0 = vpop.permute.xlu0 %6211  ;;  %v12090_v56 = vld [vmem:[%s12196_s10] ss:$0 sm:$0xff] }
 0x6e4   :  { %v6530_v60 = vpop.permute.xlu1 %6529  ;;  %7111 = vmatmul.mubr.bf16.gmra.mxu0 %v6854_v45  ;;  %6245 = vst.msk [vmem:[#allocation6 + $0x150] sm:$0xff] %vm1343_vm5, %v6212_v0 }
 0x6e5   :  { %6564 = vst.msk [vmem:[#allocation6 + $0x140] sm:$0xff] %vm1343_vm5, %v6530_v60 }
 0x6e6   :  { %v7892_v31 = vpop.f32.mrf.mxu0 }
 0x6e7   :  { %v6308_v14 = vpop.permute.xlu0 %6307  ;;  %v6828_v63 = vld [vmem:[#allocation6 + $0x128] sm:$0xff] }
 0x6e8   :  { %6341 = vst.msk [vmem:[#allocation6 + $0x150] sm:$0xff] %vm1728_vm6, %v6308_v14  ;;  %v6402_v17 = vpop.permute.xlu1 %6401  ;;  %v7893_v49 = vpop.f32.mrf.mxu0 }
 0x6e9   :  { %6436 = vst.msk [vmem:[#allocation6 + $0x138] sm:$0xff] %vm2113_vm7, %v6402_v17  ;;  %v7894_v5 = vadd.f32 %v7893_v49, %v7892_v31 }
 0x6ea   :  { %v7895_v39 = vpop.f32.mrf.mxu0 }
 0x6eb   :  { %v7097_v19 = vadd.f32 %v7894_v5, %v12028_v20 }
 0x6ec   :  { %v7896_v41 = vpop.f32.mrf.mxu0 }
 0x6ed   :  { %v7897_v42 = vadd.f32 %v7896_v41, %v7895_v39  ;;  %v7194_v25 = vadd.f32 %v8108_v22, %v7097_v19 }
 0x6ef   :  { %v7100_v11 = vadd.f32 %v7897_v42, %v12028_v20  ;;  %v7238_v2 = vmax.f32 %v7194_v25, 0.0 }
 0x6f0   :  { %v6830_v3 = vld [vmem:[#allocation6 + $0x138] sm:$0xff] }
 0x6f1   :  { %v7197_v34 = vadd.f32 %v8109_v23, %v7100_v11  ;;  %v6857_v22 = vpack.c.bf16 %v6830_v3, %v6827_v50 }
 0x6f3   :  { %v7239_v55 = vmax.f32 %v7197_v34, 0.0 }
 0x6f5   :  { %v7251_v26 = vpack.c.bf16 %v7239_v55, %v7238_v2 }
 0x6f7   :  { %8127 = vmatmul.mubr.msk.bf16.gmra.mxu1 %vm742_vm3, %v7251_v26 }
 0x70b   :  { %v6532_v43 = vpop.permute.xlu0 %6531 }
 0x70c   :  { %v6626_v13 = vpop.permute.xlu1 %6625  ;;  %6565 = vst.msk [vmem:[#allocation6 + $0x158] sm:$0xff] %vm1343_vm5, %v6532_v43 }
 0x70d   :  { %6660 = vst.msk [vmem:[#allocation6 + $0x140] sm:$0xff] %vm1728_vm6, %v6626_v13 }
 0x70f   :  { %v6628_v53 = vpop.permute.xlu0 %6627 }
 0x710   :  { %v6722_v29 = vpop.permute.xlu1 %6721  ;;  %6661 = vst.msk [vmem:[#allocation6 + $0x158] sm:$0xff] %vm1728_vm6, %v6628_v53 }
 0x711   :  { %6756 = vst.msk [vmem:[#allocation6 + $0x140] sm:$0xff] %vm2113_vm7, %v6722_v29 }
 0x713   :  { %v6724_v30 = vpop.permute.xlu0 %6723 }
 0x714   :  { %v6214_v16 = vpop.permute.xlu1 %6213  ;;  %6757 = vst.msk [vmem:[#allocation6 + $0x158] sm:$0xff] %vm2113_vm7, %v6724_v30 }
 0x715   :  { %6246 = vst.msk [vmem:[#allocation6 + $0x168] sm:$0xff] %vm1343_vm5, %v6214_v16 }
 0x717   :  { %v6404_v24 = vpop.permute.xlu0 %6403 }
 0x718   :  { %v6310_v7 = vpop.permute.xlu1 %6309  ;;  %v6831_v32 = vld [vmem:[#allocation6 + $0x140] sm:$0xff]  ;;  %6437 = vst.msk [vmem:[#allocation6 + $0x150] sm:$0xff] %vm2113_vm7, %v6404_v24 }
 0x719   :  { %6342 = vst.msk [vmem:[#allocation6 + $0x168] sm:$0xff] %vm1728_vm6, %v6310_v7  ;;  %v6858_v51 = vpack.c.bf16 %v6831_v32, %v6828_v63 }
 0x71b   :  { %7118 = vmatprep.mubr.bf16.mxu0 %v6858_v51  ;;  %v6834_v9 = vld [vmem:[#allocation6 + $0x158] sm:$0xff] }
 0x71c   :  { %v6534_v40 = vpop.permute.xlu1 %6533  ;;  %7119 = vmatmul.mubr.bf16.gmra.mxu0 %v6857_v22 }
 0x71d   :  { %6566 = vst.msk [vmem:[#allocation6 + $0x170] sm:$0xff] %vm1343_vm5, %v6534_v40 }
 0x71e   :  { %6662 = vst.msk [vmem:[#allocation6 + $0x170] sm:$0xff] %vm1728_vm6, %v11945_v58 }
 0x71f   :  { %6758 = vst.msk [vmem:[#allocation6 + $0x170] sm:$0xff] %vm2113_vm7, %v11948_v36  ;;  %v6833_v38 = vld [vmem:[#allocation6 + $0x150] sm:$0xff] }
 0x720   :  { %v6406_v6 = vpop.permute.xlu1 %6405 }
 0x721   :  { %6438 = vst.msk [vmem:[#allocation6 + $0x168] sm:$0xff] %vm2113_vm7, %v6406_v6 }
 0x726   :  { %v6837_v44 = vld [vmem:[#allocation6 + $0x170] sm:$0xff] }
 0x727   :  { %v6861_v57 = vpack.c.bf16 %v6837_v44, %v6834_v9 }
 0x728   :  { %v6836_v33 = vld [vmem:[#allocation6 + $0x168] sm:$0xff] }
 0x729   :  { %7126 = vmatprep.mubr.bf16.mxu0 %v6861_v57  ;;  %v6860_v47 = vpack.c.bf16 %v6836_v33, %v6833_v38 }
 0x72b   :  { %7127 = vmatmul.mubr.bf16.gmra.mxu0 %v6860_v47  ;;  %v12074_v23 = vpop.f32.mrf.mxu1 }
 0x72d   :  { %v7201_v59 = vpop.f32.mrf.mxu1 }
 0x72f   :  { %v8113_v62 = vpop.f32.mrf.mxu1 }
 0x731   :  { %v7204_v21 = vpop.f32.mrf.mxu1 }
 0x745   :  { %v7898_v12 = vpop.f32.mrf.mxu0 }
 0x747   :  { %v7899_v8 = vpop.f32.mrf.mxu0 }
 0x748   :  { %v7900_v58 = vadd.f32 %v7899_v8, %v7898_v12 }
 0x749   :  { %v7901_v46 = vpop.f32.mrf.mxu0 }
 0x74a   :  { %v7105_v36 = vadd.f32 %v7900_v58, %v12028_v20 }
 0x74b   :  { %v7902_v27 = vpop.f32.mrf.mxu0 }
 0x74c   :  { %v7903_v61 = vadd.f32 %v7902_v27, %v7901_v46  ;;  %v7202_v1 = vadd.f32 %v7201_v59, %v7105_v36 }
 0x74e   :  { %v7108_v52 = vadd.f32 %v7903_v61, %v12028_v20  ;;  %v7240_v28 = vmax.f32 %v7202_v1, 0.0 }
 0x750   :  { %v7205_v37 = vadd.f32 %v7204_v21, %v7108_v52 }
 0x752   :  { %v7241_v54 = vmax.f32 %v7205_v37, 0.0 }
 0x754   :  { %v7252_v4 = vpack.c.bf16 %v7241_v54, %v7240_v28 }
 0x756   :  { %8130 = vmatprep.mubr.msk.bf16.mxu1 %vm742_vm3, %v7252_v4 }
 0x769   :  { %v12079_v10 = vpop.f32.mrf.mxu1 }
 0x76b   :  { %v12081_v48 = vpop.f32.mrf.mxu1 }
 0x76d   :  { %v12083_v35 = vpop.f32.mrf.mxu1 }
 0x76f   :  { %v12085_v15 = vpop.f32.mrf.mxu1 }
 0x788   :  { %v8124_v18 = vpop.f32.mrf.mxu1 }
 0x789   :  { %v7346_v45 = vadd.f32 %v8124_v18, %v12090_v56 }
 0x78a   :  { %v7337_v0 = vpop.f32.mrf.mxu1 }
 0x78b   :  { %v7702_v60 = vmul.f32 -1.442695, %v7346_v45  ;;  %v7338_v31 = vadd.f32 %v12090_v56, %v7337_v0 }
 0x78c   :  { %v8125_v14 = vpop.f32.mrf.mxu1 }
 0x78d   :  { %8266 = vpow2.f32 %v7702_v60  ;;  %v7700_v17 = vmul.f32 -1.442695, %v7338_v31  ;;  %v7349_v49 = vadd.f32 %v8125_v14, %v12090_v56 }
 0x78e   :  { %v7340_v5 = vpop.f32.mrf.mxu1 }
 0x78f   :  { %8268 = vpow2.f32 %v7700_v17  ;;  %v7703_v39 = vmul.f32 -1.442695, %v7349_v49  ;;  %v7341_v19 = vadd.f32 %v12090_v56, %v7340_v5 }
 0x791   :  { %8270 = vpow2.f32 %v7703_v39  ;;  %v7701_v41 = vmul.f32 -1.442695, %v7341_v19 }
 0x793   :  { %8272 = vpow2.f32 %v7701_v41 }
 0x79a   :  { %v8267_v42 = vpop.eup %8266 }
 0x79b   :  { %v7450_v25 = vadd.f32 1.0, %v8267_v42 }
 0x79c   :  { %v8269_v11 = vpop.eup %8268 }
 0x79d   :  { %8274 = vrcp.f32 %v7450_v25  ;;  %v7448_v34 = vadd.f32 1.0, %v8269_v11 }
 0x79e   :  { %v8271_v2 = vpop.eup %8270 }
 0x79f   :  { %8276 = vrcp.f32 %v7448_v34  ;;  %v7451_v55 = vadd.f32 1.0, %v8271_v2 }
 0x7a0   :  { %v8273_v26 = vpop.eup %8272 }
 0x7a1   :  { %8278 = vrcp.f32 %v7451_v55  ;;  %v7449_v43 = vadd.f32 1.0, %v8273_v26 }
 0x7a3   :  { %8280 = vrcp.f32 %v7449_v43 }
 0x7a4   :  { %v7904_v13 = vpop.f32.mrf.mxu0 }
 0x7a6   :  { %v7905_v53 = vpop.f32.mrf.mxu0 }
 0x7a7   :  { %v7906_v29 = vadd.f32 %v7905_v53, %v7904_v13 }
 0x7a8   :  { %v7907_v30 = vpop.f32.mrf.mxu0 }
 0x7a9   :  { %v7113_v16 = vadd.f32 %v7906_v29, %v12028_v20 }
 0x7aa   :  { %v7908_v3 = vpop.f32.mrf.mxu0  ;;  %v8275_v24 = vpop.eup %8274 }
 0x7ab   :  { %v7909_v7 = vadd.f32 %v7908_v3, %v7907_v30  ;;  %7499 = vst.msk [vmem:[%s12197_s11 + $0x10] sm:$0xff] %vm7496_vm9, %v8275_v24  ;;  %v7210_v32 = vadd.f32 %v12074_v23, %v7113_v16 }
 0x7ac   :  { %v8277_v63 = vpop.eup %8276 }
 0x7ad   :  { %v7116_v51 = vadd.f32 %v7909_v7, %v12028_v20  ;;  %7497 = vst.msk [vmem:[%s12197_s11] sm:$0xff] %vm7496_vm9, %v8277_v63  ;;  %v7242_v6 = vmax.f32 %v7210_v32, 0.0 }
 0x7ae   :  { %v8279_v50 = vpop.eup %8278 }
 0x7af   :  { %v7213_v22 = vadd.f32 %v8113_v62, %v7116_v51  ;;  %7500 = vst.msk [vmem:[%s12197_s11 + $0x18] sm:$0xff] %vm7496_vm9, %v8279_v50 }
 0x7b0   :  { %v8281_v40 = vpop.eup %8280 }
 0x7b1   :  { %v7243_v9 = vmax.f32 %v7213_v22, 0.0  ;;  %7498 = vst.msk [vmem:[%s12197_s11 + $0x8] sm:$0xff] %vm7496_vm9, %v8281_v40 }
 0x7b3   :  { %v7253_v44 = vpack.c.bf16 %v7243_v9, %v7242_v6 }
 0x7b5   :  { %8131 = vmatmul.mubr.msk.bf16.gmra.mxu1 %vm742_vm3, %v7253_v44 }
 0x7b7   :  { %v8128_v57 = vpop.f32.mrf.mxu1 }
 0x7b8   :  { %v7362_v38 = vadd.f32 %v8128_v57, %v12090_v56 }
 0x7b9   :  { %v7353_v33 = vpop.f32.mrf.mxu1 }
 0x7ba   :  { %v7706_v47 = vmul.f32 -1.442695, %v7362_v38  ;;  %v7354_v23 = vadd.f32 %v12090_v56, %v7353_v33 }
 0x7bb   :  { %v8129_v12 = vpop.f32.mrf.mxu1 }
 0x7bc   :  { %8282 = vpow2.f32 %v7706_v47  ;;  %v7704_v59 = vmul.f32 -1.442695, %v7354_v23  ;;  %v7365_v8 = vadd.f32 %v8129_v12, %v12090_v56 }
 0x7bd   :  { %v7356_v58 = vpop.f32.mrf.mxu1 }
 0x7be   :  { %8284 = vpow2.f32 %v7704_v59  ;;  %v7707_v46 = vmul.f32 -1.442695, %v7365_v8  ;;  %v7357_v36 = vadd.f32 %v12090_v56, %v7356_v58 }
 0x7c0   :  { %8286 = vpow2.f32 %v7707_v46  ;;  %v7705_v62 = vmul.f32 -1.442695, %v7357_v36 }
 0x7c2   :  { %8288 = vpow2.f32 %v7705_v62 }
 0x7c9   :  { %v8283_v27 = vpop.eup %8282 }
 0x7ca   :  { %v7454_v61 = vadd.f32 1.0, %v8283_v27 }
 0x7cb   :  { %v8285_v1 = vpop.eup %8284 }
 0x7cc   :  { %8290 = vrcp.f32 %v7454_v61  ;;  %v7452_v52 = vadd.f32 1.0, %v8285_v1 }
 0x7cd   :  { %v8287_v21 = vpop.eup %8286 }
 0x7ce   :  { %8292 = vrcp.f32 %v7452_v52  ;;  %v7455_v37 = vadd.f32 1.0, %v8287_v21 }
 0x7cf   :  { %v8289_v28 = vpop.eup %8288 }
 0x7d0   :  { %8294 = vrcp.f32 %v7455_v37  ;;  %v7453_v54 = vadd.f32 1.0, %v8289_v28 }
 0x7d2   :  { %8296 = vrcp.f32 %v7453_v54 }
 0x7d9   :  { %v8291_v4 = vpop.eup %8290 }
 0x7da   :  { %7503 = vst.msk [vmem:[%s12197_s11 + $0x30] sm:$0xff] %vm7496_vm9, %v8291_v4 }
 0x7db   :  { %v8293_v45 = vpop.eup %8292 }
 0x7dc   :  { %v7910_v18 = vpop.f32.mrf.mxu0  ;;  %7501 = vst.msk [vmem:[%s12197_s11 + $0x20] sm:$0xff] %vm7496_vm9, %v8293_v45 }
 0x7dd   :  { %v8295_v60 = vpop.eup %8294 }
 0x7de   :  { %v7911_v0 = vpop.f32.mrf.mxu0  ;;  %7504 = vst.msk [vmem:[%s12197_s11 + $0x38] sm:$0xff] %vm7496_vm9, %v8295_v60 }
 0x7df   :  { %v7912_v31 = vadd.f32 %v7911_v0, %v7910_v18  ;;  %v8297_v17 = vpop.eup %8296 }
 0x7e0   :  { %v7913_v14 = vpop.f32.mrf.mxu0  ;;  %7502 = vst.msk [vmem:[%s12197_s11 + $0x28] sm:$0xff] %vm7496_vm9, %v8297_v17 }
 0x7e1   :  { %v7121_v49 = vadd.f32 %v7912_v31, %v12028_v20 }
 0x7e2   :  { %v7914_v5 = vpop.f32.mrf.mxu0 }
 0x7e3   :  { %v7915_v39 = vadd.f32 %v7914_v5, %v7913_v14  ;;  %v7218_v19 = vadd.f32 %v12081_v48, %v7121_v49 }
 0x7e5   :  { %v7124_v41 = vadd.f32 %v7915_v39, %v12028_v20  ;;  %v7244_v25 = vmax.f32 %v7218_v19, 0.0 }
 0x7e7   :  { %v7221_v42 = vadd.f32 %v12085_v15, %v7124_v41 }
 0x7e9   :  { %v7245_v11 = vmax.f32 %v7221_v42, 0.0 }
 0x7eb   :  { %v7254_v34 = vpack.c.bf16 %v7245_v11, %v7244_v25  ;;  %v7916_v2 = vpop.f32.mrf.mxu0 }
 0x7ed   :  { %v7917_v55 = vpop.f32.mrf.mxu0  ;;  %8134 = vmatprep.mubr.msk.bf16.mxu1 %vm742_vm3, %v7254_v34 }
 0x7ee   :  { %v7918_v26 = vadd.f32 %v7917_v55, %v7916_v2 }
 0x7ef   :  { %v7919_v43 = vpop.f32.mrf.mxu0 }
 0x7f0   :  { %v7129_v13 = vadd.f32 %v7918_v26, %v12028_v20 }
 0x7f1   :  { %v7920_v53 = vpop.f32.mrf.mxu0 }
 0x7f2   :  { %v7921_v29 = vadd.f32 %v7920_v53, %v7919_v43  ;;  %v7226_v30 = vadd.f32 %v12079_v10, %v7129_v13 }
 0x7f4   :  { %v7132_v48 = vadd.f32 %v7921_v29, %v12028_v20  ;;  %v7246_v15 = vmax.f32 %v7226_v30, 0.0 }
 0x7f6   :  { %v7229_v16 = vadd.f32 %v12083_v35, %v7132_v48 }
 0x7f8   :  { %v7247_v3 = vmax.f32 %v7229_v16, 0.0 }
 0x7fa   :  { %v7255_v24 = vpack.c.bf16 %v7247_v3, %v7246_v15 }
 0x7fc   :  { %8135 = vmatmul.mubr.msk.bf16.gmra.mxu1 %vm742_vm3, %v7255_v24 }
 0x875   :  { %v8132_v7 = vpop.f32.mrf.mxu1 }
 0x876   :  { %v7378_v63 = vadd.f32 %v8132_v7, %v12090_v56 }
 0x877   :  { %v7369_v32 = vpop.f32.mrf.mxu1 }
 0x878   :  { %v7710_v51 = vmul.f32 -1.442695, %v7378_v63  ;;  %v7370_v50 = vadd.f32 %v12090_v56, %v7369_v32 }
 0x879   :  { %v8133_v22 = vpop.f32.mrf.mxu1 }
 0x87a   :  { %8298 = vpow2.f32 %v7710_v51  ;;  %v7708_v40 = vmul.f32 -1.442695, %v7370_v50  ;;  %v7381_v10 = vadd.f32 %v8133_v22, %v12090_v56 }
 0x87b   :  { %v7372_v20 = vpop.f32.mrf.mxu1 }
 0x87c   :  { %8300 = vpow2.f32 %v7708_v40  ;;  %v7711_v35 = vmul.f32 -1.442695, %v7381_v10  ;;  %v7373_v6 = vadd.f32 %v12090_v56, %v7372_v20 }
 0x87e   :  { %8302 = vpow2.f32 %v7711_v35  ;;  %v7709_v9 = vmul.f32 -1.442695, %v7373_v6 }
 0x880   :  { %8304 = vpow2.f32 %v7709_v9 }
 0x887   :  { %v8299_v44 = vpop.eup %8298 }
 0x888   :  { %v7458_v57 = vadd.f32 1.0, %v8299_v44 }
 0x889   :  { %v8301_v38 = vpop.eup %8300 }
 0x88a   :  { %8306 = vrcp.f32 %v7458_v57  ;;  %v7456_v33 = vadd.f32 1.0, %v8301_v38 }
 0x88b   :  { %v8303_v47 = vpop.eup %8302 }
 0x88c   :  { %8308 = vrcp.f32 %v7456_v33  ;;  %v7459_v23 = vadd.f32 1.0, %v8303_v47 }
 0x88d   :  { %v8305_v12 = vpop.eup %8304 }
 0x88e   :  { %8310 = vrcp.f32 %v7459_v23  ;;  %v7457_v59 = vadd.f32 1.0, %v8305_v12 }
 0x890   :  { %8312 = vrcp.f32 %v7457_v59 }
 0x897   :  { %v8307_v8 = vpop.eup %8306 }
 0x898   :  { %7507 = vst.msk [vmem:[%s12197_s11 + $0x50] sm:$0xff] %vm7496_vm9, %v8307_v8 }
 0x899   :  { %v8309_v58 = vpop.eup %8308 }
 0x89a   :  { %7505 = vst.msk [vmem:[%s12197_s11 + $0x40] sm:$0xff] %vm7496_vm9, %v8309_v58 }
 0x89b   :  { %v8311_v46 = vpop.eup %8310 }
 0x89c   :  { %7508 = vst.msk [vmem:[%s12197_s11 + $0x58] sm:$0xff] %vm7496_vm9, %v8311_v46 }
 0x89d   :  { %v8313_v36 = vpop.eup %8312 }
 0x89e   :  { %7506 = vst.msk [vmem:[%s12197_s11 + $0x48] sm:$0xff] %vm7496_vm9, %v8313_v36 }
 0x8bc   :  { %v8136_v62 = vpop.f32.mrf.mxu1 }
 0x8bd   :  { %v7394_v27 = vadd.f32 %v8136_v62, %v12090_v56 }
 0x8be   :  { %v7385_v61 = vpop.f32.mrf.mxu1 }
 0x8bf   :  { %v7714_v1 = vmul.f32 -1.442695, %v7394_v27  ;;  %v7386_v52 = vadd.f32 %v12090_v56, %v7385_v61 }
 0x8c0   :  { %v8137_v21 = vpop.f32.mrf.mxu1 }
 0x8c1   :  { %8314 = vpow2.f32 %v7714_v1  ;;  %v7712_v37 = vmul.f32 -1.442695, %v7386_v52  ;;  %v7397_v28 = vadd.f32 %v8137_v21, %v12090_v56 }
 0x8c2   :  { %v7388_v54 = vpop.f32.mrf.mxu1 }
 0x8c3   :  { %8316 = vpow2.f32 %v7712_v37  ;;  %v7715_v4 = vmul.f32 -1.442695, %v7397_v28  ;;  %v7389_v18 = vadd.f32 %v12090_v56, %v7388_v54 }
 0x8c5   :  { %8318 = vpow2.f32 %v7715_v4  ;;  %v7713_v45 = vmul.f32 -1.442695, %v7389_v18 }
 0x8c7   :  { %8320 = vpow2.f32 %v7713_v45 }
 0x8ce   :  { %v8315_v0 = vpop.eup %8314 }
 0x8cf   :  { %v7462_v60 = vadd.f32 1.0, %v8315_v0 }
 0x8d0   :  { %v8317_v31 = vpop.eup %8316 }
 0x8d1   :  { %8322 = vrcp.f32 %v7462_v60  ;;  %v7460_v14 = vadd.f32 1.0, %v8317_v31 }
 0x8d2   :  { %v8319_v17 = vpop.eup %8318 }
 0x8d3   :  { %8324 = vrcp.f32 %v7460_v14  ;;  %v7463_v49 = vadd.f32 1.0, %v8319_v17 }
 0x8d4   :  { %v8321_v5 = vpop.eup %8320 }
 0x8d5   :  { %8326 = vrcp.f32 %v7463_v49  ;;  %v7461_v39 = vadd.f32 1.0, %v8321_v5 }
 0x8d7   :  { %8328 = vrcp.f32 %v7461_v39 }
 0x8de   :  { %v8323_v19 = vpop.eup %8322 }
 0x8df   :  { %7511 = vst.msk [vmem:[%s12197_s11 + $0x70] sm:$0xff] %vm7496_vm9, %v8323_v19 }
 0x8e0   :  { %v8325_v56 = vpop.eup %8324 }
 0x8e1   :  { %7509 = vst.msk [vmem:[%s12197_s11 + $0x60] sm:$0xff] %vm7496_vm9, %v8325_v56 }
 0x8e2   :  { %v8327_v41 = vpop.eup %8326 }
 0x8e3   :  { %7512 = vst.msk [vmem:[%s12197_s11 + $0x78] sm:$0xff] %vm7496_vm9, %v8327_v41 }
 0x8e4   :  { %v8329_v42 = vpop.eup %8328 }
 0x8e5   :  { %7510 = vst.msk [vmem:[%s12197_s11 + $0x68] sm:$0xff] %vm7496_vm9, %v8329_v42 }

</bundles_post_ra>
